<compile_context>
chip_gen: v6e
topology: v6e:2x2x1
jax: 0.10.0
libtpu: 0.0.40
codegen_flags: <defaults>
</compile_context>

<pallas_src>
import functools

import numpy as np
import jax
import jax.numpy as jnp
from jax import lax
from jax.experimental import pallas as pl
from jax.experimental.pallas import tpu as pltpu

_VMEM_LIMIT = 32 * 1024 * 1024  # fits under v5e/v6e/v7x physical VMEM with headroom


# ----------------------------------------------------------------------------
# In-kernel per-sample GroupNorm (+ optional ReLU) over (HW, C) rows.
# ----------------------------------------------------------------------------
def _gn_sample(z, gmat2, gamma, beta, eps, relu, c):
    # Row sums on the VPU/XLU (no dense membership matrices); one fused
    # [sum(x) | sum(x^2)] (1, 2C) @ (2C, 2C) group-average matmul (lane-dense).
    s1 = jnp.sum(z, axis=0, keepdims=True)                             # (1, C)
    s2 = jnp.sum(z * z, axis=0, keepdims=True)                         # (1, C)
    s12 = jnp.concatenate([s1, s2], axis=1)                            # (1, 2C)
    stats = jnp.dot(s12, gmat2, preferred_element_type=jnp.float32)    # [mean | E[x^2]]
    mean, ex2 = stats[:, :c], stats[:, c:]
    var = jnp.maximum(ex2 - mean * mean, 0.0)                          # clamp cancellation
    scale = lax.rsqrt(var + eps)
    y = (z - mean) * (scale * gamma) + beta
    if relu:
        y = jnp.maximum(y, 0.0)
    return y


# ----------------------------------------------------------------------------
# Pallas kernels
# ----------------------------------------------------------------------------
def _conv_gn_relu_kernel(p_ref, w_ref, b_ref, g_ref, be_ref, gmat2_ref, o_ref, *, eps, c):
    # Fused per-sample: conv-as-GEMM (bf16 operands, f32 acc) + bias + GroupNorm + ReLU.
    y = jnp.dot(p_ref[0], w_ref[...], preferred_element_type=jnp.float32) + b_ref[...]
    o_ref[0] = _gn_sample(y, gmat2_ref[...], g_ref[...], be_ref[...], eps, True, c)


def _ode_rk4_kernel(x0_ref, w1_ref, w2_ref, mask_ref, tmap1_ref, tmap2_ref,
                    vecp_ref, gmat2_ref, out_ref, pad_ref,
                    *, nsteps, t0, t1, eps, h, w, c):
    # Whole ODEfunc + one RK4 step per (sample, step) grid point; out_ref doubles as the
    # resident per-sample state (constant output block index along the step axis).
    hw = h * w
    step = pl.program_id(1)

    @pl.when(step == 0)
    def _():
        out_ref[...] = x0_ref[...]
        pad_ref[...] = jnp.zeros_like(pad_ref)   # zero border rows stay zero forever

    x = out_ref[0]                                # (HW, C) f32
    vp = vecp_ref[...]                            # (8, C) packed small params
    cb1, cb2 = vp[0:1], vp[1:2]                   # conv biases
    g1, be1 = vp[2:3], vp[3:4]                    # GN1
    g2, be2 = vp[4:5], vp[5:6]                    # GN2
    g3, be3 = vp[6:7], vp[7:8]                    # GN3
    gmat2 = gmat2_ref[...]
    mask = mask_ref[...]                          # (HW, 9C) source-validity mask
    tmap1, tmap2 = tmap1_ref[...], tmap2_ref[...]  # (HW, C) folded t-channel maps

    def conv3x3(z, wc_ref, bias, tmap, t):
        # Zero-padded 3x3/stride1 conv: ONE lane-dense (HW, C) @ (C, 9C) bf16 matmul,
        # mask multiply, then 9 static row-shifted accumulations via the padded scratch.
        big = jnp.dot(z.astype(jnp.bfloat16), wc_ref[...],
                      preferred_element_type=jnp.float32)              # (HW, 9C)
        pad_ref[w + 1:w + 1 + hw, :] = big * mask
        acc = bias + t * tmap                                          # (HW, C)
        for tap in range(9):
            di, dj = tap // 3, tap % 3
            off = (di - 1) * w + (dj - 1)
            start = w + 1 + off
            acc = acc + pad_ref[start:start + hw, tap * c:(tap + 1) * c]
        return acc

    def odefunc(t, z):
        o = _gn_sample(z, gmat2, g1, be1, eps, True, c)
        o = conv3x3(o, w1_ref, cb1, tmap1, t)
        o = _gn_sample(o, gmat2, g2, be2, eps, True, c)
        o = conv3x3(o, w2_ref, cb2, tmap2, t)
        return _gn_sample(o, gmat2, g3, be3, eps, False, c)

    # RK4 with a running accumulator (fewer live (HW, C) buffers).
    dt = (t1 - t0) / nsteps
    t = t0 + step.astype(jnp.float32) * dt
    k = odefunc(t, x)
    acc = x + (dt / 6.0) * k
    k = odefunc(t + 0.5 * dt, x + (0.5 * dt) * k)
    acc = acc + (dt / 3.0) * k
    k = odefunc(t + 0.5 * dt, x + (0.5 * dt) * k)
    acc = acc + (dt / 3.0) * k
    k = odefunc(t + dt, x + dt * k)
    out_ref[0] = acc + (dt / 6.0) * k


def _gn_pool_fc_kernel(x_ref, g_ref, be_ref, gmat2_ref, fcw_ref, fcb_ref, o_ref,
                       *, hw, eps, c):
    # Fused per-sample: GroupNorm + ReLU + AdaptiveAvgPool2d((1,1)) + Flatten + Linear.
    y = _gn_sample(x_ref[0], gmat2_ref[...], g_ref[...], be_ref[...], eps, True, c)
    pooled = jnp.sum(y, axis=0, keepdims=True) * (1.0 / hw)            # (1, C)
    o_ref[0] = jnp.dot(pooled, fcw_ref[...], preferred_element_type=jnp.float32) + fcb_ref[...]


# ----------------------------------------------------------------------------
# Trace-time constants (numpy -> embedded constants under jit)
# ----------------------------------------------------------------------------
def _gn_gmat2(c, g, hw):
    """Block-diag (2C, 2C) matrix averaging channel sums within each group (x2 halves)."""
    cg = c // g
    gm = np.zeros((c, c), np.float32)
    inv = 1.0 / (cg * hw)
    for grp in range(g):
        gm[grp * cg:(grp + 1) * cg, grp * cg:(grp + 1) * cg] = inv
    full = np.zeros((2 * c, 2 * c), np.float32)
    full[:c, :c] = gm
    full[c:, c:] = gm
    return jnp.asarray(full)


def _src_valid_mask(h, w, c):
    """(HW, 9C) mask: source pixel s contributes under tap (di,dj) iff its destination
    (si-(di-1), sj-(dj-1)) is inside the image (zero-padded 3x3 conv)."""
    m = np.zeros((h * w, 9 * c), np.float32)
    for di in range(3):
        for dj in range(3):
            tap = di * 3 + dj
            for si in range(h):
                for sj in range(w):
                    ri, rj = si - (di - 1), sj - (dj - 1)
                    if 0 <= ri < h and 0 <= rj < w:
                        m[si * w + sj, tap * c:(tap + 1) * c] = 1.0
    return jnp.asarray(m)


def _t_channel_map(wt, h, w):
    """Exact contribution map of the constant-t channel through the zero-padded 3x3 conv.
    wt: (Cout, 3, 3) weight slice for the t channel.  Returns (H, W, Cout)."""
    cout = wt.shape[0]
    tm = jnp.zeros((h, w, cout), jnp.float32)
    for di in range(3):
        for dj in range(3):
            i0, i1 = max(0, 1 - di), min(h, h + 1 - di)
            j0, j1 = max(0, 1 - dj), min(w, w + 1 - dj)
            tm = tm.at[i0:i1, j0:j1, :].add(wt[:, di, dj])
    return tm


# ----------------------------------------------------------------------------
# im2col glue (NHWC, only for the 3 downsampling convs)
# ----------------------------------------------------------------------------
def _im2col_nhwc(x, k, stride, pad):
    n, h, w, c = x.shape
    if pad:
        x = jnp.pad(x, ((0, 0), (pad, pad), (pad, pad), (0, 0)))
    ho = (h + 2 * pad - k) // stride + 1
    wo = (w + 2 * pad - k) // stride + 1
    cols = []
    for i in range(k):
        for j in range(k):
            cols.append(x[:, i:i + stride * ho:stride, j:j + stride * wo:stride, :])
    patches = jnp.stack(cols, axis=3)                    # (N, Ho, Wo, k*k, C)
    return patches.reshape(n, ho * wo, k * k * c), ho, wo


# ----------------------------------------------------------------------------
# pallas_call wrappers
# ----------------------------------------------------------------------------
def conv_gn_relu(x_nhwc, w, b, gamma, beta, *, k, stride, pad, eps=1e-5):
    """Fused Conv2d + GroupNorm(min(32,C),C) + ReLU.  Per-sample grid.  Returns (N, Ho*Wo, Cout)."""
    n = x_nhwc.shape[0]
    cout = w.shape[0]
    patches, ho, wo = _im2col_nhwc(x_nhwc, k, stride, pad)         # (N, HW, k*k*Cin)
    kk = patches.shape[-1]
    kkp = ((kk + 31) // 32) * 32                                    # pad contraction dim (27 -> 32)
    if kkp != kk:
        patches = jnp.pad(patches, ((0, 0), (0, 0), (0, kkp - kk)))
    patches = patches.astype(jnp.bfloat16)
    wm = jnp.transpose(w, (2, 3, 1, 0)).reshape(kk, cout)
    if kkp != kk:
        wm = jnp.pad(wm, ((0, kkp - kk), (0, 0)))
    wm = wm.astype(jnp.bfloat16)
    hw = ho * wo
    gmat2 = _gn_gmat2(cout, min(32, cout), hw)

    out = pl.pallas_call(
        functools.partial(_conv_gn_relu_kernel, eps=eps, c=cout),
        out_shape=jax.ShapeDtypeStruct((n, hw, cout), jnp.float32),
        grid=(n,),
        in_specs=[
            pl.BlockSpec((1, hw, kkp), lambda b: (b, 0, 0)),
            pl.BlockSpec((kkp, cout), lambda b: (0, 0)),
            pl.BlockSpec((1, cout), lambda b: (0, 0)),
            pl.BlockSpec((1, cout), lambda b: (0, 0)),
            pl.BlockSpec((1, cout), lambda b: (0, 0)),
            pl.BlockSpec((2 * cout, 2 * cout), lambda b: (0, 0)),
        ],
        out_specs=pl.BlockSpec((1, hw, cout), lambda b: (b, 0, 0)),
        compiler_params=pltpu.CompilerParams(
            dimension_semantics=("parallel",), vmem_limit_bytes=_VMEM_LIMIT),
    )(patches, wm, b.reshape(1, cout), gamma.reshape(1, cout), beta.reshape(1, cout), gmat2)
    return out, ho, wo


def ode_block(x, p, h, w, *, t0=0.0, t1=1.0, nsteps=8, eps=1e-5):
    """Whole ODEBlock (fixed-step RK4) in one pallas_call.  x: (N, HW, C)."""
    n, hw, c = x.shape

    def prep_w(wfull):  # (Cout, Cin+1, 3, 3) -> (Cin, 9*Cout) with t channel dropped
        wt = jnp.transpose(wfull[:, 1:, :, :], (2, 3, 1, 0)).reshape(9, c, c)   # (tap, cin, cout)
        return jnp.transpose(wt, (1, 0, 2)).reshape(c, 9 * c).astype(jnp.bfloat16)

    w1, w2 = prep_w(p["ode_c1_w"]), prep_w(p["ode_c2_w"])
    tmap1 = _t_channel_map(p["ode_c1_w"][:, 0], h, w).reshape(hw, c)
    tmap2 = _t_channel_map(p["ode_c2_w"][:, 0], h, w).reshape(hw, c)
    mask = _src_valid_mask(h, w, c)
    gmat2 = _gn_gmat2(c, min(32, c), hw)
    vecp = jnp.stack([p["ode_c1_b"], p["ode_c2_b"],
                      p["ode_gn1_g"], p["ode_gn1_b"],
                      p["ode_gn2_g"], p["ode_gn2_b"],
                      p["ode_gn3_g"], p["ode_gn3_b"]], axis=0)          # (8, C)

    return pl.pallas_call(
        functools.partial(_ode_rk4_kernel, nsteps=nsteps, t0=float(t0), t1=float(t1),
                          eps=eps, h=h, w=w, c=c),
        out_shape=jax.ShapeDtypeStruct((n, hw, c), jnp.float32),
        grid=(n, nsteps),
        in_specs=[
            pl.BlockSpec((1, hw, c), lambda b, s: (b, 0, 0)),        # x0 (per sample)
            pl.BlockSpec((c, 9 * c), lambda b, s: (0, 0)),           # conv1 fused taps (bf16)
            pl.BlockSpec((c, 9 * c), lambda b, s: (0, 0)),           # conv2 fused taps (bf16)
            pl.BlockSpec((hw, 9 * c), lambda b, s: (0, 0)),          # source-validity mask
            pl.BlockSpec((hw, c), lambda b, s: (0, 0)),              # t-map 1
            pl.BlockSpec((hw, c), lambda b, s: (0, 0)),              # t-map 2
            pl.BlockSpec((8, c), lambda b, s: (0, 0)),               # packed biases / GN params
            pl.BlockSpec((2 * c, 2 * c), lambda b, s: (0, 0)),       # fused group-average matrix
        ],
        out_specs=pl.BlockSpec((1, hw, c), lambda b, s: (b, 0, 0)),  # resident state per sample
        scratch_shapes=[pltpu.VMEM((hw + 2 * w + 2, 9 * c), jnp.float32)],   # zero-padded shifts
        compiler_params=pltpu.CompilerParams(
            dimension_semantics=("parallel", "arbitrary"), vmem_limit_bytes=_VMEM_LIMIT),
    )(x, w1, w2, mask, tmap1, tmap2, vecp, gmat2)


def gn_pool_fc(x, gamma, beta, fc_w, fc_b, *, eps=1e-5):
    """Fused GroupNorm + ReLU + AdaptiveAvgPool2d((1,1)) + Flatten + Linear.  x: (N, HW, C)."""
    n, hw, c = x.shape
    nc = fc_w.shape[1]
    gmat2 = _gn_gmat2(c, min(32, c), hw)
    out = pl.pallas_call(
        functools.partial(_gn_pool_fc_kernel, hw=float(hw), eps=eps, c=c),
        out_shape=jax.ShapeDtypeStruct((n, 1, nc), jnp.float32),
        grid=(n,),
        in_specs=[
            pl.BlockSpec((1, hw, c), lambda b: (b, 0, 0)),
            pl.BlockSpec((1, c), lambda b: (0, 0)),
            pl.BlockSpec((1, c), lambda b: (0, 0)),
            pl.BlockSpec((2 * c, 2 * c), lambda b: (0, 0)),
            pl.BlockSpec((c, nc), lambda b: (0, 0)),
            pl.BlockSpec((1, nc), lambda b: (0, 0)),
        ],
        out_specs=pl.BlockSpec((1, 1, nc), lambda b: (b, 0, 0)),
        compiler_params=pltpu.CompilerParams(
            dimension_semantics=("parallel",), vmem_limit_bytes=_VMEM_LIMIT),
    )(x, gamma.reshape(1, c), beta.reshape(1, c), gmat2, fc_w, fc_b.reshape(1, nc))
    return out.reshape(n, nc)


# ----------------------------------------------------------------------------
# Model: parameters + forward
# ----------------------------------------------------------------------------
def init_params(key, num_classes=10):
    ks = jax.random.split(key, 8)

    def w(k, shape, scale=0.05):
        return scale * jax.random.normal(k, shape, dtype=jnp.float32)

    p = {}
    # downsampling_layers
    p["ds_c1_w"] = w(ks[0], (64, 3, 3, 3));  p["ds_c1_b"] = jnp.zeros((64,), jnp.float32)
    p["ds_c2_w"] = w(ks[1], (64, 64, 4, 4)); p["ds_c2_b"] = jnp.zeros((64,), jnp.float32)
    p["ds_c3_w"] = w(ks[2], (64, 64, 4, 4)); p["ds_c3_b"] = jnp.zeros((64,), jnp.float32)
    for name in ("ds_gn1", "ds_gn2", "ds_gn3"):
        p[name + "_g"] = jnp.ones((64,), jnp.float32)
        p[name + "_b"] = jnp.zeros((64,), jnp.float32)
    # ODEfunc(64): GN / ConcatConv(64->64) / GN / ConcatConv(64->64) / GN
    p["ode_c1_w"] = w(ks[3], (64, 65, 3, 3)); p["ode_c1_b"] = jnp.zeros((64,), jnp.float32)
    p["ode_c2_w"] = w(ks[4], (64, 65, 3, 3)); p["ode_c2_b"] = jnp.zeros((64,), jnp.float32)
    for name in ("ode_gn1", "ode_gn2", "ode_gn3"):
        p[name + "_g"] = jnp.ones((64,), jnp.float32)
        p[name + "_b"] = jnp.zeros((64,), jnp.float32)
    # fc_layers: GN / ReLU / AvgPool / Flatten / Linear(64, num_classes)
    p["fc_gn_g"] = jnp.ones((64,), jnp.float32)
    p["fc_gn_b"] = jnp.zeros((64,), jnp.float32)
    p["fc_w"] = w(ks[5], (64, num_classes))
    p["fc_b"] = jnp.zeros((num_classes,), jnp.float32)
    return p


def hybrid_ode_classifier_forward(p, x, *, nsteps=8):
    # NCHW -> NHWC once at the model boundary; downstream activations live as
    # (N, H*W, C=64) lane-dense row blocks (one block per sample).
    x = jnp.transpose(x, (0, 2, 3, 1))
    n = x.shape[0]

    # downsampling_layers (each stage: fused conv + GN + ReLU, per-sample grid)
    y, ho, wo = conv_gn_relu(x, p["ds_c1_w"], p["ds_c1_b"], p["ds_gn1_g"], p["ds_gn1_b"],
                             k=3, stride=1, pad=0)
    y = y.reshape(n, ho, wo, 64)
    y, ho, wo = conv_gn_relu(y, p["ds_c2_w"], p["ds_c2_b"], p["ds_gn2_g"], p["ds_gn2_b"],
                             k=4, stride=2, pad=1)
    y = y.reshape(n, ho, wo, 64)
    y, ho, wo = conv_gn_relu(y, p["ds_c3_w"], p["ds_c3_b"], p["ds_gn3_g"], p["ds_gn3_b"],
                             k=4, stride=2, pad=1)

    # feature_layers: ODEBlock over t = [0, 1]
    y = ode_block(y, p, ho, wo, t0=0.0, t1=1.0, nsteps=nsteps)

    # fc_layers: GN + ReLU + AvgPool + Flatten + Linear, fused
    return gn_pool_fc(y, p["fc_gn_g"], p["fc_gn_b"], p["fc_w"], p["fc_b"])


if __name__ == "__main__":
    key = jax.random.PRNGKey(0)
    kp, kx = jax.random.split(key)
    num_classes = 10
    params = init_params(kp, num_classes=num_classes)

    # Small NCHW input consistent with the module (3 input channels).
    x = jax.random.normal(kx, (2, 3, 16, 16), dtype=jnp.float32)

    fwd = jax.jit(hybrid_ode_classifier_forward)
    logits = fwd(params, x)
    jax.block_until_ready(logits)
    assert logits.shape == (2, num_classes), logits.shape
    assert bool(jnp.all(jnp.isfinite(logits)))
    print("KERNEL_OK")
</pallas_src>

<mosaic_0001>
module attributes {stable_mosaic.version = 11 : i64} {
  func.func @_conv_gn_relu_kernel(%arg0: i32, %arg1: memref<1x196x32xbf16, #tpu.memory_space<vmem>>, %arg2: memref<32x64xbf16, #tpu.memory_space<vmem>>, %arg3: memref<1x64xf32, #tpu.memory_space<vmem>>, %arg4: memref<1x64xf32, #tpu.memory_space<vmem>>, %arg5: memref<1x64xf32, #tpu.memory_space<vmem>>, %arg6: memref<128x128xf32, #tpu.memory_space<vmem>>, %arg7: memref<1x196x64xf32, #tpu.memory_space<vmem>>) attributes {dimension_semantics = [#tpu.dimension_semantics<parallel>], iteration_bounds = array<i64: 2>, scalar_prefetch = 0 : i64, scratch_operands = 0 : i64, tpu.core_type = #tpu.core_type<tc>, window_params = [{transform_indices = @transform_0, window_bounds = array<i64: 1, 196, 32>}, {pipeline_mode = #tpu.pipeline_mode<synchronous>, transform_indices = @transform_1, window_bounds = array<i64: 32, 64>}, {pipeline_mode = #tpu.pipeline_mode<synchronous>, transform_indices = @transform_2, window_bounds = array<i64: 1, 64>}, {pipeline_mode = #tpu.pipeline_mode<synchronous>, transform_indices = @transform_3, window_bounds = array<i64: 1, 64>}, {pipeline_mode = #tpu.pipeline_mode<synchronous>, transform_indices = @transform_4, window_bounds = array<i64: 1, 64>}, {pipeline_mode = #tpu.pipeline_mode<synchronous>, transform_indices = @transform_5, window_bounds = array<i64: 128, 128>}, {transform_indices = @transform_6, window_bounds = array<i64: 1, 196, 64>}]} {
    %c0 = arith.constant 0 : index
    %c0_0 = arith.constant 0 : index
    %c0_1 = arith.constant 0 : index
    %0 = vector.load %arg1[%c0, %c0_0, %c0_1] : memref<1x196x32xbf16, #tpu.memory_space<vmem>>, vector<1x196x32xbf16>
    %1 = vector.shape_cast %0 : vector<1x196x32xbf16> to vector<196x32xbf16>
    %c0_2 = arith.constant 0 : index
    %c0_3 = arith.constant 0 : index
    %2 = vector.load %arg2[%c0_2, %c0_3] : memref<32x64xbf16, #tpu.memory_space<vmem>>, vector<32x64xbf16>
    %cst = arith.constant dense<0.000000e+00> : vector<196x64xf32>
    %3 = tpu.matmul %1, %2, %cst {dimension_numbers = #tpu.dot_dimension_numbers<[1], [0], [0], [1], [0, 0, 1, 1], [], []>} : vector<196x32xbf16>, vector<32x64xbf16>, vector<196x64xf32> -> vector<196x64xf32>
    %c0_4 = arith.constant 0 : index
    %c0_5 = arith.constant 0 : index
    %4 = vector.load %arg3[%c0_4, %c0_5] : memref<1x64xf32, #tpu.memory_space<vmem>>, vector<1x64xf32>
    %5 = vector.broadcast %4 : vector<1x64xf32> to vector<196x64xf32>
    %6 = arith.addf %3, %5 : vector<196x64xf32>
    %c0_6 = arith.constant 0 : index
    %c0_7 = arith.constant 0 : index
    %7 = vector.load %arg6[%c0_6, %c0_7] : memref<128x128xf32, #tpu.memory_space<vmem>>, vector<128x128xf32>
    %c0_8 = arith.constant 0 : index
    %c0_9 = arith.constant 0 : index
    %8 = vector.load %arg4[%c0_8, %c0_9] : memref<1x64xf32, #tpu.memory_space<vmem>>, vector<1x64xf32>
    %c0_10 = arith.constant 0 : index
    %c0_11 = arith.constant 0 : index
    %9 = vector.load %arg5[%c0_10, %c0_11] : memref<1x64xf32, #tpu.memory_space<vmem>>, vector<1x64xf32>
    %cst_12 = arith.constant dense<0.000000e+00> : vector<64xf32>
    %10 = vector.multi_reduction <add>, %6, %cst_12 [0] : vector<196x64xf32> to vector<64xf32>
    %11 = vector.shape_cast %10 : vector<64xf32> to vector<1x64xf32>
    %12 = arith.mulf %6, %6 : vector<196x64xf32>
    %cst_13 = arith.constant dense<0.000000e+00> : vector<64xf32>
    %13 = vector.multi_reduction <add>, %12, %cst_13 [0] : vector<196x64xf32> to vector<64xf32>
    %14 = vector.shape_cast %13 : vector<64xf32> to vector<1x64xf32>
    %15 = tpu.concatenate %11, %14 in 1 : vector<1x64xf32>, vector<1x64xf32> -> vector<1x128xf32>
    %cst_14 = arith.constant dense<0.000000e+00> : vector<1x128xf32>
    %16 = tpu.matmul %15, %7, %cst_14 {dimension_numbers = #tpu.dot_dimension_numbers<[1], [0], [0], [1], [0, 0, 1, 1], [], []>} : vector<1x128xf32>, vector<128x128xf32>, vector<1x128xf32> -> vector<1x128xf32>
    %17 = vector.extract_strided_slice %16 {offsets = [0, 0], sizes = [1, 64], strides = [1, 1]} : vector<1x128xf32> to vector<1x64xf32>
    %18 = vector.extract_strided_slice %16 {offsets = [0, 64], sizes = [1, 64], strides = [1, 1]} : vector<1x128xf32> to vector<1x64xf32>
    %19 = arith.mulf %17, %17 : vector<1x64xf32>
    %20 = arith.subf %18, %19 : vector<1x64xf32>
    %cst_15 = arith.constant 0.000000e+00 : f32
    %21 = vector.broadcast %cst_15 : f32 to vector<1x64xf32>
    %22 = arith.maximumf %20, %21 : vector<1x64xf32>
    %cst_16 = arith.constant 9.99999974E-6 : f32
    %23 = vector.broadcast %cst_16 : f32 to vector<1x64xf32>
    %24 = arith.addf %22, %23 : vector<1x64xf32>
    %25 = math.rsqrt %24 : vector<1x64xf32>
    %26 = vector.broadcast %17 : vector<1x64xf32> to vector<196x64xf32>
    %27 = arith.subf %6, %26 : vector<196x64xf32>
    %28 = arith.mulf %25, %8 : vector<1x64xf32>
    %29 = vector.broadcast %28 : vector<1x64xf32> to vector<196x64xf32>
    %30 = arith.mulf %27, %29 : vector<196x64xf32>
    %31 = vector.broadcast %9 : vector<1x64xf32> to vector<196x64xf32>
    %32 = arith.addf %30, %31 : vector<196x64xf32>
    %cst_17 = arith.constant 0.000000e+00 : f32
    %33 = vector.broadcast %cst_17 : f32 to vector<196x64xf32>
    %34 = arith.maximumf %32, %33 : vector<196x64xf32>
    %c0_18 = arith.constant 0 : index
    %c0_19 = arith.constant 0 : index
    %c0_20 = arith.constant 0 : index
    %35 = vector.load %arg7[%c0_18, %c0_19, %c0_20] : memref<1x196x64xf32, #tpu.memory_space<vmem>>, vector<1x196x64xf32>
    %36 = vector.shape_cast %35 : vector<1x196x64xf32> to vector<196x64xf32>
    %37 = vector.shape_cast %34 : vector<196x64xf32> to vector<1x196x64xf32>
    tpu.vector_store %arg7[%c0_18, %c0_19, %c0_20], %37 {strides = array<i32>} : memref<1x196x64xf32, #tpu.memory_space<vmem>>, vector<1x196x64xf32>,
    return
  }
  func.func @transform_0(%arg0: i32) -> (i32, i32, i32) {
    %c0_i32 = arith.constant 0 : i32
    %c0_i32_0 = arith.constant 0 : i32
    %c0_i32_1 = arith.constant 0 : i32
    return %arg0, %c0_i32, %c0_i32_0 : i32, i32, i32
  }
  func.func @transform_1(%arg0: i32) -> (i32, i32) {
    %c0_i32 = arith.constant 0 : i32
    %c0_i32_0 = arith.constant 0 : i32
    %c0_i32_1 = arith.constant 0 : i32
    return %c0_i32, %c0_i32_0 : i32, i32
  }
  func.func @transform_2(%arg0: i32) -> (i32, i32) {
    %c0_i32 = arith.constant 0 : i32
    %c0_i32_0 = arith.constant 0 : i32
    %c0_i32_1 = arith.constant 0 : i32
    return %c0_i32, %c0_i32_0 : i32, i32
  }
  func.func @transform_3(%arg0: i32) -> (i32, i32) {
    %c0_i32 = arith.constant 0 : i32
    %c0_i32_0 = arith.constant 0 : i32
    %c0_i32_1 = arith.constant 0 : i32
    return %c0_i32, %c0_i32_0 : i32, i32
  }
  func.func @transform_4(%arg0: i32) -> (i32, i32) {
    %c0_i32 = arith.constant 0 : i32
    %c0_i32_0 = arith.constant 0 : i32
    %c0_i32_1 = arith.constant 0 : i32
    return %c0_i32, %c0_i32_0 : i32, i32
  }
  func.func @transform_5(%arg0: i32) -> (i32, i32) {
    %c0_i32 = arith.constant 0 : i32
    %c0_i32_0 = arith.constant 0 : i32
    %c0_i32_1 = arith.constant 0 : i32
    return %c0_i32, %c0_i32_0 : i32, i32
  }
  func.func @transform_6(%arg0: i32) -> (i32, i32, i32) {
    %c0_i32 = arith.constant 0 : i32
    %c0_i32_0 = arith.constant 0 : i32
    %c0_i32_1 = arith.constant 0 : i32
    return %arg0, %c0_i32, %c0_i32_0 : i32, i32, i32
  }
}

module attributes {stable_mosaic.version = 11 : i64} {
  func.func @_conv_gn_relu_kernel(%arg0: i32, %arg1: memref<1x49x1024xbf16, #tpu.memory_space<vmem>>, %arg2: memref<1024x64xbf16, #tpu.memory_space<vmem>>, %arg3: memref<1x64xf32, #tpu.memory_space<vmem>>, %arg4: memref<1x64xf32, #tpu.memory_space<vmem>>, %arg5: memref<1x64xf32, #tpu.memory_space<vmem>>, %arg6: memref<128x128xf32, #tpu.memory_space<vmem>>, %arg7: memref<1x49x64xf32, #tpu.memory_space<vmem>>) attributes {dimension_semantics = [#tpu.dimension_semantics<parallel>], iteration_bounds = array<i64: 2>, scalar_prefetch = 0 : i64, scratch_operands = 0 : i64, tpu.core_type = #tpu.core_type<tc>, window_params = [{transform_indices = @transform_0, window_bounds = array<i64: 1, 49, 1024>}, {pipeline_mode = #tpu.pipeline_mode<synchronous>, transform_indices = @transform_1, window_bounds = array<i64: 1024, 64>}, {pipeline_mode = #tpu.pipeline_mode<synchronous>, transform_indices = @transform_2, window_bounds = array<i64: 1, 64>}, {pipeline_mode = #tpu.pipeline_mode<synchronous>, transform_indices = @transform_3, window_bounds = array<i64: 1, 64>}, {pipeline_mode = #tpu.pipeline_mode<synchronous>, transform_indices = @transform_4, window_bounds = array<i64: 1, 64>}, {pipeline_mode = #tpu.pipeline_mode<synchronous>, transform_indices = @transform_5, window_bounds = array<i64: 128, 128>}, {transform_indices = @transform_6, window_bounds = array<i64: 1, 49, 64>}]} {
    %c0 = arith.constant 0 : index
    %c0_0 = arith.constant 0 : index
    %c0_1 = arith.constant 0 : index
    %0 = vector.load %arg1[%c0, %c0_0, %c0_1] : memref<1x49x1024xbf16, #tpu.memory_space<vmem>>, vector<1x49x1024xbf16>
    %1 = vector.shape_cast %0 : vector<1x49x1024xbf16> to vector<49x1024xbf16>
    %c0_2 = arith.constant 0 : index
    %c0_3 = arith.constant 0 : index
    %2 = vector.load %arg2[%c0_2, %c0_3] : memref<1024x64xbf16, #tpu.memory_space<vmem>>, vector<1024x64xbf16>
    %cst = arith.constant dense<0.000000e+00> : vector<49x64xf32>
    %3 = tpu.matmul %1, %2, %cst {dimension_numbers = #tpu.dot_dimension_numbers<[1], [0], [0], [1], [0, 0, 1, 1], [], []>} : vector<49x1024xbf16>, vector<1024x64xbf16>, vector<49x64xf32> -> vector<49x64xf32>
    %c0_4 = arith.constant 0 : index
    %c0_5 = arith.constant 0 : index
    %4 = vector.load %arg3[%c0_4, %c0_5] : memref<1x64xf32, #tpu.memory_space<vmem>>, vector<1x64xf32>
    %5 = vector.broadcast %4 : vector<1x64xf32> to vector<49x64xf32>
    %6 = arith.addf %3, %5 : vector<49x64xf32>
    %c0_6 = arith.constant 0 : index
    %c0_7 = arith.constant 0 : index
    %7 = vector.load %arg6[%c0_6, %c0_7] : memref<128x128xf32, #tpu.memory_space<vmem>>, vector<128x128xf32>
    %c0_8 = arith.constant 0 : index
    %c0_9 = arith.constant 0 : index
    %8 = vector.load %arg4[%c0_8, %c0_9] : memref<1x64xf32, #tpu.memory_space<vmem>>, vector<1x64xf32>
    %c0_10 = arith.constant 0 : index
    %c0_11 = arith.constant 0 : index
    %9 = vector.load %arg5[%c0_10, %c0_11] : memref<1x64xf32, #tpu.memory_space<vmem>>, vector<1x64xf32>
    %cst_12 = arith.constant dense<0.000000e+00> : vector<64xf32>
    %10 = vector.multi_reduction <add>, %6, %cst_12 [0] : vector<49x64xf32> to vector<64xf32>
    %11 = vector.shape_cast %10 : vector<64xf32> to vector<1x64xf32>
    %12 = arith.mulf %6, %6 : vector<49x64xf32>
    %cst_13 = arith.constant dense<0.000000e+00> : vector<64xf32>
    %13 = vector.multi_reduction <add>, %12, %cst_13 [0] : vector<49x64xf32> to vector<64xf32>
    %14 = vector.shape_cast %13 : vector<64xf32> to vector<1x64xf32>
    %15 = tpu.concatenate %11, %14 in 1 : vector<1x64xf32>, vector<1x64xf32> -> vector<1x128xf32>
    %cst_14 = arith.constant dense<0.000000e+00> : vector<1x128xf32>
    %16 = tpu.matmul %15, %7, %cst_14 {dimension_numbers = #tpu.dot_dimension_numbers<[1], [0], [0], [1], [0, 0, 1, 1], [], []>} : vector<1x128xf32>, vector<128x128xf32>, vector<1x128xf32> -> vector<1x128xf32>
    %17 = vector.extract_strided_slice %16 {offsets = [0, 0], sizes = [1, 64], strides = [1, 1]} : vector<1x128xf32> to vector<1x64xf32>
    %18 = vector.extract_strided_slice %16 {offsets = [0, 64], sizes = [1, 64], strides = [1, 1]} : vector<1x128xf32> to vector<1x64xf32>
    %19 = arith.mulf %17, %17 : vector<1x64xf32>
    %20 = arith.subf %18, %19 : vector<1x64xf32>
    %cst_15 = arith.constant 0.000000e+00 : f32
    %21 = vector.broadcast %cst_15 : f32 to vector<1x64xf32>
    %22 = arith.maximumf %20, %21 : vector<1x64xf32>
    %cst_16 = arith.constant 9.99999974E-6 : f32
    %23 = vector.broadcast %cst_16 : f32 to vector<1x64xf32>
    %24 = arith.addf %22, %23 : vector<1x64xf32>
    %25 = math.rsqrt %24 : vector<1x64xf32>
    %26 = vector.broadcast %17 : vector<1x64xf32> to vector<49x64xf32>
    %27 = arith.subf %6, %26 : vector<49x64xf32>
    %28 = arith.mulf %25, %8 : vector<1x64xf32>
    %29 = vector.broadcast %28 : vector<1x64xf32> to vector<49x64xf32>
    %30 = arith.mulf %27, %29 : vector<49x64xf32>
    %31 = vector.broadcast %9 : vector<1x64xf32> to vector<49x64xf32>
    %32 = arith.addf %30, %31 : vector<49x64xf32>
    %cst_17 = arith.constant 0.000000e+00 : f32
    %33 = vector.broadcast %cst_17 : f32 to vector<49x64xf32>
    %34 = arith.maximumf %32, %33 : vector<49x64xf32>
    %c0_18 = arith.constant 0 : index
    %c0_19 = arith.constant 0 : index
    %c0_20 = arith.constant 0 : index
    %35 = vector.load %arg7[%c0_18, %c0_19, %c0_20] : memref<1x49x64xf32, #tpu.memory_space<vmem>>, vector<1x49x64xf32>
    %36 = vector.shape_cast %35 : vector<1x49x64xf32> to vector<49x64xf32>
    %37 = vector.shape_cast %34 : vector<49x64xf32> to vector<1x49x64xf32>
    tpu.vector_store %arg7[%c0_18, %c0_19, %c0_20], %37 {strides = array<i32>} : memref<1x49x64xf32, #tpu.memory_space<vmem>>, vector<1x49x64xf32>,
    return
  }
  func.func @transform_0(%arg0: i32) -> (i32, i32, i32) {
    %c0_i32 = arith.constant 0 : i32
    %c0_i32_0 = arith.constant 0 : i32
    %c0_i32_1 = arith.constant 0 : i32
    return %arg0, %c0_i32, %c0_i32_0 : i32, i32, i32
  }
  func.func @transform_1(%arg0: i32) -> (i32, i32) {
    %c0_i32 = arith.constant 0 : i32
    %c0_i32_0 = arith.constant 0 : i32
    %c0_i32_1 = arith.constant 0 : i32
    return %c0_i32, %c0_i32_0 : i32, i32
  }
  func.func @transform_2(%arg0: i32) -> (i32, i32) {
    %c0_i32 = arith.constant 0 : i32
    %c0_i32_0 = arith.constant 0 : i32
    %c0_i32_1 = arith.constant 0 : i32
    return %c0_i32, %c0_i32_0 : i32, i32
  }
  func.func @transform_3(%arg0: i32) -> (i32, i32) {
    %c0_i32 = arith.constant 0 : i32
    %c0_i32_0 = arith.constant 0 : i32
    %c0_i32_1 = arith.constant 0 : i32
    return %c0_i32, %c0_i32_0 : i32, i32
  }
  func.func @transform_4(%arg0: i32) -> (i32, i32) {
    %c0_i32 = arith.constant 0 : i32
    %c0_i32_0 = arith.constant 0 : i32
    %c0_i32_1 = arith.constant 0 : i32
    return %c0_i32, %c0_i32_0 : i32, i32
  }
  func.func @transform_5(%arg0: i32) -> (i32, i32) {
    %c0_i32 = arith.constant 0 : i32
    %c0_i32_0 = arith.constant 0 : i32
    %c0_i32_1 = arith.constant 0 : i32
    return %c0_i32, %c0_i32_0 : i32, i32
  }
  func.func @transform_6(%arg0: i32) -> (i32, i32, i32) {
    %c0_i32 = arith.constant 0 : i32
    %c0_i32_0 = arith.constant 0 : i32
    %c0_i32_1 = arith.constant 0 : i32
    return %arg0, %c0_i32, %c0_i32_0 : i32, i32, i32
  }
}

module attributes {stable_mosaic.version = 11 : i64} {
  func.func @_conv_gn_relu_kernel(%arg0: i32, %arg1: memref<1x9x1024xbf16, #tpu.memory_space<vmem>>, %arg2: memref<1024x64xbf16, #tpu.memory_space<vmem>>, %arg3: memref<1x64xf32, #tpu.memory_space<vmem>>, %arg4: memref<1x64xf32, #tpu.memory_space<vmem>>, %arg5: memref<1x64xf32, #tpu.memory_space<vmem>>, %arg6: memref<128x128xf32, #tpu.memory_space<vmem>>, %arg7: memref<1x9x64xf32, #tpu.memory_space<vmem>>) attributes {dimension_semantics = [#tpu.dimension_semantics<parallel>], iteration_bounds = array<i64: 2>, scalar_prefetch = 0 : i64, scratch_operands = 0 : i64, tpu.core_type = #tpu.core_type<tc>, window_params = [{transform_indices = @transform_0, window_bounds = array<i64: 1, 9, 1024>}, {pipeline_mode = #tpu.pipeline_mode<synchronous>, transform_indices = @transform_1, window_bounds = array<i64: 1024, 64>}, {pipeline_mode = #tpu.pipeline_mode<synchronous>, transform_indices = @transform_2, window_bounds = array<i64: 1, 64>}, {pipeline_mode = #tpu.pipeline_mode<synchronous>, transform_indices = @transform_3, window_bounds = array<i64: 1, 64>}, {pipeline_mode = #tpu.pipeline_mode<synchronous>, transform_indices = @transform_4, window_bounds = array<i64: 1, 64>}, {pipeline_mode = #tpu.pipeline_mode<synchronous>, transform_indices = @transform_5, window_bounds = array<i64: 128, 128>}, {transform_indices = @transform_6, window_bounds = array<i64: 1, 9, 64>}]} {
    %c0 = arith.constant 0 : index
    %c0_0 = arith.constant 0 : index
    %c0_1 = arith.constant 0 : index
    %0 = vector.load %arg1[%c0, %c0_0, %c0_1] : memref<1x9x1024xbf16, #tpu.memory_space<vmem>>, vector<1x9x1024xbf16>
    %1 = vector.shape_cast %0 : vector<1x9x1024xbf16> to vector<9x1024xbf16>
    %c0_2 = arith.constant 0 : index
    %c0_3 = arith.constant 0 : index
    %2 = vector.load %arg2[%c0_2, %c0_3] : memref<1024x64xbf16, #tpu.memory_space<vmem>>, vector<1024x64xbf16>
    %cst = arith.constant dense<0.000000e+00> : vector<9x64xf32>
    %3 = tpu.matmul %1, %2, %cst {dimension_numbers = #tpu.dot_dimension_numbers<[1], [0], [0], [1], [0, 0, 1, 1], [], []>} : vector<9x1024xbf16>, vector<1024x64xbf16>, vector<9x64xf32> -> vector<9x64xf32>
    %c0_4 = arith.constant 0 : index
    %c0_5 = arith.constant 0 : index
    %4 = vector.load %arg3[%c0_4, %c0_5] : memref<1x64xf32, #tpu.memory_space<vmem>>, vector<1x64xf32>
    %5 = vector.broadcast %4 : vector<1x64xf32> to vector<9x64xf32>
    %6 = arith.addf %3, %5 : vector<9x64xf32>
    %c0_6 = arith.constant 0 : index
    %c0_7 = arith.constant 0 : index
    %7 = vector.load %arg6[%c0_6, %c0_7] : memref<128x128xf32, #tpu.memory_space<vmem>>, vector<128x128xf32>
    %c0_8 = arith.constant 0 : index
    %c0_9 = arith.constant 0 : index
    %8 = vector.load %arg4[%c0_8, %c0_9] : memref<1x64xf32, #tpu.memory_space<vmem>>, vector<1x64xf32>
    %c0_10 = arith.constant 0 : index
    %c0_11 = arith.constant 0 : index
    %9 = vector.load %arg5[%c0_10, %c0_11] : memref<1x64xf32, #tpu.memory_space<vmem>>, vector<1x64xf32>
    %cst_12 = arith.constant dense<0.000000e+00> : vector<64xf32>
    %10 = vector.multi_reduction <add>, %6, %cst_12 [0] : vector<9x64xf32> to vector<64xf32>
    %11 = vector.shape_cast %10 : vector<64xf32> to vector<1x64xf32>
    %12 = arith.mulf %6, %6 : vector<9x64xf32>
    %cst_13 = arith.constant dense<0.000000e+00> : vector<64xf32>
    %13 = vector.multi_reduction <add>, %12, %cst_13 [0] : vector<9x64xf32> to vector<64xf32>
    %14 = vector.shape_cast %13 : vector<64xf32> to vector<1x64xf32>
    %15 = tpu.concatenate %11, %14 in 1 : vector<1x64xf32>, vector<1x64xf32> -> vector<1x128xf32>
    %cst_14 = arith.constant dense<0.000000e+00> : vector<1x128xf32>
    %16 = tpu.matmul %15, %7, %cst_14 {dimension_numbers = #tpu.dot_dimension_numbers<[1], [0], [0], [1], [0, 0, 1, 1], [], []>} : vector<1x128xf32>, vector<128x128xf32>, vector<1x128xf32> -> vector<1x128xf32>
    %17 = vector.extract_strided_slice %16 {offsets = [0, 0], sizes = [1, 64], strides = [1, 1]} : vector<1x128xf32> to vector<1x64xf32>
    %18 = vector.extract_strided_slice %16 {offsets = [0, 64], sizes = [1, 64], strides = [1, 1]} : vector<1x128xf32> to vector<1x64xf32>
    %19 = arith.mulf %17, %17 : vector<1x64xf32>
    %20 = arith.subf %18, %19 : vector<1x64xf32>
    %cst_15 = arith.constant 0.000000e+00 : f32
    %21 = vector.broadcast %cst_15 : f32 to vector<1x64xf32>
    %22 = arith.maximumf %20, %21 : vector<1x64xf32>
    %cst_16 = arith.constant 9.99999974E-6 : f32
    %23 = vector.broadcast %cst_16 : f32 to vector<1x64xf32>
    %24 = arith.addf %22, %23 : vector<1x64xf32>
    %25 = math.rsqrt %24 : vector<1x64xf32>
    %26 = vector.broadcast %17 : vector<1x64xf32> to vector<9x64xf32>
    %27 = arith.subf %6, %26 : vector<9x64xf32>
    %28 = arith.mulf %25, %8 : vector<1x64xf32>
    %29 = vector.broadcast %28 : vector<1x64xf32> to vector<9x64xf32>
    %30 = arith.mulf %27, %29 : vector<9x64xf32>
    %31 = vector.broadcast %9 : vector<1x64xf32> to vector<9x64xf32>
    %32 = arith.addf %30, %31 : vector<9x64xf32>
    %cst_17 = arith.constant 0.000000e+00 : f32
    %33 = vector.broadcast %cst_17 : f32 to vector<9x64xf32>
    %34 = arith.maximumf %32, %33 : vector<9x64xf32>
    %c0_18 = arith.constant 0 : index
    %c0_19 = arith.constant 0 : index
    %c0_20 = arith.constant 0 : index
    %35 = vector.load %arg7[%c0_18, %c0_19, %c0_20] : memref<1x9x64xf32, #tpu.memory_space<vmem>>, vector<1x9x64xf32>
    %36 = vector.shape_cast %35 : vector<1x9x64xf32> to vector<9x64xf32>
    %37 = vector.shape_cast %34 : vector<9x64xf32> to vector<1x9x64xf32>
    tpu.vector_store %arg7[%c0_18, %c0_19, %c0_20], %37 {strides = array<i32>} : memref<1x9x64xf32, #tpu.memory_space<vmem>>, vector<1x9x64xf32>,
    return
  }
  func.func @transform_0(%arg0: i32) -> (i32, i32, i32) {
    %c0_i32 = arith.constant 0 : i32
    %c0_i32_0 = arith.constant 0 : i32
    %c0_i32_1 = arith.constant 0 : i32
    return %arg0, %c0_i32, %c0_i32_0 : i32, i32, i32
  }
  func.func @transform_1(%arg0: i32) -> (i32, i32) {
    %c0_i32 = arith.constant 0 : i32
    %c0_i32_0 = arith.constant 0 : i32
    %c0_i32_1 = arith.constant 0 : i32
    return %c0_i32, %c0_i32_0 : i32, i32
  }
  func.func @transform_2(%arg0: i32) -> (i32, i32) {
    %c0_i32 = arith.constant 0 : i32
    %c0_i32_0 = arith.constant 0 : i32
    %c0_i32_1 = arith.constant 0 : i32
    return %c0_i32, %c0_i32_0 : i32, i32
  }
  func.func @transform_3(%arg0: i32) -> (i32, i32) {
    %c0_i32 = arith.constant 0 : i32
    %c0_i32_0 = arith.constant 0 : i32
    %c0_i32_1 = arith.constant 0 : i32
    return %c0_i32, %c0_i32_0 : i32, i32
  }
  func.func @transform_4(%arg0: i32) -> (i32, i32) {
    %c0_i32 = arith.constant 0 : i32
    %c0_i32_0 = arith.constant 0 : i32
    %c0_i32_1 = arith.constant 0 : i32
    return %c0_i32, %c0_i32_0 : i32, i32
  }
  func.func @transform_5(%arg0: i32) -> (i32, i32) {
    %c0_i32 = arith.constant 0 : i32
    %c0_i32_0 = arith.constant 0 : i32
    %c0_i32_1 = arith.constant 0 : i32
    return %c0_i32, %c0_i32_0 : i32, i32
  }
  func.func @transform_6(%arg0: i32) -> (i32, i32, i32) {
    %c0_i32 = arith.constant 0 : i32
    %c0_i32_0 = arith.constant 0 : i32
    %c0_i32_1 = arith.constant 0 : i32
    return %arg0, %c0_i32, %c0_i32_0 : i32, i32, i32
  }
}

module attributes {stable_mosaic.version = 11 : i64} {
  func.func @_gn_pool_fc_kernel(%arg0: i32, %arg1: memref<1x9x64xf32, #tpu.memory_space<vmem>>, %arg2: memref<1x64xf32, #tpu.memory_space<vmem>>, %arg3: memref<1x64xf32, #tpu.memory_space<vmem>>, %arg4: memref<128x128xf32, #tpu.memory_space<vmem>>, %arg5: memref<64x10xf32, #tpu.memory_space<vmem>>, %arg6: memref<1x10xf32, #tpu.memory_space<vmem>>, %arg7: memref<1x1x10xf32, #tpu.memory_space<vmem>>) attributes {dimension_semantics = [#tpu.dimension_semantics<parallel>], iteration_bounds = array<i64: 2>, scalar_prefetch = 0 : i64, scratch_operands = 0 : i64, tpu.core_type = #tpu.core_type<tc>, window_params = [{transform_indices = @transform_0, window_bounds = array<i64: 1, 9, 64>}, {pipeline_mode = #tpu.pipeline_mode<synchronous>, transform_indices = @transform_1, window_bounds = array<i64: 1, 64>}, {pipeline_mode = #tpu.pipeline_mode<synchronous>, transform_indices = @transform_2, window_bounds = array<i64: 1, 64>}, {pipeline_mode = #tpu.pipeline_mode<synchronous>, transform_indices = @transform_3, window_bounds = array<i64: 128, 128>}, {pipeline_mode = #tpu.pipeline_mode<synchronous>, transform_indices = @transform_4, window_bounds = array<i64: 64, 10>}, {pipeline_mode = #tpu.pipeline_mode<synchronous>, transform_indices = @transform_5, window_bounds = array<i64: 1, 10>}, {transform_indices = @transform_6, window_bounds = array<i64: 1, 1, 10>}]} {
    %c0 = arith.constant 0 : index
    %c0_0 = arith.constant 0 : index
    %c0_1 = arith.constant 0 : index
    %0 = vector.load %arg1[%c0, %c0_0, %c0_1] : memref<1x9x64xf32, #tpu.memory_space<vmem>>, vector<1x9x64xf32>
    %1 = vector.shape_cast %0 : vector<1x9x64xf32> to vector<9x64xf32>
    %c0_2 = arith.constant 0 : index
    %c0_3 = arith.constant 0 : index
    %2 = vector.load %arg4[%c0_2, %c0_3] : memref<128x128xf32, #tpu.memory_space<vmem>>, vector<128x128xf32>
    %c0_4 = arith.constant 0 : index
    %c0_5 = arith.constant 0 : index
    %3 = vector.load %arg2[%c0_4, %c0_5] : memref<1x64xf32, #tpu.memory_space<vmem>>, vector<1x64xf32>
    %c0_6 = arith.constant 0 : index
    %c0_7 = arith.constant 0 : index
    %4 = vector.load %arg3[%c0_6, %c0_7] : memref<1x64xf32, #tpu.memory_space<vmem>>, vector<1x64xf32>
    %cst = arith.constant dense<0.000000e+00> : vector<64xf32>
    %5 = vector.multi_reduction <add>, %1, %cst [0] : vector<9x64xf32> to vector<64xf32>
    %6 = vector.shape_cast %5 : vector<64xf32> to vector<1x64xf32>
    %7 = arith.mulf %1, %1 : vector<9x64xf32>
    %cst_8 = arith.constant dense<0.000000e+00> : vector<64xf32>
    %8 = vector.multi_reduction <add>, %7, %cst_8 [0] : vector<9x64xf32> to vector<64xf32>
    %9 = vector.shape_cast %8 : vector<64xf32> to vector<1x64xf32>
    %10 = tpu.concatenate %6, %9 in 1 : vector<1x64xf32>, vector<1x64xf32> -> vector<1x128xf32>
    %cst_9 = arith.constant dense<0.000000e+00> : vector<1x128xf32>
    %11 = tpu.matmul %10, %2, %cst_9 {dimension_numbers = #tpu.dot_dimension_numbers<[1], [0], [0], [1], [0, 0, 1, 1], [], []>} : vector<1x128xf32>, vector<128x128xf32>, vector<1x128xf32> -> vector<1x128xf32>
    %12 = vector.extract_strided_slice %11 {offsets = [0, 0], sizes = [1, 64], strides = [1, 1]} : vector<1x128xf32> to vector<1x64xf32>
    %13 = vector.extract_strided_slice %11 {offsets = [0, 64], sizes = [1, 64], strides = [1, 1]} : vector<1x128xf32> to vector<1x64xf32>
    %14 = arith.mulf %12, %12 : vector<1x64xf32>
    %15 = arith.subf %13, %14 : vector<1x64xf32>
    %cst_10 = arith.constant 0.000000e+00 : f32
    %16 = vector.broadcast %cst_10 : f32 to vector<1x64xf32>
    %17 = arith.maximumf %15, %16 : vector<1x64xf32>
    %cst_11 = arith.constant 9.99999974E-6 : f32
    %18 = vector.broadcast %cst_11 : f32 to vector<1x64xf32>
    %19 = arith.addf %17, %18 : vector<1x64xf32>
    %20 = math.rsqrt %19 : vector<1x64xf32>
    %21 = vector.broadcast %12 : vector<1x64xf32> to vector<9x64xf32>
    %22 = arith.subf %1, %21 : vector<9x64xf32>
    %23 = arith.mulf %20, %3 : vector<1x64xf32>
    %24 = vector.broadcast %23 : vector<1x64xf32> to vector<9x64xf32>
    %25 = arith.mulf %22, %24 : vector<9x64xf32>
    %26 = vector.broadcast %4 : vector<1x64xf32> to vector<9x64xf32>
    %27 = arith.addf %25, %26 : vector<9x64xf32>
    %cst_12 = arith.constant 0.000000e+00 : f32
    %28 = vector.broadcast %cst_12 : f32 to vector<9x64xf32>
    %29 = arith.maximumf %27, %28 : vector<9x64xf32>
    %cst_13 = arith.constant dense<0.000000e+00> : vector<64xf32>
    %30 = vector.multi_reduction <add>, %29, %cst_13 [0] : vector<9x64xf32> to vector<64xf32>
    %31 = vector.shape_cast %30 : vector<64xf32> to vector<1x64xf32>
    %cst_14 = arith.constant 0.111111112 : f32
    %32 = vector.broadcast %cst_14 : f32 to vector<1x64xf32>
    %33 = arith.mulf %31, %32 : vector<1x64xf32>
    %c0_15 = arith.constant 0 : index
    %c0_16 = arith.constant 0 : index
    %34 = vector.load %arg5[%c0_15, %c0_16] : memref<64x10xf32, #tpu.memory_space<vmem>>, vector<64x10xf32>
    %cst_17 = arith.constant dense<0.000000e+00> : vector<1x10xf32>
    %35 = tpu.matmul %33, %34, %cst_17 {dimension_numbers = #tpu.dot_dimension_numbers<[1], [0], [0], [1], [0, 0, 1, 1], [], []>} : vector<1x64xf32>, vector<64x10xf32>, vector<1x10xf32> -> vector<1x10xf32>
    %c0_18 = arith.constant 0 : index
    %c0_19 = arith.constant 0 : index
    %36 = vector.load %arg6[%c0_18, %c0_19] : memref<1x10xf32, #tpu.memory_space<vmem>>, vector<1x10xf32>
    %37 = arith.addf %35, %36 : vector<1x10xf32>
    %c0_20 = arith.constant 0 : index
    %c0_21 = arith.constant 0 : index
    %c0_22 = arith.constant 0 : index
    %38 = vector.load %arg7[%c0_20, %c0_21, %c0_22] : memref<1x1x10xf32, #tpu.memory_space<vmem>>, vector<1x1x10xf32>
    %39 = vector.shape_cast %38 : vector<1x1x10xf32> to vector<1x10xf32>
    %40 = vector.shape_cast %37 : vector<1x10xf32> to vector<1x1x10xf32>
    tpu.vector_store %arg7[%c0_20, %c0_21, %c0_22], %40 {strides = array<i32>} : memref<1x1x10xf32, #tpu.memory_space<vmem>>, vector<1x1x10xf32>,
    return
  }
  func.func @transform_0(%arg0: i32) -> (i32, i32, i32) {
    %c0_i32 = arith.constant 0 : i32
    %c0_i32_0 = arith.constant 0 : i32
    %c0_i32_1 = arith.constant 0 : i32
    return %arg0, %c0_i32, %c0_i32_0 : i32, i32, i32
  }
  func.func @transform_1(%arg0: i32) -> (i32, i32) {
    %c0_i32 = arith.constant 0 : i32
    %c0_i32_0 = arith.constant 0 : i32
    %c0_i32_1 = arith.constant 0 : i32
    return %c0_i32, %c0_i32_0 : i32, i32
  }
  func.func @transform_2(%arg0: i32) -> (i32, i32) {
    %c0_i32 = arith.constant 0 : i32
    %c0_i32_0 = arith.constant 0 : i32
    %c0_i32_1 = arith.constant 0 : i32
    return %c0_i32, %c0_i32_0 : i32, i32
  }
  func.func @transform_3(%arg0: i32) -> (i32, i32) {
    %c0_i32 = arith.constant 0 : i32
    %c0_i32_0 = arith.constant 0 : i32
    %c0_i32_1 = arith.constant 0 : i32
    return %c0_i32, %c0_i32_0 : i32, i32
  }
  func.func @transform_4(%arg0: i32) -> (i32, i32) {
    %c0_i32 = arith.constant 0 : i32
    %c0_i32_0 = arith.constant 0 : i32
    %c0_i32_1 = arith.constant 0 : i32
    return %c0_i32, %c0_i32_0 : i32, i32
  }
  func.func @transform_5(%arg0: i32) -> (i32, i32) {
    %c0_i32 = arith.constant 0 : i32
    %c0_i32_0 = arith.constant 0 : i32
    %c0_i32_1 = arith.constant 0 : i32
    return %c0_i32, %c0_i32_0 : i32, i32
  }
  func.func @transform_6(%arg0: i32) -> (i32, i32, i32) {
    %c0_i32 = arith.constant 0 : i32
    %c0_i32_0 = arith.constant 0 : i32
    %c0_i32_1 = arith.constant 0 : i32
    return %arg0, %c0_i32, %c0_i32_0 : i32, i32, i32
  }
}

module attributes {stable_mosaic.version = 11 : i64} {
  func.func @_ode_rk4_kernel(%arg0: i32, %arg1: i32, %arg2: memref<1x9x64xf32, #tpu.memory_space<vmem>>, %arg3: memref<64x576xbf16, #tpu.memory_space<vmem>>, %arg4: memref<64x576xbf16, #tpu.memory_space<vmem>>, %arg5: memref<9x576xf32, #tpu.memory_space<vmem>>, %arg6: memref<9x64xf32, #tpu.memory_space<vmem>>, %arg7: memref<9x64xf32, #tpu.memory_space<vmem>>, %arg8: memref<8x64xf32, #tpu.memory_space<vmem>>, %arg9: memref<128x128xf32, #tpu.memory_space<vmem>>, %arg10: memref<1x9x64xf32, #tpu.memory_space<vmem>>, %arg11: memref<17x576xf32, #tpu.memory_space<vmem>>) attributes {dimension_semantics = [#tpu.dimension_semantics<parallel>, #tpu.dimension_semantics<arbitrary>], iteration_bounds = array<i64: 2, 8>, scalar_prefetch = 0 : i64, scratch_operands = 1 : i64, tpu.core_type = #tpu.core_type<tc>, window_params = [{transform_indices = @transform_0, window_bounds = array<i64: 1, 9, 64>}, {pipeline_mode = #tpu.pipeline_mode<synchronous>, transform_indices = @transform_1, window_bounds = array<i64: 64, 576>}, {pipeline_mode = #tpu.pipeline_mode<synchronous>, transform_indices = @transform_2, window_bounds = array<i64: 64, 576>}, {pipeline_mode = #tpu.pipeline_mode<synchronous>, transform_indices = @transform_3, window_bounds = array<i64: 9, 576>}, {pipeline_mode = #tpu.pipeline_mode<synchronous>, transform_indices = @transform_4, window_bounds = array<i64: 9, 64>}, {pipeline_mode = #tpu.pipeline_mode<synchronous>, transform_indices = @transform_5, window_bounds = array<i64: 9, 64>}, {pipeline_mode = #tpu.pipeline_mode<synchronous>, transform_indices = @transform_6, window_bounds = array<i64: 8, 64>}, {pipeline_mode = #tpu.pipeline_mode<synchronous>, transform_indices = @transform_7, window_bounds = array<i64: 128, 128>}, {transform_indices = @transform_8, window_bounds = array<i64: 1, 9, 64>}]} {
    %c0_i32 = arith.constant 0 : i32
    %0 = arith.cmpi eq, %arg1, %c0_i32 : i32
    %1 = arith.extui %0 : i1 to i32
    %c0_i32_0 = arith.constant 0 : i32
    %2 = arith.cmpi ne, %1, %c0_i32_0 : i32
    scf.if %2 {
      %c0_263 = arith.constant 0 : index
      %c0_264 = arith.constant 0 : index
      %c0_265 = arith.constant 0 : index
      %556 = vector.load %arg2[%c0_263, %c0_264, %c0_265] : memref<1x9x64xf32, #tpu.memory_space<vmem>>, vector<1x9x64xf32>
      %c0_266 = arith.constant 0 : index
      %c0_267 = arith.constant 0 : index
      %c0_268 = arith.constant 0 : index
      %557 = vector.load %arg10[%c0_266, %c0_267, %c0_268] : memref<1x9x64xf32, #tpu.memory_space<vmem>>, vector<1x9x64xf32>
      tpu.vector_store %arg10[%c0_266, %c0_267, %c0_268], %556 {strides = array<i32>} : memref<1x9x64xf32, #tpu.memory_space<vmem>>, vector<1x9x64xf32>,
      %cst_269 = arith.constant 0.000000e+00 : f32
      %558 = vector.broadcast %cst_269 : f32 to vector<17x576xf32>
      %c0_270 = arith.constant 0 : index
      %c0_271 = arith.constant 0 : index
      %559 = vector.load %arg11[%c0_270, %c0_271] : memref<17x576xf32, #tpu.memory_space<vmem>>, vector<17x576xf32>
      tpu.vector_store %arg11[%c0_270, %c0_271], %558 {strides = array<i32>} : memref<17x576xf32, #tpu.memory_space<vmem>>, vector<17x576xf32>,
    } else {
    }
    %c0 = arith.constant 0 : index
    %c0_1 = arith.constant 0 : index
    %c0_2 = arith.constant 0 : index
    %3 = vector.load %arg10[%c0, %c0_1, %c0_2] : memref<1x9x64xf32, #tpu.memory_space<vmem>>, vector<1x9x64xf32>
    %4 = vector.shape_cast %3 : vector<1x9x64xf32> to vector<9x64xf32>
    %c0_3 = arith.constant 0 : index
    %c0_4 = arith.constant 0 : index
    %5 = vector.load %arg8[%c0_3, %c0_4] : memref<8x64xf32, #tpu.memory_space<vmem>>, vector<8x64xf32>
    %6 = vector.extract_strided_slice %5 {offsets = [0, 0], sizes = [1, 64], strides = [1, 1]} : vector<8x64xf32> to vector<1x64xf32>
    %7 = vector.extract_strided_slice %5 {offsets = [1, 0], sizes = [1, 64], strides = [1, 1]} : vector<8x64xf32> to vector<1x64xf32>
    %8 = vector.extract_strided_slice %5 {offsets = [2, 0], sizes = [1, 64], strides = [1, 1]} : vector<8x64xf32> to vector<1x64xf32>
    %9 = vector.extract_strided_slice %5 {offsets = [3, 0], sizes = [1, 64], strides = [1, 1]} : vector<8x64xf32> to vector<1x64xf32>
    %10 = vector.extract_strided_slice %5 {offsets = [4, 0], sizes = [1, 64], strides = [1, 1]} : vector<8x64xf32> to vector<1x64xf32>
    %11 = vector.extract_strided_slice %5 {offsets = [5, 0], sizes = [1, 64], strides = [1, 1]} : vector<8x64xf32> to vector<1x64xf32>
    %12 = vector.extract_strided_slice %5 {offsets = [6, 0], sizes = [1, 64], strides = [1, 1]} : vector<8x64xf32> to vector<1x64xf32>
    %13 = vector.extract_strided_slice %5 {offsets = [7, 0], sizes = [1, 64], strides = [1, 1]} : vector<8x64xf32> to vector<1x64xf32>
    %c0_5 = arith.constant 0 : index
    %c0_6 = arith.constant 0 : index
    %14 = vector.load %arg9[%c0_5, %c0_6] : memref<128x128xf32, #tpu.memory_space<vmem>>, vector<128x128xf32>
    %c0_7 = arith.constant 0 : index
    %c0_8 = arith.constant 0 : index
    %15 = vector.load %arg5[%c0_7, %c0_8] : memref<9x576xf32, #tpu.memory_space<vmem>>, vector<9x576xf32>
    %c0_9 = arith.constant 0 : index
    %c0_10 = arith.constant 0 : index
    %16 = vector.load %arg6[%c0_9, %c0_10] : memref<9x64xf32, #tpu.memory_space<vmem>>, vector<9x64xf32>
    %c0_11 = arith.constant 0 : index
    %c0_12 = arith.constant 0 : index
    %17 = vector.load %arg7[%c0_11, %c0_12] : memref<9x64xf32, #tpu.memory_space<vmem>>, vector<9x64xf32>
    %18 = arith.sitofp %arg1 : i32 to f32
    %cst = arith.constant 1.250000e-01 : f32
    %19 = arith.mulf %18, %cst : f32
    %cst_13 = arith.constant 0.000000e+00 : f32
    %20 = arith.addf %cst_13, %19 : f32
    %cst_14 = arith.constant dense<0.000000e+00> : vector<64xf32>
    %21 = vector.multi_reduction <add>, %4, %cst_14 [0] : vector<9x64xf32> to vector<64xf32>
    %22 = vector.shape_cast %21 : vector<64xf32> to vector<1x64xf32>
    %23 = arith.mulf %4, %4 : vector<9x64xf32>
    %cst_15 = arith.constant dense<0.000000e+00> : vector<64xf32>
    %24 = vector.multi_reduction <add>, %23, %cst_15 [0] : vector<9x64xf32> to vector<64xf32>
    %25 = vector.shape_cast %24 : vector<64xf32> to vector<1x64xf32>
    %26 = tpu.concatenate %22, %25 in 1 : vector<1x64xf32>, vector<1x64xf32> -> vector<1x128xf32>
    %cst_16 = arith.constant dense<0.000000e+00> : vector<1x128xf32>
    %27 = tpu.matmul %26, %14, %cst_16 {dimension_numbers = #tpu.dot_dimension_numbers<[1], [0], [0], [1], [0, 0, 1, 1], [], []>} : vector<1x128xf32>, vector<128x128xf32>, vector<1x128xf32> -> vector<1x128xf32>
    %28 = vector.extract_strided_slice %27 {offsets = [0, 0], sizes = [1, 64], strides = [1, 1]} : vector<1x128xf32> to vector<1x64xf32>
    %29 = vector.extract_strided_slice %27 {offsets = [0, 64], sizes = [1, 64], strides = [1, 1]} : vector<1x128xf32> to vector<1x64xf32>
    %30 = arith.mulf %28, %28 : vector<1x64xf32>
    %31 = arith.subf %29, %30 : vector<1x64xf32>
    %cst_17 = arith.constant 0.000000e+00 : f32
    %32 = vector.broadcast %cst_17 : f32 to vector<1x64xf32>
    %33 = arith.maximumf %31, %32 : vector<1x64xf32>
    %cst_18 = arith.constant 9.99999974E-6 : f32
    %34 = vector.broadcast %cst_18 : f32 to vector<1x64xf32>
    %35 = arith.addf %33, %34 : vector<1x64xf32>
    %36 = math.rsqrt %35 : vector<1x64xf32>
    %37 = vector.broadcast %28 : vector<1x64xf32> to vector<9x64xf32>
    %38 = arith.subf %4, %37 : vector<9x64xf32>
    %39 = arith.mulf %36, %8 : vector<1x64xf32>
    %40 = vector.broadcast %39 : vector<1x64xf32> to vector<9x64xf32>
    %41 = arith.mulf %38, %40 : vector<9x64xf32>
    %42 = vector.broadcast %9 : vector<1x64xf32> to vector<9x64xf32>
    %43 = arith.addf %41, %42 : vector<9x64xf32>
    %cst_19 = arith.constant 0.000000e+00 : f32
    %44 = vector.broadcast %cst_19 : f32 to vector<9x64xf32>
    %45 = arith.maximumf %43, %44 : vector<9x64xf32>
    %46 = arith.truncf %45 : vector<9x64xf32> to vector<9x64xbf16>
    %c0_20 = arith.constant 0 : index
    %c0_21 = arith.constant 0 : index
    %47 = vector.load %arg3[%c0_20, %c0_21] : memref<64x576xbf16, #tpu.memory_space<vmem>>, vector<64x576xbf16>
    %cst_22 = arith.constant dense<0.000000e+00> : vector<9x576xf32>
    %48 = tpu.matmul %46, %47, %cst_22 {dimension_numbers = #tpu.dot_dimension_numbers<[1], [0], [0], [1], [0, 0, 1, 1], [], []>} : vector<9x64xbf16>, vector<64x576xbf16>, vector<9x576xf32> -> vector<9x576xf32>
    %49 = arith.mulf %48, %15 : vector<9x576xf32>
    %c4 = arith.constant 4 : index
    %c0_23 = arith.constant 0 : index
    %50 = vector.load %arg11[%c4, %c0_23] : memref<17x576xf32, #tpu.memory_space<vmem>>, vector<9x576xf32>
    tpu.vector_store %arg11[%c4, %c0_23], %49 {strides = array<i32>} : memref<17x576xf32, #tpu.memory_space<vmem>>, vector<9x576xf32>,
    %51 = vector.broadcast %20 : f32 to vector<9x64xf32>
    %52 = arith.mulf %51, %16 : vector<9x64xf32>
    %53 = vector.broadcast %6 : vector<1x64xf32> to vector<9x64xf32>
    %54 = arith.addf %53, %52 : vector<9x64xf32>
    %c0_24 = arith.constant 0 : index
    %c0_25 = arith.constant 0 : index
    %55 = vector.load %arg11[%c0_24, %c0_25] : memref<17x576xf32, #tpu.memory_space<vmem>>, vector<9x64xf32>
    %56 = arith.addf %54, %55 : vector<9x64xf32>
    %c1 = arith.constant 1 : index
    %c64 = arith.constant 64 : index
    %57 = vector.load %arg11[%c1, %c64] : memref<17x576xf32, #tpu.memory_space<vmem>>, vector<9x64xf32>
    %58 = arith.addf %56, %57 : vector<9x64xf32>
    %c2 = arith.constant 2 : index
    %c128 = arith.constant 128 : index
    %59 = vector.load %arg11[%c2, %c128] : memref<17x576xf32, #tpu.memory_space<vmem>>, vector<9x64xf32>
    %60 = arith.addf %58, %59 : vector<9x64xf32>
    %c3 = arith.constant 3 : index
    %c192 = arith.constant 192 : index
    %61 = vector.load %arg11[%c3, %c192] : memref<17x576xf32, #tpu.memory_space<vmem>>, vector<9x64xf32>
    %62 = arith.addf %60, %61 : vector<9x64xf32>
    %c4_26 = arith.constant 4 : index
    %c256 = arith.constant 256 : index
    %63 = vector.load %arg11[%c4_26, %c256] : memref<17x576xf32, #tpu.memory_space<vmem>>, vector<9x64xf32>
    %64 = arith.addf %62, %63 : vector<9x64xf32>
    %c5 = arith.constant 5 : index
    %c320 = arith.constant 320 : index
    %65 = vector.load %arg11[%c5, %c320] : memref<17x576xf32, #tpu.memory_space<vmem>>, vector<9x64xf32>
    %66 = arith.addf %64, %65 : vector<9x64xf32>
    %c6 = arith.constant 6 : index
    %c384 = arith.constant 384 : index
    %67 = vector.load %arg11[%c6, %c384] : memref<17x576xf32, #tpu.memory_space<vmem>>, vector<9x64xf32>
    %68 = arith.addf %66, %67 : vector<9x64xf32>
    %c7 = arith.constant 7 : index
    %c448 = arith.constant 448 : index
    %69 = vector.load %arg11[%c7, %c448] : memref<17x576xf32, #tpu.memory_space<vmem>>, vector<9x64xf32>
    %70 = arith.addf %68, %69 : vector<9x64xf32>
    %c8 = arith.constant 8 : index
    %c512 = arith.constant 512 : index
    %71 = vector.load %arg11[%c8, %c512] : memref<17x576xf32, #tpu.memory_space<vmem>>, vector<9x64xf32>
    %72 = arith.addf %70, %71 : vector<9x64xf32>
    %cst_27 = arith.constant dense<0.000000e+00> : vector<64xf32>
    %73 = vector.multi_reduction <add>, %72, %cst_27 [0] : vector<9x64xf32> to vector<64xf32>
    %74 = vector.shape_cast %73 : vector<64xf32> to vector<1x64xf32>
    %75 = arith.mulf %72, %72 : vector<9x64xf32>
    %cst_28 = arith.constant dense<0.000000e+00> : vector<64xf32>
    %76 = vector.multi_reduction <add>, %75, %cst_28 [0] : vector<9x64xf32> to vector<64xf32>
    %77 = vector.shape_cast %76 : vector<64xf32> to vector<1x64xf32>
    %78 = tpu.concatenate %74, %77 in 1 : vector<1x64xf32>, vector<1x64xf32> -> vector<1x128xf32>
    %cst_29 = arith.constant dense<0.000000e+00> : vector<1x128xf32>
    %79 = tpu.matmul %78, %14, %cst_29 {dimension_numbers = #tpu.dot_dimension_numbers<[1], [0], [0], [1], [0, 0, 1, 1], [], []>} : vector<1x128xf32>, vector<128x128xf32>, vector<1x128xf32> -> vector<1x128xf32>
    %80 = vector.extract_strided_slice %79 {offsets = [0, 0], sizes = [1, 64], strides = [1, 1]} : vector<1x128xf32> to vector<1x64xf32>
    %81 = vector.extract_strided_slice %79 {offsets = [0, 64], sizes = [1, 64], strides = [1, 1]} : vector<1x128xf32> to vector<1x64xf32>
    %82 = arith.mulf %80, %80 : vector<1x64xf32>
    %83 = arith.subf %81, %82 : vector<1x64xf32>
    %cst_30 = arith.constant 0.000000e+00 : f32
    %84 = vector.broadcast %cst_30 : f32 to vector<1x64xf32>
    %85 = arith.maximumf %83, %84 : vector<1x64xf32>
    %cst_31 = arith.constant 9.99999974E-6 : f32
    %86 = vector.broadcast %cst_31 : f32 to vector<1x64xf32>
    %87 = arith.addf %85, %86 : vector<1x64xf32>
    %88 = math.rsqrt %87 : vector<1x64xf32>
    %89 = vector.broadcast %80 : vector<1x64xf32> to vector<9x64xf32>
    %90 = arith.subf %72, %89 : vector<9x64xf32>
    %91 = arith.mulf %88, %10 : vector<1x64xf32>
    %92 = vector.broadcast %91 : vector<1x64xf32> to vector<9x64xf32>
    %93 = arith.mulf %90, %92 : vector<9x64xf32>
    %94 = vector.broadcast %11 : vector<1x64xf32> to vector<9x64xf32>
    %95 = arith.addf %93, %94 : vector<9x64xf32>
    %cst_32 = arith.constant 0.000000e+00 : f32
    %96 = vector.broadcast %cst_32 : f32 to vector<9x64xf32>
    %97 = arith.maximumf %95, %96 : vector<9x64xf32>
    %98 = arith.truncf %97 : vector<9x64xf32> to vector<9x64xbf16>
    %c0_33 = arith.constant 0 : index
    %c0_34 = arith.constant 0 : index
    %99 = vector.load %arg4[%c0_33, %c0_34] : memref<64x576xbf16, #tpu.memory_space<vmem>>, vector<64x576xbf16>
    %cst_35 = arith.constant dense<0.000000e+00> : vector<9x576xf32>
    %100 = tpu.matmul %98, %99, %cst_35 {dimension_numbers = #tpu.dot_dimension_numbers<[1], [0], [0], [1], [0, 0, 1, 1], [], []>} : vector<9x64xbf16>, vector<64x576xbf16>, vector<9x576xf32> -> vector<9x576xf32>
    %101 = arith.mulf %100, %15 : vector<9x576xf32>
    %c4_36 = arith.constant 4 : index
    %c0_37 = arith.constant 0 : index
    %102 = vector.load %arg11[%c4_36, %c0_37] : memref<17x576xf32, #tpu.memory_space<vmem>>, vector<9x576xf32>
    tpu.vector_store %arg11[%c4_36, %c0_37], %101 {strides = array<i32>} : memref<17x576xf32, #tpu.memory_space<vmem>>, vector<9x576xf32>,
    %103 = vector.broadcast %20 : f32 to vector<9x64xf32>
    %104 = arith.mulf %103, %17 : vector<9x64xf32>
    %105 = vector.broadcast %7 : vector<1x64xf32> to vector<9x64xf32>
    %106 = arith.addf %105, %104 : vector<9x64xf32>
    %c0_38 = arith.constant 0 : index
    %c0_39 = arith.constant 0 : index
    %107 = vector.load %arg11[%c0_38, %c0_39] : memref<17x576xf32, #tpu.memory_space<vmem>>, vector<9x64xf32>
    %108 = arith.addf %106, %107 : vector<9x64xf32>
    %c1_40 = arith.constant 1 : index
    %c64_41 = arith.constant 64 : index
    %109 = vector.load %arg11[%c1_40, %c64_41] : memref<17x576xf32, #tpu.memory_space<vmem>>, vector<9x64xf32>
    %110 = arith.addf %108, %109 : vector<9x64xf32>
    %c2_42 = arith.constant 2 : index
    %c128_43 = arith.constant 128 : index
    %111 = vector.load %arg11[%c2_42, %c128_43] : memref<17x576xf32, #tpu.memory_space<vmem>>, vector<9x64xf32>
    %112 = arith.addf %110, %111 : vector<9x64xf32>
    %c3_44 = arith.constant 3 : index
    %c192_45 = arith.constant 192 : index
    %113 = vector.load %arg11[%c3_44, %c192_45] : memref<17x576xf32, #tpu.memory_space<vmem>>, vector<9x64xf32>
    %114 = arith.addf %112, %113 : vector<9x64xf32>
    %c4_46 = arith.constant 4 : index
    %c256_47 = arith.constant 256 : index
    %115 = vector.load %arg11[%c4_46, %c256_47] : memref<17x576xf32, #tpu.memory_space<vmem>>, vector<9x64xf32>
    %116 = arith.addf %114, %115 : vector<9x64xf32>
    %c5_48 = arith.constant 5 : index
    %c320_49 = arith.constant 320 : index
    %117 = vector.load %arg11[%c5_48, %c320_49] : memref<17x576xf32, #tpu.memory_space<vmem>>, vector<9x64xf32>
    %118 = arith.addf %116, %117 : vector<9x64xf32>
    %c6_50 = arith.constant 6 : index
    %c384_51 = arith.constant 384 : index
    %119 = vector.load %arg11[%c6_50, %c384_51] : memref<17x576xf32, #tpu.memory_space<vmem>>, vector<9x64xf32>
    %120 = arith.addf %118, %119 : vector<9x64xf32>
    %c7_52 = arith.constant 7 : index
    %c448_53 = arith.constant 448 : index
    %121 = vector.load %arg11[%c7_52, %c448_53] : memref<17x576xf32, #tpu.memory_space<vmem>>, vector<9x64xf32>
    %122 = arith.addf %120, %121 : vector<9x64xf32>
    %c8_54 = arith.constant 8 : index
    %c512_55 = arith.constant 512 : index
    %123 = vector.load %arg11[%c8_54, %c512_55] : memref<17x576xf32, #tpu.memory_space<vmem>>, vector<9x64xf32>
    %124 = arith.addf %122, %123 : vector<9x64xf32>
    %cst_56 = arith.constant dense<0.000000e+00> : vector<64xf32>
    %125 = vector.multi_reduction <add>, %124, %cst_56 [0] : vector<9x64xf32> to vector<64xf32>
    %126 = vector.shape_cast %125 : vector<64xf32> to vector<1x64xf32>
    %127 = arith.mulf %124, %124 : vector<9x64xf32>
    %cst_57 = arith.constant dense<0.000000e+00> : vector<64xf32>
    %128 = vector.multi_reduction <add>, %127, %cst_57 [0] : vector<9x64xf32> to vector<64xf32>
    %129 = vector.shape_cast %128 : vector<64xf32> to vector<1x64xf32>
    %130 = tpu.concatenate %126, %129 in 1 : vector<1x64xf32>, vector<1x64xf32> -> vector<1x128xf32>
    %cst_58 = arith.constant dense<0.000000e+00> : vector<1x128xf32>
    %131 = tpu.matmul %130, %14, %cst_58 {dimension_numbers = #tpu.dot_dimension_numbers<[1], [0], [0], [1], [0, 0, 1, 1], [], []>} : vector<1x128xf32>, vector<128x128xf32>, vector<1x128xf32> -> vector<1x128xf32>
    %132 = vector.extract_strided_slice %131 {offsets = [0, 0], sizes = [1, 64], strides = [1, 1]} : vector<1x128xf32> to vector<1x64xf32>
    %133 = vector.extract_strided_slice %131 {offsets = [0, 64], sizes = [1, 64], strides = [1, 1]} : vector<1x128xf32> to vector<1x64xf32>
    %134 = arith.mulf %132, %132 : vector<1x64xf32>
    %135 = arith.subf %133, %134 : vector<1x64xf32>
    %cst_59 = arith.constant 0.000000e+00 : f32
    %136 = vector.broadcast %cst_59 : f32 to vector<1x64xf32>
    %137 = arith.maximumf %135, %136 : vector<1x64xf32>
    %cst_60 = arith.constant 9.99999974E-6 : f32
    %138 = vector.broadcast %cst_60 : f32 to vector<1x64xf32>
    %139 = arith.addf %137, %138 : vector<1x64xf32>
    %140 = math.rsqrt %139 : vector<1x64xf32>
    %141 = vector.broadcast %132 : vector<1x64xf32> to vector<9x64xf32>
    %142 = arith.subf %124, %141 : vector<9x64xf32>
    %143 = arith.mulf %140, %12 : vector<1x64xf32>
    %144 = vector.broadcast %143 : vector<1x64xf32> to vector<9x64xf32>
    %145 = arith.mulf %142, %144 : vector<9x64xf32>
    %146 = vector.broadcast %13 : vector<1x64xf32> to vector<9x64xf32>
    %147 = arith.addf %145, %146 : vector<9x64xf32>
    %cst_61 = arith.constant 0.020833334 : f32
    %148 = vector.broadcast %cst_61 : f32 to vector<9x64xf32>
    %149 = arith.mulf %148, %147 : vector<9x64xf32>
    %150 = arith.addf %4, %149 : vector<9x64xf32>
    %cst_62 = arith.constant 6.250000e-02 : f32
    %151 = arith.addf %20, %cst_62 : f32
    %cst_63 = arith.constant 6.250000e-02 : f32
    %152 = vector.broadcast %cst_63 : f32 to vector<9x64xf32>
    %153 = arith.mulf %152, %147 : vector<9x64xf32>
    %154 = arith.addf %4, %153 : vector<9x64xf32>
    %cst_64 = arith.constant dense<0.000000e+00> : vector<64xf32>
    %155 = vector.multi_reduction <add>, %154, %cst_64 [0] : vector<9x64xf32> to vector<64xf32>
    %156 = vector.shape_cast %155 : vector<64xf32> to vector<1x64xf32>
    %157 = arith.mulf %154, %154 : vector<9x64xf32>
    %cst_65 = arith.constant dense<0.000000e+00> : vector<64xf32>
    %158 = vector.multi_reduction <add>, %157, %cst_65 [0] : vector<9x64xf32> to vector<64xf32>
    %159 = vector.shape_cast %158 : vector<64xf32> to vector<1x64xf32>
    %160 = tpu.concatenate %156, %159 in 1 : vector<1x64xf32>, vector<1x64xf32> -> vector<1x128xf32>
    %cst_66 = arith.constant dense<0.000000e+00> : vector<1x128xf32>
    %161 = tpu.matmul %160, %14, %cst_66 {dimension_numbers = #tpu.dot_dimension_numbers<[1], [0], [0], [1], [0, 0, 1, 1], [], []>} : vector<1x128xf32>, vector<128x128xf32>, vector<1x128xf32> -> vector<1x128xf32>
    %162 = vector.extract_strided_slice %161 {offsets = [0, 0], sizes = [1, 64], strides = [1, 1]} : vector<1x128xf32> to vector<1x64xf32>
    %163 = vector.extract_strided_slice %161 {offsets = [0, 64], sizes = [1, 64], strides = [1, 1]} : vector<1x128xf32> to vector<1x64xf32>
    %164 = arith.mulf %162, %162 : vector<1x64xf32>
    %165 = arith.subf %163, %164 : vector<1x64xf32>
    %cst_67 = arith.constant 0.000000e+00 : f32
    %166 = vector.broadcast %cst_67 : f32 to vector<1x64xf32>
    %167 = arith.maximumf %165, %166 : vector<1x64xf32>
    %cst_68 = arith.constant 9.99999974E-6 : f32
    %168 = vector.broadcast %cst_68 : f32 to vector<1x64xf32>
    %169 = arith.addf %167, %168 : vector<1x64xf32>
    %170 = math.rsqrt %169 : vector<1x64xf32>
    %171 = vector.broadcast %162 : vector<1x64xf32> to vector<9x64xf32>
    %172 = arith.subf %154, %171 : vector<9x64xf32>
    %173 = arith.mulf %170, %8 : vector<1x64xf32>
    %174 = vector.broadcast %173 : vector<1x64xf32> to vector<9x64xf32>
    %175 = arith.mulf %172, %174 : vector<9x64xf32>
    %176 = vector.broadcast %9 : vector<1x64xf32> to vector<9x64xf32>
    %177 = arith.addf %175, %176 : vector<9x64xf32>
    %cst_69 = arith.constant 0.000000e+00 : f32
    %178 = vector.broadcast %cst_69 : f32 to vector<9x64xf32>
    %179 = arith.maximumf %177, %178 : vector<9x64xf32>
    %180 = arith.truncf %179 : vector<9x64xf32> to vector<9x64xbf16>
    %c0_70 = arith.constant 0 : index
    %c0_71 = arith.constant 0 : index
    %181 = vector.load %arg3[%c0_70, %c0_71] : memref<64x576xbf16, #tpu.memory_space<vmem>>, vector<64x576xbf16>
    %cst_72 = arith.constant dense<0.000000e+00> : vector<9x576xf32>
    %182 = tpu.matmul %180, %181, %cst_72 {dimension_numbers = #tpu.dot_dimension_numbers<[1], [0], [0], [1], [0, 0, 1, 1], [], []>} : vector<9x64xbf16>, vector<64x576xbf16>, vector<9x576xf32> -> vector<9x576xf32>
    %183 = arith.mulf %182, %15 : vector<9x576xf32>
    %c4_73 = arith.constant 4 : index
    %c0_74 = arith.constant 0 : index
    %184 = vector.load %arg11[%c4_73, %c0_74] : memref<17x576xf32, #tpu.memory_space<vmem>>, vector<9x576xf32>
    tpu.vector_store %arg11[%c4_73, %c0_74], %183 {strides = array<i32>} : memref<17x576xf32, #tpu.memory_space<vmem>>, vector<9x576xf32>,
    %185 = vector.broadcast %151 : f32 to vector<9x64xf32>
    %186 = arith.mulf %185, %16 : vector<9x64xf32>
    %187 = vector.broadcast %6 : vector<1x64xf32> to vector<9x64xf32>
    %188 = arith.addf %187, %186 : vector<9x64xf32>
    %c0_75 = arith.constant 0 : index
    %c0_76 = arith.constant 0 : index
    %189 = vector.load %arg11[%c0_75, %c0_76] : memref<17x576xf32, #tpu.memory_space<vmem>>, vector<9x64xf32>
    %190 = arith.addf %188, %189 : vector<9x64xf32>
    %c1_77 = arith.constant 1 : index
    %c64_78 = arith.constant 64 : index
    %191 = vector.load %arg11[%c1_77, %c64_78] : memref<17x576xf32, #tpu.memory_space<vmem>>, vector<9x64xf32>
    %192 = arith.addf %190, %191 : vector<9x64xf32>
    %c2_79 = arith.constant 2 : index
    %c128_80 = arith.constant 128 : index
    %193 = vector.load %arg11[%c2_79, %c128_80] : memref<17x576xf32, #tpu.memory_space<vmem>>, vector<9x64xf32>
    %194 = arith.addf %192, %193 : vector<9x64xf32>
    %c3_81 = arith.constant 3 : index
    %c192_82 = arith.constant 192 : index
    %195 = vector.load %arg11[%c3_81, %c192_82] : memref<17x576xf32, #tpu.memory_space<vmem>>, vector<9x64xf32>
    %196 = arith.addf %194, %195 : vector<9x64xf32>
    %c4_83 = arith.constant 4 : index
    %c256_84 = arith.constant 256 : index
    %197 = vector.load %arg11[%c4_83, %c256_84] : memref<17x576xf32, #tpu.memory_space<vmem>>, vector<9x64xf32>
    %198 = arith.addf %196, %197 : vector<9x64xf32>
    %c5_85 = arith.constant 5 : index
    %c320_86 = arith.constant 320 : index
    %199 = vector.load %arg11[%c5_85, %c320_86] : memref<17x576xf32, #tpu.memory_space<vmem>>, vector<9x64xf32>
    %200 = arith.addf %198, %199 : vector<9x64xf32>
    %c6_87 = arith.constant 6 : index
    %c384_88 = arith.constant 384 : index
    %201 = vector.load %arg11[%c6_87, %c384_88] : memref<17x576xf32, #tpu.memory_space<vmem>>, vector<9x64xf32>
    %202 = arith.addf %200, %201 : vector<9x64xf32>
    %c7_89 = arith.constant 7 : index
    %c448_90 = arith.constant 448 : index
    %203 = vector.load %arg11[%c7_89, %c448_90] : memref<17x576xf32, #tpu.memory_space<vmem>>, vector<9x64xf32>
    %204 = arith.addf %202, %203 : vector<9x64xf32>
    %c8_91 = arith.constant 8 : index
    %c512_92 = arith.constant 512 : index
    %205 = vector.load %arg11[%c8_91, %c512_92] : memref<17x576xf32, #tpu.memory_space<vmem>>, vector<9x64xf32>
    %206 = arith.addf %204, %205 : vector<9x64xf32>
    %cst_93 = arith.constant dense<0.000000e+00> : vector<64xf32>
    %207 = vector.multi_reduction <add>, %206, %cst_93 [0] : vector<9x64xf32> to vector<64xf32>
    %208 = vector.shape_cast %207 : vector<64xf32> to vector<1x64xf32>
    %209 = arith.mulf %206, %206 : vector<9x64xf32>
    %cst_94 = arith.constant dense<0.000000e+00> : vector<64xf32>
    %210 = vector.multi_reduction <add>, %209, %cst_94 [0] : vector<9x64xf32> to vector<64xf32>
    %211 = vector.shape_cast %210 : vector<64xf32> to vector<1x64xf32>
    %212 = tpu.concatenate %208, %211 in 1 : vector<1x64xf32>, vector<1x64xf32> -> vector<1x128xf32>
    %cst_95 = arith.constant dense<0.000000e+00> : vector<1x128xf32>
    %213 = tpu.matmul %212, %14, %cst_95 {dimension_numbers = #tpu.dot_dimension_numbers<[1], [0], [0], [1], [0, 0, 1, 1], [], []>} : vector<1x128xf32>, vector<128x128xf32>, vector<1x128xf32> -> vector<1x128xf32>
    %214 = vector.extract_strided_slice %213 {offsets = [0, 0], sizes = [1, 64], strides = [1, 1]} : vector<1x128xf32> to vector<1x64xf32>
    %215 = vector.extract_strided_slice %213 {offsets = [0, 64], sizes = [1, 64], strides = [1, 1]} : vector<1x128xf32> to vector<1x64xf32>
    %216 = arith.mulf %214, %214 : vector<1x64xf32>
    %217 = arith.subf %215, %216 : vector<1x64xf32>
    %cst_96 = arith.constant 0.000000e+00 : f32
    %218 = vector.broadcast %cst_96 : f32 to vector<1x64xf32>
    %219 = arith.maximumf %217, %218 : vector<1x64xf32>
    %cst_97 = arith.constant 9.99999974E-6 : f32
    %220 = vector.broadcast %cst_97 : f32 to vector<1x64xf32>
    %221 = arith.addf %219, %220 : vector<1x64xf32>
    %222 = math.rsqrt %221 : vector<1x64xf32>
    %223 = vector.broadcast %214 : vector<1x64xf32> to vector<9x64xf32>
    %224 = arith.subf %206, %223 : vector<9x64xf32>
    %225 = arith.mulf %222, %10 : vector<1x64xf32>
    %226 = vector.broadcast %225 : vector<1x64xf32> to vector<9x64xf32>
    %227 = arith.mulf %224, %226 : vector<9x64xf32>
    %228 = vector.broadcast %11 : vector<1x64xf32> to vector<9x64xf32>
    %229 = arith.addf %227, %228 : vector<9x64xf32>
    %cst_98 = arith.constant 0.000000e+00 : f32
    %230 = vector.broadcast %cst_98 : f32 to vector<9x64xf32>
    %231 = arith.maximumf %229, %230 : vector<9x64xf32>
    %232 = arith.truncf %231 : vector<9x64xf32> to vector<9x64xbf16>
    %c0_99 = arith.constant 0 : index
    %c0_100 = arith.constant 0 : index
    %233 = vector.load %arg4[%c0_99, %c0_100] : memref<64x576xbf16, #tpu.memory_space<vmem>>, vector<64x576xbf16>
    %cst_101 = arith.constant dense<0.000000e+00> : vector<9x576xf32>
    %234 = tpu.matmul %232, %233, %cst_101 {dimension_numbers = #tpu.dot_dimension_numbers<[1], [0], [0], [1], [0, 0, 1, 1], [], []>} : vector<9x64xbf16>, vector<64x576xbf16>, vector<9x576xf32> -> vector<9x576xf32>
    %235 = arith.mulf %234, %15 : vector<9x576xf32>
    %c4_102 = arith.constant 4 : index
    %c0_103 = arith.constant 0 : index
    %236 = vector.load %arg11[%c4_102, %c0_103] : memref<17x576xf32, #tpu.memory_space<vmem>>, vector<9x576xf32>
    tpu.vector_store %arg11[%c4_102, %c0_103], %235 {strides = array<i32>} : memref<17x576xf32, #tpu.memory_space<vmem>>, vector<9x576xf32>,
    %237 = vector.broadcast %151 : f32 to vector<9x64xf32>
    %238 = arith.mulf %237, %17 : vector<9x64xf32>
    %239 = vector.broadcast %7 : vector<1x64xf32> to vector<9x64xf32>
    %240 = arith.addf %239, %238 : vector<9x64xf32>
    %c0_104 = arith.constant 0 : index
    %c0_105 = arith.constant 0 : index
    %241 = vector.load %arg11[%c0_104, %c0_105] : memref<17x576xf32, #tpu.memory_space<vmem>>, vector<9x64xf32>
    %242 = arith.addf %240, %241 : vector<9x64xf32>
    %c1_106 = arith.constant 1 : index
    %c64_107 = arith.constant 64 : index
    %243 = vector.load %arg11[%c1_106, %c64_107] : memref<17x576xf32, #tpu.memory_space<vmem>>, vector<9x64xf32>
    %244 = arith.addf %242, %243 : vector<9x64xf32>
    %c2_108 = arith.constant 2 : index
    %c128_109 = arith.constant 128 : index
    %245 = vector.load %arg11[%c2_108, %c128_109] : memref<17x576xf32, #tpu.memory_space<vmem>>, vector<9x64xf32>
    %246 = arith.addf %244, %245 : vector<9x64xf32>
    %c3_110 = arith.constant 3 : index
    %c192_111 = arith.constant 192 : index
    %247 = vector.load %arg11[%c3_110, %c192_111] : memref<17x576xf32, #tpu.memory_space<vmem>>, vector<9x64xf32>
    %248 = arith.addf %246, %247 : vector<9x64xf32>
    %c4_112 = arith.constant 4 : index
    %c256_113 = arith.constant 256 : index
    %249 = vector.load %arg11[%c4_112, %c256_113] : memref<17x576xf32, #tpu.memory_space<vmem>>, vector<9x64xf32>
    %250 = arith.addf %248, %249 : vector<9x64xf32>
    %c5_114 = arith.constant 5 : index
    %c320_115 = arith.constant 320 : index
    %251 = vector.load %arg11[%c5_114, %c320_115] : memref<17x576xf32, #tpu.memory_space<vmem>>, vector<9x64xf32>
    %252 = arith.addf %250, %251 : vector<9x64xf32>
    %c6_116 = arith.constant 6 : index
    %c384_117 = arith.constant 384 : index
    %253 = vector.load %arg11[%c6_116, %c384_117] : memref<17x576xf32, #tpu.memory_space<vmem>>, vector<9x64xf32>
    %254 = arith.addf %252, %253 : vector<9x64xf32>
    %c7_118 = arith.constant 7 : index
    %c448_119 = arith.constant 448 : index
    %255 = vector.load %arg11[%c7_118, %c448_119] : memref<17x576xf32, #tpu.memory_space<vmem>>, vector<9x64xf32>
    %256 = arith.addf %254, %255 : vector<9x64xf32>
    %c8_120 = arith.constant 8 : index
    %c512_121 = arith.constant 512 : index
    %257 = vector.load %arg11[%c8_120, %c512_121] : memref<17x576xf32, #tpu.memory_space<vmem>>, vector<9x64xf32>
    %258 = arith.addf %256, %257 : vector<9x64xf32>
    %cst_122 = arith.constant dense<0.000000e+00> : vector<64xf32>
    %259 = vector.multi_reduction <add>, %258, %cst_122 [0] : vector<9x64xf32> to vector<64xf32>
    %260 = vector.shape_cast %259 : vector<64xf32> to vector<1x64xf32>
    %261 = arith.mulf %258, %258 : vector<9x64xf32>
    %cst_123 = arith.constant dense<0.000000e+00> : vector<64xf32>
    %262 = vector.multi_reduction <add>, %261, %cst_123 [0] : vector<9x64xf32> to vector<64xf32>
    %263 = vector.shape_cast %262 : vector<64xf32> to vector<1x64xf32>
    %264 = tpu.concatenate %260, %263 in 1 : vector<1x64xf32>, vector<1x64xf32> -> vector<1x128xf32>
    %cst_124 = arith.constant dense<0.000000e+00> : vector<1x128xf32>
    %265 = tpu.matmul %264, %14, %cst_124 {dimension_numbers = #tpu.dot_dimension_numbers<[1], [0], [0], [1], [0, 0, 1, 1], [], []>} : vector<1x128xf32>, vector<128x128xf32>, vector<1x128xf32> -> vector<1x128xf32>
    %266 = vector.extract_strided_slice %265 {offsets = [0, 0], sizes = [1, 64], strides = [1, 1]} : vector<1x128xf32> to vector<1x64xf32>
    %267 = vector.extract_strided_slice %265 {offsets = [0, 64], sizes = [1, 64], strides = [1, 1]} : vector<1x128xf32> to vector<1x64xf32>
    %268 = arith.mulf %266, %266 : vector<1x64xf32>
    %269 = arith.subf %267, %268 : vector<1x64xf32>
    %cst_125 = arith.constant 0.000000e+00 : f32
    %270 = vector.broadcast %cst_125 : f32 to vector<1x64xf32>
    %271 = arith.maximumf %269, %270 : vector<1x64xf32>
    %cst_126 = arith.constant 9.99999974E-6 : f32
    %272 = vector.broadcast %cst_126 : f32 to vector<1x64xf32>
    %273 = arith.addf %271, %272 : vector<1x64xf32>
    %274 = math.rsqrt %273 : vector<1x64xf32>
    %275 = vector.broadcast %266 : vector<1x64xf32> to vector<9x64xf32>
    %276 = arith.subf %258, %275 : vector<9x64xf32>
    %277 = arith.mulf %274, %12 : vector<1x64xf32>
    %278 = vector.broadcast %277 : vector<1x64xf32> to vector<9x64xf32>
    %279 = arith.mulf %276, %278 : vector<9x64xf32>
    %280 = vector.broadcast %13 : vector<1x64xf32> to vector<9x64xf32>
    %281 = arith.addf %279, %280 : vector<9x64xf32>
    %cst_127 = arith.constant 0.0416666679 : f32
    %282 = vector.broadcast %cst_127 : f32 to vector<9x64xf32>
    %283 = arith.mulf %282, %281 : vector<9x64xf32>
    %284 = arith.addf %150, %283 : vector<9x64xf32>
    %cst_128 = arith.constant 6.250000e-02 : f32
    %285 = arith.addf %20, %cst_128 : f32
    %cst_129 = arith.constant 6.250000e-02 : f32
    %286 = vector.broadcast %cst_129 : f32 to vector<9x64xf32>
    %287 = arith.mulf %286, %281 : vector<9x64xf32>
    %288 = arith.addf %4, %287 : vector<9x64xf32>
    %cst_130 = arith.constant dense<0.000000e+00> : vector<64xf32>
    %289 = vector.multi_reduction <add>, %288, %cst_130 [0] : vector<9x64xf32> to vector<64xf32>
    %290 = vector.shape_cast %289 : vector<64xf32> to vector<1x64xf32>
    %291 = arith.mulf %288, %288 : vector<9x64xf32>
    %cst_131 = arith.constant dense<0.000000e+00> : vector<64xf32>
    %292 = vector.multi_reduction <add>, %291, %cst_131 [0] : vector<9x64xf32> to vector<64xf32>
    %293 = vector.shape_cast %292 : vector<64xf32> to vector<1x64xf32>
    %294 = tpu.concatenate %290, %293 in 1 : vector<1x64xf32>, vector<1x64xf32> -> vector<1x128xf32>
    %cst_132 = arith.constant dense<0.000000e+00> : vector<1x128xf32>
    %295 = tpu.matmul %294, %14, %cst_132 {dimension_numbers = #tpu.dot_dimension_numbers<[1], [0], [0], [1], [0, 0, 1, 1], [], []>} : vector<1x128xf32>, vector<128x128xf32>, vector<1x128xf32> -> vector<1x128xf32>
    %296 = vector.extract_strided_slice %295 {offsets = [0, 0], sizes = [1, 64], strides = [1, 1]} : vector<1x128xf32> to vector<1x64xf32>
    %297 = vector.extract_strided_slice %295 {offsets = [0, 64], sizes = [1, 64], strides = [1, 1]} : vector<1x128xf32> to vector<1x64xf32>
    %298 = arith.mulf %296, %296 : vector<1x64xf32>
    %299 = arith.subf %297, %298 : vector<1x64xf32>
    %cst_133 = arith.constant 0.000000e+00 : f32
    %300 = vector.broadcast %cst_133 : f32 to vector<1x64xf32>
    %301 = arith.maximumf %299, %300 : vector<1x64xf32>
    %cst_134 = arith.constant 9.99999974E-6 : f32
    %302 = vector.broadcast %cst_134 : f32 to vector<1x64xf32>
    %303 = arith.addf %301, %302 : vector<1x64xf32>
    %304 = math.rsqrt %303 : vector<1x64xf32>
    %305 = vector.broadcast %296 : vector<1x64xf32> to vector<9x64xf32>
    %306 = arith.subf %288, %305 : vector<9x64xf32>
    %307 = arith.mulf %304, %8 : vector<1x64xf32>
    %308 = vector.broadcast %307 : vector<1x64xf32> to vector<9x64xf32>
    %309 = arith.mulf %306, %308 : vector<9x64xf32>
    %310 = vector.broadcast %9 : vector<1x64xf32> to vector<9x64xf32>
    %311 = arith.addf %309, %310 : vector<9x64xf32>
    %cst_135 = arith.constant 0.000000e+00 : f32
    %312 = vector.broadcast %cst_135 : f32 to vector<9x64xf32>
    %313 = arith.maximumf %311, %312 : vector<9x64xf32>
    %314 = arith.truncf %313 : vector<9x64xf32> to vector<9x64xbf16>
    %c0_136 = arith.constant 0 : index
    %c0_137 = arith.constant 0 : index
    %315 = vector.load %arg3[%c0_136, %c0_137] : memref<64x576xbf16, #tpu.memory_space<vmem>>, vector<64x576xbf16>
    %cst_138 = arith.constant dense<0.000000e+00> : vector<9x576xf32>
    %316 = tpu.matmul %314, %315, %cst_138 {dimension_numbers = #tpu.dot_dimension_numbers<[1], [0], [0], [1], [0, 0, 1, 1], [], []>} : vector<9x64xbf16>, vector<64x576xbf16>, vector<9x576xf32> -> vector<9x576xf32>
    %317 = arith.mulf %316, %15 : vector<9x576xf32>
    %c4_139 = arith.constant 4 : index
    %c0_140 = arith.constant 0 : index
    %318 = vector.load %arg11[%c4_139, %c0_140] : memref<17x576xf32, #tpu.memory_space<vmem>>, vector<9x576xf32>
    tpu.vector_store %arg11[%c4_139, %c0_140], %317 {strides = array<i32>} : memref<17x576xf32, #tpu.memory_space<vmem>>, vector<9x576xf32>,
    %319 = vector.broadcast %285 : f32 to vector<9x64xf32>
    %320 = arith.mulf %319, %16 : vector<9x64xf32>
    %321 = vector.broadcast %6 : vector<1x64xf32> to vector<9x64xf32>
    %322 = arith.addf %321, %320 : vector<9x64xf32>
    %c0_141 = arith.constant 0 : index
    %c0_142 = arith.constant 0 : index
    %323 = vector.load %arg11[%c0_141, %c0_142] : memref<17x576xf32, #tpu.memory_space<vmem>>, vector<9x64xf32>
    %324 = arith.addf %322, %323 : vector<9x64xf32>
    %c1_143 = arith.constant 1 : index
    %c64_144 = arith.constant 64 : index
    %325 = vector.load %arg11[%c1_143, %c64_144] : memref<17x576xf32, #tpu.memory_space<vmem>>, vector<9x64xf32>
    %326 = arith.addf %324, %325 : vector<9x64xf32>
    %c2_145 = arith.constant 2 : index
    %c128_146 = arith.constant 128 : index
    %327 = vector.load %arg11[%c2_145, %c128_146] : memref<17x576xf32, #tpu.memory_space<vmem>>, vector<9x64xf32>
    %328 = arith.addf %326, %327 : vector<9x64xf32>
    %c3_147 = arith.constant 3 : index
    %c192_148 = arith.constant 192 : index
    %329 = vector.load %arg11[%c3_147, %c192_148] : memref<17x576xf32, #tpu.memory_space<vmem>>, vector<9x64xf32>
    %330 = arith.addf %328, %329 : vector<9x64xf32>
    %c4_149 = arith.constant 4 : index
    %c256_150 = arith.constant 256 : index
    %331 = vector.load %arg11[%c4_149, %c256_150] : memref<17x576xf32, #tpu.memory_space<vmem>>, vector<9x64xf32>
    %332 = arith.addf %330, %331 : vector<9x64xf32>
    %c5_151 = arith.constant 5 : index
    %c320_152 = arith.constant 320 : index
    %333 = vector.load %arg11[%c5_151, %c320_152] : memref<17x576xf32, #tpu.memory_space<vmem>>, vector<9x64xf32>
    %334 = arith.addf %332, %333 : vector<9x64xf32>
    %c6_153 = arith.constant 6 : index
    %c384_154 = arith.constant 384 : index
    %335 = vector.load %arg11[%c6_153, %c384_154] : memref<17x576xf32, #tpu.memory_space<vmem>>, vector<9x64xf32>
    %336 = arith.addf %334, %335 : vector<9x64xf32>
    %c7_155 = arith.constant 7 : index
    %c448_156 = arith.constant 448 : index
    %337 = vector.load %arg11[%c7_155, %c448_156] : memref<17x576xf32, #tpu.memory_space<vmem>>, vector<9x64xf32>
    %338 = arith.addf %336, %337 : vector<9x64xf32>
    %c8_157 = arith.constant 8 : index
    %c512_158 = arith.constant 512 : index
    %339 = vector.load %arg11[%c8_157, %c512_158] : memref<17x576xf32, #tpu.memory_space<vmem>>, vector<9x64xf32>
    %340 = arith.addf %338, %339 : vector<9x64xf32>
    %cst_159 = arith.constant dense<0.000000e+00> : vector<64xf32>
    %341 = vector.multi_reduction <add>, %340, %cst_159 [0] : vector<9x64xf32> to vector<64xf32>
    %342 = vector.shape_cast %341 : vector<64xf32> to vector<1x64xf32>
    %343 = arith.mulf %340, %340 : vector<9x64xf32>
    %cst_160 = arith.constant dense<0.000000e+00> : vector<64xf32>
    %344 = vector.multi_reduction <add>, %343, %cst_160 [0] : vector<9x64xf32> to vector<64xf32>
    %345 = vector.shape_cast %344 : vector<64xf32> to vector<1x64xf32>
    %346 = tpu.concatenate %342, %345 in 1 : vector<1x64xf32>, vector<1x64xf32> -> vector<1x128xf32>
    %cst_161 = arith.constant dense<0.000000e+00> : vector<1x128xf32>
    %347 = tpu.matmul %346, %14, %cst_161 {dimension_numbers = #tpu.dot_dimension_numbers<[1], [0], [0], [1], [0, 0, 1, 1], [], []>} : vector<1x128xf32>, vector<128x128xf32>, vector<1x128xf32> -> vector<1x128xf32>
    %348 = vector.extract_strided_slice %347 {offsets = [0, 0], sizes = [1, 64], strides = [1, 1]} : vector<1x128xf32> to vector<1x64xf32>
    %349 = vector.extract_strided_slice %347 {offsets = [0, 64], sizes = [1, 64], strides = [1, 1]} : vector<1x128xf32> to vector<1x64xf32>
    %350 = arith.mulf %348, %348 : vector<1x64xf32>
    %351 = arith.subf %349, %350 : vector<1x64xf32>
    %cst_162 = arith.constant 0.000000e+00 : f32
    %352 = vector.broadcast %cst_162 : f32 to vector<1x64xf32>
    %353 = arith.maximumf %351, %352 : vector<1x64xf32>
    %cst_163 = arith.constant 9.99999974E-6 : f32
    %354 = vector.broadcast %cst_163 : f32 to vector<1x64xf32>
    %355 = arith.addf %353, %354 : vector<1x64xf32>
    %356 = math.rsqrt %355 : vector<1x64xf32>
    %357 = vector.broadcast %348 : vector<1x64xf32> to vector<9x64xf32>
    %358 = arith.subf %340, %357 : vector<9x64xf32>
    %359 = arith.mulf %356, %10 : vector<1x64xf32>
    %360 = vector.broadcast %359 : vector<1x64xf32> to vector<9x64xf32>
    %361 = arith.mulf %358, %360 : vector<9x64xf32>
    %362 = vector.broadcast %11 : vector<1x64xf32> to vector<9x64xf32>
    %363 = arith.addf %361, %362 : vector<9x64xf32>
    %cst_164 = arith.constant 0.000000e+00 : f32
    %364 = vector.broadcast %cst_164 : f32 to vector<9x64xf32>
    %365 = arith.maximumf %363, %364 : vector<9x64xf32>
    %366 = arith.truncf %365 : vector<9x64xf32> to vector<9x64xbf16>
    %c0_165 = arith.constant 0 : index
    %c0_166 = arith.constant 0 : index
    %367 = vector.load %arg4[%c0_165, %c0_166] : memref<64x576xbf16, #tpu.memory_space<vmem>>, vector<64x576xbf16>
    %cst_167 = arith.constant dense<0.000000e+00> : vector<9x576xf32>
    %368 = tpu.matmul %366, %367, %cst_167 {dimension_numbers = #tpu.dot_dimension_numbers<[1], [0], [0], [1], [0, 0, 1, 1], [], []>} : vector<9x64xbf16>, vector<64x576xbf16>, vector<9x576xf32> -> vector<9x576xf32>
    %369 = arith.mulf %368, %15 : vector<9x576xf32>
    %c4_168 = arith.constant 4 : index
    %c0_169 = arith.constant 0 : index
    %370 = vector.load %arg11[%c4_168, %c0_169] : memref<17x576xf32, #tpu.memory_space<vmem>>, vector<9x576xf32>
    tpu.vector_store %arg11[%c4_168, %c0_169], %369 {strides = array<i32>} : memref<17x576xf32, #tpu.memory_space<vmem>>, vector<9x576xf32>,
    %371 = vector.broadcast %285 : f32 to vector<9x64xf32>
    %372 = arith.mulf %371, %17 : vector<9x64xf32>
    %373 = vector.broadcast %7 : vector<1x64xf32> to vector<9x64xf32>
    %374 = arith.addf %373, %372 : vector<9x64xf32>
    %c0_170 = arith.constant 0 : index
    %c0_171 = arith.constant 0 : index
    %375 = vector.load %arg11[%c0_170, %c0_171] : memref<17x576xf32, #tpu.memory_space<vmem>>, vector<9x64xf32>
    %376 = arith.addf %374, %375 : vector<9x64xf32>
    %c1_172 = arith.constant 1 : index
    %c64_173 = arith.constant 64 : index
    %377 = vector.load %arg11[%c1_172, %c64_173] : memref<17x576xf32, #tpu.memory_space<vmem>>, vector<9x64xf32>
    %378 = arith.addf %376, %377 : vector<9x64xf32>
    %c2_174 = arith.constant 2 : index
    %c128_175 = arith.constant 128 : index
    %379 = vector.load %arg11[%c2_174, %c128_175] : memref<17x576xf32, #tpu.memory_space<vmem>>, vector<9x64xf32>
    %380 = arith.addf %378, %379 : vector<9x64xf32>
    %c3_176 = arith.constant 3 : index
    %c192_177 = arith.constant 192 : index
    %381 = vector.load %arg11[%c3_176, %c192_177] : memref<17x576xf32, #tpu.memory_space<vmem>>, vector<9x64xf32>
    %382 = arith.addf %380, %381 : vector<9x64xf32>
    %c4_178 = arith.constant 4 : index
    %c256_179 = arith.constant 256 : index
    %383 = vector.load %arg11[%c4_178, %c256_179] : memref<17x576xf32, #tpu.memory_space<vmem>>, vector<9x64xf32>
    %384 = arith.addf %382, %383 : vector<9x64xf32>
    %c5_180 = arith.constant 5 : index
    %c320_181 = arith.constant 320 : index
    %385 = vector.load %arg11[%c5_180, %c320_181] : memref<17x576xf32, #tpu.memory_space<vmem>>, vector<9x64xf32>
    %386 = arith.addf %384, %385 : vector<9x64xf32>
    %c6_182 = arith.constant 6 : index
    %c384_183 = arith.constant 384 : index
    %387 = vector.load %arg11[%c6_182, %c384_183] : memref<17x576xf32, #tpu.memory_space<vmem>>, vector<9x64xf32>
    %388 = arith.addf %386, %387 : vector<9x64xf32>
    %c7_184 = arith.constant 7 : index
    %c448_185 = arith.constant 448 : index
    %389 = vector.load %arg11[%c7_184, %c448_185] : memref<17x576xf32, #tpu.memory_space<vmem>>, vector<9x64xf32>
    %390 = arith.addf %388, %389 : vector<9x64xf32>
    %c8_186 = arith.constant 8 : index
    %c512_187 = arith.constant 512 : index
    %391 = vector.load %arg11[%c8_186, %c512_187] : memref<17x576xf32, #tpu.memory_space<vmem>>, vector<9x64xf32>
    %392 = arith.addf %390, %391 : vector<9x64xf32>
    %cst_188 = arith.constant dense<0.000000e+00> : vector<64xf32>
    %393 = vector.multi_reduction <add>, %392, %cst_188 [0] : vector<9x64xf32> to vector<64xf32>
    %394 = vector.shape_cast %393 : vector<64xf32> to vector<1x64xf32>
    %395 = arith.mulf %392, %392 : vector<9x64xf32>
    %cst_189 = arith.constant dense<0.000000e+00> : vector<64xf32>
    %396 = vector.multi_reduction <add>, %395, %cst_189 [0] : vector<9x64xf32> to vector<64xf32>
    %397 = vector.shape_cast %396 : vector<64xf32> to vector<1x64xf32>
    %398 = tpu.concatenate %394, %397 in 1 : vector<1x64xf32>, vector<1x64xf32> -> vector<1x128xf32>
    %cst_190 = arith.constant dense<0.000000e+00> : vector<1x128xf32>
    %399 = tpu.matmul %398, %14, %cst_190 {dimension_numbers = #tpu.dot_dimension_numbers<[1], [0], [0], [1], [0, 0, 1, 1], [], []>} : vector<1x128xf32>, vector<128x128xf32>, vector<1x128xf32> -> vector<1x128xf32>
    %400 = vector.extract_strided_slice %399 {offsets = [0, 0], sizes = [1, 64], strides = [1, 1]} : vector<1x128xf32> to vector<1x64xf32>
    %401 = vector.extract_strided_slice %399 {offsets = [0, 64], sizes = [1, 64], strides = [1, 1]} : vector<1x128xf32> to vector<1x64xf32>
    %402 = arith.mulf %400, %400 : vector<1x64xf32>
    %403 = arith.subf %401, %402 : vector<1x64xf32>
    %cst_191 = arith.constant 0.000000e+00 : f32
    %404 = vector.broadcast %cst_191 : f32 to vector<1x64xf32>
    %405 = arith.maximumf %403, %404 : vector<1x64xf32>
    %cst_192 = arith.constant 9.99999974E-6 : f32
    %406 = vector.broadcast %cst_192 : f32 to vector<1x64xf32>
    %407 = arith.addf %405, %406 : vector<1x64xf32>
    %408 = math.rsqrt %407 : vector<1x64xf32>
    %409 = vector.broadcast %400 : vector<1x64xf32> to vector<9x64xf32>
    %410 = arith.subf %392, %409 : vector<9x64xf32>
    %411 = arith.mulf %408, %12 : vector<1x64xf32>
    %412 = vector.broadcast %411 : vector<1x64xf32> to vector<9x64xf32>
    %413 = arith.mulf %410, %412 : vector<9x64xf32>
    %414 = vector.broadcast %13 : vector<1x64xf32> to vector<9x64xf32>
    %415 = arith.addf %413, %414 : vector<9x64xf32>
    %cst_193 = arith.constant 0.0416666679 : f32
    %416 = vector.broadcast %cst_193 : f32 to vector<9x64xf32>
    %417 = arith.mulf %416, %415 : vector<9x64xf32>
    %418 = arith.addf %284, %417 : vector<9x64xf32>
    %cst_194 = arith.constant 1.250000e-01 : f32
    %419 = arith.addf %20, %cst_194 : f32
    %cst_195 = arith.constant 1.250000e-01 : f32
    %420 = vector.broadcast %cst_195 : f32 to vector<9x64xf32>
    %421 = arith.mulf %420, %415 : vector<9x64xf32>
    %422 = arith.addf %4, %421 : vector<9x64xf32>
    %cst_196 = arith.constant dense<0.000000e+00> : vector<64xf32>
    %423 = vector.multi_reduction <add>, %422, %cst_196 [0] : vector<9x64xf32> to vector<64xf32>
    %424 = vector.shape_cast %423 : vector<64xf32> to vector<1x64xf32>
    %425 = arith.mulf %422, %422 : vector<9x64xf32>
    %cst_197 = arith.constant dense<0.000000e+00> : vector<64xf32>
    %426 = vector.multi_reduction <add>, %425, %cst_197 [0] : vector<9x64xf32> to vector<64xf32>
    %427 = vector.shape_cast %426 : vector<64xf32> to vector<1x64xf32>
    %428 = tpu.concatenate %424, %427 in 1 : vector<1x64xf32>, vector<1x64xf32> -> vector<1x128xf32>
    %cst_198 = arith.constant dense<0.000000e+00> : vector<1x128xf32>
    %429 = tpu.matmul %428, %14, %cst_198 {dimension_numbers = #tpu.dot_dimension_numbers<[1], [0], [0], [1], [0, 0, 1, 1], [], []>} : vector<1x128xf32>, vector<128x128xf32>, vector<1x128xf32> -> vector<1x128xf32>
    %430 = vector.extract_strided_slice %429 {offsets = [0, 0], sizes = [1, 64], strides = [1, 1]} : vector<1x128xf32> to vector<1x64xf32>
    %431 = vector.extract_strided_slice %429 {offsets = [0, 64], sizes = [1, 64], strides = [1, 1]} : vector<1x128xf32> to vector<1x64xf32>
    %432 = arith.mulf %430, %430 : vector<1x64xf32>
    %433 = arith.subf %431, %432 : vector<1x64xf32>
    %cst_199 = arith.constant 0.000000e+00 : f32
    %434 = vector.broadcast %cst_199 : f32 to vector<1x64xf32>
    %435 = arith.maximumf %433, %434 : vector<1x64xf32>
    %cst_200 = arith.constant 9.99999974E-6 : f32
    %436 = vector.broadcast %cst_200 : f32 to vector<1x64xf32>
    %437 = arith.addf %435, %436 : vector<1x64xf32>
    %438 = math.rsqrt %437 : vector<1x64xf32>
    %439 = vector.broadcast %430 : vector<1x64xf32> to vector<9x64xf32>
    %440 = arith.subf %422, %439 : vector<9x64xf32>
    %441 = arith.mulf %438, %8 : vector<1x64xf32>
    %442 = vector.broadcast %441 : vector<1x64xf32> to vector<9x64xf32>
    %443 = arith.mulf %440, %442 : vector<9x64xf32>
    %444 = vector.broadcast %9 : vector<1x64xf32> to vector<9x64xf32>
    %445 = arith.addf %443, %444 : vector<9x64xf32>
    %cst_201 = arith.constant 0.000000e+00 : f32
    %446 = vector.broadcast %cst_201 : f32 to vector<9x64xf32>
    %447 = arith.maximumf %445, %446 : vector<9x64xf32>
    %448 = arith.truncf %447 : vector<9x64xf32> to vector<9x64xbf16>
    %c0_202 = arith.constant 0 : index
    %c0_203 = arith.constant 0 : index
    %449 = vector.load %arg3[%c0_202, %c0_203] : memref<64x576xbf16, #tpu.memory_space<vmem>>, vector<64x576xbf16>
    %cst_204 = arith.constant dense<0.000000e+00> : vector<9x576xf32>
    %450 = tpu.matmul %448, %449, %cst_204 {dimension_numbers = #tpu.dot_dimension_numbers<[1], [0], [0], [1], [0, 0, 1, 1], [], []>} : vector<9x64xbf16>, vector<64x576xbf16>, vector<9x576xf32> -> vector<9x576xf32>
    %451 = arith.mulf %450, %15 : vector<9x576xf32>
    %c4_205 = arith.constant 4 : index
    %c0_206 = arith.constant 0 : index
    %452 = vector.load %arg11[%c4_205, %c0_206] : memref<17x576xf32, #tpu.memory_space<vmem>>, vector<9x576xf32>
    tpu.vector_store %arg11[%c4_205, %c0_206], %451 {strides = array<i32>} : memref<17x576xf32, #tpu.memory_space<vmem>>, vector<9x576xf32>,
    %453 = vector.broadcast %419 : f32 to vector<9x64xf32>
    %454 = arith.mulf %453, %16 : vector<9x64xf32>
    %455 = vector.broadcast %6 : vector<1x64xf32> to vector<9x64xf32>
    %456 = arith.addf %455, %454 : vector<9x64xf32>
    %c0_207 = arith.constant 0 : index
    %c0_208 = arith.constant 0 : index
    %457 = vector.load %arg11[%c0_207, %c0_208] : memref<17x576xf32, #tpu.memory_space<vmem>>, vector<9x64xf32>
    %458 = arith.addf %456, %457 : vector<9x64xf32>
    %c1_209 = arith.constant 1 : index
    %c64_210 = arith.constant 64 : index
    %459 = vector.load %arg11[%c1_209, %c64_210] : memref<17x576xf32, #tpu.memory_space<vmem>>, vector<9x64xf32>
    %460 = arith.addf %458, %459 : vector<9x64xf32>
    %c2_211 = arith.constant 2 : index
    %c128_212 = arith.constant 128 : index
    %461 = vector.load %arg11[%c2_211, %c128_212] : memref<17x576xf32, #tpu.memory_space<vmem>>, vector<9x64xf32>
    %462 = arith.addf %460, %461 : vector<9x64xf32>
    %c3_213 = arith.constant 3 : index
    %c192_214 = arith.constant 192 : index
    %463 = vector.load %arg11[%c3_213, %c192_214] : memref<17x576xf32, #tpu.memory_space<vmem>>, vector<9x64xf32>
    %464 = arith.addf %462, %463 : vector<9x64xf32>
    %c4_215 = arith.constant 4 : index
    %c256_216 = arith.constant 256 : index
    %465 = vector.load %arg11[%c4_215, %c256_216] : memref<17x576xf32, #tpu.memory_space<vmem>>, vector<9x64xf32>
    %466 = arith.addf %464, %465 : vector<9x64xf32>
    %c5_217 = arith.constant 5 : index
    %c320_218 = arith.constant 320 : index
    %467 = vector.load %arg11[%c5_217, %c320_218] : memref<17x576xf32, #tpu.memory_space<vmem>>, vector<9x64xf32>
    %468 = arith.addf %466, %467 : vector<9x64xf32>
    %c6_219 = arith.constant 6 : index
    %c384_220 = arith.constant 384 : index
    %469 = vector.load %arg11[%c6_219, %c384_220] : memref<17x576xf32, #tpu.memory_space<vmem>>, vector<9x64xf32>
    %470 = arith.addf %468, %469 : vector<9x64xf32>
    %c7_221 = arith.constant 7 : index
    %c448_222 = arith.constant 448 : index
    %471 = vector.load %arg11[%c7_221, %c448_222] : memref<17x576xf32, #tpu.memory_space<vmem>>, vector<9x64xf32>
    %472 = arith.addf %470, %471 : vector<9x64xf32>
    %c8_223 = arith.constant 8 : index
    %c512_224 = arith.constant 512 : index
    %473 = vector.load %arg11[%c8_223, %c512_224] : memref<17x576xf32, #tpu.memory_space<vmem>>, vector<9x64xf32>
    %474 = arith.addf %472, %473 : vector<9x64xf32>
    %cst_225 = arith.constant dense<0.000000e+00> : vector<64xf32>
    %475 = vector.multi_reduction <add>, %474, %cst_225 [0] : vector<9x64xf32> to vector<64xf32>
    %476 = vector.shape_cast %475 : vector<64xf32> to vector<1x64xf32>
    %477 = arith.mulf %474, %474 : vector<9x64xf32>
    %cst_226 = arith.constant dense<0.000000e+00> : vector<64xf32>
    %478 = vector.multi_reduction <add>, %477, %cst_226 [0] : vector<9x64xf32> to vector<64xf32>
    %479 = vector.shape_cast %478 : vector<64xf32> to vector<1x64xf32>
    %480 = tpu.concatenate %476, %479 in 1 : vector<1x64xf32>, vector<1x64xf32> -> vector<1x128xf32>
    %cst_227 = arith.constant dense<0.000000e+00> : vector<1x128xf32>
    %481 = tpu.matmul %480, %14, %cst_227 {dimension_numbers = #tpu.dot_dimension_numbers<[1], [0], [0], [1], [0, 0, 1, 1], [], []>} : vector<1x128xf32>, vector<128x128xf32>, vector<1x128xf32> -> vector<1x128xf32>
    %482 = vector.extract_strided_slice %481 {offsets = [0, 0], sizes = [1, 64], strides = [1, 1]} : vector<1x128xf32> to vector<1x64xf32>
    %483 = vector.extract_strided_slice %481 {offsets = [0, 64], sizes = [1, 64], strides = [1, 1]} : vector<1x128xf32> to vector<1x64xf32>
    %484 = arith.mulf %482, %482 : vector<1x64xf32>
    %485 = arith.subf %483, %484 : vector<1x64xf32>
    %cst_228 = arith.constant 0.000000e+00 : f32
    %486 = vector.broadcast %cst_228 : f32 to vector<1x64xf32>
    %487 = arith.maximumf %485, %486 : vector<1x64xf32>
    %cst_229 = arith.constant 9.99999974E-6 : f32
    %488 = vector.broadcast %cst_229 : f32 to vector<1x64xf32>
    %489 = arith.addf %487, %488 : vector<1x64xf32>
    %490 = math.rsqrt %489 : vector<1x64xf32>
    %491 = vector.broadcast %482 : vector<1x64xf32> to vector<9x64xf32>
    %492 = arith.subf %474, %491 : vector<9x64xf32>
    %493 = arith.mulf %490, %10 : vector<1x64xf32>
    %494 = vector.broadcast %493 : vector<1x64xf32> to vector<9x64xf32>
    %495 = arith.mulf %492, %494 : vector<9x64xf32>
    %496 = vector.broadcast %11 : vector<1x64xf32> to vector<9x64xf32>
    %497 = arith.addf %495, %496 : vector<9x64xf32>
    %cst_230 = arith.constant 0.000000e+00 : f32
    %498 = vector.broadcast %cst_230 : f32 to vector<9x64xf32>
    %499 = arith.maximumf %497, %498 : vector<9x64xf32>
    %500 = arith.truncf %499 : vector<9x64xf32> to vector<9x64xbf16>
    %c0_231 = arith.constant 0 : index
    %c0_232 = arith.constant 0 : index
    %501 = vector.load %arg4[%c0_231, %c0_232] : memref<64x576xbf16, #tpu.memory_space<vmem>>, vector<64x576xbf16>
    %cst_233 = arith.constant dense<0.000000e+00> : vector<9x576xf32>
    %502 = tpu.matmul %500, %501, %cst_233 {dimension_numbers = #tpu.dot_dimension_numbers<[1], [0], [0], [1], [0, 0, 1, 1], [], []>} : vector<9x64xbf16>, vector<64x576xbf16>, vector<9x576xf32> -> vector<9x576xf32>
    %503 = arith.mulf %502, %15 : vector<9x576xf32>
    %c4_234 = arith.constant 4 : index
    %c0_235 = arith.constant 0 : index
    %504 = vector.load %arg11[%c4_234, %c0_235] : memref<17x576xf32, #tpu.memory_space<vmem>>, vector<9x576xf32>
    tpu.vector_store %arg11[%c4_234, %c0_235], %503 {strides = array<i32>} : memref<17x576xf32, #tpu.memory_space<vmem>>, vector<9x576xf32>,
    %505 = vector.broadcast %419 : f32 to vector<9x64xf32>
    %506 = arith.mulf %505, %17 : vector<9x64xf32>
    %507 = vector.broadcast %7 : vector<1x64xf32> to vector<9x64xf32>
    %508 = arith.addf %507, %506 : vector<9x64xf32>
    %c0_236 = arith.constant 0 : index
    %c0_237 = arith.constant 0 : index
    %509 = vector.load %arg11[%c0_236, %c0_237] : memref<17x576xf32, #tpu.memory_space<vmem>>, vector<9x64xf32>
    %510 = arith.addf %508, %509 : vector<9x64xf32>
    %c1_238 = arith.constant 1 : index
    %c64_239 = arith.constant 64 : index
    %511 = vector.load %arg11[%c1_238, %c64_239] : memref<17x576xf32, #tpu.memory_space<vmem>>, vector<9x64xf32>
    %512 = arith.addf %510, %511 : vector<9x64xf32>
    %c2_240 = arith.constant 2 : index
    %c128_241 = arith.constant 128 : index
    %513 = vector.load %arg11[%c2_240, %c128_241] : memref<17x576xf32, #tpu.memory_space<vmem>>, vector<9x64xf32>
    %514 = arith.addf %512, %513 : vector<9x64xf32>
    %c3_242 = arith.constant 3 : index
    %c192_243 = arith.constant 192 : index
    %515 = vector.load %arg11[%c3_242, %c192_243] : memref<17x576xf32, #tpu.memory_space<vmem>>, vector<9x64xf32>
    %516 = arith.addf %514, %515 : vector<9x64xf32>
    %c4_244 = arith.constant 4 : index
    %c256_245 = arith.constant 256 : index
    %517 = vector.load %arg11[%c4_244, %c256_245] : memref<17x576xf32, #tpu.memory_space<vmem>>, vector<9x64xf32>
    %518 = arith.addf %516, %517 : vector<9x64xf32>
    %c5_246 = arith.constant 5 : index
    %c320_247 = arith.constant 320 : index
    %519 = vector.load %arg11[%c5_246, %c320_247] : memref<17x576xf32, #tpu.memory_space<vmem>>, vector<9x64xf32>
    %520 = arith.addf %518, %519 : vector<9x64xf32>
    %c6_248 = arith.constant 6 : index
    %c384_249 = arith.constant 384 : index
    %521 = vector.load %arg11[%c6_248, %c384_249] : memref<17x576xf32, #tpu.memory_space<vmem>>, vector<9x64xf32>
    %522 = arith.addf %520, %521 : vector<9x64xf32>
    %c7_250 = arith.constant 7 : index
    %c448_251 = arith.constant 448 : index
    %523 = vector.load %arg11[%c7_250, %c448_251] : memref<17x576xf32, #tpu.memory_space<vmem>>, vector<9x64xf32>
    %524 = arith.addf %522, %523 : vector<9x64xf32>
    %c8_252 = arith.constant 8 : index
    %c512_253 = arith.constant 512 : index
    %525 = vector.load %arg11[%c8_252, %c512_253] : memref<17x576xf32, #tpu.memory_space<vmem>>, vector<9x64xf32>
    %526 = arith.addf %524, %525 : vector<9x64xf32>
    %cst_254 = arith.constant dense<0.000000e+00> : vector<64xf32>
    %527 = vector.multi_reduction <add>, %526, %cst_254 [0] : vector<9x64xf32> to vector<64xf32>
    %528 = vector.shape_cast %527 : vector<64xf32> to vector<1x64xf32>
    %529 = arith.mulf %526, %526 : vector<9x64xf32>
    %cst_255 = arith.constant dense<0.000000e+00> : vector<64xf32>
    %530 = vector.multi_reduction <add>, %529, %cst_255 [0] : vector<9x64xf32> to vector<64xf32>
    %531 = vector.shape_cast %530 : vector<64xf32> to vector<1x64xf32>
    %532 = tpu.concatenate %528, %531 in 1 : vector<1x64xf32>, vector<1x64xf32> -> vector<1x128xf32>
    %cst_256 = arith.constant dense<0.000000e+00> : vector<1x128xf32>
    %533 = tpu.matmul %532, %14, %cst_256 {dimension_numbers = #tpu.dot_dimension_numbers<[1], [0], [0], [1], [0, 0, 1, 1], [], []>} : vector<1x128xf32>, vector<128x128xf32>, vector<1x128xf32> -> vector<1x128xf32>
    %534 = vector.extract_strided_slice %533 {offsets = [0, 0], sizes = [1, 64], strides = [1, 1]} : vector<1x128xf32> to vector<1x64xf32>
    %535 = vector.extract_strided_slice %533 {offsets = [0, 64], sizes = [1, 64], strides = [1, 1]} : vector<1x128xf32> to vector<1x64xf32>
    %536 = arith.mulf %534, %534 : vector<1x64xf32>
    %537 = arith.subf %535, %536 : vector<1x64xf32>
    %cst_257 = arith.constant 0.000000e+00 : f32
    %538 = vector.broadcast %cst_257 : f32 to vector<1x64xf32>
    %539 = arith.maximumf %537, %538 : vector<1x64xf32>
    %cst_258 = arith.constant 9.99999974E-6 : f32
    %540 = vector.broadcast %cst_258 : f32 to vector<1x64xf32>
    %541 = arith.addf %539, %540 : vector<1x64xf32>
    %542 = math.rsqrt %541 : vector<1x64xf32>
    %543 = vector.broadcast %534 : vector<1x64xf32> to vector<9x64xf32>
    %544 = arith.subf %526, %543 : vector<9x64xf32>
    %545 = arith.mulf %542, %12 : vector<1x64xf32>
    %546 = vector.broadcast %545 : vector<1x64xf32> to vector<9x64xf32>
    %547 = arith.mulf %544, %546 : vector<9x64xf32>
    %548 = vector.broadcast %13 : vector<1x64xf32> to vector<9x64xf32>
    %549 = arith.addf %547, %548 : vector<9x64xf32>
    %cst_259 = arith.constant 0.020833334 : f32
    %550 = vector.broadcast %cst_259 : f32 to vector<9x64xf32>
    %551 = arith.mulf %550, %549 : vector<9x64xf32>
    %552 = arith.addf %418, %551 : vector<9x64xf32>
    %c0_260 = arith.constant 0 : index
    %c0_261 = arith.constant 0 : index
    %c0_262 = arith.constant 0 : index
    %553 = vector.load %arg10[%c0_260, %c0_261, %c0_262] : memref<1x9x64xf32, #tpu.memory_space<vmem>>, vector<1x9x64xf32>
    %554 = vector.shape_cast %553 : vector<1x9x64xf32> to vector<9x64xf32>
    %555 = vector.shape_cast %552 : vector<9x64xf32> to vector<1x9x64xf32>
    tpu.vector_store %arg10[%c0_260, %c0_261, %c0_262], %555 {strides = array<i32>} : memref<1x9x64xf32, #tpu.memory_space<vmem>>, vector<1x9x64xf32>,
    return
  }
  func.func @transform_0(%arg0: i32, %arg1: i32) -> (i32, i32, i32) {
    %c0_i32 = arith.constant 0 : i32
    %c0_i32_0 = arith.constant 0 : i32
    %c0_i32_1 = arith.constant 0 : i32
    return %arg0, %c0_i32, %c0_i32_0 : i32, i32, i32
  }
  func.func @transform_1(%arg0: i32, %arg1: i32) -> (i32, i32) {
    %c0_i32 = arith.constant 0 : i32
    %c0_i32_0 = arith.constant 0 : i32
    %c0_i32_1 = arith.constant 0 : i32
    return %c0_i32, %c0_i32_0 : i32, i32
  }
  func.func @transform_2(%arg0: i32, %arg1: i32) -> (i32, i32) {
    %c0_i32 = arith.constant 0 : i32
    %c0_i32_0 = arith.constant 0 : i32
    %c0_i32_1 = arith.constant 0 : i32
    return %c0_i32, %c0_i32_0 : i32, i32
  }
  func.func @transform_3(%arg0: i32, %arg1: i32) -> (i32, i32) {
    %c0_i32 = arith.constant 0 : i32
    %c0_i32_0 = arith.constant 0 : i32
    %c0_i32_1 = arith.constant 0 : i32
    return %c0_i32, %c0_i32_0 : i32, i32
  }
  func.func @transform_4(%arg0: i32, %arg1: i32) -> (i32, i32) {
    %c0_i32 = arith.constant 0 : i32
    %c0_i32_0 = arith.constant 0 : i32
    %c0_i32_1 = arith.constant 0 : i32
    return %c0_i32, %c0_i32_0 : i32, i32
  }
  func.func @transform_5(%arg0: i32, %arg1: i32) -> (i32, i32) {
    %c0_i32 = arith.constant 0 : i32
    %c0_i32_0 = arith.constant 0 : i32
    %c0_i32_1 = arith.constant 0 : i32
    return %c0_i32, %c0_i32_0 : i32, i32
  }
  func.func @transform_6(%arg0: i32, %arg1: i32) -> (i32, i32) {
    %c0_i32 = arith.constant 0 : i32
    %c0_i32_0 = arith.constant 0 : i32
    %c0_i32_1 = arith.constant 0 : i32
    return %c0_i32, %c0_i32_0 : i32, i32
  }
  func.func @transform_7(%arg0: i32, %arg1: i32) -> (i32, i32) {
    %c0_i32 = arith.constant 0 : i32
    %c0_i32_0 = arith.constant 0 : i32
    %c0_i32_1 = arith.constant 0 : i32
    return %c0_i32, %c0_i32_0 : i32, i32
  }
  func.func @transform_8(%arg0: i32, %arg1: i32) -> (i32, i32, i32) {
    %c0_i32 = arith.constant 0 : i32
    %c0_i32_0 = arith.constant 0 : i32
    %c0_i32_1 = arith.constant 0 : i32
    return %arg0, %c0_i32, %c0_i32_0 : i32, i32, i32
  }
}

</mosaic_0001>

<bundles_post_ra>
// kernel: hybrid_ode_classifier_forward.5
= control target key start
LH: loop header
LB: loop body
LE: loop exit
PB: predicated region body
PF: predicated region fallthrough
CT: control target
= control target key end

     0   :  { %s1229_s21 = smov 0   ;;  %s1703_s0 = inlined_call_operand.vmem [shape: bf16[2,196,32], index: 0, kind: input, shape index: {}]   ;;  %s1704_s1 = inlined_call_operand.vmem [shape: bf16[32,64], index: 1, kind: input, shape index: {}]   ;;  %s1705_s2 = inlined_call_operand.vmem [shape: f32[1,64], index: 2, kind: input, shape index: {}]   ;;  %s1706_s3 = inlined_call_operand.vmem [shape: f32[1,64], index: 3, kind: input, shape index: {}]   ;;  %s1707_s4 = inlined_call_operand.vmem [shape: f32[1,64], index: 4, kind: input, shape index: {}]   ;;  %s1708_s5 = inlined_call_operand.vmem [shape: f32[128,128], index: 5, kind: input, shape index: {}]   ;;  %s1709_s6 = inlined_call_operand.vmem [shape: f32[2,196,64], index: 6, kind: output, shape index: {}]  }
   0x1 LB: > { %s986_s22 = sadd.s32 4294967295, %s1189_s21   ;;  %p990_p0 = scmp.ge.s32.totalorder %s1189_s21, 1  ;;  %s1189_s21 = sphi %s1229_s21, %s16_s21  }
   0x2   : > { %p212_p1 = scmp.lt.s32.totalorder %s1189_s21, 3 }
   0x4   : > { %p213_p2 = pnand %p990_p0, %p212_p1 }
   0x5   : > { %p242_p3 = scmp.lt.s32.totalorder (!%p213_p2), %s986_s22, 1  ;;  %s1193_s19 = smov (!%p213_p2), 64  }
   0x6   : > { %216 = sbr.rel (%p213_p2) target bundleno = 898 (0x382), region = 44 }
   0xb   : > { %v1166_v0 = vld [vmem:[%s1704_s1 + $0x8] sm:$0xff]   ;;  %v1191_v1 = vmov 0.0   ;;  %v1167_v2 = vld [vmem:[%s1704_s1] sm:$0xff]   ;;  %vm1192_vm0 = vmmov 0   ;;  %s1711_s22 = smov (!%p242_p3, %s986_s22), 1  ;;  %vm364_vm1 = vcmask 261120  }
   0xc   : > { %1058 = vmatprep.subr.bf16.mxu0 %v1191_v1  ;;  %1149 = vmatprep.subr.bf16.mxu1 %v1191_v1  ;;  %s1153_s27 = smul.u32 100, %s1711_s22  ;;  %v555_v16 = vld [vmem:[%s1708_s5 + $0x78] sm:$0xff]  ;;  %v554_v17 = vld [vmem:[%s1708_s5 + $0x70] sm:$0xff]  ;;  %v553_v18 = vld [vmem:[%s1708_s5 + $0x68] sm:$0xff]  ;;  %vm558_vm2 = vcmask 523264   ;;  %vm606_vm3 = vcmask 519168  }
   0xd   : > { %1059 = vmatpush3.bf16.msra.mxu0 %v1166_v0  ;;  %1062 = vmatprep.mubr.msk.bf16.mxu0 %vm1192_vm0, %v1191_v1  ;;  %v552_v19 = vld [vmem:[%s1708_s5 + $0x60] sm:$0xff]  ;;  %v551_v20 = vld [vmem:[%s1708_s5 + $0x58] sm:$0xff]  ;;  %v550_v21 = vld [vmem:[%s1708_s5 + $0x50] sm:$0xff]  ;;  %s1154_s26 = smul.u32 200, %s1711_s22 }
   0xe   : > { %1060 = vmatprep.subr.bf16.mxu0 %v1191_v1  ;;  %1151 = vmatpush3.bf16.msra.mxu1 %v1166_v0  ;;  %s1257_s30 = scalar_lea.vmem %s1703_s0, %s1153_s27  ;;  %v549_v22 = vld [vmem:[%s1708_s5 + $0x48] sm:$0xff]  ;;  %v548_v23 = vld [vmem:[%s1708_s5 + $0x40] sm:$0xff]  ;;  %v547_v24 = vld [vmem:[%s1708_s5 + $0x38] sm:$0xff] }
   0xf   : > { %1150 = vmatprep.subr.bf16.mxu1 %v1191_v1  ;;  %1090 = vmatprep.mubr.msk.bf16.mxu1 %vm1192_vm0, %v1191_v1  ;;  %v1168_v3 = vld [vmem:[%s1257_s30] sm:$0xff]   ;;  %v1172_v4 = vld [vmem:[%s1257_s30 + $0x38] sm:$0xff]   ;;  %v1169_v5 = vld [vmem:[%s1257_s30 + $0x8] sm:$0xff]   ;;  %s1648_s22 = scalar_lea.vmem %s1709_s6, %s1154_s26 }
  0x10   : > { %v1174_v6 = vld [vmem:[%s1257_s30 + $0x40] sm:$0xff]   ;;  %v1170_v7 = vld [vmem:[%s1257_s30 + $0x10] sm:$0xff]   ;;  %v1176_v8 = vld [vmem:[%s1257_s30 + $0x48] sm:$0xff]  }
  0x11   : > { %1061 = vmatpush3.bf16.msra.mxu0 %v1167_v2  ;;  %v1171_v9 = vld [vmem:[%s1257_s30 + $0x18] sm:$0xff]   ;;  %v1178_v10 = vld [vmem:[%s1257_s30 + $0x50] sm:$0xff]   ;;  %v1173_v11 = vld [vmem:[%s1257_s30 + $0x20] sm:$0xff]  }
  0x12   : > { %1152 = vmatpush3.bf16.msra.mxu1 %v1167_v2  ;;  %v1179_v12 = vld [vmem:[%s1257_s30 + $0x58] sm:$0xff]   ;;  %v1175_v13 = vld [vmem:[%s1257_s30 + $0x28] sm:$0xff]   ;;  %v1180_v14 = vld [vmem:[%s1257_s30 + $0x60] ss:$0 sps:$4 sm:$0x33]  }
  0x13   : > { %1114 = vmatprep.subr.mxu1 %v1191_v1  ;;  %v1177_v15 = vld [vmem:[%s1257_s30 + $0x30] sm:$0xff]   ;;  %v545_v26 = vld [vmem:[%s1708_s5 + $0x28] sm:$0xff]  ;;  %v544_v27 = vld [vmem:[%s1708_s5 + $0x20] sm:$0xff] }
  0x14   : > { %1063 = vmatmul.mubr.msk.bf16.vlgmr.msra.gmra.mxu0 %vm364_vm1, %v1168_v3  ;;  %v546_v25 = vld [vmem:[%s1708_s5 + $0x30] sm:$0xff]  ;;  %v543_v28 = vld [vmem:[%s1708_s5 + $0x18] sm:$0xff]  ;;  %v541_v30 = vld [vmem:[%s1708_s5 + $0x8] sm:$0xff] }
  0x15   : > { %1066 = vmatprep.mubr.msk.bf16.mxu0 %vm1192_vm0, %v1191_v1  ;;  %1091 = vmatmul.mubr.msk.bf16.vlgmr.msra.gmra.mxu1 %vm364_vm1, %v1172_v4  ;;  %v542_v29 = vld [vmem:[%s1708_s5 + $0x10] sm:$0xff]  ;;  %v540_v31 = vld [vmem:[%s1708_s5] sm:$0xff] }
  0x16   : > { %1094 = vmatprep.mubr.msk.bf16.mxu1 %vm1192_vm0, %v1191_v1  ;;  %1115 = vmatpush3.msra.mxu1 %v555_v16  ;;  %v1386_v52 = vld [vmem:[%s1705_s2] ss:$0 sm:$0xff] }
  0x17   : > { %1116 = vmatprep.subr.mxu1 %v1191_v1 }
  0x18   : > { %1117 = vmatpush3.msra.mxu1 %v554_v17 }
  0x19   : > { %1118 = vmatprep.subr.mxu1 %v1191_v1 }
  0x1a   : > { %1119 = vmatpush3.msra.mxu1 %v553_v18 }
  0x1b   : > { %1120 = vmatprep.subr.mxu1 %v1191_v1 }
  0x1c   : > { %1067 = vmatmul.mubr.msk.bf16.gmra.mxu0 %vm364_vm1, %v1169_v5  ;;  %1121 = vmatpush3.msra.mxu1 %v552_v19 }
  0x1d   : > { %1070 = vmatprep.mubr.msk.bf16.mxu0 %vm1192_vm0, %v1191_v1  ;;  %1095 = vmatmul.mubr.msk.bf16.gmra.mxu1 %vm364_vm1, %v1174_v6 }
  0x1e   : > { %1098 = vmatprep.mubr.msk.bf16.mxu1 %vm1192_vm0, %v1191_v1  ;;  %1122 = vmatprep.subr.mxu1 %v1191_v1 }
  0x1f   : > { %1123 = vmatpush3.msra.mxu1 %v551_v20 }
  0x20   : > { %1124 = vmatprep.subr.mxu1 %v1191_v1 }
  0x21   : > { %1125 = vmatpush3.msra.mxu1 %v550_v21 }
  0x22   : > { %1126 = vmatprep.subr.mxu1 %v1191_v1 }
  0x23   : > { %1127 = vmatpush3.msra.mxu1 %v549_v22 }
  0x24   : > { %1071 = vmatmul.mubr.msk.bf16.gmra.mxu0 %vm364_vm1, %v1170_v7  ;;  %1128 = vmatprep.subr.mxu1 %v1191_v1 }
  0x25   : > { %1074 = vmatprep.mubr.msk.bf16.mxu0 %vm1192_vm0, %v1191_v1  ;;  %1099 = vmatmul.mubr.msk.bf16.gmra.mxu1 %vm364_vm1, %v1176_v8 }
  0x26   : > { %1102 = vmatprep.mubr.msk.bf16.mxu1 %vm1192_vm0, %v1191_v1  ;;  %1129 = vmatpush3.msra.mxu1 %v548_v23 }
  0x27   : > { %1130 = vmatprep.subr.mxu1 %v1191_v1 }
  0x28   : > { %1131 = vmatpush3.msra.mxu1 %v547_v24 }
  0x29   : > { %1132 = vmatprep.subr.mxu1 %v1191_v1 }
  0x2a   : > { %1133 = vmatpush3.msra.mxu1 %v546_v25 }
  0x2b   : > { %1134 = vmatprep.subr.mxu1 %v1191_v1 }
  0x2c   : > { %1075 = vmatmul.mubr.msk.bf16.gmra.mxu0 %vm364_vm1, %v1171_v9  ;;  %1135 = vmatpush3.msra.mxu1 %v545_v26 }
  0x2d   : > { %1078 = vmatprep.mubr.msk.bf16.mxu0 %vm1192_vm0, %v1191_v1  ;;  %1103 = vmatmul.mubr.msk.bf16.gmra.mxu1 %vm364_vm1, %v1178_v10 }
  0x2e   : > { %1106 = vmatprep.mubr.msk.bf16.mxu1 %vm1192_vm0, %v1191_v1  ;;  %1136 = vmatprep.subr.mxu1 %v1191_v1 }
  0x2f   : > { %1137 = vmatpush3.msra.mxu1 %v544_v27 }
  0x30   : > { %1138 = vmatprep.subr.mxu1 %v1191_v1 }
  0x31   : > { %1139 = vmatpush3.msra.mxu1 %v543_v28 }
  0x32   : > { %1140 = vmatprep.subr.mxu1 %v1191_v1 }
  0x33   : > { %1141 = vmatpush3.msra.mxu1 %v542_v29 }
  0x34   : > { %1079 = vmatmul.mubr.msk.bf16.gmra.mxu0 %vm364_vm1, %v1173_v11  ;;  %1142 = vmatprep.subr.mxu1 %v1191_v1 }
  0x35   : > { %1082 = vmatprep.mubr.msk.bf16.mxu0 %vm1192_vm0, %v1191_v1  ;;  %1107 = vmatmul.mubr.msk.bf16.gmra.mxu1 %vm364_vm1, %v1179_v12 }
  0x36   : > { %1110 = vmatprep.mubr.msk.bf16.mxu1 %vm1192_vm0, %v1191_v1  ;;  %1143 = vmatpush3.msra.mxu1 %v541_v30 }
  0x37   : > { %1144 = vmatprep.subr.mxu1 %v1191_v1 }
  0x38   : > { %1145 = vmatpush3.msra.mxu1 %v540_v31 }
  0x3c   : > { %1083 = vmatmul.mubr.msk.bf16.gmra.mxu0 %vm364_vm1, %v1175_v13 }
  0x3d   : > { %1086 = vmatprep.mubr.msk.bf16.mxu0 %vm1192_vm0, %v1191_v1  ;;  %1111 = vmatmul.mubr.msk.bf16.gmra.mxu1 %vm364_vm1, %v1180_v14 }
  0x3e   : > { %1146 = vmatprep.mubr.msk.f32.mxu1 %vm1192_vm0, %v1191_v1 }
  0x44   : > { %1087 = vmatmul.mubr.msk.bf16.gmra.mxu0 %vm364_vm1, %v1177_v15 }
  0xd4   : > { %v438_v32 = vpop.f32.mrf.mxu0 }
  0xd5   : > { %v1373_v35 = vpop.f32.mrf.mxu1  ;;  %v1394_v58 = vadd.f32 %v1386_v52, %v438_v32 }
  0xd6   : > { %v1064_v33 = vpop.f32.mrf.mxu0 }
  0xd7   : > { %v1092_v37 = vpop.f32.mrf.mxu1  ;;  %v615_v2 = vmul.f32 %v1394_v58, %v1394_v58 }
  0xd8   : > { %v441_v34 = vpop.f32.mrf.mxu0 }
  0xd9   : > { %v1375_v39 = vpop.f32.mrf.mxu1  ;;  %v1389_v55 = vadd.f32 %v1386_v52, %v441_v34  ;;  %v640_v12 = vsel %vm558_vm2, %v615_v2, 0.0 }
  0xda   : > { %v1065_v36 = vpop.f32.mrf.mxu0 }
  0xdb   : > { %v1093_v41 = vpop.f32.mrf.mxu1  ;;  %v616_v62 = vmul.f32 %v1389_v55, %v1389_v55 }
  0xdc   : > { %v446_v38 = vpop.f32.mrf.mxu0 }
  0xdd   : > { %v1377_v43 = vpop.f32.mrf.mxu1  ;;  %v1397_v59 = vadd.f32 %v1386_v52, %v446_v38  ;;  %v641_v7 = vsel %vm558_vm2, %v616_v62, 0.0 }
  0xde   : > { %v1068_v40 = vpop.f32.mrf.mxu0  ;;  %v642_v16 = vadd.f32 %v641_v7, %v640_v12 }
  0xdf   : > { %v1096_v45 = vpop.f32.mrf.mxu1  ;;  %v617_v3 = vmul.f32 %v1397_v59, %v1397_v59 }
  0xe0   : > { %v449_v42 = vpop.f32.mrf.mxu0 }
  0xe1   : > { %v1379_v47 = vpop.f32.mrf.mxu1  ;;  %v1402_v63 = vadd.f32 %v1386_v52, %v449_v42  ;;  %v643_v13 = vsel %vm558_vm2, %v617_v3, 0.0 }
  0xe2   : > { %v1069_v44 = vpop.f32.mrf.mxu0  ;;  %v644_v22 = vadd.f32 %v643_v13, %v642_v16  ;;  %v1474_v16 = vadd.f32 %v1386_v52, %v1373_v35 }
  0xe3   : > { %v1097_v49 = vpop.f32.mrf.mxu1  ;;  %v618_v8 = vmul.f32 %v1402_v63, %v1402_v63 }
  0xe4   : > { %v454_v46 = vpop.f32.mrf.mxu0  ;;  %v629_v35 = vmul.f32 %v1474_v16, %v1474_v16 }
  0xe5   : > { %v1381_v51 = vpop.f32.mrf.mxu1  ;;  %v1411_v4 = vadd.f32 %v1386_v52, %v454_v46  ;;  %v645_v19 = vsel %vm558_vm2, %v618_v8, 0.0 }
  0xe6   : > { %v1072_v48 = vpop.f32.mrf.mxu0  ;;  %v646_v28 = vadd.f32 %v645_v19, %v644_v22  ;;  %v1481_v22 = vadd.f32 %v1386_v52, %v1375_v39 }
  0xe7   : > { %v1100_v54 = vpop.f32.mrf.mxu1  ;;  %v619_v14 = vmul.f32 %v1411_v4, %v1411_v4 }
  0xe8   : > { %v457_v50 = vpop.f32.mrf.mxu0  ;;  %v630_v39 = vmul.f32 %v1481_v22, %v1481_v22 }
  0xe9   : > { %v1391_v57 = vpop.f32.mrf.mxu1  ;;  %v1417_v9 = vadd.f32 %v1386_v52, %v457_v50  ;;  %v647_v25 = vsel %vm558_vm2, %v619_v14, 0.0 }
  0xea   : > { %v1073_v53 = vpop.f32.mrf.mxu0  ;;  %v648_v34 = vadd.f32 %v647_v25, %v646_v28 }
  0xeb   : > { %v1101_v61 = vpop.f32.mrf.mxu1  ;;  %v620_v20 = vmul.f32 %v1417_v9, %v1417_v9 }
  0xec   : > { %v462_v56 = vpop.f32.mrf.mxu0 }
  0xed   : > { %v1404_v1 = vpop.f32.mrf.mxu1  ;;  %v1426_v15 = vadd.f32 %v1386_v52, %v462_v56  ;;  %v649_v31 = vsel %vm558_vm2, %v620_v20, 0.0 }
  0xee   : > { %v1076_v60 = vpop.f32.mrf.mxu0  ;;  %v650_v42 = vadd.f32 %v649_v31, %v648_v34 }
  0xef   : > { %v1104_v6 = vpop.f32.mrf.mxu1  ;;  %v621_v26 = vmul.f32 %v1426_v15, %v1426_v15 }
  0xf0   : > { %v465_v0 = vpop.f32.mrf.mxu0 }
  0xf1   : > { %v1419_v11 = vpop.f32.mrf.mxu1  ;;  %v1432_v21 = vadd.f32 %v1386_v52, %v465_v0  ;;  %v651_v38 = vsel %vm558_vm2, %v621_v26, 0.0 }
  0xf2   : > { %v1077_v5 = vpop.f32.mrf.mxu0  ;;  %v652_v49 = vadd.f32 %v651_v38, %v650_v42  ;;  %v667_v38 = vsel %vm558_vm2, %v629_v35, 0.0 }
  0xf3   : > { %v1105_v18 = vpop.f32.mrf.mxu1  ;;  %v622_v32 = vmul.f32 %v1432_v21, %v1432_v21 }
  0xf4   : > { %v470_v10 = vpop.f32.mrf.mxu0 }
  0xf5   : > { %v1434_v24 = vpop.f32.mrf.mxu1  ;;  %v1440_v27 = vadd.f32 %v1386_v52, %v470_v10  ;;  %v653_v46 = vsel %vm558_vm2, %v622_v32, 0.0  ;;  %v1499_v32 = vadd.f32 %v1386_v52, %v1379_v47  ;;  %v1514_v47 = vadd.f32 %v1386_v52, %v1391_v57 }
  0xf6   : > { %v1080_v17 = vpop.f32.mrf.mxu0  ;;  %v654_v61 = vadd.f32 %v653_v46, %v652_v49  ;;  %v1528_v57 = vadd.f32 %v1386_v52, %v1419_v11 }
  0xf7   : > { %v1108_v30 = vpop.f32.mrf.mxu1  ;;  %v623_v40 = vmul.f32 %v1440_v27, %v1440_v27 }
  0xf8   : > { %v473_v23 = vpop.f32.mrf.mxu0 }
  0xf9   : > { %v1446_v33 = vadd.f32 %v1386_v52, %v473_v23  ;;  %v1448_v37 = vpop.f32.mrf.mxu1  ;;  %v655_v54 = vsel %vm558_vm2, %v623_v40, 0.0  ;;  %v1507_v40 = vadd.f32 %v1386_v52, %v1381_v51  ;;  %v1521_v51 = vadd.f32 %v1386_v52, %v1404_v1 }
  0xfa   : > { %v1081_v29 = vpop.f32.mrf.mxu0  ;;  %v656_v5 = vadd.f32 %v655_v54, %v654_v61  ;;  %v1535_v1 = vadd.f32 %v1386_v52, %v1434_v24  ;;  %v1542_v11 = vadd.f32 %v1386_v52, %v1448_v37 }
  0xfb   : > { %v1109_v45 = vpop.f32.mrf.mxu1  ;;  %v624_v48 = vmul.f32 %v1446_v33, %v1446_v33  ;;  %v1491_v29 = vadd.f32 %v1386_v52, %v1377_v43  ;;  %v633_v49 = vmul.f32 %v1507_v40, %v1507_v40 }
  0xfc   : > { %v478_v36 = vpop.f32.mrf.mxu0  ;;  %v632_v45 = vmul.f32 %v1499_v32, %v1499_v32  ;;  %v637_v24 = vmul.f32 %v1535_v1, %v1535_v1 }
  0xfd   : > { %v1454_v41 = vadd.f32 %v1386_v52, %v478_v36  ;;  %v534_v53 = vpop.f32.mrf.mxu1  ;;  %v657_v2 = vsel %vm558_vm2, %v624_v48, 0.0  ;;  %v631_v43 = vmul.f32 %v1491_v29, %v1491_v29 }
  0xfe   : > { %v1084_v44 = vpop.f32.mrf.mxu0  ;;  %v658_v12 = vadd.f32 %v657_v2, %v656_v5  ;;  %v673_v54 = vsel %vm558_vm2, %v632_v45, 0.0  ;;  %v636_v5 = vmul.f32 %v1528_v57, %v1528_v57  ;;  %v566_v45 = vsel %vm558_vm2, %v1411_v4, 0.0 }
  0xff   : > { %v625_v56 = vmul.f32 %v1454_v41, %v1454_v41  ;;  %v1112_v0 = vpop.f32.mrf.mxu1  ;;  %v669_v44 = vsel %vm558_vm2, %v630_v39, 0.0  ;;  %v671_v48 = vsel %vm558_vm2, %v631_v43, 0.0 }
 0x100   : > { %v481_v50 = vpop.f32.mrf.mxu0  ;;  %v635_v0 = vmul.f32 %v1521_v51, %v1521_v51 }
 0x101   : > { %v1463_v60 = vadd.f32 %v1386_v52, %v481_v50  ;;  %v537_v7 = vpop.f32.mrf.mxu1  ;;  %v659_v8 = vsel %vm558_vm2, %v625_v56, 0.0  ;;  %v634_v56 = vmul.f32 %v1514_v47, %v1514_v47 }
 0x102   : > { %v1085_v62 = vpop.f32.mrf.mxu0  ;;  %v660_v19 = vadd.f32 %v659_v8, %v658_v12  ;;  %v679_v8 = vsel %vm558_vm2, %v635_v0, 0.0 }
 0x103   : > { %v626_v3 = vmul.f32 %v1463_v60, %v1463_v60  ;;  %v1113_v14 = vpop.f32.mrf.mxu1  ;;  %v675_v62 = vsel %vm558_vm2, %v633_v49, 0.0 }
 0x104   : > { %v486_v6 = vpop.f32.mrf.mxu0  ;;  %v638_v14 = vmul.f32 %v1542_v11, %v1542_v11 }
 0x105   : > { %v1470_v10 = vadd.f32 %v1386_v52, %v486_v6  ;;  %v661_v17 = vsel %vm558_vm2, %v626_v3, 0.0  ;;  %v677_v3 = vsel %vm558_vm2, %v634_v56, 0.0  ;;  %v1545_v6 = vadd.f32 %v1386_v52, %v534_v53 }
 0x106   : > { %v1088_v13 = vpop.f32.mrf.mxu0  ;;  %v662_v26 = vadd.f32 %v661_v17, %v660_v19  ;;  %v685_v53 = vsel %vm558_vm2, %v638_v14, 0.0  ;;  %v572_v56 = vsel %vm558_vm2, %v1432_v21, 0.0 }
 0x107   : > { %v627_v18 = vmul.f32 %v1470_v10, %v1470_v10  ;;  %v681_v13 = vsel %vm558_vm2, %v636_v5, 0.0  ;;  %v639_v17 = vmul.f32 %v1545_v6, %v1545_v6  ;;  %v578_v5 = vsel %vm558_vm2, %v1454_v41, 0.0 }
 0x108   : > { %v489_v20 = vpop.f32.mrf.mxu0 }
 0x109   : > { %v663_v23 = vsel %vm558_vm2, %v627_v18, 0.0  ;;  %v1485_v25 = vadd.f32 %v1386_v52, %v489_v20  ;;  %v683_v18 = vsel %vm558_vm2, %v637_v24, 0.0  ;;  %v687_v19 = vsel %vm606_vm3, %v639_v17, 0.0 }
 0x10a   : > { %v1089_v28 = vpop.f32.mrf.mxu0  ;;  %v664_v31 = vadd.f32 %v663_v23, %v662_v26 }
 0x10b   : > { %v628_v30 = vmul.f32 %v1485_v25, %v1485_v25  ;;  %v584_v14 = vsel %vm558_vm2, %v1485_v25, 0.0 }
 0x10d   : > { %v665_v34 = vsel %vm558_vm2, %v628_v30, 0.0 }
 0x10e   : > { %v666_v36 = vadd.f32 %v665_v34, %v664_v31  ;;  %v560_v34 = vsel %vm558_vm2, %v1389_v55, 0.0 }
 0x110   : > { %v668_v42 = vadd.f32 %v667_v38, %v666_v36  ;;  %v559_v36 = vsel %vm558_vm2, %v1394_v58, 0.0  ;;  %v562_v38 = vsel %vm558_vm2, %v1397_v59, 0.0 }
 0x111   : > { %v561_v43 = vadd.f32 %v560_v34, %v559_v36  ;;  %v598_v34 = vsel %vm558_vm2, %v1521_v51, 0.0 }
 0x112   : > { %v670_v46 = vadd.f32 %v669_v44, %v668_v42  ;;  %v564_v42 = vsel %vm558_vm2, %v1402_v63, 0.0 }
 0x113   : > { %v563_v44 = vadd.f32 %v562_v38, %v561_v43  ;;  %v600_v38 = vsel %vm558_vm2, %v1528_v57, 0.0 }
 0x114   : > { %v672_v50 = vadd.f32 %v671_v48, %v670_v46  ;;  %v568_v48 = vsel %vm558_vm2, %v1417_v9, 0.0 }
 0x115   : > { %v565_v46 = vadd.f32 %v564_v42, %v563_v44  ;;  %v602_v42 = vsel %vm558_vm2, %v1535_v1, 0.0 }
 0x116   : > { %v674_v61 = vadd.f32 %v673_v54, %v672_v50  ;;  %v570_v50 = vsel %vm558_vm2, %v1426_v15, 0.0 }
 0x117   : > { %v567_v49 = vadd.f32 %v566_v45, %v565_v46  ;;  %v604_v45 = vsel %vm558_vm2, %v1542_v11, 0.0 }
 0x118   : > { %v676_v2 = vadd.f32 %v675_v62, %v674_v61  ;;  %v574_v62 = vsel %vm558_vm2, %v1440_v27, 0.0 }
 0x119   : > { %v569_v54 = vadd.f32 %v568_v48, %v567_v49  ;;  %v607_v48 = vsel %vm606_vm3, %v1545_v6, 0.0 }
 0x11a   : > { %v678_v7 = vadd.f32 %v677_v3, %v676_v2  ;;  %v576_v2 = vsel %vm558_vm2, %v1446_v33, 0.0 }
 0x11b   : > { %v571_v61 = vadd.f32 %v570_v50, %v569_v54 }
 0x11c   : > { %v680_v12 = vadd.f32 %v679_v8, %v678_v7  ;;  %v580_v8 = vsel %vm558_vm2, %v1463_v60, 0.0 }
 0x11d   : > { %v573_v0 = vadd.f32 %v572_v56, %v571_v61 }
 0x11e   : > { %v682_v37 = vadd.f32 %v681_v13, %v680_v12  ;;  %v582_v12 = vsel %vm558_vm2, %v1470_v10, 0.0 }
 0x11f   : > { %v575_v3 = vadd.f32 %v574_v62, %v573_v0 }
 0x120   : > { %v684_v52 = vadd.f32 %v683_v18, %v682_v37  ;;  %v586_v18 = vsel %vm558_vm2, %v1474_v16, 0.0 }
 0x121   : > { %v577_v7 = vadd.f32 %v576_v2, %v575_v3 }
 0x122   : > { %v686_v20 = vadd.f32 %v685_v53, %v684_v52  ;;  %v588_v53 = vsel %vm558_vm2, %v1481_v22, 0.0 }
 0x123   : > { %v579_v24 = vadd.f32 %v578_v5, %v577_v7  ;;  %v1022_v5 = vld [vmem:[%s1706_s3] ss:$0 sm:$0xff] }
 0x124   : > { %v688_v23 = vadd.f32 %v687_v19, %v686_v20  ;;  %v590_v20 = vsel %vm558_vm2, %v1491_v29, 0.0  ;;  %813 = vrot.lane.b32.xlu1 %v1022_v5, %s1193_s19 }
 0x125   : > { %v581_v13 = vadd.f32 %v580_v8, %v579_v24 }
 0x126   : > { %v689_v26 = vrot.slane %v688_v23, 4 }
 0x127   : > { %v583_v17 = vadd.f32 %v582_v12, %v581_v13 }
 0x128   : > { %v690_v28 = vadd.f32 %v689_v26, %v688_v23  ;;  %v592_v26 = vsel %vm558_vm2, %v1499_v32, 0.0 }
 0x129   : > { %v585_v37 = vadd.f32 %v584_v14, %v583_v17 }
 0x12a   : > { %v691_v35 = vrot.slane %v690_v28, 2 }
 0x12b   : > { %v587_v52 = vadd.f32 %v586_v18, %v585_v37  ;;  %v779_v37 = vlaneseq }
 0x12c   : > { %v692_v30 = vadd.f32 %v691_v35, %v690_v28  ;;  %v594_v35 = vsel %vm558_vm2, %v1507_v40, 0.0 }
 0x12d   : > { %v589_v19 = vadd.f32 %v588_v53, %v587_v52  ;;  %v780_v18 = vshrl.u32 %v779_v37, 7 }
 0x12e   : > { %v693_v31 = vrot.slane %v692_v30, 1 }
 0x12f   : > { %v591_v23 = vadd.f32 %v590_v20, %v589_v19  ;;  %v781_v19 = vsub.s32 0, %v780_v18 }
 0x130   : > { %v694_v39 = vadd.f32 %v693_v31, %v692_v30  ;;  %v596_v31 = vsel %vm558_vm2, %v1514_v47, 0.0 }
 0x131   : > { %v593_v28 = vadd.f32 %v592_v26, %v591_v23 }
 0x132   : > { %696 = vrot.lane.b32.xlu0 %v694_v39, %s1193_s19 }
 0x133   : > { %v595_v30 = vadd.f32 %v594_v35, %v593_v28 }
 0x135   : > { %v597_v39 = vadd.f32 %v596_v31, %v595_v30 }
 0x137   : > { %v599_v36 = vadd.f32 %v598_v34, %v597_v39 }
 0x139   : > { %v601_v43 = vadd.f32 %v600_v38, %v599_v36 }
 0x13b   : > { %v603_v44 = vadd.f32 %v602_v42, %v601_v43 }
 0x13d   : > { %v605_v46 = vadd.f32 %v604_v45, %v603_v44 }
 0x13f   : > { %v608_v49 = vadd.f32 %v607_v48, %v605_v46 }
 0x141   : > { %v609_v50 = vrot.slane %v608_v49, 4 }
 0x143   : > { %v610_v54 = vadd.f32 %v609_v50, %v608_v49 }
 0x145   : > { %v611_v56 = vrot.slane %v610_v54, 2 }
 0x147   : > { %v612_v61 = vadd.f32 %v611_v56, %v610_v54 }
 0x149   : > { %v613_v62 = vrot.slane %v612_v61, 1 }
 0x14b   : > { %v614_v0 = vadd.f32 %v613_v62, %v612_v61 }
 0x196   : > { %v814_v52 = vpop.permute.xlu1 %813 }
 0x1a4   : > { %v697_v2 = vpop.permute.xlu0 %696 }
 0x1a5   : > { %v699_v3 = vsel %vm558_vm2, %v614_v0, %v697_v2 }
 0x1a6   : > { %1147 = vmatmul.mubr.f32.vlgmr.msra.gmra.mxu1 %v699_v3 }
 0x266   : > { %v766_v7 = vpop.f32.mrf.mxu1 }
 0x267   : > { %v770_v8 = vmul.f32 %v766_v7, %v766_v7  ;;  %v782_v26 = vrot.slane %v766_v7, %v781_v19 }
 0x268   : > { %v1148_v24 = vpop.f32.mrf.mxu1 }
 0x269   : > { %772 = vrot.lane.b32.xlu0 %v770_v8, %s1193_s19  ;;  %v783_v28 = vsub.f32 %v1394_v58, %v782_v26  ;;  %v784_v35 = vsub.f32 %v1389_v55, %v782_v26  ;;  %v785_v30 = vsub.f32 %v1397_v59, %v782_v26  ;;  %v786_v31 = vsub.f32 %v1402_v63, %v782_v26 }
 0x26a   : > { %v787_v39 = vsub.f32 %v1411_v4, %v782_v26  ;;  %v788_v34 = vsub.f32 %v1417_v9, %v782_v26  ;;  %v789_v36 = vsub.f32 %v1426_v15, %v782_v26  ;;  %v790_v38 = vsub.f32 %v1432_v21, %v782_v26 }
 0x26b   : > { %v791_v43 = vsub.f32 %v1440_v27, %v782_v26  ;;  %v792_v42 = vsub.f32 %v1446_v33, %v782_v26  ;;  %v793_v58 = vsub.f32 %v1454_v41, %v782_v26  ;;  %v794_v55 = vsub.f32 %v1463_v60, %v782_v26 }
 0x26c   : > { %v795_v59 = vsub.f32 %v1470_v10, %v782_v26  ;;  %v796_v63 = vsub.f32 %v1485_v25, %v782_v26  ;;  %v797_v4 = vsub.f32 %v1474_v16, %v782_v26  ;;  %v798_v9 = vsub.f32 %v1481_v22, %v782_v26 }
 0x26d   : > { %v799_v15 = vsub.f32 %v1491_v29, %v782_v26  ;;  %v800_v21 = vsub.f32 %v1499_v32, %v782_v26  ;;  %v801_v27 = vsub.f32 %v1507_v40, %v782_v26  ;;  %v802_v33 = vsub.f32 %v1514_v47, %v782_v26 }
 0x26e   : > { %v803_v41 = vsub.f32 %v1521_v51, %v782_v26  ;;  %v804_v60 = vsub.f32 %v1528_v57, %v782_v26  ;;  %v805_v10 = vsub.f32 %v1535_v1, %v782_v26  ;;  %v806_v25 = vsub.f32 %v1542_v11, %v782_v26  ;;  %v1023_v57 = vld [vmem:[%s1707_s4] ss:$0 sm:$0xff] }
 0x26f   : > { %v807_v16 = vsub.f32 %v1545_v6, %v782_v26 }
 0x2db   : > { %v773_v12 = vpop.permute.xlu0 %772 }
 0x2dc   : > { %v775_v13 = vsub.f32 %v766_v7, %v773_v12 }
 0x2de   : > { %v776_v14 = vmax.f32 %v775_v13, 0.0 }
 0x2e0   : > { %v777_v17 = vadd.f32 1e-05, %v776_v14 }
 0x2e2   : > { %1181 = vrsqrt.f32 %v777_v17 }
 0x2ef   : > { %v1182_v53 = vpop.eup %1181 }
 0x2f0   : > { %v816_v20 = vmul.f32 %v1182_v53, %v814_v52 }
 0x2f2   : > { %v820_v23 = vrot.slane %v816_v20, %v781_v19 }
 0x2f4   : > { %822 = vrot.lane.b32.xlu1 %v820_v23, %s1193_s19 }
 0x366   : > { %v823_v44 = vpop.permute.xlu1 %822 }
 0x367   : > { %v825_v22 = vmul.f32 %v823_v44, %v783_v28  ;;  %v826_v45 = vmul.f32 %v823_v44, %v784_v35  ;;  %v827_v29 = vmul.f32 %v823_v44, %v785_v30  ;;  %v828_v46 = vmul.f32 %v823_v44, %v786_v31 }
 0x368   : > { %v829_v32 = vmul.f32 %v823_v44, %v787_v39  ;;  %v830_v48 = vmul.f32 %v823_v44, %v788_v34  ;;  %v831_v40 = vmul.f32 %v823_v44, %v789_v36  ;;  %v832_v49 = vmul.f32 %v823_v44, %v790_v38 }
 0x369   : > { %v833_v47 = vmul.f32 %v823_v44, %v791_v43  ;;  %v834_v50 = vmul.f32 %v823_v44, %v792_v42  ;;  %v835_v51 = vmul.f32 %v823_v44, %v793_v58  ;;  %v836_v54 = vmul.f32 %v823_v44, %v794_v55 }
 0x36a   : > { %v837_v1 = vmul.f32 %v823_v44, %v795_v59  ;;  %v838_v11 = vmul.f32 %v823_v44, %v796_v63  ;;  %v839_v6 = vmul.f32 %v823_v44, %v797_v4  ;;  %v840_v56 = vmul.f32 %v823_v44, %v798_v9 }
 0x36b   : > { %v841_v61 = vmul.f32 %v823_v44, %v799_v15  ;;  %v842_v62 = vmul.f32 %v823_v44, %v800_v21  ;;  %v843_v0 = vmul.f32 %v823_v44, %v801_v27  ;;  %v844_v2 = vmul.f32 %v823_v44, %v802_v33 }
 0x36c   : > { %v845_v3 = vmul.f32 %v823_v44, %v803_v41  ;;  %v846_v5 = vmul.f32 %v823_v44, %v804_v60  ;;  %v847_v7 = vmul.f32 %v823_v44, %v805_v10  ;;  %v848_v8 = vmul.f32 %v823_v44, %v806_v25 }
 0x36d   : > { %v849_v24 = vmul.f32 %v823_v44, %v807_v16  ;;  %v856_v12 = vadd.f32 %v1023_v57, %v825_v22  ;;  %v857_v13 = vadd.f32 %v1023_v57, %v826_v45  ;;  %v858_v14 = vadd.f32 %v1023_v57, %v827_v29 }
 0x36e   : > { %v859_v17 = vadd.f32 %v1023_v57, %v828_v46  ;;  %v860_v37 = vadd.f32 %v1023_v57, %v829_v32  ;;  %v861_v18 = vadd.f32 %v1023_v57, %v830_v48  ;;  %v862_v52 = vadd.f32 %v1023_v57, %v831_v40 }
 0x36f   : > { %v863_v53 = vadd.f32 %v1023_v57, %v832_v49  ;;  %v864_v19 = vadd.f32 %v1023_v57, %v833_v47  ;;  %v865_v20 = vadd.f32 %v1023_v57, %v834_v50  ;;  %v866_v23 = vadd.f32 %v1023_v57, %v835_v51 }
 0x370   : > { %v867_v26 = vadd.f32 %v1023_v57, %v836_v54  ;;  %v868_v28 = vadd.f32 %v1023_v57, %v837_v1  ;;  %v869_v35 = vadd.f32 %v1023_v57, %v838_v11  ;;  %v870_v30 = vadd.f32 %v1023_v57, %v839_v6 }
 0x371   : > { %v871_v31 = vadd.f32 %v1023_v57, %v840_v56  ;;  %v872_v39 = vadd.f32 %v1023_v57, %v841_v61  ;;  %v873_v34 = vadd.f32 %v1023_v57, %v842_v62  ;;  %v874_v36 = vadd.f32 %v1023_v57, %v843_v0 }
 0x372   : > { %v875_v38 = vadd.f32 %v1023_v57, %v844_v2  ;;  %v876_v43 = vadd.f32 %v1023_v57, %v845_v3  ;;  %v877_v42 = vadd.f32 %v1023_v57, %v846_v5  ;;  %v878_v58 = vadd.f32 %v1023_v57, %v847_v7 }
 0x373   : > { %v879_v55 = vadd.f32 %v1023_v57, %v848_v8  ;;  %v880_v59 = vadd.f32 %v1023_v57, %v849_v24  ;;  %v881_v63 = vmax.f32 %v856_v12, 0.0  ;;  %v882_v4 = vmax.f32 %v857_v13, 0.0 }
 0x374   : > { %v883_v9 = vmax.f32 %v858_v14, 0.0  ;;  %v884_v15 = vmax.f32 %v859_v17, 0.0  ;;  %v885_v21 = vmax.f32 %v860_v37, 0.0  ;;  %v886_v27 = vmax.f32 %v861_v18, 0.0 }
 0x375   : > { %v887_v33 = vmax.f32 %v862_v52, 0.0  ;;  %v888_v41 = vmax.f32 %v863_v53, 0.0  ;;  %v889_v60 = vmax.f32 %v864_v19, 0.0  ;;  %v890_v10 = vmax.f32 %v865_v20, 0.0  ;;  %906 = vst.msk [vmem:[%s1648_s22] sm:$0xff] %vm558_vm2, %v881_v63  ;;  %907 = vst.msk [vmem:[%s1648_s22 + $0x8] sm:$0xff] %vm558_vm2, %v882_v4 }
 0x376   : > { %v891_v25 = vmax.f32 %v866_v23, 0.0  ;;  %v892_v16 = vmax.f32 %v867_v26, 0.0  ;;  %v893_v44 = vmax.f32 %v868_v28, 0.0  ;;  %v894_v22 = vmax.f32 %v869_v35, 0.0  ;;  %908 = vst.msk [vmem:[%s1648_s22 + $0x10] sm:$0xff] %vm558_vm2, %v883_v9  ;;  %909 = vst.msk [vmem:[%s1648_s22 + $0x18] sm:$0xff] %vm558_vm2, %v884_v15 }
 0x377   : > { %910 = vst.msk [vmem:[%s1648_s22 + $0x20] sm:$0xff] %vm558_vm2, %v885_v21  ;;  %911 = vst.msk [vmem:[%s1648_s22 + $0x28] sm:$0xff] %vm558_vm2, %v886_v27  ;;  %v895_v45 = vmax.f32 %v870_v30, 0.0  ;;  %v896_v29 = vmax.f32 %v871_v31, 0.0  ;;  %v897_v46 = vmax.f32 %v872_v39, 0.0  ;;  %v898_v32 = vmax.f32 %v873_v34, 0.0 }
 0x378   : > { %912 = vst.msk [vmem:[%s1648_s22 + $0x30] sm:$0xff] %vm558_vm2, %v887_v33  ;;  %913 = vst.msk [vmem:[%s1648_s22 + $0x38] sm:$0xff] %vm558_vm2, %v888_v41  ;;  %v899_v48 = vmax.f32 %v874_v36, 0.0  ;;  %v900_v40 = vmax.f32 %v875_v38, 0.0  ;;  %v901_v49 = vmax.f32 %v876_v43, 0.0  ;;  %v902_v47 = vmax.f32 %v877_v42, 0.0 }
 0x379   : > { %914 = vst.msk [vmem:[%s1648_s22 + $0x40] sm:$0xff] %vm558_vm2, %v889_v60  ;;  %915 = vst.msk [vmem:[%s1648_s22 + $0x48] sm:$0xff] %vm558_vm2, %v890_v10  ;;  %v903_v50 = vmax.f32 %v878_v58, 0.0  ;;  %v904_v51 = vmax.f32 %v879_v55, 0.0  ;;  %v905_v54 = vmax.f32 %v880_v59, 0.0 }
 0x37a   : > { %916 = vst.msk [vmem:[%s1648_s22 + $0x50] sm:$0xff] %vm558_vm2, %v891_v25  ;;  %917 = vst.msk [vmem:[%s1648_s22 + $0x58] sm:$0xff] %vm558_vm2, %v892_v16 }
 0x37b   : > { %918 = vst.msk [vmem:[%s1648_s22 + $0x60] sm:$0xff] %vm558_vm2, %v893_v44  ;;  %919 = vst.msk [vmem:[%s1648_s22 + $0x68] sm:$0xff] %vm558_vm2, %v894_v22 }
 0x37c   : > { %920 = vst.msk [vmem:[%s1648_s22 + $0x70] sm:$0xff] %vm558_vm2, %v895_v45  ;;  %921 = vst.msk [vmem:[%s1648_s22 + $0x78] sm:$0xff] %vm558_vm2, %v896_v29 }
 0x37d   : > { %922 = vst.msk [vmem:[%s1648_s22 + $0x80] sm:$0xff] %vm558_vm2, %v897_v46  ;;  %923 = vst.msk [vmem:[%s1648_s22 + $0x88] sm:$0xff] %vm558_vm2, %v898_v32 }
 0x37e   : > { %924 = vst.msk [vmem:[%s1648_s22 + $0x90] sm:$0xff] %vm558_vm2, %v899_v48  ;;  %925 = vst.msk [vmem:[%s1648_s22 + $0x98] sm:$0xff] %vm558_vm2, %v900_v40 }
 0x37f   : > { %926 = vst.msk [vmem:[%s1648_s22 + $0xa0] sm:$0xff] %vm558_vm2, %v901_v49  ;;  %927 = vst.msk [vmem:[%s1648_s22 + $0xa8] sm:$0xff] %vm558_vm2, %v902_v47 }
 0x380   : > { %928 = vst.msk [vmem:[%s1648_s22 + $0xb0] sm:$0xff] %vm558_vm2, %v903_v50  ;;  %929 = vst.msk [vmem:[%s1648_s22 + $0xb8] sm:$0xff] %vm558_vm2, %v904_v51 }
 0x381   : > { %930 = vst.msk [vmem:[%s1648_s22 + $0xc0] sm:$0xf] %vm606_vm3, %v905_v54 }
 0x382 PF: > { %s16_s21 = sadd.s32 1, %s1189_s21  }
 0x383   : > { %p13_p4 = scmp.ge.s32.totalorder %s16_s21, 4  }
 0x385   :  { %15 = sbr.rel (!%p13_p4) target bundleno = 1 (0x1), region = 74 }

// kernel: hybrid_ode_classifier_forward.6
= control target key start
LH: loop header
LB: loop body
LE: loop exit
PB: predicated region body
PF: predicated region fallthrough
CT: control target
= control target key end

     0   :  { %s1923_s21 = smov 0   ;;  %s2339_s0 = inlined_call_operand.vmem [shape: bf16[2,49,1024], index: 0, kind: input, shape index: {}]   ;;  %s2340_s1 = inlined_call_operand.vmem [shape: bf16[1024,64], index: 1, kind: input, shape index: {}]   ;;  %s2341_s2 = inlined_call_operand.vmem [shape: f32[1,64], index: 2, kind: input, shape index: {}]   ;;  %s2342_s3 = inlined_call_operand.vmem [shape: f32[1,64], index: 3, kind: input, shape index: {}]   ;;  %s2343_s4 = inlined_call_operand.vmem [shape: f32[1,64], index: 4, kind: input, shape index: {}]   ;;  %s2344_s5 = inlined_call_operand.vmem [shape: f32[128,128], index: 5, kind: input, shape index: {}]   ;;  %s2345_s6 = inlined_call_operand.vmem [shape: f32[2,49,64], index: 6, kind: output, shape index: {}]  }
   0x1 LB: > { %s1470_s22 = sadd.s32 4294967295, %s1883_s21   ;;  %p1474_p0 = scmp.ge.s32.totalorder %s1883_s21, 1  ;;  %s1883_s21 = sphi %s1923_s21, %s16_s21  }
   0x2   : > { %p212_p1 = scmp.lt.s32.totalorder %s1883_s21, 3 }
   0x4   : > { %p213_p2 = pnand %p1474_p0, %p212_p1 }
   0x5   : > { %p242_p3 = scmp.lt.s32.totalorder (!%p213_p2), %s1470_s22, 1  ;;  %s1887_s13 = smov (!%p213_p2), 64  }
   0x6   : > { %216 = sbr.rel (%p213_p2) target bundleno = 894 (0x37e), region = 44 }
   0xb   : > { %v1803_v0 = vld [vmem:[%s2340_s1 + $0x78] sm:$0xff]   ;;  %v1807_v4 = vld [vmem:[%s2340_s1 + $0x70] sm:$0xff]   ;;  %v1811_v8 = vld [vmem:[%s2340_s1 + $0x68] sm:$0xff]   ;;  %s2347_s22 = smov (!%p242_p3, %s1470_s22), 1  ;;  %vm1222_vm0 = vcmask 523264   ;;  %vm1234_vm1 = vcmask 516096  }
   0xc   : > { %v1804_v1 = vld [vmem:[%s2340_s1 + $0xf8] sm:$0xff]   ;;  %1578 = vmatprep.subr.bf16.mxu0 %v1803_v0  ;;  %v1808_v5 = vld [vmem:[%s2340_s1 + $0xf0] sm:$0xff]   ;;  %v1812_v9 = vld [vmem:[%s2340_s1 + $0xe8] sm:$0xff]   ;;  %s1790_s7 = smul.u32 224, %s2347_s22  ;;  %vm1886_vm2 = vmmov 0  }
   0xd   : > { %v1805_v2 = vld [vmem:[%s2340_s1 + $0x38] sm:$0xff]   ;;  %1618 = vmatprep.subr.bf16.mxu1 %v1804_v1  ;;  %v1809_v6 = vld [vmem:[%s2340_s1 + $0x30] sm:$0xff]   ;;  %v1813_v10 = vld [vmem:[%s2340_s1 + $0x28] sm:$0xff]   ;;  %s1791_s16 = smul.u32 56, %s2347_s22 }
   0xe   : > { %v1806_v3 = vld [vmem:[%s2340_s1 + $0xb8] sm:$0xff]   ;;  %1579 = vmatpush3.bf16.msra.mxu0 %v1805_v2  ;;  %v1810_v7 = vld [vmem:[%s2340_s1 + $0xb0] sm:$0xff]   ;;  %v1814_v11 = vld [vmem:[%s2340_s1 + $0xa8] sm:$0xff]   ;;  %s2031_s18 = scalar_lea.vmem %s2339_s0, %s1790_s7 }
   0xf   : > { %1619 = vmatpush3.bf16.msra.mxu1 %v1806_v3  ;;  %1580 = vmatprep.subr.bf16.mxu0 %v1807_v4  ;;  %v1815_v12 = vld [vmem:[%s2340_s1 + $0x60] sm:$0xff]   ;;  %v1819_v16 = vld [vmem:[%s2340_s1 + $0x58] sm:$0xff]   ;;  %v1823_v20 = vld [vmem:[%s2340_s1 + $0x50] sm:$0xff]   ;;  %s251_s23 = scalar_lea.vmem %s2345_s6, %s1791_s16 }
  0x10   : > { %1620 = vmatprep.subr.bf16.mxu1 %v1808_v5  ;;  %v1816_v13 = vld [vmem:[%s2340_s1 + $0xe0] sm:$0xff]   ;;  %v1820_v17 = vld [vmem:[%s2340_s1 + $0xd8] sm:$0xff]   ;;  %v1824_v21 = vld [vmem:[%s2340_s1 + $0xd0] sm:$0xff]  }
  0x11   : > { %v1817_v14 = vld [vmem:[%s2340_s1 + $0x20] sm:$0xff]   ;;  %v1821_v18 = vld [vmem:[%s2340_s1 + $0x18] sm:$0xff]   ;;  %v1825_v22 = vld [vmem:[%s2340_s1 + $0x10] sm:$0xff]  }
  0x12   : > { %1581 = vmatpush3.bf16.msra.mxu0 %v1809_v6  ;;  %v1818_v15 = vld [vmem:[%s2340_s1 + $0xa0] sm:$0xff]   ;;  %v1822_v19 = vld [vmem:[%s2340_s1 + $0x98] sm:$0xff]   ;;  %v1826_v23 = vld [vmem:[%s2340_s1 + $0x90] sm:$0xff]  }
  0x13   : > { %1621 = vmatpush3.bf16.msra.mxu1 %v1810_v7  ;;  %1582 = vmatprep.subr.bf16.mxu0 %v1811_v8  ;;  %v1827_v24 = vld [vmem:[%s2340_s1 + $0x48] sm:$0xff]   ;;  %v1831_v28 = vld [vmem:[%s2340_s1 + $0x40] sm:$0xff]   ;;  %v1835_v40 = vld [vmem:[%s2340_s1 + $0x178] sm:$0xff]  }
  0x14   : > { %1622 = vmatprep.subr.bf16.mxu1 %v1812_v9  ;;  %v1828_v25 = vld [vmem:[%s2340_s1 + $0xc8] sm:$0xff]   ;;  %v1832_v29 = vld [vmem:[%s2340_s1 + $0xc0] sm:$0xff]   ;;  %v1836_v41 = vld [vmem:[%s2340_s1 + $0x1f8] sm:$0xff]  }
  0x15   : > { %v1829_v26 = vld [vmem:[%s2340_s1 + $0x8] sm:$0xff]   ;;  %v1833_v30 = vld [vmem:[%s2340_s1] sm:$0xff]   ;;  %v1837_v42 = vld [vmem:[%s2340_s1 + $0x138] sm:$0xff]  }
  0x16   : > { %1583 = vmatpush3.bf16.msra.mxu0 %v1813_v10  ;;  %v1830_v27 = vld [vmem:[%s2340_s1 + $0x88] sm:$0xff]   ;;  %v1834_v31 = vld [vmem:[%s2340_s1 + $0x80] sm:$0xff]   ;;  %v1838_v43 = vld [vmem:[%s2340_s1 + $0x1b8] sm:$0xff]  }
  0x17   : > { %1623 = vmatpush3.bf16.msra.mxu1 %v1814_v11  ;;  %1584 = vmatprep.subr.bf16.mxu0 %v1815_v12  ;;  %v253_v32 = vld [vmem:[%s2031_s18] sm:$0xff]  ;;  %v254_v34 = vld [vmem:[%s2031_s18 + $0x8] sm:$0xff]  ;;  %v1839_v44 = vld [vmem:[%s2340_s1 + $0x170] sm:$0xff]  }
  0x18   : > { %1624 = vmatprep.subr.bf16.mxu1 %v1816_v13  ;;  %v257_v33 = vld [vmem:[%s2031_s18 + $0x20] sm:$0xff]  ;;  %v258_v37 = vld [vmem:[%s2031_s18 + $0x28] sm:$0xff]  ;;  %v1840_v45 = vld [vmem:[%s2340_s1 + $0x1f0] sm:$0xff]  }
  0x19   : > { %v1478_v35 = vcombine.low %v253_v32, %v257_v33  ;;  %v1479_v36 = vcombine.high %v253_v32, %v257_v33  ;;  %v1480_v38 = vcombine.low %v254_v34, %v258_v37  ;;  %v1481_v39 = vcombine.high %v254_v34, %v258_v37  ;;  %v1841_v46 = vld [vmem:[%s2340_s1 + $0x130] sm:$0xff]   ;;  %v261_v48 = vld [vmem:[%s2031_s18 + $0x40] sm:$0xff]  ;;  %v262_v51 = vld [vmem:[%s2031_s18 + $0x48] sm:$0xff] }
  0x1a   : > { %1585 = vmatpush3.bf16.msra.mxu0 %v1817_v14  ;;  %v1842_v47 = vld [vmem:[%s2340_s1 + $0x1b0] sm:$0xff]   ;;  %v265_v49 = vld [vmem:[%s2031_s18 + $0x60] sm:$0xff]  ;;  %v266_v52 = vld [vmem:[%s2031_s18 + $0x68] sm:$0xff] }
  0x1b   : > { %1625 = vmatpush3.bf16.msra.mxu1 %v1818_v15  ;;  %1586 = vmatprep.subr.bf16.mxu0 %v1819_v16  ;;  %v1487_v50 = vcombine.high %v261_v48, %v265_v49  ;;  %v1486_v53 = vcombine.low %v261_v48, %v265_v49  ;;  %v1489_v54 = vcombine.high %v262_v51, %v266_v52  ;;  %v1843_v56 = vld [vmem:[%s2340_s1 + $0x168] sm:$0xff]   ;;  %v1847_v60 = vld [vmem:[%s2340_s1 + $0x160] sm:$0xff]   ;;  %v1851_v8 = vld [vmem:[%s2340_s1 + $0x158] sm:$0xff]  }
  0x1c   : > { %1626 = vmatprep.subr.bf16.mxu1 %v1820_v17  ;;  %980 = vmatprep.mubr.bf16.mxu0 %v1479_v36  ;;  %v1488_v55 = vcombine.low %v262_v51, %v266_v52  ;;  %v1844_v57 = vld [vmem:[%s2340_s1 + $0x1e8] sm:$0xff]   ;;  %v1848_v61 = vld [vmem:[%s2340_s1 + $0x1e0] sm:$0xff]   ;;  %v1852_v9 = vld [vmem:[%s2340_s1 + $0x1d8] sm:$0xff]  }
  0x1d   : > { %1044 = vmatprep.mubr.bf16.mxu1 %v1481_v39  ;;  %v1845_v58 = vld [vmem:[%s2340_s1 + $0x128] sm:$0xff]   ;;  %v1849_v62 = vld [vmem:[%s2340_s1 + $0x120] sm:$0xff]   ;;  %v1853_v10 = vld [vmem:[%s2340_s1 + $0x118] sm:$0xff]  }
  0x1e   : > { %1587 = vmatpush3.bf16.msra.mxu0 %v1821_v18  ;;  %v1846_v59 = vld [vmem:[%s2340_s1 + $0x1a8] sm:$0xff]   ;;  %v1850_v63 = vld [vmem:[%s2340_s1 + $0x1a0] sm:$0xff]   ;;  %v1854_v11 = vld [vmem:[%s2340_s1 + $0x198] sm:$0xff]  }
  0x1f   : > { %1627 = vmatpush3.bf16.msra.mxu1 %v1822_v19  ;;  %1588 = vmatprep.subr.bf16.mxu0 %v1823_v20  ;;  %v269_v0 = vld [vmem:[%s2031_s18 + $0x80] sm:$0xff]  ;;  %v270_v2 = vld [vmem:[%s2031_s18 + $0x88] sm:$0xff]  ;;  %v1855_v12 = vld [vmem:[%s2340_s1 + $0x150] sm:$0xff]  }
  0x20   : > { %1628 = vmatprep.subr.bf16.mxu1 %v1824_v21  ;;  %v273_v1 = vld [vmem:[%s2031_s18 + $0xa0] sm:$0xff]  ;;  %v274_v3 = vld [vmem:[%s2031_s18 + $0xa8] sm:$0xff]  ;;  %v1856_v13 = vld [vmem:[%s2340_s1 + $0x1d0] sm:$0xff]  }
  0x21   : > { %v1495_v4 = vcombine.high %v269_v0, %v273_v1  ;;  %v1497_v5 = vcombine.high %v270_v2, %v274_v3  ;;  %v1494_v6 = vcombine.low %v269_v0, %v273_v1  ;;  %v1496_v7 = vcombine.low %v270_v2, %v274_v3  ;;  %v1857_v14 = vld [vmem:[%s2340_s1 + $0x110] sm:$0xff]   ;;  %v277_v16 = vld [vmem:[%s2031_s18 + $0xc0] sm:$0x11]  ;;  %v278_v17 = vld [vmem:[%s2031_s18 + $0xc8] sm:$0x11] }
  0x22   : > { %1589 = vmatpush3.bf16.msra.mxu0 %v1825_v22  ;;  %v1858_v15 = vld [vmem:[%s2340_s1 + $0x190] sm:$0xff]   ;;  %v1503_v18 = vcombine.high %v277_v16, %v277_v16  ;;  %v1505_v19 = vcombine.high %v278_v17, %v278_v17  ;;  %v1502_v20 = vcombine.low %v277_v16, %v277_v16  ;;  %v1863_v21 = vld [vmem:[%s2340_s1 + $0x148] sm:$0xff]   ;;  %v1504_v22 = vcombine.low %v278_v17, %v278_v17  ;;  %v256_v32 = vld [vmem:[%s2031_s18 + $0x18] sm:$0xff] }
  0x23   : > { %1629 = vmatpush3.bf16.msra.mxu1 %v1826_v23  ;;  %1590 = vmatprep.subr.bf16.mxu0 %v1827_v24  ;;  %v1864_v23 = vld [vmem:[%s2340_s1 + $0x1c8] sm:$0xff]   ;;  %v260_v33 = vld [vmem:[%s2031_s18 + $0x38] sm:$0xff]  ;;  %v263_v37 = vld [vmem:[%s2031_s18 + $0x50] sm:$0xff] }
  0x24   : > { %1630 = vmatprep.subr.bf16.mxu1 %v1828_v25  ;;  %v1865_v24 = vld [vmem:[%s2340_s1 + $0x108] sm:$0xff]   ;;  %v1484_v36 = vcombine.low %v256_v32, %v260_v33  ;;  %v264_v39 = vld [vmem:[%s2031_s18 + $0x58] sm:$0xff]  ;;  %v279_v52 = vld [vmem:[%s2031_s18 + $0xd0] sm:$0x11] }
  0x25   : > { %v1866_v25 = vld [vmem:[%s2340_s1 + $0x188] sm:$0xff]   ;;  %v1216_v0 = vld [vmem:[%s2344_s5 + $0x60] sm:$0xff]  ;;  %v1215_v1 = vld [vmem:[%s2344_s5 + $0x58] sm:$0xff] }
  0x26   : > { %1591 = vmatpush3.bf16.msra.mxu0 %v1829_v26  ;;  %v1867_v26 = vld [vmem:[%s2340_s1 + $0x140] sm:$0xff]   ;;  %v1214_v2 = vld [vmem:[%s2344_s5 + $0x50] sm:$0xff]  ;;  %v1213_v3 = vld [vmem:[%s2344_s5 + $0x48] sm:$0xff] }
  0x27   : > { %1631 = vmatpush3.bf16.msra.mxu1 %v1830_v27  ;;  %1592 = vmatprep.subr.bf16.mxu0 %v1831_v28  ;;  %v1868_v27 = vld [vmem:[%s2340_s1 + $0x1c0] sm:$0xff]  }
  0x28   : > { %1632 = vmatprep.subr.bf16.mxu1 %v1832_v29  ;;  %v1869_v28 = vld [vmem:[%s2340_s1 + $0x100] sm:$0xff]  }
  0x29   : > { %v1870_v29 = vld [vmem:[%s2340_s1 + $0x180] sm:$0xff]  }
  0x2a   : > { %1593 = vmatpush3.bf16.msra.mxu0 %v1833_v30  ;;  %v255_v30 = vld [vmem:[%s2031_s18 + $0x10] sm:$0xff] }
  0x2b   : > { %1633 = vmatpush3.bf16.msra.mxu1 %v1834_v31  ;;  %1658 = vmatprep.subr.bf16.mxu0 %v1835_v40  ;;  %v259_v31 = vld [vmem:[%s2031_s18 + $0x30] sm:$0xff]  ;;  %v1485_v40 = vcombine.high %v256_v32, %v260_v33 }
  0x2c   : > { %1698 = vmatprep.subr.bf16.mxu1 %v1836_v41  ;;  %v1482_v34 = vcombine.low %v255_v30, %v259_v31 }
  0x2d   : > { %981 = vmatmul.mubr.bf16.vlgmr.msra.gmra.mxu0 %v1478_v35  ;;  %v1483_v35 = vcombine.high %v255_v30, %v259_v31 }
  0x2e   : > { %1045 = vmatmul.mubr.bf16.vlgmr.msra.gmra.mxu1 %v1480_v38  ;;  %1659 = vmatpush3.bf16.msra.mxu0 %v1837_v42  ;;  %v267_v38 = vld [vmem:[%s2031_s18 + $0x70] sm:$0xff]  ;;  %v268_v42 = vld [vmem:[%s2031_s18 + $0x78] sm:$0xff] }
  0x2f   : > { %1699 = vmatpush3.bf16.msra.mxu1 %v1838_v43  ;;  %1660 = vmatprep.subr.bf16.mxu0 %v1839_v44  ;;  %v1491_v41 = vcombine.high %v263_v37, %v267_v38  ;;  %v1493_v43 = vcombine.high %v264_v39, %v268_v42  ;;  %v271_v44 = vld [vmem:[%s2031_s18 + $0x90] sm:$0xff]  ;;  %v1490_v48 = vcombine.low %v263_v37, %v267_v38 }
  0x30   : > { %1700 = vmatprep.subr.bf16.mxu1 %v1840_v45  ;;  %988 = vmatprep.mubr.bf16.mxu0 %v1487_v50  ;;  %v275_v45 = vld [vmem:[%s2031_s18 + $0xb0] sm:$0xff]  ;;  %v1492_v49 = vcombine.low %v264_v39, %v268_v42 }
  0x31   : > { %1052 = vmatprep.mubr.bf16.mxu1 %v1489_v54  ;;  %v1499_v50 = vcombine.high %v271_v44, %v275_v45  ;;  %v1498_v54 = vcombine.low %v271_v44, %v275_v45 }
  0x32   : > { %1661 = vmatpush3.bf16.msra.mxu0 %v1841_v46  ;;  %v272_v46 = vld [vmem:[%s2031_s18 + $0x98] sm:$0xff] }
  0x33   : > { %1701 = vmatpush3.bf16.msra.mxu1 %v1842_v47  ;;  %1662 = vmatprep.subr.bf16.mxu0 %v1843_v56  ;;  %v276_v47 = vld [vmem:[%s2031_s18 + $0xb8] sm:$0xff]  ;;  %v1507_v56 = vcombine.high %v279_v52, %v279_v52 }
  0x34   : > { %1702 = vmatprep.subr.bf16.mxu1 %v1844_v57  ;;  %v1501_v51 = vcombine.high %v272_v46, %v276_v47 }
  0x35   : > { %989 = vmatmul.mubr.bf16.gmra.mxu0 %v1486_v53  ;;  %v280_v53 = vld [vmem:[%s2031_s18 + $0xd8] sm:$0x11] }
  0x36   : > { %1053 = vmatmul.mubr.bf16.gmra.mxu1 %v1488_v55  ;;  %1663 = vmatpush3.bf16.msra.mxu0 %v1845_v58  ;;  %v1500_v55 = vcombine.low %v272_v46, %v276_v47  ;;  %v1509_v57 = vcombine.high %v280_v53, %v280_v53  ;;  %v1506_v58 = vcombine.low %v279_v52, %v279_v52 }
  0x37   : > { %1703 = vmatpush3.bf16.msra.mxu1 %v1846_v59  ;;  %1664 = vmatprep.subr.bf16.mxu0 %v1847_v60  ;;  %v1508_v59 = vcombine.low %v280_v53, %v280_v53  ;;  %v1219_v60 = vld [vmem:[%s2344_s5 + $0x78] sm:$0xff] }
  0x38   : > { %1704 = vmatprep.subr.bf16.mxu1 %v1848_v61  ;;  %996 = vmatprep.mubr.bf16.mxu0 %v1495_v4  ;;  %v1885_v61 = vmov 0.0   ;;  %v1212_v4 = vld [vmem:[%s2344_s5 + $0x40] sm:$0xff] }
  0x39   : > { %1060 = vmatprep.mubr.bf16.mxu1 %v1497_v5  ;;  %v1211_v5 = vld [vmem:[%s2344_s5 + $0x38] sm:$0xff] }
  0x3a   : > { %1665 = vmatpush3.bf16.msra.mxu0 %v1849_v62  ;;  %v1218_v62 = vld [vmem:[%s2344_s5 + $0x70] sm:$0xff] }
  0x3b   : > { %1705 = vmatpush3.bf16.msra.mxu1 %v1850_v63  ;;  %1666 = vmatprep.subr.bf16.mxu0 %v1851_v8  ;;  %v1217_v63 = vld [vmem:[%s2344_s5 + $0x68] sm:$0xff]  ;;  %v1208_v8 = vld [vmem:[%s2344_s5 + $0x20] sm:$0xff] }
  0x3c   : > { %1706 = vmatprep.subr.bf16.mxu1 %v1852_v9  ;;  %v1207_v9 = vld [vmem:[%s2344_s5 + $0x18] sm:$0xff] }
  0x3d   : > { %997 = vmatmul.mubr.bf16.gmra.mxu0 %v1494_v6  ;;  %v1210_v6 = vld [vmem:[%s2344_s5 + $0x30] sm:$0xff] }
  0x3e   : > { %1061 = vmatmul.mubr.bf16.gmra.mxu1 %v1496_v7  ;;  %1667 = vmatpush3.bf16.msra.mxu0 %v1853_v10  ;;  %v1209_v7 = vld [vmem:[%s2344_s5 + $0x28] sm:$0xff]  ;;  %v1206_v10 = vld [vmem:[%s2344_s5 + $0x10] sm:$0xff] }
  0x3f   : > { %1707 = vmatpush3.bf16.msra.mxu1 %v1854_v11  ;;  %1668 = vmatprep.subr.bf16.mxu0 %v1855_v12  ;;  %v1205_v11 = vld [vmem:[%s2344_s5 + $0x8] sm:$0xff] }
  0x40   : > { %1708 = vmatprep.subr.bf16.mxu1 %v1856_v13  ;;  %1004 = vmatprep.mubr.bf16.mxu0 %v1503_v18 }
  0x41   : > { %1068 = vmatprep.mubr.bf16.mxu1 %v1505_v19 }
  0x42   : > { %1669 = vmatpush3.bf16.msra.mxu0 %v1857_v14 }
  0x43   : > { %1709 = vmatpush3.bf16.msra.mxu1 %v1858_v15  ;;  %1670 = vmatprep.subr.bf16.mxu0 %v1863_v21 }
  0x44   : > { %1710 = vmatprep.subr.bf16.mxu1 %v1864_v23 }
  0x45   : > { %1005 = vmatmul.mubr.bf16.gmra.mxu0 %v1502_v20 }
  0x46   : > { %1069 = vmatmul.mubr.bf16.gmra.mxu1 %v1504_v22  ;;  %1671 = vmatpush3.bf16.msra.mxu0 %v1865_v24 }
  0x47   : > { %1711 = vmatpush3.bf16.msra.mxu1 %v1866_v25  ;;  %1672 = vmatprep.subr.bf16.mxu0 %v1867_v26 }
  0x48   : > { %1712 = vmatprep.subr.bf16.mxu1 %v1868_v27  ;;  %1108 = vmatprep.mubr.bf16.mxu0 %v1483_v35 }
  0x49   : > { %1172 = vmatprep.mubr.bf16.mxu1 %v1485_v40 }
  0x4a   : > { %1673 = vmatpush3.bf16.msra.mxu0 %v1869_v28 }
  0x4b   : > { %1713 = vmatpush3.bf16.msra.mxu1 %v1870_v29  ;;  %1755 = vmatprep.subr.mxu0 %v1885_v61 }
  0x4d   : > { %1109 = vmatmul.mubr.bf16.vlgmr.msra.gmra.mxu0 %v1482_v34 }
  0x4e   : > { %1173 = vmatmul.mubr.bf16.vlgmr.msra.gmra.mxu1 %v1484_v36  ;;  %1116 = vmatprep.mubr.bf16.mxu0 %v1491_v41 }
  0x4f   : > { %1180 = vmatprep.mubr.bf16.mxu1 %v1493_v43  ;;  %1756 = vmatpush3.msra.mxu0 %v1219_v60 }
  0x50   : > { %1757 = vmatprep.subr.mxu0 %v1885_v61 }
  0x51   : > { %1758 = vmatpush3.msra.mxu0 %v1218_v62 }
  0x52   : > { %1759 = vmatprep.subr.mxu0 %v1885_v61 }
  0x53   : > { %1760 = vmatpush3.msra.mxu0 %v1217_v63 }
  0x54   : > { %1761 = vmatprep.subr.mxu0 %v1885_v61 }
  0x55   : > { %1117 = vmatmul.mubr.bf16.gmra.mxu0 %v1490_v48 }
  0x56   : > { %1181 = vmatmul.mubr.bf16.gmra.mxu1 %v1492_v49  ;;  %1124 = vmatprep.mubr.bf16.mxu0 %v1499_v50  ;;  %v2239_v49 = vld [vmem:[%s2341_s2] ss:$0 sm:$0xff] }
  0x57   : > { %1188 = vmatprep.mubr.bf16.mxu1 %v1501_v51  ;;  %1762 = vmatpush3.msra.mxu0 %v1216_v0 }
  0x58   : > { %1763 = vmatprep.subr.mxu0 %v1885_v61 }
  0x59   : > { %1764 = vmatpush3.msra.mxu0 %v1215_v1 }
  0x5a   : > { %1765 = vmatprep.subr.mxu0 %v1885_v61 }
  0x5b   : > { %1766 = vmatpush3.msra.mxu0 %v1214_v2 }
  0x5c   : > { %1767 = vmatprep.subr.mxu0 %v1885_v61 }
  0x5d   : > { %1125 = vmatmul.mubr.bf16.gmra.mxu0 %v1498_v54 }
  0x5e   : > { %1189 = vmatmul.mubr.bf16.gmra.mxu1 %v1500_v55  ;;  %1132 = vmatprep.mubr.bf16.mxu0 %v1507_v56 }
  0x5f   : > { %1196 = vmatprep.mubr.bf16.mxu1 %v1509_v57  ;;  %1768 = vmatpush3.msra.mxu0 %v1213_v3 }
  0x60   : > { %1769 = vmatprep.subr.mxu0 %v1885_v61 }
  0x61   : > { %1770 = vmatpush3.msra.mxu0 %v1212_v4 }
  0x62   : > { %1771 = vmatprep.subr.mxu0 %v1885_v61 }
  0x63   : > { %1772 = vmatpush3.msra.mxu0 %v1211_v5 }
  0x64   : > { %1773 = vmatprep.subr.mxu0 %v1885_v61 }
  0x65   : > { %1133 = vmatmul.mubr.bf16.gmra.mxu0 %v1506_v58 }
  0x66   : > { %1197 = vmatmul.mubr.bf16.gmra.mxu1 %v1508_v59  ;;  %1774 = vmatpush3.msra.mxu0 %v1210_v6 }
  0x67   : > { %1775 = vmatprep.subr.mxu0 %v1885_v61  ;;  %1787 = vmatprep.mubr.msk.f32.mxu0 %vm1886_vm2, %v1885_v61 }
  0x68   : > { %1776 = vmatpush3.msra.mxu0 %v1209_v7 }
  0x69   : > { %1777 = vmatprep.subr.mxu0 %v1885_v61 }
  0x6a   : > { %1778 = vmatpush3.msra.mxu0 %v1208_v8 }
  0x6b   : > { %1779 = vmatprep.subr.mxu0 %v1885_v61 }
  0x6c   : > { %1780 = vmatpush3.msra.mxu0 %v1207_v9 }
  0x6d   : > { %1781 = vmatprep.subr.mxu0 %v1885_v61 }
  0x6e   : > { %1782 = vmatpush3.msra.mxu0 %v1206_v10 }
  0x6f   : > { %1783 = vmatprep.subr.mxu0 %v1885_v61 }
  0x70   : > { %1784 = vmatpush3.msra.mxu0 %v1205_v11 }
  0x71   : > { %1785 = vmatprep.subr.mxu0 %v1885_v61 }
  0xed   : > { %v1594_v12 = vpop.f32.mrf.mxu0 }
  0xee   : > { %v1634_v13 = vpop.f32.mrf.mxu1 }
  0xef   : > { %v1595_v14 = vpop.f32.mrf.mxu0 }
  0xf0   : > { %v1635_v15 = vpop.f32.mrf.mxu1  ;;  %v1596_v47 = vadd.f32 %v1595_v14, %v1594_v12 }
  0xf1   : > { %v1597_v16 = vpop.f32.mrf.mxu0  ;;  %v1636_v63 = vadd.f32 %v1635_v15, %v1634_v13 }
  0xf2   : > { %v1637_v17 = vpop.f32.mrf.mxu1  ;;  %v983_v55 = vadd.f32 %v1596_v47, %v2239_v49 }
  0xf3   : > { %v1598_v18 = vpop.f32.mrf.mxu0 }
  0xf4   : > { %v1638_v19 = vpop.f32.mrf.mxu1  ;;  %v1599_v45 = vadd.f32 %v1598_v18, %v1597_v16  ;;  %v1047_v5 = vadd.f32 %v1636_v63, %v983_v55 }
  0xf5   : > { %v1600_v20 = vpop.f32.mrf.mxu0  ;;  %v1639_v58 = vadd.f32 %v1638_v19, %v1637_v17 }
  0xf6   : > { %v1640_v21 = vpop.f32.mrf.mxu1  ;;  %v986_v53 = vadd.f32 %v1599_v45, %v2239_v49 }
  0xf7   : > { %v1601_v22 = vpop.f32.mrf.mxu0 }
  0xf8   : > { %v1641_v23 = vpop.f32.mrf.mxu1  ;;  %v1602_v50 = vadd.f32 %v1601_v22, %v1600_v20  ;;  %v1050_v2 = vadd.f32 %v1639_v58, %v986_v53 }
  0xf9   : > { %v1603_v24 = vpop.f32.mrf.mxu0  ;;  %v1642_v3 = vadd.f32 %v1641_v23, %v1640_v21 }
  0xfa   : > { %v1643_v25 = vpop.f32.mrf.mxu1  ;;  %v991_v59 = vadd.f32 %v1602_v50, %v2239_v49 }
  0xfb   : > { %v1604_v26 = vpop.f32.mrf.mxu0 }
  0xfc   : > { %v1644_v27 = vpop.f32.mrf.mxu1  ;;  %v1605_v56 = vadd.f32 %v1604_v26, %v1603_v24  ;;  %v1055_v8 = vadd.f32 %v1642_v3, %v991_v59 }
  0xfd   : > { %v1606_v28 = vpop.f32.mrf.mxu0  ;;  %v1645_v14 = vadd.f32 %v1644_v27, %v1643_v25 }
  0xfe   : > { %v2224_v29 = vpop.f32.mrf.mxu1  ;;  %v994_v6 = vadd.f32 %v1605_v56, %v2239_v49 }
  0xff   : > { %v1607_v30 = vpop.f32.mrf.mxu0 }
 0x100   : > { %v1647_v31 = vpop.f32.mrf.mxu1  ;;  %v1608_v9 = vadd.f32 %v1607_v30, %v1606_v28  ;;  %v1058_v15 = vadd.f32 %v1645_v14, %v994_v6 }
 0x101   : > { %v1609_v32 = vpop.f32.mrf.mxu0  ;;  %v1648_v25 = vadd.f32 %v1647_v31, %v2224_v29 }
 0x102   : > { %v2226_v33 = vpop.f32.mrf.mxu1  ;;  %v999_v23 = vadd.f32 %v1608_v9, %v2239_v49 }
 0x103   : > { %v1610_v34 = vpop.f32.mrf.mxu0 }
 0x104   : > { %v2228_v35 = vpop.f32.mrf.mxu1  ;;  %v1611_v20 = vadd.f32 %v1610_v34, %v1609_v32 }
 0x105   : > { %v2230_v36 = vpop.f32.mrf.mxu0  ;;  %v1651_v29 = vadd.f32 %v2228_v35, %v2226_v33 }
 0x106   : > { %v2232_v37 = vpop.f32.mrf.mxu1  ;;  %v1002_v32 = vadd.f32 %v1611_v20, %v2239_v49 }
 0x107   : > { %v1613_v38 = vpop.f32.mrf.mxu0 }
 0x108   : > { %v2234_v39 = vpop.f32.mrf.mxu1  ;;  %v1614_v34 = vadd.f32 %v1613_v38, %v2230_v36  ;;  %v1066_v55 = vadd.f32 %v1651_v29, %v1002_v32 }
 0x109   : > { %v1615_v40 = vpop.f32.mrf.mxu0 }
 0x10a   : > { %v1655_v41 = vpop.f32.mrf.mxu1  ;;  %v1007_v56 = vadd.f32 %v1614_v34, %v2239_v49 }
 0x10b   : > { %v1616_v42 = vpop.f32.mrf.mxu0 }
 0x10c   : > { %v1656_v43 = vpop.f32.mrf.mxu1 }
 0x10d   : > { %v1674_v44 = vpop.f32.mrf.mxu0 }
 0x10e   : > { %v1714_v46 = vpop.f32.mrf.mxu1 }
 0x10f   : > { %v1675_v48 = vpop.f32.mrf.mxu0 }
 0x110   : > { %v1715_v51 = vpop.f32.mrf.mxu1  ;;  %v1676_v0 = vadd.f32 %v1675_v48, %v1674_v44 }
 0x111   : > { %v1677_v52 = vpop.f32.mrf.mxu0  ;;  %v1716_v22 = vadd.f32 %v1715_v51, %v1714_v46  ;;  %v1063_v46 = vadd.f32 %v1648_v25, %v999_v23 }
 0x112   : > { %v1717_v54 = vpop.f32.mrf.mxu1  ;;  %v1111_v16 = vadd.f32 %v1676_v0, %v1047_v5 }
 0x113   : > { %v1678_v57 = vpop.f32.mrf.mxu0 }
 0x114   : > { %v1679_v60 = vadd.f32 %v1678_v57, %v1677_v52  ;;  %v1718_v62 = vpop.f32.mrf.mxu1  ;;  %v2248_v30 = vadd.f32 %v1716_v22, %v1111_v16 }
 0x115   : > { %v1680_v1 = vpop.f32.mrf.mxu0  ;;  %v1719_v18 = vadd.f32 %v1718_v62, %v1717_v54  ;;  %v1654_v62 = vadd.f32 %v2234_v39, %v2232_v37 }
 0x116   : > { %v1720_v4 = vpop.f32.mrf.mxu1  ;;  %v1114_v10 = vadd.f32 %v1679_v60, %v1050_v2  ;;  %v1243_v31 = vmul.f32 %v2248_v30, %v2248_v30 }
 0x117   : > { %v1681_v7 = vpop.f32.mrf.mxu0 }
 0x118   : > { %v1682_v11 = vadd.f32 %v1681_v7, %v1680_v1  ;;  %v1721_v12 = vpop.f32.mrf.mxu1  ;;  %v2246_v24 = vadd.f32 %v1719_v18, %v1114_v10  ;;  %v1250_v63 = vsel %vm1222_vm0, %v1243_v31, 0.0  ;;  %v1071_v7 = vadd.f32 %v1654_v62, %v1007_v56 }
 0x119   : > { %v1683_v17 = vpop.f32.mrf.mxu0  ;;  %v1722_v26 = vadd.f32 %v1721_v12, %v1720_v4 }
 0x11a   : > { %v1119_v19 = vadd.f32 %v1682_v11, %v1055_v8  ;;  %v1723_v13 = vpop.f32.mrf.mxu1  ;;  %v1244_v47 = vmul.f32 %v2246_v24, %v2246_v24 }
 0x11b   : > { %v1684_v21 = vpop.f32.mrf.mxu0 }
 0x11c   : > { %v1685_v40 = vadd.f32 %v1684_v21, %v1683_v17  ;;  %v1724_v28 = vpop.f32.mrf.mxu1  ;;  %v2251_v27 = vadd.f32 %v1722_v26, %v1119_v19  ;;  %v1251_v58 = vsel %vm1222_vm0, %v1244_v47, 0.0 }
 0x11d   : > { %v1686_v41 = vpop.f32.mrf.mxu0  ;;  %v1725_v43 = vadd.f32 %v1724_v28, %v1723_v13  ;;  %v1252_v5 = vadd.f32 %v1251_v58, %v1250_v63  ;;  %v1574_v63 = vld [vmem:[%s2342_s3] ss:$0 sm:$0xff] }
 0x11e   : > { %v1122_v42 = vadd.f32 %v1685_v40, %v1058_v15  ;;  %v1726_v44 = vpop.f32.mrf.mxu1  ;;  %v1245_v53 = vmul.f32 %v2251_v27, %v2251_v27  ;;  %v1226_v47 = vsel %vm1222_vm0, %v2251_v27, 0.0  ;;  %1369 = vrot.lane.b32.xlu1 %v1574_v63, %s1887_s13 }
 0x11f   : > { %v1687_v45 = vpop.f32.mrf.mxu0 }
 0x120   : > { %v2257_v48 = vadd.f32 %v1725_v43, %v1122_v42  ;;  %v1688_v50 = vadd.f32 %v1687_v45, %v1686_v41  ;;  %v1727_v51 = vpop.f32.mrf.mxu1  ;;  %v1253_v1 = vsel %vm1222_vm0, %v1245_v53, 0.0  ;;  %v1204_v41 = vld [vmem:[%s2344_s5] sm:$0xff]  ;;  %v1224_v45 = vsel %vm1222_vm0, %v2246_v24, 0.0 }
 0x121   : > { %v1689_v52 = vpop.f32.mrf.mxu0  ;;  %v1728_v38 = vadd.f32 %v1727_v51, %v1726_v44  ;;  %v1254_v39 = vadd.f32 %v1253_v1, %v1252_v5  ;;  %1786 = vmatpush3.msra.mxu0 %v1204_v41 }
 0x122   : > { %v1127_v36 = vadd.f32 %v1688_v50, %v1063_v46  ;;  %v1729_v54 = vpop.f32.mrf.mxu1  ;;  %v1246_v33 = vmul.f32 %v2257_v48, %v2257_v48  ;;  %v1223_v46 = vsel %vm1222_vm0, %v2248_v30, 0.0  ;;  %v1228_v61 = vsel %vm1222_vm0, %v2257_v48, 0.0 }
 0x123   : > { %v1690_v57 = vpop.f32.mrf.mxu0  ;;  %v1225_v50 = vadd.f32 %v1224_v45, %v1223_v46 }
 0x124   : > { %v2269_v35 = vadd.f32 %v1728_v38, %v1127_v36  ;;  %v1691_v59 = vadd.f32 %v1690_v57, %v1689_v52  ;;  %v1730_v60 = vpop.f32.mrf.mxu1  ;;  %v1255_v8 = vsel %vm1222_vm0, %v1246_v33, 0.0 }
 0x125   : > { %v1692_v0 = vpop.f32.mrf.mxu0  ;;  %v1731_v3 = vadd.f32 %v1730_v60, %v1729_v54  ;;  %v1256_v19 = vadd.f32 %v1255_v8, %v1254_v39  ;;  %v1227_v51 = vadd.f32 %v1226_v47, %v1225_v50 }
 0x126   : > { %v1247_v49 = vmul.f32 %v2269_v35, %v2269_v35  ;;  %v1130_v2 = vadd.f32 %v1691_v59, %v1066_v55  ;;  %v1732_v4 = vpop.f32.mrf.mxu1  ;;  %v1230_v29 = vsel %vm1222_vm0, %v2269_v35, 0.0 }
 0x127   : > { %v1693_v6 = vpop.f32.mrf.mxu0  ;;  %v1229_v31 = vadd.f32 %v1228_v61, %v1227_v51 }
 0x128   : > { %v2278_v9 = vadd.f32 %v1731_v3, %v1130_v2  ;;  %v1694_v10 = vadd.f32 %v1693_v6, %v1692_v0  ;;  %v1733_v37 = vpop.f32.mrf.mxu1  ;;  %v1257_v12 = vsel %vm1222_vm0, %v1247_v49, 0.0  ;;  %v1353_v6 = vlaneseq }
 0x129   : > { %v1695_v11 = vpop.f32.mrf.mxu0  ;;  %v1734_v17 = vadd.f32 %v1733_v37, %v1732_v4  ;;  %v1258_v21 = vadd.f32 %v1257_v12, %v1256_v19  ;;  %v1231_v53 = vadd.f32 %v1230_v29, %v1229_v31  ;;  %v1575_v19 = vld [vmem:[%s2343_s4] ss:$0 sm:$0xff] }
 0x12a   : > { %v1248_v14 = vmul.f32 %v2278_v9, %v2278_v9  ;;  %v1135_v16 = vadd.f32 %v1694_v10, %v1071_v7  ;;  %v1735_v18 = vpop.f32.mrf.mxu1  ;;  %v1232_v52 = vsel %vm1222_vm0, %v2278_v9, 0.0  ;;  %v1354_v7 = vshrl.u32 %v1353_v6, 7 }
 0x12b   : > { %v1696_v13 = vpop.f32.mrf.mxu0  ;;  %v1233_v38 = vadd.f32 %v1232_v52, %v1231_v53 }
 0x12c   : > { %v1259_v15 = vsel %vm1222_vm0, %v1248_v14, 0.0  ;;  %v2284_v20 = vadd.f32 %v1734_v17, %v1135_v16  ;;  %v1736_v22 = vpop.f32.mrf.mxu1  ;;  %v1355_v37 = vsub.s32 0, %v1354_v7 }
 0x12d   : > { %v1260_v26 = vadd.f32 %v1259_v15, %v1258_v21 }
 0x12e   : > { %v1249_v23 = vmul.f32 %v2284_v20, %v2284_v20  ;;  %v1235_v36 = vsel %vm1234_vm1, %v2284_v20, 0.0 }
 0x12f   : > { %v1236_v54 = vadd.f32 %v1235_v36, %v1233_v38 }
 0x130   : > { %v1261_v40 = vsel %vm1234_vm1, %v1249_v23, 0.0 }
 0x131   : > { %v1262_v28 = vadd.f32 %v1261_v40, %v1260_v26  ;;  %v1237_v55 = vrot.slane %v1236_v54, 4 }
 0x133   : > { %v1263_v25 = vrot.slane %v1262_v28, 4  ;;  %v1238_v56 = vadd.f32 %v1237_v55, %v1236_v54 }
 0x135   : > { %v1264_v42 = vadd.f32 %v1263_v25, %v1262_v28  ;;  %v1239_v57 = vrot.slane %v1238_v56, 2 }
 0x137   : > { %v1265_v43 = vrot.slane %v1264_v42, 2  ;;  %v1240_v58 = vadd.f32 %v1239_v57, %v1238_v56 }
 0x139   : > { %v1266_v44 = vadd.f32 %v1265_v43, %v1264_v42  ;;  %v1241_v33 = vrot.slane %v1240_v58, 1 }
 0x13b   : > { %v1267_v32 = vrot.slane %v1266_v44, 1  ;;  %v1242_v59 = vadd.f32 %v1241_v33, %v1240_v58 }
 0x13d   : > { %v1268_v34 = vadd.f32 %v1267_v32, %v1266_v44 }
 0x13f   : > { %1270 = vrot.lane.b32.xlu0 %v1268_v34, %s1887_s13 }
 0x190   : > { %v1370_v8 = vpop.permute.xlu1 %1369 }
 0x1b1   : > { %v1271_v60 = vpop.permute.xlu0 %1270 }
 0x1b2   : > { %v1273_v62 = vsel %vm1222_vm0, %v1242_v59, %v1271_v60 }
 0x1b3   : > { %1788 = vmatmul.mubr.f32.vlgmr.msra.gmra.mxu0 %v1273_v62 }
 0x273   : > { %v1340_v0 = vpop.f32.mrf.mxu0 }
 0x274   : > { %v1344_v1 = vmul.f32 %v1340_v0, %v1340_v0  ;;  %v1356_v12 = vrot.slane %v1340_v0, %v1355_v37 }
 0x275   : > { %v1789_v49 = vpop.f32.mrf.mxu0 }
 0x276   : > { %1346 = vrot.lane.b32.xlu0 %v1344_v1, %s1887_s13  ;;  %v1357_v14 = vsub.f32 %v2248_v30, %v1356_v12  ;;  %v1358_v16 = vsub.f32 %v2246_v24, %v1356_v12  ;;  %v1359_v17 = vsub.f32 %v2251_v27, %v1356_v12  ;;  %v1360_v18 = vsub.f32 %v2257_v48, %v1356_v12 }
 0x277   : > { %v1361_v13 = vsub.f32 %v2269_v35, %v1356_v12  ;;  %v1362_v15 = vsub.f32 %v2278_v9, %v1356_v12  ;;  %v1363_v22 = vsub.f32 %v2284_v20, %v1356_v12 }
 0x2e8   : > { %v1347_v2 = vpop.permute.xlu0 %1346 }
 0x2e9   : > { %v1349_v3 = vsub.f32 %v1340_v0, %v1347_v2 }
 0x2eb   : > { %v1350_v4 = vmax.f32 %v1349_v3, 0.0 }
 0x2ed   : > { %v1351_v5 = vadd.f32 1e-05, %v1350_v4 }
 0x2ef   : > { %1875 = vrsqrt.f32 %v1351_v5 }
 0x2fc   : > { %v1876_v10 = vpop.eup %1875 }
 0x2fd   : > { %v1372_v39 = vmul.f32 %v1876_v10, %v1370_v8 }
 0x2ff   : > { %v1376_v11 = vrot.slane %v1372_v39, %v1355_v37 }
 0x301   : > { %1378 = vrot.lane.b32.xlu1 %v1376_v11, %s1887_s13 }
 0x373   : > { %v1379_v21 = vpop.permute.xlu1 %1378 }
 0x374   : > { %v1381_v23 = vmul.f32 %v1379_v21, %v1357_v14  ;;  %v1382_v30 = vmul.f32 %v1379_v21, %v1358_v16  ;;  %v1383_v26 = vmul.f32 %v1379_v21, %v1359_v17  ;;  %v1384_v24 = vmul.f32 %v1379_v21, %v1360_v18 }
 0x375   : > { %v1385_v40 = vmul.f32 %v1379_v21, %v1361_v13  ;;  %v1386_v27 = vmul.f32 %v1379_v21, %v1362_v15  ;;  %v1387_v28 = vmul.f32 %v1379_v21, %v1363_v22 }
 0x376   : > { %v1394_v48 = vadd.f32 %v1575_v19, %v1381_v23  ;;  %v1395_v41 = vadd.f32 %v1575_v19, %v1382_v30  ;;  %v1396_v25 = vadd.f32 %v1575_v19, %v1383_v26  ;;  %v1397_v42 = vadd.f32 %v1575_v19, %v1384_v24 }
 0x377   : > { %v1398_v35 = vadd.f32 %v1575_v19, %v1385_v40  ;;  %v1399_v9 = vadd.f32 %v1575_v19, %v1386_v27  ;;  %v1400_v43 = vadd.f32 %v1575_v19, %v1387_v28 }
 0x378   : > { %v1401_v20 = vmax.f32 %v1394_v48, 0.0  ;;  %v1402_v44 = vmax.f32 %v1395_v41, 0.0  ;;  %v1403_v32 = vmax.f32 %v1396_v25, 0.0  ;;  %v1404_v34 = vmax.f32 %v1397_v42, 0.0 }
 0x379   : > { %v1405_v45 = vmax.f32 %v1398_v35, 0.0  ;;  %v1406_v46 = vmax.f32 %v1399_v9, 0.0  ;;  %v1407_v47 = vmax.f32 %v1400_v43, 0.0 }
 0x37a   : > { %1408 = vst.msk [vmem:[%s251_s23] sm:$0xff] %vm1222_vm0, %v1401_v20  ;;  %1409 = vst.msk [vmem:[%s251_s23 + $0x8] sm:$0xff] %vm1222_vm0, %v1402_v44 }
 0x37b   : > { %1410 = vst.msk [vmem:[%s251_s23 + $0x10] sm:$0xff] %vm1222_vm0, %v1403_v32  ;;  %1411 = vst.msk [vmem:[%s251_s23 + $0x18] sm:$0xff] %vm1222_vm0, %v1404_v34 }
 0x37c   : > { %1412 = vst.msk [vmem:[%s251_s23 + $0x20] sm:$0xff] %vm1222_vm0, %v1405_v45  ;;  %1413 = vst.msk [vmem:[%s251_s23 + $0x28] sm:$0xff] %vm1222_vm0, %v1406_v46 }
 0x37d   : > { %1414 = vst.msk [vmem:[%s251_s23 + $0x30] sm:$0x1] %vm1234_vm1, %v1407_v47 }
 0x37e PF: > { %s16_s21 = sadd.s32 1, %s1883_s21  }
 0x37f   : > { %p13_p4 = scmp.ge.s32.totalorder %s16_s21, 4  }
 0x381   :  { %15 = sbr.rel (!%p13_p4) target bundleno = 1 (0x1), region = 74 }

// kernel: hybrid_ode_classifier_forward.7
= control target key start
LH: loop header
LB: loop body
LE: loop exit
PB: predicated region body
PF: predicated region fallthrough
CT: control target
= control target key end

     0   :  { %s1551_s21 = smov 0   ;;  %s1869_s0 = inlined_call_operand.vmem [shape: bf16[2,9,1024], index: 0, kind: input, shape index: {}]   ;;  %s1870_s1 = inlined_call_operand.vmem [shape: bf16[1024,64], index: 1, kind: input, shape index: {}]   ;;  %s1871_s2 = inlined_call_operand.vmem [shape: f32[1,64], index: 2, kind: input, shape index: {}]   ;;  %s1872_s3 = inlined_call_operand.vmem [shape: f32[1,64], index: 3, kind: input, shape index: {}]   ;;  %s1873_s4 = inlined_call_operand.vmem [shape: f32[1,64], index: 4, kind: input, shape index: {}]   ;;  %s1874_s5 = inlined_call_operand.vmem [shape: f32[128,128], index: 5, kind: input, shape index: {}]   ;;  %s1875_s6 = inlined_call_operand.vmem [shape: f32[2,9,64], index: 6, kind: output, shape index: {}]  }
   0x1 LB: > { %s1200_s22 = sadd.s32 4294967295, %s1511_s21   ;;  %p1204_p0 = scmp.ge.s32.totalorder %s1511_s21, 1  ;;  %s1511_s21 = sphi %s1551_s21, %s16_s21  }
   0x2   : > { %p212_p1 = scmp.lt.s32.totalorder %s1511_s21, 3 }
   0x4   : > { %p213_p2 = pnand %p1204_p0, %p212_p1 }
   0x5   : > { %p242_p3 = scmp.lt.s32.totalorder (!%p213_p2), %s1200_s22, 1  ;;  %s1515_s13 = smov (!%p213_p2), 64  }
   0x6   : > { %216 = sbr.rel (%p213_p2) target bundleno = 872 (0x368), region = 44 }
   0xb   : > { %v1439_v0 = vld [vmem:[%s1870_s1 + $0x78] sm:$0xff]   ;;  %v1443_v4 = vld [vmem:[%s1870_s1 + $0x70] sm:$0xff]   ;;  %v1447_v8 = vld [vmem:[%s1870_s1 + $0x68] sm:$0xff]   ;;  %s1877_s22 = smov (!%p242_p3, %s1200_s22), 1  ;;  %vm1002_vm0 = vcmask 523264   ;;  %vm1004_vm1 = vcmask 516096  }
   0xc   : > { %v1440_v1 = vld [vmem:[%s1870_s1 + $0xf8] sm:$0xff]   ;;  %1288 = vmatprep.subr.bf16.mxu0 %v1439_v0  ;;  %v1444_v5 = vld [vmem:[%s1870_s1 + $0xf0] sm:$0xff]   ;;  %v1448_v9 = vld [vmem:[%s1870_s1 + $0xe8] sm:$0xff]   ;;  %s1286_s9 = sshll.u32 %s1877_s22, 6  ;;  %vm1514_vm2 = vmmov 0   ;;  %s1287_s19 = sshll.u32 %s1877_s22, 4 }
   0xd   : > { %v1441_v2 = vld [vmem:[%s1870_s1 + $0x38] sm:$0xff]   ;;  %1310 = vmatprep.subr.bf16.mxu1 %v1440_v1  ;;  %v1445_v6 = vld [vmem:[%s1870_s1 + $0x30] sm:$0xff]   ;;  %v1449_v10 = vld [vmem:[%s1870_s1 + $0x28] sm:$0xff]   ;;  %s1659_s18 = scalar_lea.vmem %s1869_s0, %s1286_s9  ;;  %s251_s24 = scalar_lea.vmem %s1875_s6, %s1287_s19 }
   0xe   : > { %v1442_v3 = vld [vmem:[%s1870_s1 + $0xb8] sm:$0xff]   ;;  %1289 = vmatpush3.bf16.msra.mxu0 %v1441_v2  ;;  %v1446_v7 = vld [vmem:[%s1870_s1 + $0xb0] sm:$0xff]   ;;  %v1450_v11 = vld [vmem:[%s1870_s1 + $0xa8] sm:$0xff]  }
   0xf   : > { %1311 = vmatpush3.bf16.msra.mxu1 %v1442_v3  ;;  %1290 = vmatprep.subr.bf16.mxu0 %v1443_v4  ;;  %v1451_v12 = vld [vmem:[%s1870_s1 + $0x60] sm:$0xff]   ;;  %v1455_v16 = vld [vmem:[%s1870_s1 + $0x58] sm:$0xff]   ;;  %v1459_v20 = vld [vmem:[%s1870_s1 + $0x50] sm:$0xff]  }
  0x10   : > { %1312 = vmatprep.subr.bf16.mxu1 %v1444_v5  ;;  %v1452_v13 = vld [vmem:[%s1870_s1 + $0xe0] sm:$0xff]   ;;  %v1456_v17 = vld [vmem:[%s1870_s1 + $0xd8] sm:$0xff]   ;;  %v1460_v21 = vld [vmem:[%s1870_s1 + $0xd0] sm:$0xff]  }
  0x11   : > { %v1453_v14 = vld [vmem:[%s1870_s1 + $0x20] sm:$0xff]   ;;  %v1457_v18 = vld [vmem:[%s1870_s1 + $0x18] sm:$0xff]   ;;  %v1461_v22 = vld [vmem:[%s1870_s1 + $0x10] sm:$0xff]  }
  0x12   : > { %1291 = vmatpush3.bf16.msra.mxu0 %v1445_v6  ;;  %v1454_v15 = vld [vmem:[%s1870_s1 + $0xa0] sm:$0xff]   ;;  %v1458_v19 = vld [vmem:[%s1870_s1 + $0x98] sm:$0xff]   ;;  %v1462_v23 = vld [vmem:[%s1870_s1 + $0x90] sm:$0xff]  }
  0x13   : > { %1313 = vmatpush3.bf16.msra.mxu1 %v1446_v7  ;;  %1292 = vmatprep.subr.bf16.mxu0 %v1447_v8  ;;  %v1463_v24 = vld [vmem:[%s1870_s1 + $0x48] sm:$0xff]   ;;  %v1467_v28 = vld [vmem:[%s1870_s1 + $0x40] sm:$0xff]   ;;  %v1471_v40 = vld [vmem:[%s1870_s1 + $0x178] sm:$0xff]  }
  0x14   : > { %1314 = vmatprep.subr.bf16.mxu1 %v1448_v9  ;;  %v1464_v25 = vld [vmem:[%s1870_s1 + $0xc8] sm:$0xff]   ;;  %v1468_v29 = vld [vmem:[%s1870_s1 + $0xc0] sm:$0xff]   ;;  %v1472_v41 = vld [vmem:[%s1870_s1 + $0x1f8] sm:$0xff]  }
  0x15   : > { %v1465_v26 = vld [vmem:[%s1870_s1 + $0x8] sm:$0xff]   ;;  %v1469_v30 = vld [vmem:[%s1870_s1] sm:$0xff]   ;;  %v1473_v42 = vld [vmem:[%s1870_s1 + $0x138] sm:$0xff]  }
  0x16   : > { %1293 = vmatpush3.bf16.msra.mxu0 %v1449_v10  ;;  %v1466_v27 = vld [vmem:[%s1870_s1 + $0x88] sm:$0xff]   ;;  %v1470_v31 = vld [vmem:[%s1870_s1 + $0x80] sm:$0xff]   ;;  %v1474_v43 = vld [vmem:[%s1870_s1 + $0x1b8] sm:$0xff]  }
  0x17   : > { %1315 = vmatpush3.bf16.msra.mxu1 %v1450_v11  ;;  %1294 = vmatprep.subr.bf16.mxu0 %v1451_v12  ;;  %v253_v32 = vld [vmem:[%s1659_s18] sm:$0xff]  ;;  %v254_v34 = vld [vmem:[%s1659_s18 + $0x8] sm:$0xff]  ;;  %v1475_v44 = vld [vmem:[%s1870_s1 + $0x170] sm:$0xff]  }
  0x18   : > { %1316 = vmatprep.subr.bf16.mxu1 %v1452_v13  ;;  %v257_v33 = vld [vmem:[%s1659_s18 + $0x20] sm:$0x11]  ;;  %v258_v37 = vld [vmem:[%s1659_s18 + $0x28] sm:$0x11]  ;;  %v1476_v45 = vld [vmem:[%s1870_s1 + $0x1f0] sm:$0xff]  }
  0x19   : > { %v1210_v35 = vcombine.low %v253_v32, %v257_v33  ;;  %v1211_v36 = vcombine.high %v253_v32, %v257_v33  ;;  %v1212_v38 = vcombine.low %v254_v34, %v258_v37  ;;  %v1213_v39 = vcombine.high %v254_v34, %v258_v37  ;;  %v1477_v46 = vld [vmem:[%s1870_s1 + $0x130] sm:$0xff]   ;;  %v1479_v48 = vld [vmem:[%s1870_s1 + $0x168] sm:$0xff]   ;;  %v1483_v52 = vld [vmem:[%s1870_s1 + $0x160] sm:$0xff]  }
  0x1a   : > { %1295 = vmatpush3.bf16.msra.mxu0 %v1453_v14  ;;  %v1478_v47 = vld [vmem:[%s1870_s1 + $0x1b0] sm:$0xff]   ;;  %v1480_v49 = vld [vmem:[%s1870_s1 + $0x1e8] sm:$0xff]   ;;  %v1484_v53 = vld [vmem:[%s1870_s1 + $0x1e0] sm:$0xff]  }
  0x1b   : > { %1317 = vmatpush3.bf16.msra.mxu1 %v1454_v15  ;;  %1296 = vmatprep.subr.bf16.mxu0 %v1455_v16  ;;  %v1481_v50 = vld [vmem:[%s1870_s1 + $0x128] sm:$0xff]   ;;  %v1485_v54 = vld [vmem:[%s1870_s1 + $0x120] sm:$0xff]   ;;  %v1487_v56 = vld [vmem:[%s1870_s1 + $0x158] sm:$0xff]  }
  0x1c   : > { %1318 = vmatprep.subr.bf16.mxu1 %v1456_v17  ;;  %852 = vmatprep.mubr.bf16.mxu0 %v1211_v36  ;;  %v1482_v51 = vld [vmem:[%s1870_s1 + $0x1a8] sm:$0xff]   ;;  %v1486_v55 = vld [vmem:[%s1870_s1 + $0x1a0] sm:$0xff]   ;;  %v1488_v57 = vld [vmem:[%s1870_s1 + $0x1d8] sm:$0xff]   ;;  %v1513_v17 = vmov 0.0  }
  0x1d   : > { %893 = vmatprep.mubr.bf16.mxu1 %v1213_v39  ;;  %v1489_v58 = vld [vmem:[%s1870_s1 + $0x118] sm:$0xff]   ;;  %v1491_v60 = vld [vmem:[%s1870_s1 + $0x150] sm:$0xff]   ;;  %v1495_v0 = vld [vmem:[%s1870_s1 + $0x148] sm:$0xff]  }
  0x1e   : > { %1297 = vmatpush3.bf16.msra.mxu0 %v1457_v18  ;;  %v1490_v59 = vld [vmem:[%s1870_s1 + $0x198] sm:$0xff]   ;;  %v1492_v61 = vld [vmem:[%s1870_s1 + $0x1d0] sm:$0xff]   ;;  %v1496_v1 = vld [vmem:[%s1870_s1 + $0x1c8] sm:$0xff]  }
  0x1f   : > { %1319 = vmatpush3.bf16.msra.mxu1 %v1458_v19  ;;  %1298 = vmatprep.subr.bf16.mxu0 %v1459_v20  ;;  %v1493_v62 = vld [vmem:[%s1870_s1 + $0x110] sm:$0xff]   ;;  %v1497_v2 = vld [vmem:[%s1870_s1 + $0x108] sm:$0xff]   ;;  %v1499_v4 = vld [vmem:[%s1870_s1 + $0x140] sm:$0xff]  }
  0x20   : > { %1320 = vmatprep.subr.bf16.mxu1 %v1460_v21  ;;  %v1494_v63 = vld [vmem:[%s1870_s1 + $0x190] sm:$0xff]   ;;  %v1498_v3 = vld [vmem:[%s1870_s1 + $0x188] sm:$0xff]   ;;  %v1500_v5 = vld [vmem:[%s1870_s1 + $0x1c0] sm:$0xff]  }
  0x21   : > { %v1501_v6 = vld [vmem:[%s1870_s1 + $0x100] sm:$0xff]   ;;  %v255_v8 = vld [vmem:[%s1659_s18 + $0x10] sm:$0xff]  ;;  %v256_v12 = vld [vmem:[%s1659_s18 + $0x18] sm:$0xff] }
  0x22   : > { %1299 = vmatpush3.bf16.msra.mxu0 %v1461_v22  ;;  %v1502_v7 = vld [vmem:[%s1870_s1 + $0x180] sm:$0xff]   ;;  %v259_v9 = vld [vmem:[%s1659_s18 + $0x30] sm:$0x11]  ;;  %v260_v13 = vld [vmem:[%s1659_s18 + $0x38] sm:$0x11] }
  0x23   : > { %1321 = vmatpush3.bf16.msra.mxu1 %v1462_v23  ;;  %1300 = vmatprep.subr.bf16.mxu0 %v1463_v24  ;;  %v1214_v10 = vcombine.low %v255_v8, %v259_v9  ;;  %v1215_v11 = vcombine.high %v255_v8, %v259_v9  ;;  %v1216_v14 = vcombine.low %v256_v12, %v260_v13  ;;  %v999_v16 = vld [vmem:[%s1874_s5 + $0x78] sm:$0xff]  ;;  %v998_v18 = vld [vmem:[%s1874_s5 + $0x70] sm:$0xff]  ;;  %v997_v19 = vld [vmem:[%s1874_s5 + $0x68] sm:$0xff] }
  0x24   : > { %1322 = vmatprep.subr.bf16.mxu1 %v1464_v25  ;;  %v1217_v15 = vcombine.high %v256_v12, %v260_v13  ;;  %v996_v20 = vld [vmem:[%s1874_s5 + $0x60] sm:$0xff]  ;;  %v995_v21 = vld [vmem:[%s1874_s5 + $0x58] sm:$0xff]  ;;  %v994_v22 = vld [vmem:[%s1874_s5 + $0x50] sm:$0xff] }
  0x25   : > { %v993_v23 = vld [vmem:[%s1874_s5 + $0x48] sm:$0xff]  ;;  %v992_v24 = vld [vmem:[%s1874_s5 + $0x40] sm:$0xff]  ;;  %v991_v25 = vld [vmem:[%s1874_s5 + $0x38] sm:$0xff] }
  0x26   : > { %1301 = vmatpush3.bf16.msra.mxu0 %v1465_v26  ;;  %v990_v26 = vld [vmem:[%s1874_s5 + $0x30] sm:$0xff]  ;;  %v1209_v39 = vld [vmem:[%s1871_s2] ss:$0 sm:$0xff] }
  0x27   : > { %1323 = vmatpush3.bf16.msra.mxu1 %v1466_v27  ;;  %1302 = vmatprep.subr.bf16.mxu0 %v1467_v28  ;;  %v989_v27 = vld [vmem:[%s1874_s5 + $0x28] sm:$0xff]  ;;  %v988_v28 = vld [vmem:[%s1874_s5 + $0x20] sm:$0xff] }
  0x28   : > { %1324 = vmatprep.subr.bf16.mxu1 %v1468_v29  ;;  %v987_v29 = vld [vmem:[%s1874_s5 + $0x18] sm:$0xff] }
  0x2a   : > { %1303 = vmatpush3.bf16.msra.mxu0 %v1469_v30  ;;  %v986_v30 = vld [vmem:[%s1874_s5 + $0x10] sm:$0xff] }
  0x2b   : > { %1325 = vmatpush3.bf16.msra.mxu1 %v1470_v31  ;;  %1332 = vmatprep.subr.bf16.mxu0 %v1471_v40  ;;  %v985_v31 = vld [vmem:[%s1874_s5 + $0x8] sm:$0xff] }
  0x2c   : > { %1354 = vmatprep.subr.bf16.mxu1 %v1472_v41 }
  0x2d   : > { %853 = vmatmul.mubr.bf16.vlgmr.msra.gmra.mxu0 %v1210_v35 }
  0x2e   : > { %894 = vmatmul.mubr.bf16.vlgmr.msra.gmra.mxu1 %v1212_v38  ;;  %1333 = vmatpush3.bf16.msra.mxu0 %v1473_v42 }
  0x2f   : > { %1355 = vmatpush3.bf16.msra.mxu1 %v1474_v43  ;;  %1334 = vmatprep.subr.bf16.mxu0 %v1475_v44 }
  0x30   : > { %1356 = vmatprep.subr.bf16.mxu1 %v1476_v45  ;;  %934 = vmatprep.mubr.bf16.mxu0 %v1215_v11 }
  0x31   : > { %975 = vmatprep.mubr.bf16.mxu1 %v1217_v15 }
  0x32   : > { %1335 = vmatpush3.bf16.msra.mxu0 %v1477_v46 }
  0x33   : > { %1357 = vmatpush3.bf16.msra.mxu1 %v1478_v47  ;;  %1336 = vmatprep.subr.bf16.mxu0 %v1479_v48 }
  0x34   : > { %1358 = vmatprep.subr.bf16.mxu1 %v1480_v49 }
  0x36   : > { %1337 = vmatpush3.bf16.msra.mxu0 %v1481_v50 }
  0x37   : > { %1359 = vmatpush3.bf16.msra.mxu1 %v1482_v51  ;;  %1338 = vmatprep.subr.bf16.mxu0 %v1483_v52 }
  0x38   : > { %1360 = vmatprep.subr.bf16.mxu1 %v1484_v53 }
  0x3a   : > { %1339 = vmatpush3.bf16.msra.mxu0 %v1485_v54 }
  0x3b   : > { %1361 = vmatpush3.bf16.msra.mxu1 %v1486_v55  ;;  %1340 = vmatprep.subr.bf16.mxu0 %v1487_v56 }
  0x3c   : > { %1362 = vmatprep.subr.bf16.mxu1 %v1488_v57 }
  0x3e   : > { %1341 = vmatpush3.bf16.msra.mxu0 %v1489_v58 }
  0x3f   : > { %1363 = vmatpush3.bf16.msra.mxu1 %v1490_v59  ;;  %1342 = vmatprep.subr.bf16.mxu0 %v1491_v60 }
  0x40   : > { %1364 = vmatprep.subr.bf16.mxu1 %v1492_v61 }
  0x42   : > { %1343 = vmatpush3.bf16.msra.mxu0 %v1493_v62 }
  0x43   : > { %1365 = vmatpush3.bf16.msra.mxu1 %v1494_v63  ;;  %1344 = vmatprep.subr.bf16.mxu0 %v1495_v0 }
  0x44   : > { %1366 = vmatprep.subr.bf16.mxu1 %v1496_v1 }
  0x46   : > { %1345 = vmatpush3.bf16.msra.mxu0 %v1497_v2 }
  0x47   : > { %1367 = vmatpush3.bf16.msra.mxu1 %v1498_v3  ;;  %1346 = vmatprep.subr.bf16.mxu0 %v1499_v4 }
  0x48   : > { %1368 = vmatprep.subr.bf16.mxu1 %v1500_v5 }
  0x4a   : > { %1347 = vmatpush3.bf16.msra.mxu0 %v1501_v6  ;;  %v984_v6 = vld [vmem:[%s1874_s5] sm:$0xff] }
  0x4b   : > { %1369 = vmatpush3.bf16.msra.mxu1 %v1502_v7  ;;  %1393 = vmatprep.subr.mxu0 %v1513_v17 }
  0x4d   : > { %935 = vmatmul.mubr.bf16.vlgmr.msra.gmra.mxu0 %v1214_v10 }
  0x4e   : > { %976 = vmatmul.mubr.bf16.vlgmr.msra.gmra.mxu1 %v1216_v14  ;;  %1394 = vmatpush3.msra.mxu0 %v999_v16 }
  0x4f   : > { %1395 = vmatprep.subr.mxu0 %v1513_v17  ;;  %1425 = vmatprep.mubr.msk.f32.mxu0 %vm1514_vm2, %v1513_v17 }
  0x50   : > { %1396 = vmatpush3.msra.mxu0 %v998_v18 }
  0x51   : > { %1397 = vmatprep.subr.mxu0 %v1513_v17 }
  0x52   : > { %1398 = vmatpush3.msra.mxu0 %v997_v19 }
  0x53   : > { %1399 = vmatprep.subr.mxu0 %v1513_v17 }
  0x54   : > { %1400 = vmatpush3.msra.mxu0 %v996_v20 }
  0x55   : > { %1401 = vmatprep.subr.mxu0 %v1513_v17 }
  0x56   : > { %1402 = vmatpush3.msra.mxu0 %v995_v21 }
  0x57   : > { %1403 = vmatprep.subr.mxu0 %v1513_v17 }
  0x58   : > { %1404 = vmatpush3.msra.mxu0 %v994_v22 }
  0x59   : > { %1405 = vmatprep.subr.mxu0 %v1513_v17 }
  0x5a   : > { %1406 = vmatpush3.msra.mxu0 %v993_v23 }
  0x5b   : > { %1407 = vmatprep.subr.mxu0 %v1513_v17 }
  0x5c   : > { %1408 = vmatpush3.msra.mxu0 %v992_v24  ;;  %v1282_v24 = vld [vmem:[%s1872_s3] ss:$0 sm:$0xff] }
  0x5d   : > { %1409 = vmatprep.subr.mxu0 %v1513_v17  ;;  %1119 = vrot.lane.b32.xlu1 %v1282_v24, %s1515_s13 }
  0x5e   : > { %1410 = vmatpush3.msra.mxu0 %v991_v25 }
  0x5f   : > { %1411 = vmatprep.subr.mxu0 %v1513_v17 }
  0x60   : > { %1412 = vmatpush3.msra.mxu0 %v990_v26 }
  0x61   : > { %1413 = vmatprep.subr.mxu0 %v1513_v17 }
  0x62   : > { %1414 = vmatpush3.msra.mxu0 %v989_v27 }
  0x63   : > { %1415 = vmatprep.subr.mxu0 %v1513_v17 }
  0x64   : > { %1416 = vmatpush3.msra.mxu0 %v988_v28 }
  0x65   : > { %1417 = vmatprep.subr.mxu0 %v1513_v17 }
  0x66   : > { %1418 = vmatpush3.msra.mxu0 %v987_v29 }
  0x67   : > { %1419 = vmatprep.subr.mxu0 %v1513_v17 }
  0x68   : > { %1420 = vmatpush3.msra.mxu0 %v986_v30 }
  0x69   : > { %1421 = vmatprep.subr.mxu0 %v1513_v17 }
  0x6a   : > { %1422 = vmatpush3.msra.mxu0 %v985_v31 }
  0x6b   : > { %1423 = vmatprep.subr.mxu0 %v1513_v17 }
  0x6c   : > { %1424 = vmatpush3.msra.mxu0 %v984_v6 }
  0xed   : > { %v1304_v32 = vpop.f32.mrf.mxu0 }
  0xee   : > { %v1326_v33 = vpop.f32.mrf.mxu1 }
  0xef   : > { %v1305_v34 = vpop.f32.mrf.mxu0 }
  0xf0   : > { %v1327_v35 = vpop.f32.mrf.mxu1  ;;  %v1306_v37 = vadd.f32 %v1305_v34, %v1304_v32  ;;  %v1108_v32 = vlaneseq  ;;  %v1120_v34 = vpop.permute.xlu1 %1119 }
  0xf1   : > { %v1307_v36 = vpop.f32.mrf.mxu0  ;;  %v1328_v42 = vadd.f32 %v1327_v35, %v1326_v33 }
  0xf2   : > { %v1329_v38 = vpop.f32.mrf.mxu1  ;;  %v855_v41 = vadd.f32 %v1306_v37, %v1209_v39  ;;  %v1109_v33 = vshrl.u32 %v1108_v32, 7 }
  0xf3   : > { %v1308_v40 = vpop.f32.mrf.mxu0 }
  0xf4   : > { %v1309_v43 = vadd.f32 %v1308_v40, %v1307_v36  ;;  %v1330_v44 = vpop.f32.mrf.mxu1  ;;  %v896_v48 = vadd.f32 %v1328_v42, %v855_v41  ;;  %v1110_v36 = vsub.s32 0, %v1109_v33  ;;  %v1283_v42 = vld [vmem:[%s1873_s4] ss:$0 sm:$0xff] }
  0xf5   : > { %v1331_v53 = vadd.f32 %v1330_v44, %v1329_v38 }
  0xf6   : > { %v858_v49 = vadd.f32 %v1309_v43, %v1209_v39 }
  0xf8   : > { %v899_v58 = vadd.f32 %v1331_v53, %v858_v49 }
 0x10d   : > { %v1348_v45 = vpop.f32.mrf.mxu0 }
 0x10e   : > { %v1370_v46 = vpop.f32.mrf.mxu1 }
 0x10f   : > { %v1349_v47 = vpop.f32.mrf.mxu0 }
 0x110   : > { %v1350_v50 = vadd.f32 %v1349_v47, %v1348_v45  ;;  %v1371_v51 = vpop.f32.mrf.mxu1 }
 0x111   : > { %v1351_v52 = vpop.f32.mrf.mxu0  ;;  %v1372_v55 = vadd.f32 %v1371_v51, %v1370_v46 }
 0x112   : > { %v937_v54 = vadd.f32 %v1350_v50, %v896_v48  ;;  %v1373_v56 = vpop.f32.mrf.mxu1 }
 0x113   : > { %v1352_v57 = vpop.f32.mrf.mxu0 }
 0x114   : > { %v1835_v59 = vadd.f32 %v1372_v55, %v937_v54  ;;  %v1353_v60 = vadd.f32 %v1352_v57, %v1351_v52  ;;  %v1374_v61 = vpop.f32.mrf.mxu1 }
 0x115   : > { %v1375_v63 = vadd.f32 %v1374_v61, %v1373_v56 }
 0x116   : > { %v940_v62 = vadd.f32 %v1353_v60, %v899_v58  ;;  %v1013_v0 = vmul.f32 %v1835_v59, %v1835_v59  ;;  %v1003_v14 = vsel %vm1002_vm0, %v1835_v59, 0.0 }
 0x118   : > { %v981_v1 = vadd.f32 %v1375_v63, %v940_v62  ;;  %v1015_v3 = vsel %vm1002_vm0, %v1013_v0, 0.0 }
 0x11a   : > { %v1014_v2 = vmul.f32 %v981_v1, %v981_v1  ;;  %v1005_v13 = vsel %vm1004_vm1, %v981_v1, 0.0 }
 0x11b   : > { %v1006_v15 = vadd.f32 %v1005_v13, %v1003_v14 }
 0x11c   : > { %v1016_v4 = vsel %vm1004_vm1, %v1014_v2, 0.0 }
 0x11d   : > { %v1017_v5 = vadd.f32 %v1016_v4, %v1015_v3  ;;  %v1007_v16 = vrot.slane %v1006_v15, 4 }
 0x11f   : > { %v1018_v7 = vrot.slane %v1017_v5, 4  ;;  %v1008_v18 = vadd.f32 %v1007_v16, %v1006_v15 }
 0x121   : > { %v1019_v8 = vadd.f32 %v1018_v7, %v1017_v5  ;;  %v1009_v19 = vrot.slane %v1008_v18, 2 }
 0x123   : > { %v1020_v9 = vrot.slane %v1019_v8, 2  ;;  %v1010_v20 = vadd.f32 %v1009_v19, %v1008_v18 }
 0x125   : > { %v1021_v10 = vadd.f32 %v1020_v9, %v1019_v8  ;;  %v1011_v21 = vrot.slane %v1010_v20, 1 }
 0x127   : > { %v1022_v11 = vrot.slane %v1021_v10, 1  ;;  %v1012_v17 = vadd.f32 %v1011_v21, %v1010_v20 }
 0x129   : > { %v1023_v12 = vadd.f32 %v1022_v11, %v1021_v10 }
 0x12b   : > { %1025 = vrot.lane.b32.xlu0 %v1023_v12, %s1515_s13 }
 0x19d   : > { %v1026_v22 = vpop.permute.xlu0 %1025 }
 0x19e   : > { %v1028_v23 = vsel %vm1002_vm0, %v1012_v17, %v1026_v22 }
 0x19f   : > { %1426 = vmatmul.mubr.f32.vlgmr.msra.gmra.mxu0 %v1028_v23 }
 0x25f   : > { %v1095_v25 = vpop.f32.mrf.mxu0 }
 0x260   : > { %v1099_v26 = vmul.f32 %v1095_v25, %v1095_v25  ;;  %v1111_v39 = vrot.slane %v1095_v25, %v1110_v36 }
 0x261   : > { %v1427_v27 = vpop.f32.mrf.mxu0 }
 0x262   : > { %1101 = vrot.lane.b32.xlu0 %v1099_v26, %s1515_s13  ;;  %v1112_v40 = vsub.f32 %v1835_v59, %v1111_v39  ;;  %v1113_v41 = vsub.f32 %v981_v1, %v1111_v39 }
 0x2d4   : > { %v1102_v28 = vpop.permute.xlu0 %1101 }
 0x2d5   : > { %v1104_v29 = vsub.f32 %v1095_v25, %v1102_v28 }
 0x2d7   : > { %v1105_v30 = vmax.f32 %v1104_v29, 0.0 }
 0x2d9   : > { %v1106_v31 = vadd.f32 1e-05, %v1105_v30 }
 0x2db   : > { %1503 = vrsqrt.f32 %v1106_v31 }
 0x2e8   : > { %v1504_v35 = vpop.eup %1503 }
 0x2e9   : > { %v1122_v37 = vmul.f32 %v1504_v35, %v1120_v34 }
 0x2eb   : > { %v1126_v38 = vrot.slane %v1122_v37, %v1110_v36 }
 0x2ed   : > { %1128 = vrot.lane.b32.xlu1 %v1126_v38, %s1515_s13 }
 0x35f   : > { %v1129_v43 = vpop.permute.xlu1 %1128 }
 0x360   : > { %v1131_v44 = vmul.f32 %v1129_v43, %v1112_v40  ;;  %v1132_v45 = vmul.f32 %v1129_v43, %v1113_v41 }
 0x362   : > { %v1139_v46 = vadd.f32 %v1283_v42, %v1131_v44  ;;  %v1140_v47 = vadd.f32 %v1283_v42, %v1132_v45 }
 0x364   : > { %v1141_v48 = vmax.f32 %v1139_v46, 0.0  ;;  %v1142_v49 = vmax.f32 %v1140_v47, 0.0 }
 0x366   : > { %1143 = vst.msk [vmem:[%s251_s24] sm:$0xff] %vm1002_vm0, %v1141_v48 }
 0x367   : > { %1144 = vst.msk [vmem:[%s251_s24 + $0x8] sm:$0x1] %vm1004_vm1, %v1142_v49 }
 0x368 PF: > { %s16_s21 = sadd.s32 1, %s1511_s21  }
 0x369   : > { %p13_p4 = scmp.ge.s32.totalorder %s16_s21, 4  }
 0x36b   :  { %15 = sbr.rel (!%p13_p4) target bundleno = 1 (0x1), region = 74 }

// kernel: hybrid_ode_classifier_forward.9
= control target key start
LH: loop header
LB: loop body
LE: loop exit
PB: predicated region body
PF: predicated region fallthrough
CT: control target
= control target key end

     0   :  { %11 = vsyncpa [#allocation3], 0  ;;  %s1034_s0 = inlined_call_operand.vmem [shape: f32[2,9,64], index: 0, kind: input, shape index: {}]   ;;  %s1035_s1 = inlined_call_operand.vmem [shape: f32[1,64], index: 1, kind: input, shape index: {}]   ;;  %s1036_s2 = inlined_call_operand.vmem [shape: f32[1,64], index: 2, kind: input, shape index: {}]   ;;  %s1037_s3 = inlined_call_operand.vmem [shape: f32[128,128], index: 3, kind: input, shape index: {}]   ;;  %s1038_s4 = inlined_call_operand.vmem [shape: f32[64,10], index: 4, kind: input, shape index: {}]   ;;  %s1039_s5 = inlined_call_operand.vmem [shape: f32[1,10], index: 5, kind: input, shape index: {}]   ;;  %s1040_s6 = inlined_call_operand.hbm [shape: f32[2,1,10], index: 6, kind: output, shape index: {}]  }
   0x1   :  { %13 = vsyncpa [#allocation3 + $0x1], 0  ;;  %s810_s21 = smov 0   ;;  %s812_s22 = smov 0  }
   0x2   :  { %s814_s23 = smov 0   ;;  %s816_s24 = smov 0  }
   0x3 LB: > { %s831_s25 = sadd.s32 4294967295, %s769_s24   ;;  %s572_s26 = sadd.s32 4294967294, %s769_s24   ;;  %s769_s24 = sphi %s816_s24, %s1046_s24   ;;  %s765_s23 = sphi %s814_s23, %s1045_s23   ;;  %s761_s22 = sphi %s812_s22, %s1044_s22   ;;  %s757_s21 = sphi %s810_s21, %s1043_s21  }
   0x4   : > { %s835_s27 = sadd.s32 1, %s769_s24   ;;  %s157_s28 = sadd.s32 1, %s765_s23 }
   0x5   : > { %s154_s29 = ssub.s32 %s769_s24, %s835_s27  ;;  %p167_p0 = scmp.ne.s32.totalorder %s765_s23, %s761_s22 }
   0x6   : > { %p155_p1 = scmp.eq.s32.totalorder %s154_s29, 0  ;;  %p168_p2 = scmp.eq.s32.totalorder %s831_s25, 1 }
   0x7   : > { %p173_p3 = scmp.ne.s32.totalorder %s761_s22, %s757_s21  ;;  %p174_p4 = scmp.eq.s32.totalorder %s572_s26, 1 }
   0x8   : > { %s846_s30 = scalar_select %p155_p1, %s765_s23, %s157_s28  }
   0x9   : > { %p848_p5 = por %p168_p2, %p167_p0  ;;  %p852_p6 = por %p174_p4, %p173_p3 }
   0xa   : > { %p575_p7 = scmp.ge.s32.totalorder %s769_s24, 1  ;;  %p215_p8 = scmp.lt.s32.totalorder %s769_s24, 3 }
   0xc   : > { %p216_p9 = pnand %p575_p7, %p215_p8 }
   0xd   : > { %p244_p10 = scmp.lt.s32.totalorder (!%p216_p9), %s831_s25, 1  ;;  %s773_s10 = smov (!%p216_p9), 64  }
   0xe   : > { %219 = sbr.rel (%p216_p9) target bundleno = 837 (0x345), region = 44  ;;  %s242_s28 = sand.u32 (!%p216_p9), 1, %s761_s22  }
   0xf   : > { %s581_s11 = sshll.u32 (!%p216_p9), %s831_s25, 4  ;;  %s243_s12 = scalar_lea.vmem (!%p216_p9), [#allocation2], %s242_s28 }
  0x13   : > { %v266_v0 = vld [vmem:[%s1037_s3 + $0x78] sm:$0xff]  ;;  %v771_v1 = vmov 0.0   ;;  %v265_v2 = vld [vmem:[%s1037_s3 + $0x70] sm:$0xff]  ;;  %s245_s13 = scalar_select %p244_p10, %s831_s25, 1  ;;  %v264_v3 = vld [vmem:[%s1037_s3 + $0x68] sm:$0xff]  ;;  %vm269_vm0 = vcmask 523264   ;;  %v375_v49 = vlaneseq }
  0x14   : > { %611 = vmatprep.subr.mxu0 %v771_v1  ;;  %646 = vmatprep.subr.mxu1 %v771_v1  ;;  %v263_v4 = vld [vmem:[%s1037_s3 + $0x60] sm:$0xff]  ;;  %vm271_vm1 = vcmask 516096   ;;  %v262_v9 = vld [vmem:[%s1037_s3 + $0x58] sm:$0xff]  ;;  %v261_v12 = vld [vmem:[%s1037_s3 + $0x50] sm:$0xff]  ;;  %vm772_vm2 = vmmov 0   ;;  %vm502_vm3 = vcmask 73728  }
  0x15   : > { %612 = vmatpush3.msra.mxu0 %v266_v0  ;;  %s584_s16 = sshll.u32 %s245_s13, 4  ;;  %v260_v14 = vld [vmem:[%s1037_s3 + $0x48] sm:$0xff]  ;;  %643 = vmatprep.mubr.msk.f32.mxu0 %vm772_vm2, %v771_v1  ;;  %v259_v16 = vld [vmem:[%s1037_s3 + $0x40] sm:$0xff]  ;;  %v258_v18 = vld [vmem:[%s1037_s3 + $0x38] sm:$0xff]  ;;  %v376_v50 = vshrl.u32 %v375_v49, 7  ;;  %s517_s13 = sshll.u32 %s243_s12, 4  ;;  %s518_s13 = int_to_ptr.vmem [resolvable:$true] %s517_s13 }
  0x16   : > { %613 = vmatprep.subr.mxu0 %v771_v1  ;;  %s248_s19 = scalar_lea.vmem %s1034_s0, %s584_s16  ;;  %662 = vmatprep.mubr.msk.f32.mxu1 %vm772_vm2, %v771_v1  ;;  %v257_v20 = vld [vmem:[%s1037_s3 + $0x30] sm:$0xff]  ;;  %v256_v22 = vld [vmem:[%s1037_s3 + $0x28] sm:$0xff]  ;;  %v255_v24 = vld [vmem:[%s1037_s3 + $0x20] sm:$0xff]  ;;  %s999_s16 = scalar_lea.hbm %s1040_s6, %s581_s11 }
  0x17   : > { %614 = vmatpush3.msra.mxu0 %v265_v2  ;;  %v879_v5 = vld [vmem:[%s248_s19] sm:$0xff]  ;;  %v881_v6 = vld [vmem:[%s248_s19 + $0x8] sm:$0x1]  ;;  %v254_v26 = vld [vmem:[%s1037_s3 + $0x18] sm:$0xff]  ;;  %v377_v54 = vsub.s32 0, %v376_v50  ;;  %s709_s17 = scalar_lea.vmem %s518_s13, 16 }
  0x18   : > { %615 = vmatprep.subr.mxu0 %v771_v1  ;;  %v280_v7 = vmul.f32 %v879_v5, %v879_v5  ;;  %v281_v8 = vmul.f32 %v881_v6, %v881_v6  ;;  %v253_v27 = vld [vmem:[%s1037_s3 + $0x10] sm:$0xff]  ;;  %v252_v28 = vld [vmem:[%s1037_s3 + $0x8] sm:$0xff]  ;;  %v251_v29 = vld [vmem:[%s1037_s3] sm:$0xff]  ;;  %v272_v30 = vsel %vm271_vm1, %v881_v6, 0.0  ;;  %v270_v31 = vsel %vm269_vm0, %v879_v5, 0.0  ;;  %p710_p11 = scmp.ne.s32.totalorder %s518_s13, %s709_s17  ;;  %s774_s25 = smov [#allocation2]  }
  0x19   : > { %616 = vmatpush3.msra.mxu0 %v264_v3  ;;  %v273_v32 = vadd.f32 %v272_v30, %v270_v31  ;;  %v578_v41 = vld [vmem:[%s1035_s1] ss:$0 sm:$0xff]  ;;  %v427_v52 = vld [vmem:[%s1038_s4 + $0x38] sm:$0xff]  ;;  %v426_v56 = vld [vmem:[%s1038_s4 + $0x30] sm:$0xff]  ;;  %s713_s18 = sshll.u32 %s774_s25, 4  ;;  %s714_s18 = int_to_ptr.vmem [resolvable:$false] %s713_s18 }
  0x1a   : > { %617 = vmatprep.subr.mxu0 %v771_v1  ;;  %v282_v10 = vsel %vm269_vm0, %v280_v7, 0.0  ;;  %v283_v11 = vsel %vm271_vm1, %v281_v8, 0.0  ;;  %386 = vrot.lane.b32.xlu1 %v578_v41, %s773_s10  ;;  %v425_v58 = vld [vmem:[%s1038_s4 + $0x28] sm:$0xff]  ;;  %v424_v59 = vld [vmem:[%s1038_s4 + $0x20] sm:$0xff]  ;;  %v423_v60 = vld [vmem:[%s1038_s4 + $0x18] sm:$0xff]  ;;  %p711_p12 = pnand %p710_p11, %p848_p5  ;;  %s715_s19 = scalar_lea.vmem %s714_s18, 32 }
  0x1b   : > { %618 = vmatpush3.msra.mxu0 %v263_v4  ;;  %v284_v13 = vadd.f32 %v283_v11, %v282_v10  ;;  %v274_v33 = vrot.slane %v273_v32, 4  ;;  %647 = vmatpush3.msra.mxu1 %v427_v52  ;;  %v422_v61 = vld [vmem:[%s1038_s4 + $0x10] sm:$0xff]  ;;  %v421_v62 = vld [vmem:[%s1038_s4 + $0x8] sm:$0xff]  ;;  %v420_v63 = vld [vmem:[%s1038_s4] sm:$0xff]  ;;  %p716_p0 = scmp.lt.s32.totalorder %s518_s13, %s714_s18  ;;  %p717_p1 = scmp.lt.s32.totalorder %s715_s19, %s709_s17 }
  0x1c   : > { %619 = vmatprep.subr.mxu0 %v771_v1  ;;  %648 = vmatprep.subr.mxu1 %v771_v1  ;;  %v579_v4 = vld [vmem:[%s1036_s2] ss:$0 sm:$0xff]  ;;  %p712_p13 = pneg %p711_p12 }
  0x1d   : > { %620 = vmatpush3.msra.mxu0 %v262_v9  ;;  %v285_v15 = vrot.slane %v284_v13, 4  ;;  %v275_v34 = vadd.f32 %v274_v33, %v273_v32  ;;  %649 = vmatpush3.msra.mxu1 %v426_v56  ;;  %p718_p2 = por %p717_p1, %p716_p0 }
  0x1e   : > { %621 = vmatprep.subr.mxu0 %v771_v1  ;;  %650 = vmatprep.subr.mxu1 %v771_v1 }
  0x1f   : > { %622 = vmatpush3.msra.mxu0 %v261_v12  ;;  %v286_v17 = vadd.f32 %v285_v15, %v284_v13  ;;  %v276_v35 = vrot.slane %v275_v34, 2  ;;  %651 = vmatpush3.msra.mxu1 %v425_v58  ;;  %p719_p3 = pnand %p718_p2, %p712_p13 }
  0x20   : > { %623 = vmatprep.subr.mxu0 %v771_v1  ;;  %652 = vmatprep.subr.mxu1 %v771_v1 }
  0x21   : > { %624 = vmatpush3.msra.mxu0 %v260_v14  ;;  %v287_v19 = vrot.slane %v286_v17, 2  ;;  %v277_v36 = vadd.f32 %v276_v35, %v275_v34  ;;  %653 = vmatpush3.msra.mxu1 %v424_v59 }
  0x22   : > { %625 = vmatprep.subr.mxu0 %v771_v1  ;;  %654 = vmatprep.subr.mxu1 %v771_v1 }
  0x23   : > { %626 = vmatpush3.msra.mxu0 %v259_v16  ;;  %v288_v21 = vadd.f32 %v287_v19, %v286_v17  ;;  %v278_v37 = vrot.slane %v277_v36, 1  ;;  %655 = vmatpush3.msra.mxu1 %v423_v60 }
  0x24   : > { %627 = vmatprep.subr.mxu0 %v771_v1  ;;  %656 = vmatprep.subr.mxu1 %v771_v1 }
  0x25   : > { %628 = vmatpush3.msra.mxu0 %v258_v18  ;;  %v289_v23 = vrot.slane %v288_v21, 1  ;;  %v279_v38 = vadd.f32 %v278_v37, %v277_v36  ;;  %657 = vmatpush3.msra.mxu1 %v422_v61 }
  0x26   : > { %629 = vmatprep.subr.mxu0 %v771_v1  ;;  %658 = vmatprep.subr.mxu1 %v771_v1 }
  0x27   : > { %630 = vmatpush3.msra.mxu0 %v257_v20  ;;  %v290_v25 = vadd.f32 %v289_v23, %v288_v21  ;;  %659 = vmatpush3.msra.mxu1 %v421_v62  ;;  %v428_v21 = vld [vmem:[%s1039_s5] sm:$0x1] }
  0x28   : > { %631 = vmatprep.subr.mxu0 %v771_v1  ;;  %660 = vmatprep.subr.mxu1 %v771_v1 }
  0x29   : > { %632 = vmatpush3.msra.mxu0 %v256_v22  ;;  %292 = vrot.lane.b32.xlu0 %v290_v25, %s773_s10 }
  0x2a   : > { %633 = vmatprep.subr.mxu0 %v771_v1  ;;  %661 = vmatpush3.msra.mxu1 %v420_v63 }
  0x2b   : > { %634 = vmatpush3.msra.mxu0 %v255_v24 }
  0x2c   : > { %635 = vmatprep.subr.mxu0 %v771_v1 }
  0x2d   : > { %636 = vmatpush3.msra.mxu0 %v254_v26 }
  0x2e   : > { %637 = vmatprep.subr.mxu0 %v771_v1 }
  0x2f   : > { %638 = vmatpush3.msra.mxu0 %v253_v27 }
  0x30   : > { %639 = vmatprep.subr.mxu0 %v771_v1 }
  0x31   : > { %640 = vmatpush3.msra.mxu0 %v252_v28 }
  0x32   : > { %641 = vmatprep.subr.mxu0 %v771_v1 }
  0x33   : > { %642 = vmatpush3.msra.mxu0 %v251_v29 }
  0x8c   : > { %v387_v51 = vpop.permute.xlu1 %386 }
  0x9b   : > { %v293_v39 = vpop.permute.xlu0 %292 }
  0x9c   : > { %v295_v40 = vsel %vm269_vm0, %v279_v38, %v293_v39 }
  0x9d   : > { %644 = vmatmul.mubr.f32.vlgmr.msra.gmra.mxu0 %v295_v40 }
 0x15d   : > { %v362_v42 = vpop.f32.mrf.mxu0 }
 0x15e   : > { %v366_v43 = vmul.f32 %v362_v42, %v362_v42  ;;  %v378_v0 = vrot.slane %v362_v42, %v377_v54 }
 0x15f   : > { %v645_v44 = vpop.f32.mrf.mxu0 }
 0x160   : > { %368 = vrot.lane.b32.xlu0 %v366_v43, %s773_s10  ;;  %v379_v2 = vsub.f32 %v879_v5, %v378_v0  ;;  %v380_v3 = vsub.f32 %v881_v6, %v378_v0 }
 0x1d2   : > { %v369_v45 = vpop.permute.xlu0 %368 }
 0x1d3   : > { %v371_v46 = vsub.f32 %v362_v42, %v369_v45 }
 0x1d5   : > { %v372_v47 = vmax.f32 %v371_v46, 0.0 }
 0x1d7   : > { %v373_v48 = vadd.f32 1e-05, %v372_v47 }
 0x1d9   : > { %707 = vrsqrt.f32 %v373_v48 }
 0x1e6   : > { %v708_v53 = vpop.eup %707 }
 0x1e7   : > { %v389_v55 = vmul.f32 %v708_v53, %v387_v51 }
 0x1e9   : > { %v393_v57 = vrot.slane %v389_v55, %v377_v54 }
 0x1eb   : > { %395 = vrot.lane.b32.xlu1 %v393_v57, %s773_s10  ;;  %s505_s10 = scalar_lea.sflag [#allocation3], %s242_s28 }
 0x25d   : > { %v396_v7 = vpop.permute.xlu1 %395 }
 0x25e   : > { %v398_v8 = vmul.f32 %v396_v7, %v379_v2  ;;  %v399_v9 = vmul.f32 %v396_v7, %v380_v3 }
 0x260   : > { %v406_v10 = vadd.f32 %v579_v4, %v398_v8  ;;  %v407_v11 = vadd.f32 %v579_v4, %v399_v9 }
 0x262   : > { %v408_v12 = vmax.f32 %v406_v10, 0.0  ;;  %v409_v13 = vmax.f32 %v407_v11, 0.0 }
 0x264   : > { %v410_v1 = vsel %vm269_vm0, %v408_v12, 0.0  ;;  %v411_v14 = vsel %vm271_vm1, %v409_v13, 0.0 }
 0x265   : > { %v412_v5 = vadd.f32 %v411_v14, %v410_v1 }
 0x267   : > { %v413_v15 = vrot.slane %v412_v5, 4 }
 0x269   : > { %v414_v6 = vadd.f32 %v413_v15, %v412_v5 }
 0x26b   : > { %v415_v16 = vrot.slane %v414_v6, 2 }
 0x26d   : > { %v416_v17 = vadd.f32 %v415_v16, %v414_v6 }
 0x26f   : > { %v417_v18 = vrot.slane %v416_v17, 1 }
 0x271   : > { %v418_v19 = vadd.f32 %v417_v18, %v416_v17 }
 0x273   : > { %v419_v20 = vmul.f32 0.11111111, %v418_v19 }
 0x275   : > { %663 = vmatmul.mubr.msk.f32.vlgmr.msra.gmra.mxu1 %vm269_vm0, %v419_v20 }
 0x335   : > { %v498_v22 = vpop.f32.mrf.mxu1 }
 0x336   : > { %v499_v23 = vadd.f32 %v498_v22, %v428_v21 }
 0x337   : > { %v664_v24 = vpop.f32.mrf.mxu1 }
 0x338   : > { %503 = vst.msk [vmem:[%s243_s12] sm:$0x1] %vm502_vm3, %v499_v23 }
 0x339   : > { %722 = shalt.err (!%p719_p3)
}
 0x33a   : > { %s723_s20 = scalar_lea.hbm %s999_s16, 16  ;;  %s727_s29 = scalar_lea.hbm %s1040_s6, 32 }
 0x33b   : > { %p724_p4 = scmp.ne.s32.totalorder %s999_s16, %s723_s20  ;;  %p728_p9 = scmp.lt.s32.totalorder %s999_s16, %s1040_s6 }
 0x33c   : > { %p729_p10 = scmp.lt.s32.totalorder %s727_s29, %s723_s20 }
 0x33d   : > { %p725_p7 = pnand %p724_p4, %p848_p5 }
 0x33e   : > { %p730_p11 = por %p729_p10, %p728_p9 }
 0x33f   : > { %p726_p8 = pneg %p725_p7 }
 0x341   : > { %p731_p12 = pnand %p730_p11, %p726_p8 }
 0x343   : > { %734 = shalt.err (!%p731_p12)
}
 0x344   : > { %665 = dma.vmem_to_hbm [thread:$0]  (%p848_p5), %s518_s13, 16, %s999_s16, %s505_s10  }
 0x345 PF: > { %p671_p13 = scmp.ge.s32.totalorder %s769_s24, 2  ;;  %s529_s12 = sand.u32 1, %s757_s21  }
 0x346   : > { %s530_s14 = scalar_lea.sflag [#allocation3], %s529_s12 }
 0x347   : > { %p668_p0 = pnand %p671_p13, %p852_p6 }
 0x349   : > { %p669_p1 = pneg %p668_p0 }
 0x34b   : > { %752 = dma.done.wait (%p669_p1), %s530_s14, 16  }
 0x34c   : > { %754 = vsyncadd (%p669_p1), %s530_s14, 4294967280  ;;  %p16_p2 = scmp.ge.s32.totalorder %s835_s27, 4   ;;  %s1043_s21 = smov %s761_s22 }
 0x34d   : > { %s1044_s22 = smov %s765_s23  ;;  %s1045_s23 = smov %s846_s30 }
 0x34e   : > { %s1046_s24 = smov %s835_s27  ;;  %18 = sbr.rel (!%p16_p2) target bundleno = 3 (0x3), region = 79 }
 0x353   :  { %534 = vsyncpa [#allocation3], 1 }
 0x354   :  { %536 = vsyncpa [#allocation3 + $0x1], 1 }

// kernel: hybrid_ode_classifier_forward.8
= control target key start
LH: loop header
LB: loop body
LE: loop exit
PB: predicated region body
PF: predicated region fallthrough
CT: control target
= control target key end

     0   :  { %s6811_s27 = smov 0   ;;  %s6813_s28 = smov 0   ;;  %s9064_s0 = inlined_call_operand.vmem [shape: f32[2,9,64], index: 0, kind: input, shape index: {}]   ;;  %s9065_s1 = inlined_call_operand.vmem [shape: bf16[64,576], index: 1, kind: input, shape index: {}]   ;;  %s9066_s2 = inlined_call_operand.vmem [shape: bf16[64,576], index: 2, kind: input, shape index: {}]   ;;  %s9067_s3 = inlined_call_operand.vmem [shape: f32[9,576], index: 3, kind: input, shape index: {}]   ;;  %s9068_s4 = inlined_call_operand.vmem [shape: f32[9,64], index: 4, kind: input, shape index: {}]   ;;  %s9069_s5 = inlined_call_operand.vmem [shape: f32[9,64], index: 5, kind: input, shape index: {}]   ;;  %s9070_s6 = inlined_call_operand.vmem [shape: f32[8,64], index: 6, kind: input, shape index: {}]   ;;  %s9071_s7 = inlined_call_operand.vmem [shape: f32[128,128], index: 7, kind: input, shape index: {}]   ;;  %s9072_s8 = inlined_call_operand.vmem [shape: f32[2,9,64], index: 8, kind: output, shape index: {}]  }
   0x1   :  { %s6815_s29 = smov 0   ;;  %s6817_s30 = smov 0  }
   0x2   :  { %s6819_s9 = smov 0  }
   0x3 LB: > { %s27_s10 = sadd.s32 1, %s6751_s29  ;;  %s30_s11 = sadd.s32 1, %s6755_s30  ;;  %s6759_s9 = sphi %s6819_s9, %s18_s9   ;;  %s6755_s30 = sphi %s6817_s30, %s9076_s30   ;;  %s6751_s29 = sphi %s6815_s29, %s9075_s29   ;;  %s6747_s28 = sphi %s6813_s28, %s9074_s28   ;;  %s6743_s27 = sphi %s6811_s27, %s9073_s27  }
   0x4   : > { %p28_p0 = scmp.ge.s32.totalorder %s27_s10, 8  ;;  %p5365_p1 = scmp.ge.s32.totalorder %s6759_s9, 1 }
   0x5   : > { %p274_p2 = scmp.lt.s32.totalorder %s6759_s9, 17 }
   0x6   : > { %s9078_s10 = smov (%p28_p0, %s27_s10), 0  ;;  %s9080_s11 = smov (!%p28_p0, %s30_s11), %s6755_s30 }
   0x7   : > { %p275_p3 = pnand %p5365_p1, %p274_p2  ;;  %p32_p4 = scmp.ge.s32.totalorder %s9080_s11, 2 }
   0x8   : > { %p308_p5 = scmp.lt.s32.totalorder (!%p275_p3), %s6747_s28, 1  ;;  %p5370_p6 = scmp.ne.s32.totalorder (!%p275_p3), %s6743_s27, 0 }
   0x9   : > { %s9082_s11 = smov (%p32_p4, %s9080_s11), 0  ;;  %278 = sbr.rel (%p275_p3) target bundleno = 9903 (0x26af), region = 52 }
   0xe   : > { %s9084_s28 = smov (!%p308_p5, %s6747_s28), 1  ;;  %322 = sbr.rel (%p5370_p6) target bundleno = 27 (0x1b), region = 56 }
   0xf   : > { %s5557_s12 = sshll.u32 %s9084_s28, 4 }
  0x10   : > { %s312_s15 = scalar_lea.vmem %s9064_s0, %s5557_s12  ;;  %s6849_s18 = scalar_lea.vmem %s9072_s8, %s5557_s12 }
  0x13   : > { %v323_v0 = vld [vmem:[%s312_s15] sm:$0xff]  ;;  %vm325_vm0 = vcmask 523264   ;;  %v324_v1 = vld [vmem:[%s312_s15 + $0x8] sm:$0x1]  ;;  %vm327_vm1 = vcmask 516096   ;;  %v6761_v2 = vmov 0.0  }
  0x14   : > { %326 = vst.msk [vmem:[%s6849_s18] sm:$0xff] %vm325_vm0, %v323_v0  ;;  %329 = vst [vmem:[#allocation2] sm:$0xff] %v6761_v2 }
  0x15   : > { %328 = vst.msk [vmem:[%s6849_s18 + $0x8] sm:$0x1] %vm327_vm1, %v324_v1  ;;  %330 = vst [vmem:[#allocation2 + $0x8] sm:$0xff] %v6761_v2 }
  0x16   : > { %331 = vst [vmem:[#allocation2 + $0x10] sm:$0xff] %v6761_v2  ;;  %332 = vst [vmem:[#allocation2 + $0x18] sm:$0xff] %v6761_v2 }
  0x17   : > { %334 = vst [vmem:[#allocation2 + $0x28] sm:$0xff] %v6761_v2  ;;  %335 = vst [vmem:[#allocation2 + $0x30] sm:$0xff] %v6761_v2 }
  0x18   : > { %336 = vst [vmem:[#allocation2 + $0x38] sm:$0xff] %v6761_v2  ;;  %337 = vst [vmem:[#allocation2 + $0x40] sm:$0xff] %v6761_v2 }
  0x19   : > { %338 = vst.msk [vmem:[#allocation2 + $0x48] sm:$0xff] %vm325_vm0, %v6761_v2 }
  0x1a   : > { %343 = vst.msk [vmem:[#allocation2 + $0x70] sm:$0x1] %vm327_vm1, %v6761_v2 }
  0x1b PF: > { %v6855_v3 = vld [vmem:[%s6849_s18] sm:$0xff]  ;;  %vm380_vm2 = vcmask 523264   ;;  %vm382_vm3 = vcmask 516096   ;;  %v6867_v7 = vld [vmem:[%s9071_s7 + $0x78] sm:$0xff]  ;;  %v6762_v8 = vmov 0.0   ;;  %v6873_v9 = vld [vmem:[%s9071_s7 + $0x70] sm:$0xff]  ;;  %v486_v59 = vlaneseq  ;;  %s377_s13 = scvt.s32.f32 %s6743_s27 }
  0x1c   : > { %v6858_v4 = vld [vmem:[%s6849_s18 + $0x8] sm:$0x1]  ;;  %v391_v5 = vmul.f32 %v6855_v3, %v6855_v3  ;;  %5803 = vmatprep.subr.mxu0 %v6762_v8  ;;  %v6888_v14 = vld [vmem:[%s9071_s7 + $0x60] sm:$0xff]  ;;  %vm6763_vm4 = vmmov 0   ;;  %v6896_v16 = vld [vmem:[%s9071_s7 + $0x58] sm:$0xff]  ;;  %s6764_s24 = smov 64  }
  0x1d   : > { %v392_v6 = vmul.f32 %v6858_v4, %v6858_v4  ;;  %5804 = vmatpush3.msra.mxu0 %v6867_v7  ;;  %v6882_v13 = vld [vmem:[%s9071_s7 + $0x68] sm:$0xff]  ;;  %5835 = vmatprep.mubr.msk.f32.mxu0 %vm6763_vm4, %v6762_v8  ;;  %v6903_v18 = vld [vmem:[%s9071_s7 + $0x50] sm:$0xff]  ;;  %v6917_v22 = vld [vmem:[%s9071_s7 + $0x40] sm:$0xff]  ;;  %v381_v33 = vsel %vm380_vm2, %v6855_v3, 0.0  ;;  %v383_v34 = vsel %vm382_vm3, %v6858_v4, 0.0  ;;  %v7021_v63 = vshrl.u32 %v486_v59, 7 }
  0x1e   : > { %v393_v10 = vsel %vm380_vm2, %v391_v5, 0.0  ;;  %5805 = vmatprep.subr.mxu0 %v6762_v8  ;;  %v6910_v20 = vld [vmem:[%s9071_s7 + $0x48] sm:$0xff]  ;;  %v6924_v24 = vld [vmem:[%s9071_s7 + $0x38] sm:$0xff]  ;;  %v6931_v26 = vld [vmem:[%s9071_s7 + $0x30] sm:$0xff]  ;;  %v384_v35 = vadd.f32 %v383_v34, %v381_v33  ;;  %v6765_v0 = vmov 0   ;;  %vm795_vm5 = vcmask 1043456  }
  0x1f   : > { %v394_v11 = vsel %vm382_vm3, %v392_v6, 0.0  ;;  %5806 = vmatpush3.msra.mxu0 %v6873_v9  ;;  %v6939_v27 = vld [vmem:[%s9071_s7 + $0x28] sm:$0xff]  ;;  %v6946_v28 = vld [vmem:[%s9071_s7 + $0x20] sm:$0xff]  ;;  %v6953_v29 = vld [vmem:[%s9071_s7 + $0x18] sm:$0xff]  ;;  %680 = vmatprep.mubr.bf16.mxu1 %v6765_v0  ;;  %v7028_v5 = vsub.s32 0, %v7021_v63  ;;  %vm850_vm6 = vcmask 1046528  }
  0x20   : > { %v395_v12 = vadd.f32 %v394_v11, %v393_v10  ;;  %5807 = vmatprep.subr.mxu0 %v6762_v8  ;;  %v6960_v30 = vld [vmem:[%s9071_s7 + $0x10] sm:$0xff]  ;;  %v6967_v31 = vld [vmem:[%s9071_s7 + $0x8] sm:$0xff]  ;;  %v6974_v32 = vld [vmem:[%s9071_s7] sm:$0xff]  ;;  %v385_v36 = vrot.slane %v384_v35, 4  ;;  %vm878_vm7 = vcmask 1044480   ;;  %vm905_vm8 = vcmask 1042432  }
  0x21   : > { %5808 = vmatpush3.msra.mxu0 %v6882_v13  ;;  %v6989_v44 = vld [vmem:[%s9070_s6] sm:$0xff]  ;;  %v6364_v49 = vld [vmem:[%s9065_s1 + $0x7c] ss:$20 sps:$4 sm:$0xff]   ;;  %v6366_v50 = vld [vmem:[%s9065_s1 + $0x78] ss:$20 sps:$4 sm:$0xff]   ;;  %vm933_vm9 = vcmask 1040384  }
  0x22   : > { %v396_v15 = vrot.slane %v395_v12, 4  ;;  %5809 = vmatprep.subr.mxu0 %v6762_v8  ;;  %v386_v37 = vadd.f32 %v385_v36, %v384_v35  ;;  %v493_v45 = vrot.slane %v6989_v44, 2  ;;  %v6367_v51 = vld [vmem:[%s9065_s1 + $0x54] ss:$20 sps:$4 sm:$0xff]   ;;  %656 = vmatprep.subr.bf16.mxu1 %v6364_v49  ;;  %v6369_v52 = vld [vmem:[%s9065_s1 + $0x50] ss:$20 sps:$4 sm:$0xff]  }
  0x23   : > { %5810 = vmatpush3.msra.mxu0 %v6888_v14  ;;  %657 = vmatpush1.bf16.msra.mxu1 %v6366_v50  ;;  %v6370_v53 = vld [vmem:[%s9065_s1 + $0x2c] ss:$20 sps:$4 sm:$0xff]   ;;  %v6372_v58 = vld [vmem:[%s9065_s1 + $0x28] ss:$20 sps:$4 sm:$0xff]   ;;  %v6373_v60 = vld [vmem:[%s9065_s1 + $0x4] ss:$20 sps:$4 sm:$0xff]  }
  0x24   : > { %v397_v17 = vadd.f32 %v396_v15, %v395_v12  ;;  %5811 = vmatprep.subr.mxu0 %v6762_v8  ;;  %v387_v38 = vrot.slane %v386_v37, 2  ;;  %494 = vrot.lane.b32.xlu1 %v493_v45, %s6764_s24  ;;  %v6375_v61 = vld [vmem:[%s9065_s1] ss:$20 sps:$4 sm:$0xff]   ;;  %v6378_v62 = vld [vmem:[%s9065_s1 + $0x84] ss:$20 sps:$4 sm:$0xff]   ;;  %v510_v12 = vsub.s32 3, %v7021_v63 }
  0x25   : > { %5812 = vmatpush3.msra.mxu0 %v6896_v16  ;;  %658 = vmatprep.subr.bf16.mxu1 %v6367_v51  ;;  %v6389_v45 = vld [vmem:[%s9065_s1 + $0x60] ss:$20 sps:$4 sm:$0xff]   ;;  %vm831_vm10 = vcmask 520192   ;;  %s7199_s14 = smul.f32 0.125, %s377_s13  ;;  %vm866_vm11 = vcmask 1045504   ;;  %vm921_vm12 = vcmask 1041408  }
  0x26   : > { %v398_v19 = vrot.slane %v397_v17, 2  ;;  %5813 = vmatprep.subr.mxu0 %v6762_v8  ;;  %v388_v39 = vadd.f32 %v387_v38, %v386_v37  ;;  %v7036_v15 = vrot.slane %v6989_v44, %v510_v12  ;;  %v6376_v37 = vld [vmem:[%s9065_s1 + $0x80] ss:$20 sps:$4 sm:$0xff]  }
  0x27   : > { %5814 = vmatpush3.msra.mxu0 %v6903_v18  ;;  %659 = vmatpush1.bf16.msra.mxu1 %v6369_v52  ;;  %v7149_v50 = vld [vmem:[%s9067_s3 + $0x10] sm:$0xff]  ;;  %s1640_s17 = sadd.f32 0.0625, %s7199_s14 }
  0x28   : > { %v399_v21 = vadd.f32 %v398_v19, %v397_v17  ;;  %5815 = vmatprep.subr.mxu0 %v6762_v8  ;;  %v389_v40 = vrot.slane %v388_v39, 1  ;;  %660 = vmatprep.subr.bf16.mxu1 %v6370_v53  ;;  %v7154_v53 = vld [vmem:[%s9067_s3 + $0x18] sm:$0xff]  ;;  %s4072_s25 = sadd.f32 0.125, %s7199_s14 }
  0x29   : > { %5816 = vmatpush3.msra.mxu0 %v6910_v20 }
  0x2a   : > { %v400_v23 = vrot.slane %v399_v21, 1  ;;  %5817 = vmatprep.subr.mxu0 %v6762_v8  ;;  %v390_v41 = vadd.f32 %v389_v40, %v388_v39  ;;  %v6384_v39 = vld [vmem:[%s9065_s1 + $0x34] ss:$20 sps:$4 sm:$0xff]   ;;  %v6382_v40 = vld [vmem:[%s9065_s1 + $0x30] ss:$20 sps:$4 sm:$0xff]  }
  0x2b   : > { %5818 = vmatpush3.msra.mxu0 %v6917_v22  ;;  %661 = vmatpush1.bf16.msra.mxu1 %v6372_v58 }
  0x2c   : > { %v401_v25 = vadd.f32 %v400_v23, %v399_v21  ;;  %5819 = vmatprep.subr.mxu0 %v6762_v8  ;;  %662 = vmatprep.subr.bf16.mxu1 %v6373_v60 }
  0x2d   : > { %5820 = vmatpush3.msra.mxu0 %v6924_v24 }
  0x2e   : > { %403 = vrot.lane.b32.xlu0 %v401_v25, %s6764_s24  ;;  %5821 = vmatprep.subr.mxu0 %v6762_v8 }
  0x2f   : > { %5822 = vmatpush3.msra.mxu0 %v6931_v26  ;;  %663 = vmatpush1.bf16.msra.mxu1 %v6375_v61 }
  0x30   : > { %5823 = vmatprep.subr.mxu0 %v6762_v8  ;;  %699 = vmatprep.subr.bf16.mxu1 %v6378_v62 }
  0x31   : > { %5824 = vmatpush3.msra.mxu0 %v6939_v27 }
  0x32   : > { %5825 = vmatprep.subr.mxu0 %v6762_v8 }
  0x33   : > { %5826 = vmatpush3.msra.mxu0 %v6946_v28 }
  0x34   : > { %5827 = vmatprep.subr.mxu0 %v6762_v8 }
  0x35   : > { %5828 = vmatpush3.msra.mxu0 %v6953_v29 }
  0x36   : > { %5829 = vmatprep.subr.mxu0 %v6762_v8 }
  0x37   : > { %5830 = vmatpush3.msra.mxu0 %v6960_v30 }
  0x38   : > { %5831 = vmatprep.subr.mxu0 %v6762_v8 }
  0x39   : > { %5832 = vmatpush3.msra.mxu0 %v6967_v31 }
  0x3a   : > { %5833 = vmatprep.subr.mxu0 %v6762_v8 }
  0x3b   : > { %5834 = vmatpush3.msra.mxu0 %v6974_v32 }
  0x96   : > { %v7025_v1 = vpop.permute.xlu1 %494 }
  0xa0   : > { %v404_v42 = vpop.permute.xlu0 %403 }
  0xa1   : > { %v406_v43 = vsel %vm380_vm2, %v390_v41, %v404_v42  ;;  %v6387_v41 = vld [vmem:[%s9065_s1 + $0xc] ss:$20 sps:$4 sm:$0xff]   ;;  %v6385_v42 = vld [vmem:[%s9065_s1 + $0x8] ss:$20 sps:$4 sm:$0xff]  }
  0xa2   : > { %5836 = vmatmul.mubr.f32.vlgmr.msra.gmra.mxu0 %v406_v43  ;;  %v6388_v43 = vld [vmem:[%s9065_s1 + $0x88] ss:$20 sps:$4 sm:$0xff]  }
  0xa3   : > { %1246 = vmatprep.mubr.bf16.mxu0 %v6765_v0 }
 0x162   : > { %v473_v46 = vpop.f32.mrf.mxu0 }
 0x163   : > { %v477_v47 = vmul.f32 %v473_v46, %v473_v46  ;;  %v489_v11 = vrot.slane %v473_v46, %v7028_v5 }
 0x164   : > { %v5837_v48 = vpop.f32.mrf.mxu0 }
 0x165   : > { %479 = vrot.lane.b32.xlu0 %v477_v47, %s6764_s24  ;;  %v490_v17 = vsub.f32 %v6855_v3, %v489_v11  ;;  %v491_v19 = vsub.f32 %v6858_v4, %v489_v11  ;;  %v6381_v3 = vld [vmem:[%s9065_s1 + $0x5c] ss:$20 sps:$4 sm:$0xff]   ;;  %v6379_v4 = vld [vmem:[%s9065_s1 + $0x58] ss:$20 sps:$4 sm:$0xff]   ;;  %v7168_v11 = vld [vmem:[%s9067_s3 + $0x40] sm:$0x1] }
 0x166   : > { %v6391_v47 = vld [vmem:[%s9065_s1 + $0x10] ss:$20 sps:$4 sm:$0xff]  }
 0x1d7   : > { %v480_v54 = vpop.permute.xlu0 %479 }
 0x1d8   : > { %v482_v55 = vsub.f32 %v473_v46, %v480_v54  ;;  %v6390_v46 = vld [vmem:[%s9065_s1 + $0x38] ss:$20 sps:$4 sm:$0xff]  }
 0x1da   : > { %v483_v56 = vmax.f32 %v482_v55, 0.0 }
 0x1dc   : > { %v484_v57 = vadd.f32 1e-05, %v483_v56 }
 0x1de   : > { %6588 = vrsqrt.f32 %v484_v57  ;;  %v7160_v57 = vld [vmem:[%s9067_s3 + $0x38] sm:$0x1] }
 0x1eb   : > { %v6589_v2 = vpop.eup %6588 }
 0x1ec   : > { %v497_v6 = vmul.f32 %v6589_v2, %v7025_v1 }
 0x1ee   : > { %v501_v10 = vrot.slane %v497_v6, %v7028_v5 }
 0x1f0   : > { %503 = vrot.lane.b32.xlu1 %v501_v10, %s6764_s24 }
 0x262   : > { %v504_v21 = vpop.permute.xlu1 %503 }
 0x263   : > { %v506_v23 = vmul.f32 %v504_v21, %v490_v17  ;;  %v507_v25 = vmul.f32 %v504_v21, %v491_v19 }
 0x265   : > { %v512_v33 = vadd.f32 %v7036_v15, %v506_v23  ;;  %v513_v34 = vadd.f32 %v7036_v15, %v507_v25 }
 0x267   : > { %v514_v35 = vmax.f32 %v512_v33, 0.0  ;;  %v515_v36 = vmax.f32 %v513_v34, 0.0 }
 0x269   : > { %v516_v38 = vpack.c.bf16 %v515_v36, %v514_v35 }
 0x26b   : > { %5391 = vmatmul.mubr.msk.bf16.vlgmr.msra.gmra.mxu1 %vm380_vm2, %v516_v38 }
 0x26c   : > { %700 = vmatpush1.bf16.msra.mxu1 %v6376_v37  ;;  %723 = vmatprep.mubr.bf16.mxu1 %v6765_v0 }
 0x26d   : > { %701 = vmatprep.subr.bf16.mxu1 %v6381_v3 }
 0x270   : > { %702 = vmatpush1.bf16.msra.mxu1 %v6379_v4 }
 0x271   : > { %703 = vmatprep.subr.bf16.mxu1 %v6384_v39 }
 0x274   : > { %704 = vmatpush1.bf16.msra.mxu1 %v6382_v40 }
 0x275   : > { %705 = vmatprep.subr.bf16.mxu1 %v6387_v41 }
 0x278   : > { %706 = vmatpush1.bf16.msra.mxu1 %v6385_v42 }
 0x279   : > { %5838 = vmatprep.subr.bf16.mxu1 %v6762_v8 }
 0x27b   : > { %5392 = vmatmul.mubr.msk.bf16.vlgmr.msra.gmra.mxu1 %vm380_vm2, %v516_v38 }
 0x27c   : > { %5839 = vmatpush3.bf16.msra.mxu1 %v6388_v43  ;;  %5846 = vmatprep.mubr.msk.bf16.mxu1 %vm6763_vm4, %v6762_v8  ;;  %v7187_v43 = vld [vmem:[%s9067_s3 + $0x48] sm:$0x1] }
 0x27d   : > { %5840 = vmatprep.subr.bf16.mxu1 %v6762_v8 }
 0x280   : > { %5841 = vmatpush3.bf16.msra.mxu1 %v6389_v45 }
 0x281   : > { %5842 = vmatprep.subr.bf16.mxu1 %v6762_v8 }
 0x284   : > { %5843 = vmatpush3.bf16.msra.mxu1 %v6390_v46 }
 0x285   : > { %5844 = vmatprep.subr.bf16.mxu1 %v6762_v8 }
 0x288   : > { %5845 = vmatpush3.bf16.msra.mxu1 %v6391_v47 }
 0x289   : > { %5850 = vmatprep.subr.mxu1 %v6762_v8 }
 0x28b   : > { %5847 = vmatmul.mubr.msk.bf16.vlgmr.msra.gmra.mxu1 %vm380_vm2, %v516_v38  ;;  %v7181_v38 = vld [vmem:[%s9067_s3 + $0x20] sm:$0xff] }
 0x28c   : > { %5851 = vmatpush3.msra.mxu1 %v6867_v7  ;;  %5882 = vmatprep.mubr.msk.f32.mxu1 %vm6763_vm4, %v6762_v8  ;;  %v7123_v7 = vld [vmem:[%s9067_s3] sm:$0xff] }
 0x28d   : > { %5852 = vmatprep.subr.mxu1 %v6762_v8 }
 0x28e   : > { %5853 = vmatpush3.msra.mxu1 %v6873_v9 }
 0x28f   : > { %5854 = vmatprep.subr.mxu1 %v6762_v8 }
 0x290   : > { %5855 = vmatpush3.msra.mxu1 %v6882_v13  ;;  %v7128_v13 = vld [vmem:[%s9067_s3 + $0x8] sm:$0xff] }
 0x291   : > { %5856 = vmatprep.subr.mxu1 %v6762_v8 }
 0x292   : > { %5857 = vmatpush3.msra.mxu1 %v6888_v14 }
 0x293   : > { %5858 = vmatprep.subr.mxu1 %v6762_v8 }
 0x294   : > { %5859 = vmatpush3.msra.mxu1 %v6896_v16 }
 0x295   : > { %5860 = vmatprep.subr.mxu1 %v6762_v8 }
 0x296   : > { %5861 = vmatpush3.msra.mxu1 %v6903_v18  ;;  %v7134_v18 = vld [vmem:[%s9067_s3 + $0x28] sm:$0x1] }
 0x297   : > { %5862 = vmatprep.subr.mxu1 %v6762_v8 }
 0x298   : > { %5863 = vmatpush3.msra.mxu1 %v6910_v20 }
 0x299   : > { %5864 = vmatprep.subr.mxu1 %v6762_v8 }
 0x29a   : > { %5865 = vmatpush3.msra.mxu1 %v6917_v22 }
 0x29b   : > { %5866 = vmatprep.subr.mxu1 %v6762_v8 }
 0x29c   : > { %5867 = vmatpush3.msra.mxu1 %v6924_v24 }
 0x29d   : > { %5868 = vmatprep.subr.mxu1 %v6762_v8 }
 0x29e   : > { %5869 = vmatpush3.msra.mxu1 %v6931_v26  ;;  %v7140_v26 = vld [vmem:[%s9067_s3 + $0x30] sm:$0x1] }
 0x29f   : > { %5870 = vmatprep.subr.mxu1 %v6762_v8 }
 0x2a0   : > { %5871 = vmatpush3.msra.mxu1 %v6939_v27 }
 0x2a1   : > { %5872 = vmatprep.subr.mxu1 %v6762_v8 }
 0x2a2   : > { %5873 = vmatpush3.msra.mxu1 %v6946_v28 }
 0x2a3   : > { %5874 = vmatprep.subr.mxu1 %v6762_v8 }
 0x2a4   : > { %5875 = vmatpush3.msra.mxu1 %v6953_v29 }
 0x2a5   : > { %5876 = vmatprep.subr.mxu1 %v6762_v8 }
 0x2a6   : > { %5877 = vmatpush3.msra.mxu1 %v6960_v30 }
 0x2a7   : > { %5878 = vmatprep.subr.mxu1 %v6762_v8 }
 0x2a8   : > { %5879 = vmatpush3.msra.mxu1 %v6967_v31 }
 0x2a9   : > { %5880 = vmatprep.subr.mxu1 %v6762_v8 }
 0x2aa   : > { %5881 = vmatpush3.msra.mxu1 %v6974_v32 }
 0x2ab   : > { %5885 = vmatprep.subr.bf16.mxu1 %v6762_v8 }
 0x32b   : > { %v682_v9 = vpop.f32.mrf.mxu1 }
 0x32c   : > { %v775_v14 = vmul.f32 %v682_v9, %v7123_v7 }
 0x32d   : > { %v684_v16 = vpop.f32.mrf.mxu1 }
 0x32e   : > { %v796_v20 = vrot.slane %v775_v14, 4  ;;  %v776_v22 = vmul.f32 %v684_v16, %v7128_v13 }
 0x32f   : > { %v686_v24 = vpop.f32.mrf.mxu1 }
 0x330   : > { %821 = vst [vmem:[#allocation2] sm:$0xf0] %v796_v20  ;;  %v797_v27 = vrot.slane %v776_v22, 4  ;;  %v780_v28 = vmul.f32 %v686_v24, %v7134_v18 }
 0x331   : > { %v688_v29 = vpop.f32.mrf.mxu1 }
 0x332   : > { %822 = vst [vmem:[#allocation2 + $0x8] sm:$0xf0] %v797_v27  ;;  %v801_v30 = vrot.slane %v780_v28, 4  ;;  %v781_v31 = vmul.f32 %v688_v29, %v7140_v26 }
 0x334   : > { %v802_v32 = vsel %vm795_vm5, %v796_v20, %v801_v30  ;;  %v803_v48 = vrot.slane %v781_v31, 4  ;;  %v374_v31 = vld [vmem:[%s9068_s4 + $0x8] sm:$0x1] }
 0x335   : > { %827 = vst [vmem:[#allocation2 + $0x28] sm:$0x1f] %v802_v32  ;;  %v7205_v32 = vstv %s7199_s14 }
 0x336   : > { %v804_v49 = vsel %vm795_vm5, %v797_v27, %v803_v48  ;;  %v373_v48 = vld [vmem:[%s9068_s4] sm:$0xff] }
 0x337   : > { %828 = vst [vmem:[#allocation2 + $0x30] sm:$0x1f] %v804_v49  ;;  %v846_v51 = vld [vmem:[#allocation2] sm:$0xfe]  ;;  %v835_v49 = vmul.f32 %v7205_v32, %v374_v31 }
 0x338   : > { %v851_v59 = vrot.slane %v846_v51, 1  ;;  %v7213_v51 = vrot.slane %v6989_v44, %v7028_v5 }
 0x339   : > { %v874_v2 = vld [vmem:[#allocation2 + $0x8] sm:$0xf8] }
 0x33a   : > { %v879_v23 = vrot.slane %v874_v2, 3 }
 0x33b   : > { %v725_v52 = vpop.f32.mrf.mxu1 }
 0x33c   : > { %v777_v54 = vmul.f32 %v725_v52, %v7149_v50  ;;  %v847_v55 = vld [vmem:[#allocation2 + $0x28] sm:$0x3]  ;;  %v834_v52 = vmul.f32 %v7205_v32, %v373_v48 }
 0x33d   : > { %v727_v56 = vpop.f32.mrf.mxu1  ;;  %v852_v58 = vrot.slane %v847_v55, 1  ;;  %v843_v55 = vld [vmem:[#allocation2 + $0x28] sm:$0x1] }
 0x33e   : > { %v798_v60 = vrot.slane %v777_v54, 4  ;;  %v778_v61 = vmul.f32 %v727_v56, %v7154_v53  ;;  %v875_v62 = vld [vmem:[#allocation2 + $0x30] sm:$0xf]  ;;  %v841_v54 = vadd.f32 %v7213_v51, %v835_v49  ;;  %v840_v56 = vadd.f32 %v7213_v51, %v834_v52 }
 0x33f   : > { %v729_v6 = vpop.f32.mrf.mxu1  ;;  %856 = vrot.lane.b32.xlu1 %v852_v58, %s6764_s24  ;;  %v853_v10 = vsel %vm850_vm6, %v851_v59, %v852_v58  ;;  %v880_v12 = vrot.slane %v875_v62, 3  ;;  %v842_v58 = vld [vmem:[#allocation2] sm:$0xff] }
 0x340   : > { %823 = vst [vmem:[#allocation2 + $0x10] sm:$0xf0] %v798_v60  ;;  %v799_v17 = vrot.slane %v778_v61, 4  ;;  %v782_v19 = vmul.f32 %v729_v6, %v7160_v57  ;;  %854 = vrot.lane.b32.xlu0 %v853_v10, %s6764_s24  ;;  %v845_v61 = vadd.f32 %v843_v55, %v841_v54  ;;  %v844_v2 = vadd.f32 %v842_v58, %v840_v56  ;;  %v862_v6 = vld [vmem:[#allocation2 + $0x8] sm:$0xfc] }
 0x341   : > { %v731_v21 = vpop.f32.mrf.mxu1  ;;  %v881_v34 = vsel %vm878_vm7, %v879_v23, %v880_v12 }
 0x342   : > { %824 = vst [vmem:[#allocation2 + $0x18] sm:$0xf0] %v799_v17  ;;  %v805_v25 = vrot.slane %v782_v19, 4  ;;  %v783_v33 = vmul.f32 %v731_v21, %v7168_v11  ;;  %v867_v19 = vrot.slane %v862_v6, 2 }
 0x343   : > { %884 = vrot.lane.b32.xlu1 %v880_v12, %s6764_s24 }
 0x344   : > { %v806_v35 = vsel %vm795_vm5, %v798_v60, %v805_v25  ;;  %v807_v36 = vrot.slane %v783_v33, 4  ;;  %882 = vrot.lane.b32.xlu0 %v881_v34, %s6764_s24  ;;  %v863_v60 = vld [vmem:[#allocation2 + $0x30] sm:$0x7] }
 0x345   : > { %829 = vst [vmem:[#allocation2 + $0x38] sm:$0x1f] %v806_v35  ;;  %v868_v12 = vrot.slane %v863_v60, 2 }
 0x346   : > { %v808_v37 = vsel %vm795_vm5, %v799_v17, %v807_v36 }
 0x347   : > { %830 = vst [vmem:[#allocation2 + $0x40] sm:$0x1f] %v808_v37  ;;  %v901_v3 = vld [vmem:[#allocation2 + $0x10] sm:$0xe0]  ;;  %v869_v23 = vsel %vm866_vm11, %v867_v19, %v868_v12 }
 0x348   : > { %v906_v45 = vrot.slane %v901_v3, 5  ;;  %v890_v36 = vld [vmem:[#allocation2 + $0x10] sm:$0xf0] }
 0x349   : > { %v929_v9 = vld [vmem:[#allocation2 + $0x18] sm:$0x80] }
 0x34a   : > { %v934_v27 = vrot.slane %v929_v9, 7 }
 0x34b   : > { %v768_v4 = vpop.f32.mrf.mxu1 }
 0x34c   : > { %v779_v39 = vmul.f32 %v768_v4, %v7181_v38  ;;  %v902_v40 = vld [vmem:[#allocation2 + $0x38] sm:$0x3f] }
 0x34d   : > { %v5848_v41 = vpop.f32.mrf.mxu1  ;;  %v907_v42 = vrot.slane %v902_v40, 5  ;;  %v891_v34 = vld [vmem:[#allocation2 + $0x38] sm:$0x1f]  ;;  %v894_v40 = vrot.slane %v890_v36, 4 }
 0x34e   : > { %v800_v46 = vrot.slane %v779_v39, 4  ;;  %v930_v47 = vld [vmem:[#allocation2 + $0x40] sm:$0xff]  ;;  %v895_v3 = vrot.slane %v891_v34, 4  ;;  %v917_v41 = vld [vmem:[#allocation2 + $0x18] sm:$0xc0] }
 0x34f   : > { %911 = vrot.lane.b32.xlu1 %v907_v42, %s6764_s24  ;;  %v771_v14 = vpop.f32.mrf.mxu1  ;;  %v908_v16 = vsel %vm905_vm8, %v906_v45, %v907_v42  ;;  %v935_v20 = vrot.slane %v930_v47, 7  ;;  %v918_v39 = vld [vmem:[#allocation2 + $0x40] sm:$0x7f] }
 0x350   : > { %v784_v22 = vmul.f32 %v771_v14, %v7187_v43  ;;  %909 = vrot.lane.b32.xlu0 %v908_v16, %s6764_s24  ;;  %v896_v45 = vsel %vm795_vm5, %v894_v40, %v895_v3 }
 0x351   : > { %v5849_v24 = vpop.f32.mrf.mxu1  ;;  %v936_v29 = vsel %vm933_vm9, %v934_v27, %v935_v20 }
 0x352   : > { %v809_v28 = vrot.slane %v784_v22, 4 }
 0x353   : > { %939 = vrot.lane.b32.xlu1 %v935_v20, %s6764_s24  ;;  %v922_v20 = vrot.slane %v917_v41, 6 }
 0x354   : > { %v810_v30 = vsel %vm795_vm5, %v800_v46, %v809_v28  ;;  %937 = vrot.lane.b32.xlu0 %v936_v29, %s6764_s24  ;;  %v923_v46 = vrot.slane %v918_v39, 6  ;;  %v946_v28 = vld [vmem:[#allocation2 + $0x70] sm:$0x1]  ;;  %v1059_v39 = vrot.slane %v6989_v44, 4 }
 0x355   : > { %832 = vst.msk [vmem:[#allocation2 + $0x48] sm:$0x1f] %vm831_vm10, %v810_v30 }
 0x356   : > { %v924_v27 = vsel %vm921_vm12, %v922_v20, %v923_v46  ;;  %v6402_v20 = vld [vmem:[%s9066_s2 + $0x2c] ss:$20 sps:$4 sm:$0xff]  }
 0x35c   : > { %v945_v54 = vld [vmem:[#allocation2 + $0x48] sm:$0xff] }
 0x3b1   : > { %v857_v59 = vpop.permute.xlu1 %856 }
 0x3b2   : > { %v855_v62 = vpop.permute.xlu0 %854  ;;  %v861_v10 = vadd.f32 %v857_v59, %v845_v61 }
 0x3b3   : > { %v860_v17 = vadd.f32 %v855_v62, %v844_v2 }
 0x3b4   : > { %v873_v21 = vadd.f32 %v868_v12, %v861_v10 }
 0x3b5   : > { %v885_v25 = vpop.permute.xlu1 %884  ;;  %v872_v33 = vadd.f32 %v869_v23, %v860_v17 }
 0x3b6   : > { %v883_v35 = vpop.permute.xlu0 %882  ;;  %v889_v37 = vadd.f32 %v885_v25, %v873_v21 }
 0x3b7   : > { %v888_v4 = vadd.f32 %v883_v35, %v872_v33 }
 0x3b8   : > { %v900_v42 = vadd.f32 %v895_v3, %v889_v37 }
 0x3b9   : > { %v899_v9 = vadd.f32 %v896_v45, %v888_v4  ;;  %v6392_v45 = vld [vmem:[%s9066_s2 + $0x78] ss:$20 sps:$4 sm:$0xff]  }
 0x3c1   : > { %v912_v47 = vpop.permute.xlu1 %911 }
 0x3c2   : > { %v916_v14 = vadd.f32 %v912_v47, %v900_v42  ;;  %v910_v16 = vpop.permute.xlu0 %909  ;;  %v6395_v47 = vld [vmem:[%s9066_s2 + $0x88] ss:$20 sps:$4 sm:$0xff]  }
 0x3c3   : > { %v915_v22 = vadd.f32 %v910_v16, %v899_v9  ;;  %v6398_v9 = vld [vmem:[%s9066_s2 + $0x54] ss:$20 sps:$4 sm:$0xff]   ;;  %v6396_v16 = vld [vmem:[%s9066_s2 + $0x50] ss:$20 sps:$4 sm:$0xff]  }
 0x3c4   : > { %v928_v24 = vadd.f32 %v923_v46, %v916_v14  ;;  %v6394_v46 = vld [vmem:[%s9066_s2 + $0x7c] ss:$20 sps:$4 sm:$0xff]   ;;  %v6399_v14 = vld [vmem:[%s9066_s2 + $0x60] ss:$20 sps:$4 sm:$0xff]  }
 0x3c5   : > { %v940_v29 = vpop.permute.xlu1 %939  ;;  %v927_v30 = vadd.f32 %v924_v27, %v915_v22  ;;  %1222 = vmatprep.subr.bf16.mxu0 %v6394_v46  ;;  %v6400_v22 = vld [vmem:[%s9066_s2 + $0x28] ss:$20 sps:$4 sm:$0xff]  }
 0x3c6   : > { %v944_v31 = vadd.f32 %v940_v29, %v928_v24  ;;  %v938_v48 = vpop.permute.xlu0 %937  ;;  %1223 = vmatpush1.bf16.msra.mxu0 %v6392_v45  ;;  %v7363_v45 = vld [vmem:[%s9071_s7 + $0x50] sm:$0xff]  ;;  %v7371_v46 = vld [vmem:[%s9071_s7 + $0x48] sm:$0xff] }
 0x3c7   : > { %v943_v49 = vadd.f32 %v938_v48, %v927_v30  ;;  %1224 = vmatprep.subr.bf16.mxu0 %v6398_v9  ;;  %v6403_v30 = vld [vmem:[%s9066_s2 + $0x38] ss:$20 sps:$4 sm:$0xff]   ;;  %v6404_v48 = vld [vmem:[%s9066_s2] ss:$20 sps:$4 sm:$0xff]  }
 0x3c8   : > { %v7221_v52 = vadd.f32 %v946_v28, %v944_v31  ;;  %v6406_v31 = vld [vmem:[%s9066_s2 + $0x4] ss:$20 sps:$4 sm:$0xff]  }
 0x3c9   : > { %v7223_v55 = vadd.f32 %v945_v54, %v943_v49  ;;  %v6407_v49 = vld [vmem:[%s9066_s2 + $0x10] ss:$20 sps:$4 sm:$0xff]   ;;  %v7391_v9 = vld [vmem:[%s9071_s7 + $0x38] sm:$0xff] }
 0x3ca   : > { %v959_v56 = vmul.f32 %v7221_v52, %v7221_v52  ;;  %v950_v19 = vsel %vm382_vm3, %v7221_v52, 0.0  ;;  %1225 = vmatpush1.bf16.msra.mxu0 %v6396_v16  ;;  %v6410_v54 = vld [vmem:[%s9066_s2 + $0x84] ss:$20 sps:$4 sm:$0xff]   ;;  %v7409_v16 = vld [vmem:[%s9071_s7 + $0x28] sm:$0xff] }
 0x3cb   : > { %v958_v58 = vmul.f32 %v7223_v55, %v7223_v55  ;;  %v949_v21 = vsel %vm380_vm2, %v7223_v55, 0.0  ;;  %1226 = vmatprep.subr.bf16.mxu0 %v6402_v20  ;;  %v7418_v20 = vld [vmem:[%s9071_s7 + $0x20] sm:$0xff] }
 0x3cc   : > { %v961_v59 = vsel %vm382_vm3, %v959_v56, 0.0  ;;  %v951_v23 = vadd.f32 %v950_v19, %v949_v21 }
 0x3cd   : > { %v960_v60 = vsel %vm380_vm2, %v958_v58, 0.0 }
 0x3ce   : > { %v962_v61 = vadd.f32 %v961_v59, %v960_v60  ;;  %v952_v25 = vrot.slane %v951_v23, 4  ;;  %1227 = vmatpush1.bf16.msra.mxu0 %v6400_v22  ;;  %v7427_v22 = vld [vmem:[%s9071_s7 + $0x18] sm:$0xff] }
 0x3cf   : > { %1228 = vmatprep.subr.bf16.mxu0 %v6406_v31 }
 0x3d0   : > { %v963_v62 = vrot.slane %v962_v61, 4  ;;  %v953_v33 = vadd.f32 %v952_v25, %v951_v23 }
 0x3d2   : > { %v964_v2 = vadd.f32 %v963_v62, %v962_v61  ;;  %v954_v34 = vrot.slane %v953_v33, 2  ;;  %1229 = vmatpush1.bf16.msra.mxu0 %v6404_v48  ;;  %v1076_v61 = vsub.s32 5, %v7021_v63 }
 0x3d3   : > { %1265 = vmatprep.subr.bf16.mxu0 %v6410_v54 }
 0x3d4   : > { %v965_v6 = vrot.slane %v964_v2, 2  ;;  %v955_v35 = vadd.f32 %v954_v34, %v953_v33  ;;  %v6408_v34 = vld [vmem:[%s9066_s2 + $0x80] ss:$20 sps:$4 sm:$0xff]  }
 0x3d6   : > { %v966_v10 = vadd.f32 %v965_v6, %v964_v2  ;;  %v956_v36 = vrot.slane %v955_v35, 1  ;;  %v7293_v2 = vrot.slane %v6989_v44, %v1076_v61  ;;  %v6413_v44 = vld [vmem:[%s9066_s2 + $0x5c] ss:$20 sps:$4 sm:$0xff]  }
 0x3d8   : > { %v967_v12 = vrot.slane %v966_v10, 1  ;;  %v957_v37 = vadd.f32 %v956_v36, %v955_v35  ;;  %v7317_v36 = vld [vmem:[%s9071_s7 + $0x78] sm:$0xff] }
 0x3da   : > { %v968_v17 = vadd.f32 %v967_v12, %v966_v10 }
 0x3dc   : > { %970 = vrot.lane.b32.xlu0 %v968_v17, %s6764_s24 }
 0x3e0   : > { %1060 = vrot.lane.b32.xlu0 %v1059_v39, %s6764_s24  ;;  %v7339_v39 = vld [vmem:[%s9071_s7 + $0x68] sm:$0xff] }
 0x44e   : > { %v971_v3 = vpop.permute.xlu0 %970 }
 0x44f   : > { %v973_v4 = vsel %vm380_vm2, %v957_v37, %v971_v3  ;;  %v7326_v37 = vld [vmem:[%s9071_s7 + $0x70] sm:$0xff] }
 0x450   : > { %5883 = vmatmul.mubr.f32.vlgmr.msra.gmra.mxu1 %v973_v4  ;;  %v6414_v3 = vld [vmem:[%s9066_s2 + $0x30] ss:$20 sps:$4 sm:$0xff]   ;;  %v6419_v4 = vld [vmem:[%s9066_s2 + $0xc] ss:$20 sps:$4 sm:$0xff]  }
 0x451   : > { %5893 = vmatprep.mubr.msk.bf16.mxu1 %vm6763_vm4, %v6762_v8  ;;  %5886 = vmatpush3.bf16.msra.mxu1 %v6395_v47  ;;  %v7379_v47 = vld [vmem:[%s9071_s7 + $0x40] sm:$0xff] }
 0x452   : > { %5887 = vmatprep.subr.bf16.mxu1 %v6762_v8  ;;  %v7284_v56 = vpop.permute.xlu0 %1060 }
 0x455   : > { %5888 = vmatpush3.bf16.msra.mxu1 %v6399_v14  ;;  %v7400_v14 = vld [vmem:[%s9071_s7 + $0x30] sm:$0xff] }
 0x456   : > { %5889 = vmatprep.subr.bf16.mxu1 %v6762_v8 }
 0x459   : > { %5890 = vmatpush3.bf16.msra.mxu1 %v6403_v30 }
 0x45a   : > { %5891 = vmatprep.subr.bf16.mxu1 %v6762_v8 }
 0x45d   : > { %5892 = vmatpush3.bf16.msra.mxu1 %v6407_v49 }
 0x45e   : > { %5932 = vmatprep.subr.mxu1 %v6762_v8 }
 0x510   : > { %v1040_v40 = vpop.f32.mrf.mxu1 }
 0x511   : > { %v1044_v41 = vmul.f32 %v1040_v40, %v1040_v40  ;;  %v1056_v62 = vrot.slane %v1040_v40, %v7028_v5 }
 0x512   : > { %v5884_v42 = vpop.f32.mrf.mxu1 }
 0x513   : > { %1046 = vrot.lane.b32.xlu1 %v1044_v41, %s6764_s24  ;;  %v1057_v6 = vsub.f32 %v7223_v55, %v1056_v62  ;;  %v1058_v10 = vsub.f32 %v7221_v52, %v1056_v62  ;;  %v6411_v52 = vld [vmem:[%s9066_s2 + $0x58] ss:$20 sps:$4 sm:$0xff]   ;;  %v6416_v55 = vld [vmem:[%s9066_s2 + $0x34] ss:$20 sps:$4 sm:$0xff]  }
 0x514   : > { %v6417_v41 = vld [vmem:[%s9066_s2 + $0x8] ss:$20 sps:$4 sm:$0xff]  }
 0x515   : > { %v7356_v42 = vld [vmem:[%s9071_s7 + $0x58] sm:$0xff] }
 0x585   : > { %v1047_v24 = vpop.permute.xlu1 %1046 }
 0x586   : > { %v1049_v27 = vsub.f32 %v1040_v40, %v1047_v24  ;;  %v7346_v40 = vld [vmem:[%s9071_s7 + $0x60] sm:$0xff]  ;;  %v7436_v24 = vld [vmem:[%s9071_s7 + $0x10] sm:$0xff] }
 0x588   : > { %v1050_v28 = vmax.f32 %v1049_v27, 0.0  ;;  %v7445_v27 = vld [vmem:[%s9071_s7 + $0x8] sm:$0xff] }
 0x58a   : > { %v1051_v29 = vadd.f32 1e-05, %v1050_v28  ;;  %v7454_v28 = vld [vmem:[%s9071_s7] sm:$0xff] }
 0x58c   : > { %6590 = vrsqrt.f32 %v1051_v29 }
 0x599   : > { %v6591_v58 = vpop.eup %6590 }
 0x59a   : > { %v1063_v59 = vmul.f32 %v6591_v58, %v7284_v56 }
 0x59c   : > { %v1067_v60 = vrot.slane %v1063_v59, %v7028_v5 }
 0x59e   : > { %1069 = vrot.lane.b32.xlu1 %v1067_v60, %s6764_s24 }
 0x610   : > { %v1070_v12 = vpop.permute.xlu1 %1069 }
 0x611   : > { %v1072_v17 = vmul.f32 %v1070_v12, %v1057_v6  ;;  %v1073_v19 = vmul.f32 %v1070_v12, %v1058_v10 }
 0x613   : > { %v1078_v21 = vadd.f32 %v7293_v2, %v1072_v17  ;;  %v1079_v23 = vadd.f32 %v7293_v2, %v1073_v19 }
 0x615   : > { %v1080_v25 = vmax.f32 %v1078_v21, 0.0  ;;  %v1081_v33 = vmax.f32 %v1079_v23, 0.0 }
 0x617   : > { %v1082_v35 = vpack.c.bf16 %v1081_v33, %v1080_v25 }
 0x619   : > { %5414 = vmatmul.mubr.msk.bf16.vlgmr.msra.gmra.mxu0 %vm380_vm2, %v1082_v35  ;;  %5894 = vmatmul.mubr.msk.bf16.vlgmr.msra.gmra.mxu1 %vm380_vm2, %v1082_v35 }
 0x61a   : > { %1266 = vmatpush1.bf16.msra.mxu0 %v6408_v34  ;;  %1289 = vmatprep.mubr.bf16.mxu0 %v6765_v0 }
 0x61b   : > { %1267 = vmatprep.subr.bf16.mxu0 %v6413_v44  ;;  %5933 = vmatpush3.msra.mxu1 %v7317_v36 }
 0x61c   : > { %5934 = vmatprep.subr.mxu1 %v6762_v8  ;;  %5964 = vmatprep.mubr.msk.f32.mxu1 %vm6763_vm4, %v6762_v8 }
 0x61d   : > { %5935 = vmatpush3.msra.mxu1 %v7326_v37 }
 0x61e   : > { %1268 = vmatpush1.bf16.msra.mxu0 %v6411_v52  ;;  %5936 = vmatprep.subr.mxu1 %v6762_v8 }
 0x61f   : > { %1269 = vmatprep.subr.bf16.mxu0 %v6416_v55  ;;  %5937 = vmatpush3.msra.mxu1 %v7339_v39 }
 0x620   : > { %5938 = vmatprep.subr.mxu1 %v6762_v8 }
 0x621   : > { %5939 = vmatpush3.msra.mxu1 %v7346_v40 }
 0x622   : > { %1270 = vmatpush1.bf16.msra.mxu0 %v6414_v3  ;;  %5940 = vmatprep.subr.mxu1 %v6762_v8 }
 0x623   : > { %1271 = vmatprep.subr.bf16.mxu0 %v6419_v4  ;;  %5941 = vmatpush3.msra.mxu1 %v7356_v42 }
 0x624   : > { %5942 = vmatprep.subr.mxu1 %v6762_v8 }
 0x625   : > { %5943 = vmatpush3.msra.mxu1 %v7363_v45 }
 0x626   : > { %1272 = vmatpush1.bf16.msra.mxu0 %v6417_v41  ;;  %5944 = vmatprep.subr.mxu1 %v6762_v8 }
 0x627   : > { %5897 = vmatprep.subr.mxu0 %v6762_v8  ;;  %5945 = vmatpush3.msra.mxu1 %v7371_v46 }
 0x628   : > { %5946 = vmatprep.subr.mxu1 %v6762_v8 }
 0x629   : > { %5415 = vmatmul.mubr.msk.bf16.vlgmr.msra.gmra.mxu0 %vm380_vm2, %v1082_v35  ;;  %5947 = vmatpush3.msra.mxu1 %v7379_v47 }
 0x62a   : > { %5898 = vmatpush3.msra.mxu0 %v7317_v36  ;;  %5929 = vmatprep.mubr.msk.f32.mxu0 %vm6763_vm4, %v6762_v8 }
 0x62b   : > { %5899 = vmatprep.subr.mxu0 %v6762_v8  ;;  %5948 = vmatprep.subr.mxu1 %v6762_v8 }
 0x62c   : > { %5900 = vmatpush3.msra.mxu0 %v7326_v37  ;;  %5949 = vmatpush3.msra.mxu1 %v7391_v9 }
 0x62d   : > { %5901 = vmatprep.subr.mxu0 %v6762_v8  ;;  %5950 = vmatprep.subr.mxu1 %v6762_v8 }
 0x62e   : > { %5902 = vmatpush3.msra.mxu0 %v7339_v39  ;;  %5951 = vmatpush3.msra.mxu1 %v7400_v14 }
 0x62f   : > { %5903 = vmatprep.subr.mxu0 %v6762_v8  ;;  %5952 = vmatprep.subr.mxu1 %v6762_v8 }
 0x630   : > { %5904 = vmatpush3.msra.mxu0 %v7346_v40  ;;  %5953 = vmatpush3.msra.mxu1 %v7409_v16 }
 0x631   : > { %5905 = vmatprep.subr.mxu0 %v6762_v8  ;;  %5954 = vmatprep.subr.mxu1 %v6762_v8 }
 0x632   : > { %5906 = vmatpush3.msra.mxu0 %v7356_v42  ;;  %5955 = vmatpush3.msra.mxu1 %v7418_v20 }
 0x633   : > { %5907 = vmatprep.subr.mxu0 %v6762_v8  ;;  %5956 = vmatprep.subr.mxu1 %v6762_v8 }
 0x634   : > { %5908 = vmatpush3.msra.mxu0 %v7363_v45  ;;  %5957 = vmatpush3.msra.mxu1 %v7427_v22 }
 0x635   : > { %5909 = vmatprep.subr.mxu0 %v6762_v8  ;;  %5958 = vmatprep.subr.mxu1 %v6762_v8 }
 0x636   : > { %5910 = vmatpush3.msra.mxu0 %v7371_v46  ;;  %5959 = vmatpush3.msra.mxu1 %v7436_v24 }
 0x637   : > { %5911 = vmatprep.subr.mxu0 %v6762_v8  ;;  %5960 = vmatprep.subr.mxu1 %v6762_v8 }
 0x638   : > { %5912 = vmatpush3.msra.mxu0 %v7379_v47  ;;  %5961 = vmatpush3.msra.mxu1 %v7445_v27 }
 0x639   : > { %5913 = vmatprep.subr.mxu0 %v6762_v8  ;;  %5962 = vmatprep.subr.mxu1 %v6762_v8 }
 0x63a   : > { %5914 = vmatpush3.msra.mxu0 %v7391_v9  ;;  %5963 = vmatpush3.msra.mxu1 %v7454_v28 }
 0x63b   : > { %5915 = vmatprep.subr.mxu0 %v6762_v8 }
 0x63c   : > { %5916 = vmatpush3.msra.mxu0 %v7400_v14 }
 0x63d   : > { %5917 = vmatprep.subr.mxu0 %v6762_v8 }
 0x63e   : > { %5918 = vmatpush3.msra.mxu0 %v7409_v16 }
 0x63f   : > { %5919 = vmatprep.subr.mxu0 %v6762_v8 }
 0x640   : > { %5920 = vmatpush3.msra.mxu0 %v7418_v20 }
 0x641   : > { %5921 = vmatprep.subr.mxu0 %v6762_v8 }
 0x642   : > { %5922 = vmatpush3.msra.mxu0 %v7427_v22 }
 0x643   : > { %5923 = vmatprep.subr.mxu0 %v6762_v8 }
 0x644   : > { %5924 = vmatpush3.msra.mxu0 %v7436_v24 }
 0x645   : > { %5925 = vmatprep.subr.mxu0 %v6762_v8 }
 0x646   : > { %5926 = vmatpush3.msra.mxu0 %v7445_v27 }
 0x647   : > { %5927 = vmatprep.subr.mxu0 %v6762_v8 }
 0x648   : > { %5928 = vmatpush3.msra.mxu0 %v7454_v28 }
 0x6d9   : > { %v1248_v29 = vpop.f32.mrf.mxu0  ;;  %v1334_v30 = vpop.f32.mrf.mxu1 }
 0x6da   : > { %v1341_v31 = vmul.f32 %v1248_v29, %v7123_v7  ;;  %v1345_v48 = vmul.f32 %v1334_v30, %v7181_v38 }
 0x6db   : > { %v1250_v49 = vpop.f32.mrf.mxu0  ;;  %v5895_v54 = vpop.f32.mrf.mxu1 }
 0x6dc   : > { %v1361_v58 = vrot.slane %v1341_v31, 4  ;;  %v1365_v59 = vrot.slane %v1345_v48, 4  ;;  %v1342_v60 = vmul.f32 %v1250_v49, %v7128_v13 }
 0x6dd   : > { %v1252_v61 = vpop.f32.mrf.mxu0  ;;  %v1337_v62 = vpop.f32.mrf.mxu1 }
 0x6de   : > { %1386 = vst [vmem:[#allocation2] sm:$0xf0] %v1361_v58  ;;  %v1362_v6 = vrot.slane %v1342_v60, 4  ;;  %v1346_v10 = vmul.f32 %v1252_v61, %v7134_v18  ;;  %v1350_v12 = vmul.f32 %v1337_v62, %v7187_v43 }
 0x6df   : > { %v1254_v17 = vpop.f32.mrf.mxu0  ;;  %v5896_v19 = vpop.f32.mrf.mxu1 }
 0x6e0   : > { %1387 = vst [vmem:[#allocation2 + $0x8] sm:$0xf0] %v1362_v6  ;;  %v1366_v7 = vrot.slane %v1346_v10, 4  ;;  %v1374_v21 = vrot.slane %v1350_v12, 4  ;;  %v1347_v38 = vmul.f32 %v1254_v17, %v7140_v26 }
 0x6e2   : > { %v1367_v23 = vsel %vm795_vm5, %v1361_v58, %v1366_v7  ;;  %v1375_v25 = vsel %vm795_vm5, %v1365_v59, %v1374_v21  ;;  %v1368_v13 = vrot.slane %v1347_v38, 4 }
 0x6e3   : > { %1391 = vst [vmem:[#allocation2 + $0x28] sm:$0x1f] %v1367_v23  ;;  %1395 = vst.msk [vmem:[#allocation2 + $0x48] sm:$0x1f] %vm831_vm10, %v1375_v25  ;;  %v376_v23 = vld [vmem:[%s9069_s5 + $0x8] sm:$0x1] }
 0x6e4   : > { %v1369_v33 = vsel %vm795_vm5, %v1362_v6, %v1368_v13  ;;  %v1400_v25 = vsub.s32 1, %v7021_v63  ;;  %v375_v13 = vld [vmem:[%s9069_s5] sm:$0xff] }
 0x6e5   : > { %1392 = vst [vmem:[#allocation2 + $0x30] sm:$0x1f] %v1369_v33  ;;  %v1408_v18 = vld [vmem:[#allocation2] sm:$0xfe]  ;;  %v1397_v33 = vmul.f32 %v7205_v32, %v376_v23 }
 0x6e6   : > { %v1412_v55 = vrot.slane %v1408_v18, 1  ;;  %v7510_v18 = vld [vmem:[%s9070_s6] sm:$0xff] }
 0x6e7   : > { %v1434_v41 = vld [vmem:[#allocation2 + $0x8] sm:$0xf8] }
 0x6e8   : > { %v1438_v54 = vrot.slane %v1434_v41, 3 }
 0x6e9   : > { %v1291_v43 = vpop.f32.mrf.mxu0 }
 0x6ea   : > { %v1343_v34 = vmul.f32 %v1291_v43, %v7149_v50  ;;  %v1409_v35 = vld [vmem:[#allocation2 + $0x28] sm:$0x3]  ;;  %v7513_v43 = vrot.slane %v7510_v18, %v1400_v25 }
 0x6eb   : > { %v1293_v44 = vpop.f32.mrf.mxu0  ;;  %v1413_v52 = vrot.slane %v1409_v35, 1 }
 0x6ec   : > { %v1363_v26 = vrot.slane %v1343_v34, 4  ;;  %v1344_v3 = vmul.f32 %v1293_v44, %v7154_v53  ;;  %v1435_v4 = vld [vmem:[#allocation2 + $0x30] sm:$0xf]  ;;  %v1396_v34 = vmul.f32 %v7205_v32, %v375_v13  ;;  %v1403_v35 = vadd.f32 %v7513_v43, %v1397_v33  ;;  %v1405_v44 = vld [vmem:[#allocation2 + $0x28] sm:$0x1] }
 0x6ed   : > { %v1295_v29 = vpop.f32.mrf.mxu0  ;;  %1417 = vrot.lane.b32.xlu1 %v1413_v52, %s6764_s24  ;;  %v1414_v30 = vsel %vm850_vm6, %v1412_v55, %v1413_v52  ;;  %v1439_v31 = vrot.slane %v1435_v4, 3  ;;  %v1404_v55 = vld [vmem:[#allocation2] sm:$0xff] }
 0x6ee   : > { %1388 = vst [vmem:[#allocation2 + $0x10] sm:$0xf0] %v1363_v26  ;;  %v1364_v48 = vrot.slane %v1344_v3, 4  ;;  %v1348_v49 = vmul.f32 %v1295_v29, %v7160_v57  ;;  %1415 = vrot.lane.b32.xlu0 %v1414_v30, %s6764_s24  ;;  %v1402_v52 = vadd.f32 %v7513_v43, %v1396_v34  ;;  %v1424_v3 = vld [vmem:[#allocation2 + $0x30] sm:$0x7]  ;;  %v1407_v4 = vadd.f32 %v1405_v44, %v1403_v35 }
 0x6ef   : > { %v1297_v50 = vpop.f32.mrf.mxu0  ;;  %v1440_v59 = vsel %vm878_vm7, %v1438_v54, %v1439_v31  ;;  %v1423_v30 = vld [vmem:[#allocation2 + $0x8] sm:$0xfc]  ;;  %v1502_v44 = vld [vmem:[#allocation2 + $0x70] sm:$0x1] }
 0x6f0   : > { %1389 = vst [vmem:[#allocation2 + $0x18] sm:$0xf0] %v1364_v48  ;;  %v1370_v58 = vrot.slane %v1348_v49, 4  ;;  %v1349_v53 = vmul.f32 %v1297_v50, %v7168_v11  ;;  %v1406_v29 = vadd.f32 %v1404_v55, %v1402_v52  ;;  %v1427_v50 = vrot.slane %v1423_v30, 2 }
 0x6f1   : > { %1443 = vrot.lane.b32.xlu1 %v1439_v31, %s6764_s24 }
 0x6f2   : > { %v1371_v60 = vsel %vm795_vm5, %v1363_v26, %v1370_v58  ;;  %v1372_v61 = vrot.slane %v1349_v53, 4  ;;  %1441 = vrot.lane.b32.xlu0 %v1440_v59, %s6764_s24 }
 0x6f3   : > { %1393 = vst [vmem:[#allocation2 + $0x38] sm:$0x1f] %v1371_v60 }
 0x6f4   : > { %v1373_v57 = vsel %vm795_vm5, %v1364_v48, %v1372_v61  ;;  %v1428_v48 = vrot.slane %v1424_v3, 2 }
 0x6f5   : > { %1394 = vst [vmem:[#allocation2 + $0x40] sm:$0x1f] %v1373_v57  ;;  %v1460_v62 = vld [vmem:[#allocation2 + $0x10] sm:$0xe0] }
 0x6f6   : > { %v1464_v12 = vrot.slane %v1460_v62, 5  ;;  %v1429_v58 = vsel %vm866_vm11, %v1427_v50, %v1428_v48  ;;  %v1449_v61 = vld [vmem:[#allocation2 + $0x10] sm:$0xf0] }
 0x6f7   : > { %v1486_v19 = vld [vmem:[#allocation2 + $0x18] sm:$0x80] }
 0x6f8   : > { %v1490_v21 = vrot.slane %v1486_v19, 7 }
 0x6fa   : > { %v1461_v6 = vld [vmem:[#allocation2 + $0x38] sm:$0x3f] }
 0x6fb   : > { %v1465_v10 = vrot.slane %v1461_v6, 5  ;;  %v1450_v59 = vld [vmem:[#allocation2 + $0x38] sm:$0x1f] }
 0x6fc   : > { %v1487_v17 = vld [vmem:[#allocation2 + $0x40] sm:$0xff]  ;;  %v1454_v62 = vrot.slane %v1450_v59, 4 }
 0x6fd   : > { %1469 = vrot.lane.b32.xlu1 %v1465_v10, %s6764_s24  ;;  %v1466_v11 = vsel %vm905_vm8, %v1464_v12, %v1465_v10  ;;  %v1491_v7 = vrot.slane %v1487_v17, 7  ;;  %v1476_v10 = vld [vmem:[#allocation2 + $0x40] sm:$0x7f]  ;;  %v1453_v12 = vrot.slane %v1449_v61, 4  ;;  %v1475_v17 = vld [vmem:[#allocation2 + $0x18] sm:$0xc0] }
 0x6fe   : > { %1467 = vrot.lane.b32.xlu0 %v1466_v11, %s6764_s24  ;;  %v1479_v13 = vrot.slane %v1475_v17, 6 }
 0x6ff   : > { %v1492_v38 = vsel %vm933_vm9, %v1490_v21, %v1491_v7  ;;  %v1455_v11 = vsel %vm795_vm5, %v1453_v12, %v1454_v62 }
 0x701   : > { %1495 = vrot.lane.b32.xlu1 %v1491_v7, %s6764_s24  ;;  %v1480_v7 = vrot.slane %v1476_v10, 6 }
 0x702   : > { %1493 = vrot.lane.b32.xlu0 %v1492_v38, %s6764_s24 }
 0x703   : > { %v1481_v35 = vsel %vm921_vm12, %v1479_v13, %v1480_v7 }
 0x75f   : > { %v1418_v26 = vpop.permute.xlu1 %1417 }
 0x760   : > { %v1416_v41 = vpop.permute.xlu0 %1415  ;;  %v1422_v31 = vadd.f32 %v1418_v26, %v1407_v4 }
 0x761   : > { %v1421_v49 = vadd.f32 %v1416_v41, %v1406_v29  ;;  %v1501_v29 = vld [vmem:[#allocation2 + $0x48] sm:$0xff] }
 0x762   : > { %v1433_v54 = vadd.f32 %v1428_v48, %v1422_v31 }
 0x763   : > { %v1444_v32 = vpop.permute.xlu1 %1443  ;;  %v1432_v53 = vadd.f32 %v1429_v58, %v1421_v49 }
 0x764   : > { %v1442_v60 = vpop.permute.xlu0 %1441  ;;  %v1448_v57 = vadd.f32 %v1444_v32, %v1433_v54 }
 0x765   : > { %v1447_v6 = vadd.f32 %v1442_v60, %v1432_v53 }
 0x766   : > { %v1459_v19 = vadd.f32 %v1454_v62, %v1448_v57 }
 0x767   : > { %v1458_v38 = vadd.f32 %v1455_v11, %v1447_v6 }
 0x76f   : > { %v1470_v21 = vpop.permute.xlu1 %1469 }
 0x770   : > { %v1474_v23 = vadd.f32 %v1470_v21, %v1459_v19  ;;  %v1468_v25 = vpop.permute.xlu0 %1467 }
 0x771   : > { %v1473_v33 = vadd.f32 %v1468_v25, %v1458_v38 }
 0x772   : > { %v1485_v34 = vadd.f32 %v1480_v7, %v1474_v23  ;;  %v1615_v23 = vrot.slane %v7510_v18, 6 }
 0x773   : > { %v1496_v52 = vpop.permute.xlu1 %1495  ;;  %v1484_v55 = vadd.f32 %v1481_v35, %v1473_v33 }
 0x774   : > { %v1500_v26 = vadd.f32 %v1496_v52, %v1485_v34  ;;  %v1494_v3 = vpop.permute.xlu0 %1493 }
 0x775   : > { %v1499_v4 = vadd.f32 %v1494_v3, %v1484_v55 }
 0x776   : > { %v1504_v41 = vadd.f32 %v1502_v44, %v1500_v26 }
 0x777   : > { %v1503_v30 = vadd.f32 %v1501_v29, %v1499_v4  ;;  %v1632_v29 = vsub.s32 7, %v7021_v63 }
 0x778   : > { %v1515_v31 = vmul.f32 %v1504_v41, %v1504_v41  ;;  %v1506_v57 = vsel %vm382_vm3, %v1504_v41, 0.0 }
 0x779   : > { %v1514_v48 = vmul.f32 %v1503_v30, %v1503_v30  ;;  %v1505_v62 = vsel %vm380_vm2, %v1503_v30, 0.0 }
 0x77a   : > { %v1517_v49 = vsel %vm382_vm3, %v1515_v31, 0.0  ;;  %v1507_v6 = vadd.f32 %v1506_v57, %v1505_v62 }
 0x77b   : > { %v1516_v50 = vsel %vm380_vm2, %v1514_v48, 0.0  ;;  %v7539_v48 = vrot.slane %v7510_v18, %v1632_v29  ;;  %v6630_v18 = vld [vmem:[%s6849_s18 + $0x8] sm:$0x1] }
 0x77c   : > { %v1518_v54 = vadd.f32 %v1517_v49, %v1516_v50  ;;  %v1508_v10 = vrot.slane %v1507_v6, 4 }
 0x77e   : > { %v1519_v58 = vrot.slane %v1518_v54, 4  ;;  %v1509_v12 = vadd.f32 %v1508_v10, %v1507_v6 }
 0x780   : > { %v1520_v32 = vadd.f32 %v1519_v58, %v1518_v54  ;;  %v1510_v17 = vrot.slane %v1509_v12, 2 }
 0x782   : > { %v1521_v53 = vrot.slane %v1520_v32, 2  ;;  %v1511_v19 = vadd.f32 %v1510_v17, %v1509_v12 }
 0x784   : > { %v1522_v59 = vadd.f32 %v1521_v53, %v1520_v32  ;;  %v1512_v11 = vrot.slane %v1511_v19, 1 }
 0x786   : > { %v1523_v60 = vrot.slane %v1522_v59, 1  ;;  %v1513_v7 = vadd.f32 %v1512_v11, %v1511_v19 }
 0x788   : > { %v1524_v61 = vadd.f32 %v1523_v60, %v1522_v59 }
 0x78a   : > { %1526 = vrot.lane.b32.xlu0 %v1524_v61, %s6764_s24  ;;  %v6629_v61 = vld [vmem:[%s6849_s18] sm:$0xff] }
 0x78e   : > { %1616 = vrot.lane.b32.xlu0 %v1615_v23, %s6764_s24 }
 0x7fc   : > { %v1527_v21 = vpop.permute.xlu0 %1526 }
 0x7fd   : > { %v1529_v38 = vsel %vm380_vm2, %v1513_v7, %v1527_v21 }
 0x7fe   : > { %5930 = vmatmul.mubr.f32.vlgmr.msra.gmra.mxu0 %v1529_v38 }
 0x7ff   : > { %1934 = vmatprep.mubr.bf16.mxu0 %v6765_v0 }
 0x800   : > { %v7531_v55 = vpop.permute.xlu0 %1616 }
 0x8be   : > { %v1596_v25 = vpop.f32.mrf.mxu0 }
 0x8bf   : > { %v1600_v13 = vmul.f32 %v1596_v25, %v1596_v25  ;;  %v1612_v31 = vrot.slane %v1596_v25, %v7028_v5 }
 0x8c0   : > { %v5931_v33 = vpop.f32.mrf.mxu0 }
 0x8c1   : > { %1602 = vrot.lane.b32.xlu1 %v1600_v13, %s6764_s24  ;;  %v1613_v49 = vsub.f32 %v1503_v30, %v1612_v31  ;;  %v1614_v50 = vsub.f32 %v1504_v41, %v1612_v31 }
 0x933   : > { %v1603_v34 = vpop.permute.xlu1 %1602 }
 0x934   : > { %v1605_v35 = vsub.f32 %v1596_v25, %v1603_v34 }
 0x936   : > { %v1606_v44 = vmax.f32 %v1605_v35, 0.0 }
 0x938   : > { %v1607_v52 = vadd.f32 1e-05, %v1606_v44 }
 0x93a   : > { %6592 = vrsqrt.f32 %v1607_v52 }
 0x947   : > { %v6593_v26 = vpop.eup %6592 }
 0x948   : > { %v1619_v3 = vmul.f32 %v6593_v26, %v7531_v55 }
 0x94a   : > { %v1623_v4 = vrot.slane %v1619_v3, %v7028_v5 }
 0x94c   : > { %1625 = vrot.lane.b32.xlu1 %v1623_v4, %s6764_s24 }
 0x9be   : > { %v1626_v54 = vpop.permute.xlu1 %1625 }
 0x9bf   : > { %v1628_v58 = vmul.f32 %v1626_v54, %v1613_v49  ;;  %v1629_v32 = vmul.f32 %v1626_v54, %v1614_v50  ;;  %v6420_v50 = vld [vmem:[%s9065_s1 + $0x78] ss:$20 sps:$4 sm:$0xff]   ;;  %v6422_v54 = vld [vmem:[%s9065_s1 + $0x7c] ss:$20 sps:$4 sm:$0xff]  }
 0x9c0   : > { %1910 = vmatprep.subr.bf16.mxu0 %v6422_v54  ;;  %v6444_v54 = vld [vmem:[%s9065_s1 + $0x88] ss:$20 sps:$4 sm:$0xff]  }
 0x9c1   : > { %v7542_v53 = vadd.f32 %v7539_v48, %v1628_v58  ;;  %v7545_v59 = vadd.f32 %v7539_v48, %v1629_v32  ;;  %v6423_v58 = vld [vmem:[%s9065_s1 + $0x80] ss:$20 sps:$4 sm:$0xff]   ;;  %v6425_v32 = vld [vmem:[%s9065_s1 + $0x84] ss:$20 sps:$4 sm:$0xff]   ;;  %1911 = vmatpush1.bf16.msra.mxu0 %v6420_v50 }
 0x9c2   : > { %1953 = vmatprep.subr.bf16.mxu1 %v6425_v32 }
 0x9c3   : > { %v1641_v60 = vmul.f32 0.0625, %v7542_v53  ;;  %v1642_v63 = vmul.f32 0.0625, %v7545_v59 }
 0x9c5   : > { %v7550_v57 = vadd.f32 %v6629_v61, %v1641_v60  ;;  %v7553_v62 = vadd.f32 %v6630_v18, %v1642_v63  ;;  %v6428_v60 = vld [vmem:[%s9065_s1 + $0x54] ss:$20 sps:$4 sm:$0xff]   ;;  %v6431_v63 = vld [vmem:[%s9065_s1 + $0x5c] ss:$20 sps:$4 sm:$0xff]   ;;  %v6429_v18 = vld [vmem:[%s9065_s1 + $0x58] ss:$20 sps:$4 sm:$0xff]  }
 0x9c6   : > { %v6426_v61 = vld [vmem:[%s9065_s1 + $0x50] ss:$20 sps:$4 sm:$0xff]   ;;  %1912 = vmatprep.subr.bf16.mxu0 %v6428_v60 }
 0x9c7   : > { %v1654_v41 = vmul.f32 %v7550_v57, %v7550_v57  ;;  %v1655_v30 = vmul.f32 %v7553_v62, %v7553_v62  ;;  %v1645_v23 = vsel %vm380_vm2, %v7550_v57, 0.0  ;;  %v1646_v25 = vsel %vm382_vm3, %v7553_v62, 0.0  ;;  %1913 = vmatpush1.bf16.msra.mxu0 %v6426_v61 }
 0x9c8   : > { %v1647_v13 = vadd.f32 %v1646_v25, %v1645_v23  ;;  %v6441_v23 = vld [vmem:[%s9065_s1 + $0x8] ss:$20 sps:$4 sm:$0xff]  }
 0x9c9   : > { %v1656_v6 = vsel %vm380_vm2, %v1654_v41, 0.0  ;;  %v1657_v10 = vsel %vm382_vm3, %v1655_v30, 0.0  ;;  %v6434_v41 = vld [vmem:[%s9065_s1 + $0x2c] ss:$20 sps:$4 sm:$0xff]   ;;  %v6432_v30 = vld [vmem:[%s9065_s1 + $0x28] ss:$20 sps:$4 sm:$0xff]  }
 0x9ca   : > { %v1658_v12 = vadd.f32 %v1657_v10, %v1656_v6  ;;  %v1648_v33 = vrot.slane %v1647_v13, 4  ;;  %1914 = vmatprep.subr.bf16.mxu0 %v6434_v41 }
 0x9cb   : > { %1915 = vmatpush1.bf16.msra.mxu0 %v6432_v30 }
 0x9cc   : > { %v1659_v17 = vrot.slane %v1658_v12, 4  ;;  %v1649_v34 = vadd.f32 %v1648_v33, %v1647_v13 }
 0x9ce   : > { %v1660_v19 = vadd.f32 %v1659_v17, %v1658_v12  ;;  %v1650_v35 = vrot.slane %v1649_v34, 2 }
 0x9d0   : > { %v1661_v11 = vrot.slane %v1660_v19, 2  ;;  %v1651_v44 = vadd.f32 %v1650_v35, %v1649_v34 }
 0x9d2   : > { %v1662_v7 = vadd.f32 %v1661_v11, %v1660_v19  ;;  %v1652_v52 = vrot.slane %v1651_v44, 1  ;;  %v6437_v19 = vld [vmem:[%s9065_s1 + $0x34] ss:$20 sps:$4 sm:$0xff]   ;;  %v6435_v11 = vld [vmem:[%s9065_s1 + $0x30] ss:$20 sps:$4 sm:$0xff]  }
 0x9d4   : > { %v1663_v21 = vrot.slane %v1662_v7, 1  ;;  %v1653_v26 = vadd.f32 %v1652_v52, %v1651_v44 }
 0x9d6   : > { %v1664_v38 = vadd.f32 %v1663_v21, %v1662_v7  ;;  %v6440_v7 = vld [vmem:[%s9065_s1 + $0x4] ss:$20 sps:$4 sm:$0xff]   ;;  %v6438_v21 = vld [vmem:[%s9065_s1] ss:$20 sps:$4 sm:$0xff]  }
 0x9d7   : > { %1916 = vmatprep.subr.bf16.mxu0 %v6440_v7 }
 0x9d8   : > { %1666 = vrot.lane.b32.xlu0 %v1664_v38, %s6764_s24  ;;  %v6443_v38 = vld [vmem:[%s9065_s1 + $0xc] ss:$20 sps:$4 sm:$0xff]   ;;  %1917 = vmatpush1.bf16.msra.mxu0 %v6438_v21 }
 0x9d9   : > { %5967 = vmatprep.subr.bf16.mxu0 %v6762_v8 }
 0xa4a   : > { %v1667_v3 = vpop.permute.xlu0 %1666 }
 0xa4b   : > { %v1669_v4 = vsel %vm380_vm2, %v1653_v26, %v1667_v3 }
 0xa4c   : > { %5965 = vmatmul.mubr.f32.vlgmr.msra.gmra.mxu1 %v1669_v4 }
 0xa4d   : > { %1977 = vmatprep.mubr.bf16.mxu1 %v6765_v0  ;;  %1954 = vmatpush1.bf16.msra.mxu1 %v6423_v58 }
 0xa4e   : > { %1955 = vmatprep.subr.bf16.mxu1 %v6431_v63  ;;  %v7709_v63 = vld [vmem:[%s9067_s3 + $0x28] sm:$0x1] }
 0xa51   : > { %1956 = vmatpush1.bf16.msra.mxu1 %v6429_v18  ;;  %v7715_v18 = vld [vmem:[%s9067_s3 + $0x38] sm:$0x1] }
 0xa52   : > { %1957 = vmatprep.subr.bf16.mxu1 %v6437_v19 }
 0xa55   : > { %1958 = vmatpush1.bf16.msra.mxu1 %v6435_v11  ;;  %v7727_v11 = vld [vmem:[%s9067_s3 + $0x40] sm:$0x1] }
 0xa56   : > { %1959 = vmatprep.subr.bf16.mxu1 %v6443_v38 }
 0xa59   : > { %1960 = vmatpush1.bf16.msra.mxu1 %v6441_v23 }
 0xa5a   : > { %5979 = vmatprep.subr.mxu1 %v6762_v8 }
 0xb0c   : > { %v1736_v29 = vpop.f32.mrf.mxu1 }
 0xb0d   : > { %v1740_v31 = vmul.f32 %v1736_v29, %v1736_v29  ;;  %v1752_v34 = vrot.slane %v1736_v29, %v7028_v5 }
 0xb0e   : > { %v5966_v49 = vpop.f32.mrf.mxu1 }
 0xb0f   : > { %1742 = vrot.lane.b32.xlu1 %v1740_v31, %s6764_s24  ;;  %v1753_v35 = vsub.f32 %v7550_v57, %v1752_v34  ;;  %v1754_v44 = vsub.f32 %v7553_v62, %v1752_v34  ;;  %v6445_v57 = vld [vmem:[%s9065_s1 + $0x60] ss:$20 sps:$4 sm:$0xff]   ;;  %v6446_v62 = vld [vmem:[%s9065_s1 + $0x38] ss:$20 sps:$4 sm:$0xff]  }
 0xb81   : > { %v1743_v6 = vpop.permute.xlu1 %1742 }
 0xb82   : > { %v1745_v10 = vsub.f32 %v1736_v29, %v1743_v6 }
 0xb84   : > { %v1746_v12 = vmax.f32 %v1745_v10, 0.0 }
 0xb86   : > { %v1747_v17 = vadd.f32 1e-05, %v1746_v12 }
 0xb88   : > { %6594 = vrsqrt.f32 %v1747_v17  ;;  %v7721_v17 = vld [vmem:[%s9067_s3 + $0x30] sm:$0x1] }
 0xb95   : > { %v6595_v25 = vpop.eup %6594 }
 0xb96   : > { %v1755_v13 = vmul.f32 %v6595_v25, %v7025_v1 }
 0xb98   : > { %v1759_v33 = vrot.slane %v1755_v13, %v7028_v5 }
 0xb9a   : > { %1761 = vrot.lane.b32.xlu0 %v1759_v33, %s6764_s24 }
 0xc0c   : > { %v1762_v52 = vpop.permute.xlu0 %1761 }
 0xc0d   : > { %v1764_v26 = vmul.f32 %v1762_v52, %v1753_v35  ;;  %v1765_v3 = vmul.f32 %v1762_v52, %v1754_v44  ;;  %v7737_v44 = vld [vmem:[%s9067_s3 + $0x20] sm:$0xff] }
 0xc0f   : > { %v1766_v4 = vadd.f32 %v1764_v26, %v7036_v15  ;;  %v1767_v31 = vadd.f32 %v1765_v3, %v7036_v15 }
 0xc11   : > { %v1768_v49 = vmax.f32 %v1766_v4, 0.0  ;;  %v1769_v50 = vmax.f32 %v1767_v31, 0.0 }
 0xc13   : > { %v1770_v58 = vpack.c.bf16 %v1769_v50, %v1768_v49 }
 0xc15   : > { %5437 = vmatmul.mubr.msk.bf16.vlgmr.msra.gmra.mxu0 %vm380_vm2, %v1770_v58  ;;  %5438 = vmatmul.mubr.msk.bf16.vlgmr.msra.gmra.mxu1 %vm380_vm2, %v1770_v58 }
 0xc16   : > { %5968 = vmatpush3.bf16.msra.mxu0 %v6444_v54  ;;  %5975 = vmatprep.mubr.msk.bf16.mxu0 %vm6763_vm4, %v6762_v8 }
 0xc17   : > { %5969 = vmatprep.subr.bf16.mxu0 %v6762_v8  ;;  %5980 = vmatpush3.msra.mxu1 %v7317_v36  ;;  %v6447_v36 = vld [vmem:[%s9065_s1 + $0x10] ss:$20 sps:$4 sm:$0xff]  }
 0xc18   : > { %5981 = vmatprep.subr.mxu1 %v6762_v8  ;;  %6011 = vmatprep.mubr.msk.f32.mxu1 %vm6763_vm4, %v6762_v8 }
 0xc19   : > { %5982 = vmatpush3.msra.mxu1 %v7326_v37 }
 0xc1a   : > { %5970 = vmatpush3.bf16.msra.mxu0 %v6445_v57  ;;  %5983 = vmatprep.subr.mxu1 %v6762_v8 }
 0xc1b   : > { %5971 = vmatprep.subr.bf16.mxu0 %v6762_v8  ;;  %5984 = vmatpush3.msra.mxu1 %v7339_v39 }
 0xc1c   : > { %5985 = vmatprep.subr.mxu1 %v6762_v8 }
 0xc1d   : > { %5986 = vmatpush3.msra.mxu1 %v7346_v40  ;;  %v7685_v40 = vld [vmem:[%s9067_s3] sm:$0xff] }
 0xc1e   : > { %5972 = vmatpush3.bf16.msra.mxu0 %v6446_v62  ;;  %5987 = vmatprep.subr.mxu1 %v6762_v8 }
 0xc1f   : > { %5973 = vmatprep.subr.bf16.mxu0 %v6762_v8  ;;  %5988 = vmatpush3.msra.mxu1 %v7356_v42 }
 0xc20   : > { %5989 = vmatprep.subr.mxu1 %v6762_v8 }
 0xc21   : > { %5990 = vmatpush3.msra.mxu1 %v7363_v45  ;;  %v7691_v45 = vld [vmem:[%s9067_s3 + $0x10] sm:$0xff] }
 0xc22   : > { %5974 = vmatpush3.bf16.msra.mxu0 %v6447_v36  ;;  %5991 = vmatprep.subr.mxu1 %v6762_v8  ;;  %v7745_v36 = vld [vmem:[%s9067_s3 + $0x48] sm:$0x1] }
 0xc23   : > { %5992 = vmatpush3.msra.mxu1 %v7371_v46 }
 0xc24   : > { %5993 = vmatprep.subr.mxu1 %v6762_v8 }
 0xc25   : > { %5976 = vmatmul.mubr.msk.bf16.vlgmr.msra.gmra.mxu0 %vm380_vm2, %v1770_v58  ;;  %5994 = vmatpush3.msra.mxu1 %v7379_v47 }
 0xc26   : > { %5995 = vmatprep.subr.mxu1 %v6762_v8  ;;  %2479 = vmatprep.mubr.bf16.mxu0 %v6765_v0 }
 0xc27   : > { %5996 = vmatpush3.msra.mxu1 %v7391_v9 }
 0xc28   : > { %5997 = vmatprep.subr.mxu1 %v6762_v8 }
 0xc29   : > { %5998 = vmatpush3.msra.mxu1 %v7400_v14 }
 0xc2a   : > { %5999 = vmatprep.subr.mxu1 %v6762_v8 }
 0xc2b   : > { %6000 = vmatpush3.msra.mxu1 %v7409_v16 }
 0xc2c   : > { %6001 = vmatprep.subr.mxu1 %v6762_v8 }
 0xc2d   : > { %6002 = vmatpush3.msra.mxu1 %v7418_v20  ;;  %v7697_v20 = vld [vmem:[%s9067_s3 + $0x8] sm:$0xff] }
 0xc2e   : > { %6003 = vmatprep.subr.mxu1 %v6762_v8 }
 0xc2f   : > { %6004 = vmatpush3.msra.mxu1 %v7427_v22 }
 0xc30   : > { %6005 = vmatprep.subr.mxu1 %v6762_v8 }
 0xc31   : > { %6006 = vmatpush3.msra.mxu1 %v7436_v24  ;;  %v7703_v24 = vld [vmem:[%s9067_s3 + $0x18] sm:$0xff] }
 0xc32   : > { %6007 = vmatprep.subr.mxu1 %v6762_v8 }
 0xc33   : > { %6008 = vmatpush3.msra.mxu1 %v7445_v27 }
 0xc34   : > { %6009 = vmatprep.subr.mxu1 %v6762_v8 }
 0xc35   : > { %6010 = vmatpush3.msra.mxu1 %v7454_v28 }
 0xc36   : > { %6014 = vmatprep.subr.bf16.mxu1 %v6762_v8 }
 0xcd5   : > { %v1936_v37 = vpop.f32.mrf.mxu0  ;;  %v1979_v39 = vpop.f32.mrf.mxu1 }
 0xcd6   : > { %v2029_v42 = vmul.f32 %v7685_v40, %v1936_v37  ;;  %v2031_v46 = vmul.f32 %v7691_v45, %v1979_v39 }
 0xcd7   : > { %v1938_v47 = vpop.f32.mrf.mxu0  ;;  %v1981_v9 = vpop.f32.mrf.mxu1 }
 0xcd8   : > { %v2049_v14 = vrot.slane %v2029_v42, 4  ;;  %v2051_v16 = vrot.slane %v2031_v46, 4  ;;  %v2030_v22 = vmul.f32 %v7697_v20, %v1938_v47  ;;  %v2032_v27 = vmul.f32 %v7703_v24, %v1981_v9 }
 0xcd9   : > { %v1940_v28 = vpop.f32.mrf.mxu0  ;;  %v1983_v29 = vpop.f32.mrf.mxu1 }
 0xcda   : > { %2074 = vst [vmem:[#allocation2] sm:$0xf0] %v2049_v14  ;;  %2076 = vst [vmem:[#allocation2 + $0x10] sm:$0xf0] %v2051_v16  ;;  %v2050_v32 = vrot.slane %v2030_v22, 4  ;;  %v2052_v60 = vrot.slane %v2032_v27, 4  ;;  %v2034_v61 = vmul.f32 %v7709_v63, %v1940_v28  ;;  %v2036_v41 = vmul.f32 %v7715_v18, %v1983_v29 }
 0xcdb   : > { %v1942_v30 = vpop.f32.mrf.mxu0  ;;  %v1985_v6 = vpop.f32.mrf.mxu1 }
 0xcdc   : > { %2075 = vst [vmem:[#allocation2 + $0x8] sm:$0xf0] %v2050_v32  ;;  %2077 = vst [vmem:[#allocation2 + $0x18] sm:$0xf0] %v2052_v60  ;;  %v2054_v10 = vrot.slane %v2034_v61, 4  ;;  %v2058_v12 = vrot.slane %v2036_v41, 4  ;;  %v2035_v19 = vmul.f32 %v7721_v17, %v1942_v30  ;;  %v2037_v7 = vmul.f32 %v7727_v11, %v1985_v6 }
 0xcdd   : > { %v7761_v30 = vstv %s1640_s17  ;;  %v6641_v6 = vld [vmem:[%s9068_s4 + $0x8] sm:$0x1] }
 0xcde   : > { %v2055_v21 = vsel %vm795_vm5, %v2049_v14, %v2054_v10  ;;  %v2059_v38 = vsel %vm795_vm5, %v2051_v16, %v2058_v12  ;;  %v2056_v23 = vrot.slane %v2035_v19, 4  ;;  %v2060_v25 = vrot.slane %v2037_v7, 4  ;;  %v6642_v12 = vld [vmem:[%s9068_s4] sm:$0xff] }
 0xcdf   : > { %2079 = vst [vmem:[#allocation2 + $0x28] sm:$0x1f] %v2055_v21  ;;  %2081 = vst [vmem:[#allocation2 + $0x38] sm:$0x1f] %v2059_v38  ;;  %v2086_v10 = vmul.f32 %v6641_v6, %v7761_v30  ;;  %v2085_v19 = vmul.f32 %v6642_v12, %v7761_v30  ;;  %v2187_v12 = vld [vmem:[#allocation2 + $0x70] sm:$0x1] }
 0xce0   : > { %v2057_v13 = vsel %vm795_vm5, %v2050_v32, %v2056_v23  ;;  %v2061_v33 = vsel %vm795_vm5, %v2052_v60, %v2060_v25 }
 0xce1   : > { %2080 = vst [vmem:[#allocation2 + $0x30] sm:$0x1f] %v2057_v13  ;;  %2082 = vst [vmem:[#allocation2 + $0x40] sm:$0x1f] %v2061_v33  ;;  %v2093_v34 = vld [vmem:[#allocation2] sm:$0xfe]  ;;  %v7772_v7 = vadd.f32 %v2086_v10, %v7213_v51  ;;  %v7775_v38 = vadd.f32 %v2085_v19, %v7213_v51 }
 0xce2   : > { %v2097_v31 = vrot.slane %v2093_v34, 1  ;;  %v2145_v9 = vld [vmem:[#allocation2 + $0x10] sm:$0xe0]  ;;  %v2089_v25 = vld [vmem:[#allocation2] sm:$0xff] }
 0xce3   : > { %v2119_v54 = vld [vmem:[#allocation2 + $0x8] sm:$0xf8]  ;;  %v2149_v28 = vrot.slane %v2145_v9, 5  ;;  %v2171_v29 = vld [vmem:[#allocation2 + $0x18] sm:$0x80] }
 0xce4   : > { %v2123_v46 = vrot.slane %v2119_v54, 3  ;;  %v2175_v61 = vrot.slane %v2171_v29, 7  ;;  %v2108_v13 = vld [vmem:[#allocation2 + $0x8] sm:$0xfc] }
 0xce5   : > { %v2022_v35 = vpop.f32.mrf.mxu0 }
 0xce6   : > { %v2033_v52 = vmul.f32 %v7737_v44, %v2022_v35  ;;  %v2094_v26 = vld [vmem:[#allocation2 + $0x28] sm:$0x3]  ;;  %v2146_v39 = vld [vmem:[#allocation2 + $0x38] sm:$0x3f] }
 0xce7   : > { %v5977_v3 = vpop.f32.mrf.mxu0  ;;  %v2098_v4 = vrot.slane %v2094_v26, 1  ;;  %v2150_v16 = vrot.slane %v2146_v39, 5  ;;  %v2090_v21 = vld [vmem:[#allocation2 + $0x28] sm:$0x1]  ;;  %v2135_v26 = vld [vmem:[#allocation2 + $0x38] sm:$0x1f] }
 0xce8   : > { %v2053_v49 = vrot.slane %v2033_v52, 4  ;;  %v2120_v50 = vld [vmem:[#allocation2 + $0x30] sm:$0xf]  ;;  %v2172_v27 = vld [vmem:[#allocation2 + $0x40] sm:$0xff]  ;;  %v2092_v33 = vadd.f32 %v2090_v21, %v7772_v7  ;;  %v2091_v52 = vadd.f32 %v2089_v25, %v7775_v38 }
 0xce9   : > { %v2025_v58 = vpop.f32.mrf.mxu0  ;;  %2102 = vrot.lane.b32.xlu0 %v2098_v4, %s6764_s24  ;;  %v2099_v57 = vsel %vm850_vm6, %v2097_v31, %v2098_v4  ;;  %v2124_v62 = vrot.slane %v2120_v50, 3  ;;  %v2151_v32 = vsel %vm905_vm8, %v2149_v28, %v2150_v16  ;;  %v2176_v60 = vrot.slane %v2172_v27, 7  ;;  %v2109_v23 = vld [vmem:[#allocation2 + $0x30] sm:$0x7]  ;;  %v2134_v50 = vld [vmem:[#allocation2 + $0x10] sm:$0xf0] }
 0xcea   : > { %v2038_v37 = vmul.f32 %v7745_v36, %v2025_v58  ;;  %2100 = vrot.lane.b32.xlu1 %v2099_v57, %s6764_s24  ;;  %v2113_v34 = vrot.slane %v2109_v23, 2  ;;  %v2112_v31 = vrot.slane %v2108_v13, 2  ;;  %v2139_v57 = vrot.slane %v2135_v26, 4  ;;  %v2161_v39 = vld [vmem:[#allocation2 + $0x40] sm:$0x7f] }
 0xceb   : > { %v5978_v42 = vpop.f32.mrf.mxu0  ;;  %v2125_v14 = vsel %vm878_vm7, %v2123_v46, %v2124_v62  ;;  %v2177_v41 = vsel %vm933_vm9, %v2175_v61, %v2176_v60  ;;  %v2165_v27 = vrot.slane %v2161_v39, 6 }
 0xcec   : > { %v2062_v47 = vrot.slane %v2038_v37, 4  ;;  %v2114_v58 = vsel %vm866_vm11, %v2112_v31, %v2113_v34 }
 0xced   : > { %2128 = vrot.lane.b32.xlu0 %v2124_v62, %s6764_s24 }
 0xcee   : > { %v2063_v22 = vsel %vm795_vm5, %v2053_v49, %v2062_v47  ;;  %2126 = vrot.lane.b32.xlu1 %v2125_v14, %s6764_s24  ;;  %v2138_v47 = vrot.slane %v2134_v50, 4  ;;  %v2160_v14 = vld [vmem:[#allocation2 + $0x18] sm:$0xc0] }
 0xcef   : > { %2083 = vst.msk [vmem:[#allocation2 + $0x48] sm:$0x1f] %vm831_vm10, %v2063_v22  ;;  %v2164_v61 = vrot.slane %v2160_v14, 6 }
 0xcf0   : > { %v2140_v22 = vsel %vm795_vm5, %v2138_v47, %v2139_v57 }
 0xcf1   : > { %2154 = vrot.lane.b32.xlu0 %v2150_v16, %s6764_s24  ;;  %v2166_v10 = vsel %vm921_vm12, %v2164_v61, %v2165_v27  ;;  %v6448_v61 = vld [vmem:[%s9066_s2 + $0x78] ss:$20 sps:$4 sm:$0xff]  }
 0xcf2   : > { %2152 = vrot.lane.b32.xlu1 %v2151_v32, %s6764_s24 }
 0xcf5   : > { %2180 = vrot.lane.b32.xlu0 %v2176_v60, %s6764_s24 }
 0xcf6   : > { %2178 = vrot.lane.b32.xlu1 %v2177_v41, %s6764_s24 }
 0xd5b   : > { %v2103_v35 = vpop.permute.xlu0 %2102 }
 0xd5c   : > { %v2107_v3 = vadd.f32 %v2103_v35, %v2092_v33  ;;  %v2101_v4 = vpop.permute.xlu1 %2100 }
 0xd5d   : > { %v2106_v49 = vadd.f32 %v2101_v4, %v2091_v52 }
 0xd5e   : > { %v2118_v54 = vadd.f32 %v2113_v34, %v2107_v3  ;;  %v2186_v34 = vld [vmem:[#allocation2 + $0x48] sm:$0xff] }
 0xd5f   : > { %v2129_v62 = vpop.permute.xlu0 %2128  ;;  %v2117_v37 = vadd.f32 %v2114_v58, %v2106_v49 }
 0xd60   : > { %v2133_v42 = vadd.f32 %v2129_v62, %v2118_v54  ;;  %v2127_v46 = vpop.permute.xlu1 %2126 }
 0xd61   : > { %v2132_v9 = vadd.f32 %v2127_v46, %v2117_v37 }
 0xd62   : > { %v2144_v16 = vadd.f32 %v2139_v57, %v2133_v42 }
 0xd63   : > { %v2155_v28 = vpop.permute.xlu0 %2154  ;;  %v2143_v29 = vadd.f32 %v2140_v22, %v2132_v9 }
 0xd64   : > { %v2159_v32 = vadd.f32 %v2155_v28, %v2144_v16  ;;  %v2153_v60 = vpop.permute.xlu1 %2152 }
 0xd65   : > { %v2158_v41 = vadd.f32 %v2153_v60, %v2143_v29 }
 0xd66   : > { %v2170_v6 = vadd.f32 %v2165_v27, %v2159_v32 }
 0xd67   : > { %v2181_v19 = vpop.permute.xlu0 %2180  ;;  %v2169_v21 = vadd.f32 %v2166_v10, %v2158_v41  ;;  %v6450_v41 = vld [vmem:[%s9066_s2 + $0x7c] ss:$20 sps:$4 sm:$0xff]   ;;  %v6454_v10 = vld [vmem:[%s9066_s2 + $0x54] ss:$20 sps:$4 sm:$0xff]  }
 0xd68   : > { %v2185_v23 = vadd.f32 %v2181_v19, %v2170_v6  ;;  %v2179_v25 = vpop.permute.xlu1 %2178  ;;  %v6451_v6 = vld [vmem:[%s9066_s2 + $0x88] ss:$20 sps:$4 sm:$0xff]   ;;  %2455 = vmatprep.subr.bf16.mxu0 %v6450_v41  ;;  %v6452_v19 = vld [vmem:[%s9066_s2 + $0x50] ss:$20 sps:$4 sm:$0xff]  }
 0xd69   : > { %v2184_v13 = vadd.f32 %v2179_v25, %v2169_v21  ;;  %2456 = vmatpush1.bf16.msra.mxu0 %v6448_v61  ;;  %v6458_v21 = vld [vmem:[%s9066_s2 + $0x2c] ss:$20 sps:$4 sm:$0xff]  }
 0xd6a   : > { %v7782_v33 = vadd.f32 %v2187_v12, %v2185_v23  ;;  %v6455_v12 = vld [vmem:[%s9066_s2 + $0x60] ss:$20 sps:$4 sm:$0xff]   ;;  %2457 = vmatprep.subr.bf16.mxu0 %v6454_v10  ;;  %v6456_v23 = vld [vmem:[%s9066_s2 + $0x28] ss:$20 sps:$4 sm:$0xff]  }
 0xd6b   : > { %v7784_v35 = vadd.f32 %v2186_v34, %v2184_v13  ;;  %v6475_v61 = vld [vmem:[%s9066_s2 + $0xc] ss:$20 sps:$4 sm:$0xff]   ;;  %v6473_v10 = vld [vmem:[%s9066_s2 + $0x8] ss:$20 sps:$4 sm:$0xff]  }
 0xd6c   : > { %v2200_v52 = vmul.f32 %v7782_v33, %v7782_v33  ;;  %v2191_v37 = vsel %vm382_vm3, %v7782_v33, 0.0  ;;  %v7892_v41 = vld [vmem:[%s9071_s7 + $0x68] sm:$0xff] }
 0xd6d   : > { %v2199_v26 = vmul.f32 %v7784_v35, %v7784_v35  ;;  %v2190_v39 = vsel %vm380_vm2, %v7784_v35, 0.0  ;;  %2458 = vmatpush1.bf16.msra.mxu0 %v6452_v19  ;;  %v7916_v19 = vld [vmem:[%s9071_s7 + $0x50] sm:$0xff] }
 0xd6e   : > { %v2202_v3 = vsel %vm382_vm3, %v2200_v52, 0.0  ;;  %v2192_v42 = vadd.f32 %v2191_v37, %v2190_v39  ;;  %2459 = vmatprep.subr.bf16.mxu0 %v6458_v21  ;;  %v7924_v21 = vld [vmem:[%s9071_s7 + $0x48] sm:$0xff] }
 0xd6f   : > { %v2201_v4 = vsel %vm380_vm2, %v2199_v26, 0.0  ;;  %v6459_v26 = vld [vmem:[%s9066_s2 + $0x38] ss:$20 sps:$4 sm:$0xff]  }
 0xd70   : > { %v2203_v31 = vadd.f32 %v2202_v3, %v2201_v4  ;;  %v2193_v46 = vrot.slane %v2192_v42, 4  ;;  %v6462_v3 = vld [vmem:[%s9066_s2 + $0x4] ss:$20 sps:$4 sm:$0xff]   ;;  %v6460_v4 = vld [vmem:[%s9066_s2] ss:$20 sps:$4 sm:$0xff]  }
 0xd71   : > { %2460 = vmatpush1.bf16.msra.mxu0 %v6456_v23  ;;  %v7932_v23 = vld [vmem:[%s9071_s7 + $0x40] sm:$0xff] }
 0xd72   : > { %v2204_v49 = vrot.slane %v2203_v31, 4  ;;  %v2194_v47 = vadd.f32 %v2193_v46, %v2192_v42  ;;  %2461 = vmatprep.subr.bf16.mxu0 %v6462_v3  ;;  %v7989_v3 = vld [vmem:[%s9071_s7 + $0x10] sm:$0xff] }
 0xd74   : > { %v2205_v50 = vadd.f32 %v2204_v49, %v2203_v31  ;;  %v2195_v9 = vrot.slane %v2194_v47, 2  ;;  %v6463_v31 = vld [vmem:[%s9066_s2 + $0x10] ss:$20 sps:$4 sm:$0xff]  }
 0xd75   : > { %v6466_v49 = vld [vmem:[%s9066_s2 + $0x84] ss:$20 sps:$4 sm:$0xff]   ;;  %2462 = vmatpush1.bf16.msra.mxu0 %v6460_v4  ;;  %v7998_v4 = vld [vmem:[%s9071_s7 + $0x8] sm:$0xff] }
 0xd76   : > { %v2206_v54 = vrot.slane %v2205_v50, 2  ;;  %v2196_v14 = vadd.f32 %v2195_v9, %v2194_v47  ;;  %2498 = vmatprep.subr.bf16.mxu0 %v6466_v49 }
 0xd78   : > { %v2207_v58 = vadd.f32 %v2206_v54, %v2205_v50  ;;  %v2197_v16 = vrot.slane %v2196_v14, 1 }
 0xd7a   : > { %v2208_v57 = vrot.slane %v2207_v58, 1  ;;  %v2198_v22 = vadd.f32 %v2197_v16, %v2196_v14 }
 0xd7c   : > { %v2209_v62 = vadd.f32 %v2208_v57, %v2207_v58 }
 0xd7e   : > { %2211 = vrot.lane.b32.xlu1 %v2209_v62, %s6764_s24 }
 0xdf0   : > { %v2212_v27 = vpop.permute.xlu1 %2211 }
 0xdf1   : > { %v2214_v28 = vsel %vm380_vm2, %v2198_v22, %v2212_v27  ;;  %v6464_v22 = vld [vmem:[%s9066_s2 + $0x80] ss:$20 sps:$4 sm:$0xff]  }
 0xdf2   : > { %6012 = vmatmul.mubr.f32.vlgmr.msra.gmra.mxu1 %v2214_v28  ;;  %v6472_v28 = vld [vmem:[%s9066_s2 + $0x34] ss:$20 sps:$4 sm:$0xff]  }
 0xdf3   : > { %6022 = vmatprep.mubr.msk.bf16.mxu1 %vm6763_vm4, %v6762_v8  ;;  %6015 = vmatpush3.bf16.msra.mxu1 %v6451_v6  ;;  %v7899_v6 = vld [vmem:[%s9071_s7 + $0x60] sm:$0xff] }
 0xdf4   : > { %6016 = vmatprep.subr.bf16.mxu1 %v6762_v8 }
 0xdf7   : > { %6017 = vmatpush3.bf16.msra.mxu1 %v6455_v12  ;;  %v7909_v12 = vld [vmem:[%s9071_s7 + $0x58] sm:$0xff] }
 0xdf8   : > { %6018 = vmatprep.subr.bf16.mxu1 %v6762_v8 }
 0xdfb   : > { %6019 = vmatpush3.bf16.msra.mxu1 %v6459_v26  ;;  %v7980_v26 = vld [vmem:[%s9071_s7 + $0x18] sm:$0xff] }
 0xdfc   : > { %6020 = vmatprep.subr.bf16.mxu1 %v6762_v8 }
 0xdff   : > { %6021 = vmatpush3.bf16.msra.mxu1 %v6463_v31  ;;  %v8007_v31 = vld [vmem:[%s9071_s7] sm:$0xff] }
 0xe00   : > { %6061 = vmatprep.subr.mxu1 %v6762_v8 }
 0xeb2   : > { %v2281_v29 = vpop.f32.mrf.mxu1 }
 0xeb3   : > { %v2285_v32 = vmul.f32 %v2281_v29, %v2281_v29  ;;  %v2297_v57 = vrot.slane %v2281_v29, %v7028_v5 }
 0xeb4   : > { %v6013_v60 = vpop.f32.mrf.mxu1 }
 0xeb5   : > { %2287 = vrot.lane.b32.xlu0 %v2285_v32, %s6764_s24  ;;  %v2298_v62 = vsub.f32 %v7784_v35, %v2297_v57  ;;  %v2299_v37 = vsub.f32 %v7782_v33, %v2297_v57  ;;  %v6469_v35 = vld [vmem:[%s9066_s2 + $0x5c] ss:$20 sps:$4 sm:$0xff]   ;;  %v6467_v33 = vld [vmem:[%s9066_s2 + $0x58] ss:$20 sps:$4 sm:$0xff]  }
 0xeb6   : > { %v7879_v32 = vld [vmem:[%s9071_s7 + $0x70] sm:$0xff] }
 0xeb7   : > { %v6470_v60 = vld [vmem:[%s9066_s2 + $0x30] ss:$20 sps:$4 sm:$0xff]  }
 0xf27   : > { %v2288_v25 = vpop.permute.xlu0 %2287 }
 0xf28   : > { %v2290_v13 = vsub.f32 %v2281_v29, %v2288_v25  ;;  %v7870_v29 = vld [vmem:[%s9071_s7 + $0x78] sm:$0xff] }
 0xf29   : > { %v7944_v25 = vld [vmem:[%s9071_s7 + $0x38] sm:$0xff] }
 0xf2a   : > { %v2291_v34 = vmax.f32 %v2290_v13, 0.0  ;;  %v7953_v13 = vld [vmem:[%s9071_s7 + $0x30] sm:$0xff] }
 0xf2c   : > { %v2292_v52 = vadd.f32 1e-05, %v2291_v34  ;;  %v7962_v34 = vld [vmem:[%s9071_s7 + $0x28] sm:$0xff] }
 0xf2e   : > { %6596 = vrsqrt.f32 %v2292_v52  ;;  %v7971_v52 = vld [vmem:[%s9071_s7 + $0x20] sm:$0xff] }
 0xf3b   : > { %v6597_v50 = vpop.eup %6596 }
 0xf3c   : > { %v2300_v54 = vmul.f32 %v6597_v50, %v7284_v56 }
 0xf3e   : > { %v2304_v58 = vrot.slane %v2300_v54, %v7028_v5 }
 0xf40   : > { %2306 = vrot.lane.b32.xlu1 %v2304_v58, %s6764_s24 }
 0xfb2   : > { %v2307_v39 = vpop.permute.xlu1 %2306 }
 0xfb3   : > { %v2309_v42 = vmul.f32 %v2307_v39, %v2298_v62  ;;  %v2310_v46 = vmul.f32 %v2307_v39, %v2299_v37 }
 0xfb5   : > { %v2311_v47 = vadd.f32 %v2309_v42, %v7293_v2  ;;  %v2312_v9 = vadd.f32 %v2310_v46, %v7293_v2 }
 0xfb7   : > { %v2313_v14 = vmax.f32 %v2311_v47, 0.0  ;;  %v2314_v16 = vmax.f32 %v2312_v9, 0.0 }
 0xfb9   : > { %v2315_v27 = vpack.c.bf16 %v2314_v16, %v2313_v14 }
 0xfbb   : > { %5460 = vmatmul.mubr.msk.bf16.vlgmr.msra.gmra.mxu0 %vm380_vm2, %v2315_v27  ;;  %6023 = vmatmul.mubr.msk.bf16.vlgmr.msra.gmra.mxu1 %vm380_vm2, %v2315_v27 }
 0xfbc   : > { %2499 = vmatpush1.bf16.msra.mxu0 %v6464_v22  ;;  %2522 = vmatprep.mubr.bf16.mxu0 %v6765_v0 }
 0xfbd   : > { %2500 = vmatprep.subr.bf16.mxu0 %v6469_v35  ;;  %6062 = vmatpush3.msra.mxu1 %v7870_v29 }
 0xfbe   : > { %6063 = vmatprep.subr.mxu1 %v6762_v8  ;;  %6093 = vmatprep.mubr.msk.f32.mxu1 %vm6763_vm4, %v6762_v8 }
 0xfbf   : > { %6064 = vmatpush3.msra.mxu1 %v7879_v32 }
 0xfc0   : > { %2501 = vmatpush1.bf16.msra.mxu0 %v6467_v33  ;;  %6065 = vmatprep.subr.mxu1 %v6762_v8 }
 0xfc1   : > { %2502 = vmatprep.subr.bf16.mxu0 %v6472_v28  ;;  %6066 = vmatpush3.msra.mxu1 %v7892_v41 }
 0xfc2   : > { %6067 = vmatprep.subr.mxu1 %v6762_v8 }
 0xfc3   : > { %6068 = vmatpush3.msra.mxu1 %v7899_v6 }
 0xfc4   : > { %2503 = vmatpush1.bf16.msra.mxu0 %v6470_v60  ;;  %6069 = vmatprep.subr.mxu1 %v6762_v8 }
 0xfc5   : > { %2504 = vmatprep.subr.bf16.mxu0 %v6475_v61  ;;  %6070 = vmatpush3.msra.mxu1 %v7909_v12 }
 0xfc6   : > { %6071 = vmatprep.subr.mxu1 %v6762_v8 }
 0xfc7   : > { %6072 = vmatpush3.msra.mxu1 %v7916_v19 }
 0xfc8   : > { %2505 = vmatpush1.bf16.msra.mxu0 %v6473_v10  ;;  %6073 = vmatprep.subr.mxu1 %v6762_v8 }
 0xfc9   : > { %6026 = vmatprep.subr.mxu0 %v6762_v8  ;;  %6074 = vmatpush3.msra.mxu1 %v7924_v21 }
 0xfca   : > { %6075 = vmatprep.subr.mxu1 %v6762_v8 }
 0xfcb   : > { %5461 = vmatmul.mubr.msk.bf16.vlgmr.msra.gmra.mxu0 %vm380_vm2, %v2315_v27  ;;  %6076 = vmatpush3.msra.mxu1 %v7932_v23 }
 0xfcc   : > { %6027 = vmatpush3.msra.mxu0 %v7870_v29  ;;  %6058 = vmatprep.mubr.msk.f32.mxu0 %vm6763_vm4, %v6762_v8 }
 0xfcd   : > { %6028 = vmatprep.subr.mxu0 %v6762_v8  ;;  %6077 = vmatprep.subr.mxu1 %v6762_v8 }
 0xfce   : > { %6029 = vmatpush3.msra.mxu0 %v7879_v32  ;;  %6078 = vmatpush3.msra.mxu1 %v7944_v25 }
 0xfcf   : > { %6030 = vmatprep.subr.mxu0 %v6762_v8  ;;  %6079 = vmatprep.subr.mxu1 %v6762_v8 }
 0xfd0   : > { %6031 = vmatpush3.msra.mxu0 %v7892_v41  ;;  %6080 = vmatpush3.msra.mxu1 %v7953_v13 }
 0xfd1   : > { %6032 = vmatprep.subr.mxu0 %v6762_v8  ;;  %6081 = vmatprep.subr.mxu1 %v6762_v8 }
 0xfd2   : > { %6033 = vmatpush3.msra.mxu0 %v7899_v6  ;;  %6082 = vmatpush3.msra.mxu1 %v7962_v34 }
 0xfd3   : > { %6034 = vmatprep.subr.mxu0 %v6762_v8  ;;  %6083 = vmatprep.subr.mxu1 %v6762_v8 }
 0xfd4   : > { %6035 = vmatpush3.msra.mxu0 %v7909_v12  ;;  %6084 = vmatpush3.msra.mxu1 %v7971_v52 }
 0xfd5   : > { %6036 = vmatprep.subr.mxu0 %v6762_v8  ;;  %6085 = vmatprep.subr.mxu1 %v6762_v8 }
 0xfd6   : > { %6037 = vmatpush3.msra.mxu0 %v7916_v19  ;;  %6086 = vmatpush3.msra.mxu1 %v7980_v26 }
 0xfd7   : > { %6038 = vmatprep.subr.mxu0 %v6762_v8  ;;  %6087 = vmatprep.subr.mxu1 %v6762_v8 }
 0xfd8   : > { %6039 = vmatpush3.msra.mxu0 %v7924_v21  ;;  %6088 = vmatpush3.msra.mxu1 %v7989_v3 }
 0xfd9   : > { %6040 = vmatprep.subr.mxu0 %v6762_v8  ;;  %6089 = vmatprep.subr.mxu1 %v6762_v8 }
 0xfda   : > { %6041 = vmatpush3.msra.mxu0 %v7932_v23  ;;  %6090 = vmatpush3.msra.mxu1 %v7998_v4 }
 0xfdb   : > { %6042 = vmatprep.subr.mxu0 %v6762_v8  ;;  %6091 = vmatprep.subr.mxu1 %v6762_v8 }
 0xfdc   : > { %6043 = vmatpush3.msra.mxu0 %v7944_v25  ;;  %6092 = vmatpush3.msra.mxu1 %v8007_v31 }
 0xfdd   : > { %6044 = vmatprep.subr.mxu0 %v6762_v8 }
 0xfde   : > { %6045 = vmatpush3.msra.mxu0 %v7953_v13 }
 0xfdf   : > { %6046 = vmatprep.subr.mxu0 %v6762_v8 }
 0xfe0   : > { %6047 = vmatpush3.msra.mxu0 %v7962_v34 }
 0xfe1   : > { %6048 = vmatprep.subr.mxu0 %v6762_v8 }
 0xfe2   : > { %6049 = vmatpush3.msra.mxu0 %v7971_v52 }
 0xfe3   : > { %6050 = vmatprep.subr.mxu0 %v6762_v8 }
 0xfe4   : > { %6051 = vmatpush3.msra.mxu0 %v7980_v26 }
 0xfe5   : > { %6052 = vmatprep.subr.mxu0 %v6762_v8 }
 0xfe6   : > { %6053 = vmatpush3.msra.mxu0 %v7989_v3 }
 0xfe7   : > { %6054 = vmatprep.subr.mxu0 %v6762_v8 }
 0xfe8   : > { %6055 = vmatpush3.msra.mxu0 %v7998_v4 }
 0xfe9   : > { %6056 = vmatprep.subr.mxu0 %v6762_v8 }
 0xfea   : > { %6057 = vmatpush3.msra.mxu0 %v8007_v31 }
0x107b   : > { %v2481_v49 = vpop.f32.mrf.mxu0  ;;  %v2567_v50 = vpop.f32.mrf.mxu1 }
0x107c   : > { %v2574_v54 = vmul.f32 %v7685_v40, %v2481_v49  ;;  %v2578_v58 = vmul.f32 %v7737_v44, %v2567_v50 }
0x107d   : > { %v2483_v57 = vpop.f32.mrf.mxu0  ;;  %v6024_v62 = vpop.f32.mrf.mxu1 }
0x107e   : > { %v2594_v37 = vrot.slane %v2574_v54, 4  ;;  %v2598_v39 = vrot.slane %v2578_v58, 4  ;;  %v2575_v42 = vmul.f32 %v7697_v20, %v2483_v57 }
0x107f   : > { %v2485_v46 = vpop.f32.mrf.mxu0  ;;  %v2570_v47 = vpop.f32.mrf.mxu1 }
0x1080   : > { %2619 = vst [vmem:[#allocation2] sm:$0xf0] %v2594_v37  ;;  %v2595_v9 = vrot.slane %v2575_v42, 4  ;;  %v2579_v14 = vmul.f32 %v7709_v63, %v2485_v46  ;;  %v2583_v16 = vmul.f32 %v7745_v36, %v2570_v47 }
0x1081   : > { %v2487_v22 = vpop.f32.mrf.mxu0  ;;  %v6025_v27 = vpop.f32.mrf.mxu1 }
0x1082   : > { %2620 = vst [vmem:[#allocation2 + $0x8] sm:$0xf0] %v2595_v9  ;;  %v2599_v40 = vrot.slane %v2579_v14, 4  ;;  %v2607_v35 = vrot.slane %v2583_v16, 4  ;;  %v2580_v44 = vmul.f32 %v7721_v17, %v2487_v22 }
0x1084   : > { %v2600_v33 = vsel %vm795_vm5, %v2594_v37, %v2599_v40  ;;  %v2608_v28 = vsel %vm795_vm5, %v2598_v39, %v2607_v35  ;;  %v2601_v20 = vrot.slane %v2580_v44, 4 }
0x1085   : > { %2624 = vst [vmem:[#allocation2 + $0x28] sm:$0x1f] %v2600_v33  ;;  %2628 = vst.msk [vmem:[#allocation2 + $0x48] sm:$0x1f] %vm831_vm10, %v2608_v28 }
0x1086   : > { %v2602_v60 = vsel %vm795_vm5, %v2595_v9, %v2601_v20 }
0x1087   : > { %2625 = vst [vmem:[#allocation2 + $0x30] sm:$0x1f] %v2602_v60  ;;  %v2637_v63 = vld [vmem:[#allocation2] sm:$0xfe] }
0x1088   : > { %v2641_v54 = vrot.slane %v2637_v63, 1 }
0x1089   : > { %v2663_v62 = vld [vmem:[#allocation2 + $0x8] sm:$0xf8] }
0x108a   : > { %v2667_v9 = vrot.slane %v2663_v62, 3 }
0x108b   : > { %v2524_v36 = vpop.f32.mrf.mxu0 }
0x108c   : > { %v2576_v61 = vmul.f32 %v7691_v45, %v2524_v36  ;;  %v2638_v10 = vld [vmem:[#allocation2 + $0x28] sm:$0x3] }
0x108d   : > { %v2526_v49 = vpop.f32.mrf.mxu0  ;;  %v2642_v50 = vrot.slane %v2638_v10, 1 }
0x108e   : > { %v2596_v17 = vrot.slane %v2576_v61, 4  ;;  %v2577_v58 = vmul.f32 %v7703_v24, %v2526_v49  ;;  %v2664_v57 = vld [vmem:[#allocation2 + $0x30] sm:$0xf]  ;;  %v6659_v61 = vld [vmem:[%s9069_s5 + $0x8] sm:$0x1]  ;;  %v6660_v49 = vld [vmem:[%s9069_s5] sm:$0xff] }
0x108f   : > { %v2528_v37 = vpop.f32.mrf.mxu0  ;;  %2646 = vrot.lane.b32.xlu1 %v2642_v50, %s6764_s24  ;;  %v2643_v39 = vsel %vm850_vm6, %v2641_v54, %v2642_v50  ;;  %v2668_v42 = vrot.slane %v2664_v57, 3  ;;  %v2630_v10 = vmul.f32 %v6659_v61, %v7761_v30  ;;  %v2629_v50 = vmul.f32 %v6660_v49, %v7761_v30  ;;  %v2633_v57 = vld [vmem:[#allocation2] sm:$0xff] }
0x1090   : > { %2621 = vst [vmem:[#allocation2 + $0x10] sm:$0xf0] %v2596_v17  ;;  %v2597_v46 = vrot.slane %v2577_v58, 4  ;;  %v2581_v47 = vmul.f32 %v7715_v18, %v2528_v37  ;;  %2644 = vrot.lane.b32.xlu0 %v2643_v39, %s6764_s24  ;;  %v2653_v37 = vld [vmem:[#allocation2 + $0x30] sm:$0x7] }
0x1091   : > { %v2530_v45 = vpop.f32.mrf.mxu0  ;;  %v2669_v16 = vsel %vm878_vm7, %v2667_v9, %v2668_v42  ;;  %v8061_v54 = vadd.f32 %v2630_v10, %v7513_v43  ;;  %v8064_v58 = vadd.f32 %v2629_v50, %v7513_v43  ;;  %v2657_v9 = vrot.slane %v2653_v37, 2 }
0x1092   : > { %2622 = vst [vmem:[#allocation2 + $0x18] sm:$0xf0] %v2597_v46  ;;  %v2603_v14 = vrot.slane %v2581_v47, 4  ;;  %v2582_v24 = vmul.f32 %v7727_v11, %v2530_v45  ;;  %v2652_v47 = vld [vmem:[#allocation2 + $0x8] sm:$0xfc] }
0x1093   : > { %2672 = vrot.lane.b32.xlu1 %v2668_v42, %s6764_s24  ;;  %v2656_v30 = vrot.slane %v2652_v47, 2 }
0x1094   : > { %v2604_v22 = vsel %vm795_vm5, %v2596_v17, %v2603_v14  ;;  %v2605_v27 = vrot.slane %v2582_v24, 4  ;;  %2670 = vrot.lane.b32.xlu0 %v2669_v16, %s6764_s24  ;;  %v2634_v17 = vld [vmem:[#allocation2 + $0x28] sm:$0x1] }
0x1095   : > { %2626 = vst [vmem:[#allocation2 + $0x38] sm:$0x1f] %v2604_v22  ;;  %v2636_v39 = vadd.f32 %v2634_v17, %v8061_v54  ;;  %v2658_v16 = vsel %vm866_vm11, %v2656_v30, %v2657_v9 }
0x1096   : > { %v2606_v18 = vsel %vm795_vm5, %v2597_v46, %v2605_v27  ;;  %v2635_v46 = vadd.f32 %v2633_v57, %v8064_v58 }
0x1097   : > { %2627 = vst [vmem:[#allocation2 + $0x40] sm:$0x1f] %v2606_v18  ;;  %v2689_v40 = vld [vmem:[#allocation2 + $0x10] sm:$0xe0] }
0x1098   : > { %v2693_v33 = vrot.slane %v2689_v40, 5 }
0x1099   : > { %v2715_v20 = vld [vmem:[#allocation2 + $0x18] sm:$0x80] }
0x109a   : > { %v2719_v63 = vrot.slane %v2715_v20, 7 }
0x109c   : > { %v2690_v35 = vld [vmem:[#allocation2 + $0x38] sm:$0x3f] }
0x109d   : > { %v2694_v44 = vrot.slane %v2690_v35, 5  ;;  %v2679_v18 = vld [vmem:[#allocation2 + $0x38] sm:$0x1f]  ;;  %v2678_v35 = vld [vmem:[#allocation2 + $0x10] sm:$0xf0] }
0x109e   : > { %v2716_v28 = vld [vmem:[#allocation2 + $0x40] sm:$0xff] }
0x109f   : > { %2698 = vrot.lane.b32.xlu1 %v2694_v44, %s6764_s24  ;;  %v2695_v11 = vsel %vm905_vm8, %v2693_v33, %v2694_v44  ;;  %v2720_v60 = vrot.slane %v2716_v28, 7  ;;  %v2683_v33 = vrot.slane %v2679_v18, 4  ;;  %v2705_v20 = vld [vmem:[#allocation2 + $0x40] sm:$0x7f] }
0x10a0   : > { %2696 = vrot.lane.b32.xlu0 %v2695_v11, %s6764_s24  ;;  %v2682_v11 = vrot.slane %v2678_v35, 4  ;;  %v2709_v61 = vrot.slane %v2705_v20, 6 }
0x10a1   : > { %v2721_v36 = vsel %vm933_vm9, %v2719_v63, %v2720_v60 }
0x10a3   : > { %2724 = vrot.lane.b32.xlu1 %v2720_v60, %s6764_s24  ;;  %v2704_v60 = vld [vmem:[#allocation2 + $0x18] sm:$0xc0] }
0x10a4   : > { %2722 = vrot.lane.b32.xlu0 %v2721_v36, %s6764_s24  ;;  %v2684_v36 = vsel %vm795_vm5, %v2682_v11, %v2683_v33  ;;  %v2708_v57 = vrot.slane %v2704_v60, 6 }
0x1101   : > { %v2647_v62 = vpop.permute.xlu1 %2646 }
0x1102   : > { %v2645_v42 = vpop.permute.xlu0 %2644  ;;  %v2651_v45 = vadd.f32 %v2647_v62, %v2636_v39  ;;  %v2710_v39 = vsel %vm921_vm12, %v2708_v57, %v2709_v61 }
0x1103   : > { %v2650_v14 = vadd.f32 %v2645_v42, %v2635_v46  ;;  %v2731_v42 = vld [vmem:[#allocation2 + $0x70] sm:$0x1] }
0x1104   : > { %v2662_v24 = vadd.f32 %v2657_v9, %v2651_v45 }
0x1105   : > { %v2673_v22 = vpop.permute.xlu1 %2672  ;;  %v2661_v27 = vadd.f32 %v2658_v16, %v2650_v14 }
0x1106   : > { %v2671_v40 = vpop.permute.xlu0 %2670  ;;  %v2677_v44 = vadd.f32 %v2673_v22, %v2662_v24  ;;  %v2730_v24 = vld [vmem:[#allocation2 + $0x48] sm:$0xff] }
0x1107   : > { %v2676_v28 = vadd.f32 %v2671_v40, %v2661_v27 }
0x1108   : > { %v2688_v63 = vadd.f32 %v2683_v33, %v2677_v44 }
0x1109   : > { %v2687_v49 = vadd.f32 %v2684_v36, %v2676_v28 }
0x1111   : > { %v2699_v10 = vpop.permute.xlu1 %2698 }
0x1112   : > { %v2703_v50 = vadd.f32 %v2699_v10, %v2688_v63  ;;  %v2697_v17 = vpop.permute.xlu0 %2696 }
0x1113   : > { %v2702_v62 = vadd.f32 %v2697_v17, %v2687_v49 }
0x1114   : > { %v2714_v37 = vadd.f32 %v2709_v61, %v2703_v50 }
0x1115   : > { %v2725_v46 = vpop.permute.xlu1 %2724  ;;  %v2713_v47 = vadd.f32 %v2710_v39, %v2702_v62 }
0x1116   : > { %v2729_v45 = vadd.f32 %v2725_v46, %v2714_v37  ;;  %v2723_v9 = vpop.permute.xlu0 %2722 }
0x1117   : > { %v2728_v14 = vadd.f32 %v2723_v9, %v2713_v47 }
0x1118   : > { %v2733_v30 = vadd.f32 %v2731_v42, %v2729_v45 }
0x1119   : > { %v2732_v16 = vadd.f32 %v2730_v24, %v2728_v14 }
0x111a   : > { %v2744_v22 = vmul.f32 %v2733_v30, %v2733_v30  ;;  %v2735_v63 = vsel %vm382_vm3, %v2733_v30, 0.0 }
0x111b   : > { %v2743_v27 = vmul.f32 %v2732_v16, %v2732_v16  ;;  %v2734_v36 = vsel %vm380_vm2, %v2732_v16, 0.0 }
0x111c   : > { %v2746_v18 = vsel %vm382_vm3, %v2744_v22, 0.0  ;;  %v2736_v61 = vadd.f32 %v2735_v63, %v2734_v36 }
0x111d   : > { %v2745_v40 = vsel %vm380_vm2, %v2743_v27, 0.0 }
0x111e   : > { %v2747_v35 = vadd.f32 %v2746_v18, %v2745_v40  ;;  %v2737_v10 = vrot.slane %v2736_v61, 4 }
0x1120   : > { %v2748_v44 = vrot.slane %v2747_v35, 4  ;;  %v2738_v49 = vadd.f32 %v2737_v10, %v2736_v61  ;;  %v6661_v61 = vld [vmem:[%s6849_s18] sm:$0xff] }
0x1122   : > { %v2749_v33 = vadd.f32 %v2748_v44, %v2747_v35  ;;  %v2739_v50 = vrot.slane %v2738_v49, 2 }
0x1124   : > { %v2750_v28 = vrot.slane %v2749_v33, 2  ;;  %v2740_v17 = vadd.f32 %v2739_v50, %v2738_v49  ;;  %v6662_v49 = vld [vmem:[%s6849_s18 + $0x8] sm:$0x1] }
0x1126   : > { %v2751_v20 = vadd.f32 %v2750_v28, %v2749_v33  ;;  %v2741_v57 = vrot.slane %v2740_v17, 1  ;;  %v1636_v33 = vmul.f32 0.020833334, %v7542_v53  ;;  %v1637_v28 = vmul.f32 0.020833334, %v7545_v59 }
0x1128   : > { %v2752_v11 = vrot.slane %v2751_v20, 1  ;;  %v2742_v62 = vadd.f32 %v2741_v57, %v2740_v17  ;;  %v1638_v10 = vadd.f32 %v6661_v61, %v1636_v33  ;;  %v1639_v50 = vadd.f32 %v6662_v49, %v1637_v28 }
0x112a   : > { %v2753_v60 = vadd.f32 %v2752_v11, %v2751_v20 }
0x112c   : > { %2755 = vrot.lane.b32.xlu0 %v2753_v60, %s6764_s24 }
0x119e   : > { %v2756_v37 = vpop.permute.xlu0 %2755 }
0x119f   : > { %v2758_v39 = vsel %vm380_vm2, %v2742_v62, %v2756_v37 }
0x11a0   : > { %6059 = vmatmul.mubr.f32.vlgmr.msra.gmra.mxu0 %v2758_v39 }
0x11a1   : > { %3154 = vmatprep.mubr.bf16.mxu0 %v6765_v0 }
0x1260   : > { %v2825_v42 = vpop.f32.mrf.mxu0 }
0x1261   : > { %v2829_v46 = vmul.f32 %v2825_v42, %v2825_v42  ;;  %v2841_v40 = vrot.slane %v2825_v42, %v7028_v5 }
0x1262   : > { %v6060_v47 = vpop.f32.mrf.mxu0 }
0x1263   : > { %2831 = vrot.lane.b32.xlu1 %v2829_v46, %s6764_s24  ;;  %v2842_v35 = vsub.f32 %v2732_v16, %v2841_v40  ;;  %v2843_v44 = vsub.f32 %v2733_v30, %v2841_v40 }
0x12d5   : > { %v2832_v45 = vpop.permute.xlu1 %2831 }
0x12d6   : > { %v2834_v9 = vsub.f32 %v2825_v42, %v2832_v45 }
0x12d8   : > { %v2835_v14 = vmax.f32 %v2834_v9, 0.0 }
0x12da   : > { %v2836_v24 = vadd.f32 1e-05, %v2835_v14 }
0x12dc   : > { %6598 = vrsqrt.f32 %v2836_v24 }
0x12e9   : > { %v6599_v22 = vpop.eup %6598 }
0x12ea   : > { %v2844_v27 = vmul.f32 %v6599_v22, %v7531_v55 }
0x12ec   : > { %v2848_v18 = vrot.slane %v2844_v27, %v7028_v5 }
0x12ee   : > { %2850 = vrot.lane.b32.xlu0 %v2848_v18, %s6764_s24 }
0x1360   : > { %v2851_v20 = vpop.permute.xlu0 %2850 }
0x1361   : > { %v2853_v11 = vmul.f32 %v2851_v20, %v2842_v35  ;;  %v2854_v60 = vmul.f32 %v2851_v20, %v2843_v44 }
0x1363   : > { %v2855_v63 = vadd.f32 %v2853_v11, %v7539_v48  ;;  %v2856_v36 = vadd.f32 %v2854_v60, %v7539_v48 }
0x1365   : > { %v2857_v17 = vmul.f32 0.041666668, %v2855_v63  ;;  %v2858_v57 = vmul.f32 0.041666668, %v2856_v36  ;;  %v2861_v62 = vmul.f32 0.0625, %v2855_v63  ;;  %v2862_v16 = vmul.f32 0.0625, %v2856_v36 }
0x1367   : > { %v8089_v30 = vadd.f32 %v2857_v17, %v1638_v10  ;;  %v8091_v53 = vadd.f32 %v2858_v57, %v1639_v50  ;;  %v8093_v59 = vadd.f32 %v6661_v61, %v2861_v62  ;;  %v8095_v37 = vadd.f32 %v6662_v49, %v2862_v16  ;;  %v6476_v17 = vld [vmem:[%s9065_s1 + $0x78] ss:$20 sps:$4 sm:$0xff]   ;;  %v6478_v57 = vld [vmem:[%s9065_s1 + $0x7c] ss:$20 sps:$4 sm:$0xff]   ;;  %v6479_v62 = vld [vmem:[%s9065_s1 + $0x80] ss:$20 sps:$4 sm:$0xff]  }
0x1368   : > { %v6481_v16 = vld [vmem:[%s9065_s1 + $0x84] ss:$20 sps:$4 sm:$0xff]   ;;  %3130 = vmatprep.subr.bf16.mxu0 %v6478_v57 }
0x1369   : > { %v2874_v39 = vmul.f32 %v8093_v59, %v8093_v59  ;;  %v2875_v42 = vmul.f32 %v8095_v37, %v8095_v37  ;;  %v2865_v40 = vsel %vm380_vm2, %v8093_v59, 0.0  ;;  %v2866_v35 = vsel %vm382_vm3, %v8095_v37, 0.0  ;;  %3131 = vmatpush1.bf16.msra.mxu0 %v6476_v17  ;;  %3173 = vmatprep.subr.bf16.mxu1 %v6481_v16 }
0x136a   : > { %v2867_v44 = vadd.f32 %v2866_v35, %v2865_v40  ;;  %v6491_v40 = vld [vmem:[%s9065_s1 + $0x30] ss:$20 sps:$4 sm:$0xff]  }
0x136b   : > { %v2876_v46 = vsel %vm380_vm2, %v2874_v39, 0.0  ;;  %v2877_v47 = vsel %vm382_vm3, %v2875_v42, 0.0  ;;  %v6484_v39 = vld [vmem:[%s9065_s1 + $0x54] ss:$20 sps:$4 sm:$0xff]   ;;  %v6487_v42 = vld [vmem:[%s9065_s1 + $0x5c] ss:$20 sps:$4 sm:$0xff]  }
0x136c   : > { %v2878_v45 = vadd.f32 %v2877_v47, %v2876_v46  ;;  %v2868_v33 = vrot.slane %v2867_v44, 4  ;;  %v6482_v46 = vld [vmem:[%s9065_s1 + $0x50] ss:$20 sps:$4 sm:$0xff]   ;;  %3132 = vmatprep.subr.bf16.mxu0 %v6484_v39  ;;  %v6485_v47 = vld [vmem:[%s9065_s1 + $0x58] ss:$20 sps:$4 sm:$0xff]  }
0x136d   : > { %3133 = vmatpush1.bf16.msra.mxu0 %v6482_v46  ;;  %v6496_v35 = vld [vmem:[%s9065_s1 + $0x4] ss:$20 sps:$4 sm:$0xff]  }
0x136e   : > { %v2879_v9 = vrot.slane %v2878_v45, 4  ;;  %v2869_v28 = vadd.f32 %v2868_v33, %v2867_v44  ;;  %v6494_v44 = vld [vmem:[%s9065_s1] ss:$20 sps:$4 sm:$0xff]  }
0x136f   : > { %v6499_v33 = vld [vmem:[%s9065_s1 + $0xc] ss:$20 sps:$4 sm:$0xff]  }
0x1370   : > { %v2880_v14 = vadd.f32 %v2879_v9, %v2878_v45  ;;  %v2870_v20 = vrot.slane %v2869_v28, 2  ;;  %v6490_v45 = vld [vmem:[%s9065_s1 + $0x2c] ss:$20 sps:$4 sm:$0xff]   ;;  %v6488_v9 = vld [vmem:[%s9065_s1 + $0x28] ss:$20 sps:$4 sm:$0xff]  }
0x1371   : > { %3134 = vmatprep.subr.bf16.mxu0 %v6490_v45 }
0x1372   : > { %v2881_v24 = vrot.slane %v2880_v14, 2  ;;  %v2871_v11 = vadd.f32 %v2870_v20, %v2869_v28  ;;  %3135 = vmatpush1.bf16.msra.mxu0 %v6488_v9  ;;  %v6497_v28 = vld [vmem:[%s9065_s1 + $0x8] ss:$20 sps:$4 sm:$0xff]  }
0x1373   : > { %3136 = vmatprep.subr.bf16.mxu0 %v6496_v35  ;;  %v8251_v9 = vld [vmem:[%s9067_s3 + $0x28] sm:$0x1] }
0x1374   : > { %v2882_v22 = vadd.f32 %v2881_v24, %v2880_v14  ;;  %v2872_v60 = vrot.slane %v2871_v11, 1 }
0x1376   : > { %v2883_v27 = vrot.slane %v2882_v22, 1  ;;  %v2873_v63 = vadd.f32 %v2872_v60, %v2871_v11  ;;  %3137 = vmatpush1.bf16.msra.mxu0 %v6494_v44  ;;  %v8263_v44 = vld [vmem:[%s9067_s3 + $0x30] sm:$0x1] }
0x1377   : > { %6096 = vmatprep.subr.bf16.mxu0 %v6762_v8 }
0x1378   : > { %v2884_v18 = vadd.f32 %v2883_v27, %v2882_v22 }
0x137a   : > { %2886 = vrot.lane.b32.xlu1 %v2884_v18, %s6764_s24  ;;  %v6493_v18 = vld [vmem:[%s9065_s1 + $0x34] ss:$20 sps:$4 sm:$0xff]  }
0x13ec   : > { %v2887_v36 = vpop.permute.xlu1 %2886 }
0x13ed   : > { %v2889_v61 = vsel %vm380_vm2, %v2873_v63, %v2887_v36 }
0x13ee   : > { %6094 = vmatmul.mubr.f32.vlgmr.msra.gmra.mxu1 %v2889_v61 }
0x13ef   : > { %3197 = vmatprep.mubr.bf16.mxu1 %v6765_v0  ;;  %3174 = vmatpush1.bf16.msra.mxu1 %v6479_v62 }
0x13f0   : > { %3175 = vmatprep.subr.bf16.mxu1 %v6487_v42  ;;  %v6500_v42 = vld [vmem:[%s9065_s1 + $0x88] ss:$20 sps:$4 sm:$0xff]  }
0x13f3   : > { %3176 = vmatpush1.bf16.msra.mxu1 %v6485_v47 }
0x13f4   : > { %3177 = vmatprep.subr.bf16.mxu1 %v6493_v18 }
0x13f7   : > { %3178 = vmatpush1.bf16.msra.mxu1 %v6491_v40 }
0x13f8   : > { %3179 = vmatprep.subr.bf16.mxu1 %v6499_v33 }
0x13fb   : > { %3180 = vmatpush1.bf16.msra.mxu1 %v6497_v28  ;;  %v8269_v28 = vld [vmem:[%s9067_s3 + $0x40] sm:$0x1] }
0x13fc   : > { %6108 = vmatprep.subr.mxu1 %v6762_v8 }
0x14ae   : > { %v2956_v10 = vpop.f32.mrf.mxu1 }
0x14af   : > { %v2960_v49 = vmul.f32 %v2956_v10, %v2956_v10  ;;  %v2972_v63 = vrot.slane %v2956_v10, %v7028_v5 }
0x14b0   : > { %v6095_v50 = vpop.f32.mrf.mxu1 }
0x14b1   : > { %2962 = vrot.lane.b32.xlu0 %v2960_v49, %s6764_s24  ;;  %v2973_v36 = vsub.f32 %v8093_v59, %v2972_v63  ;;  %v2974_v61 = vsub.f32 %v8095_v37, %v2972_v63  ;;  %v6501_v59 = vld [vmem:[%s9065_s1 + $0x60] ss:$20 sps:$4 sm:$0xff]   ;;  %v6502_v37 = vld [vmem:[%s9065_s1 + $0x38] ss:$20 sps:$4 sm:$0xff]  }
0x1523   : > { %v2963_v14 = vpop.permute.xlu0 %2962 }
0x1524   : > { %v2965_v24 = vsub.f32 %v2956_v10, %v2963_v14 }
0x1526   : > { %v2966_v22 = vmax.f32 %v2965_v24, 0.0  ;;  %v8257_v24 = vld [vmem:[%s9067_s3 + $0x38] sm:$0x1] }
0x1528   : > { %v2967_v27 = vadd.f32 1e-05, %v2966_v22 }
0x152a   : > { %6600 = vrsqrt.f32 %v2967_v27 }
0x1537   : > { %v6601_v20 = vpop.eup %6600 }
0x1538   : > { %v2975_v11 = vmul.f32 %v6601_v20, %v7025_v1 }
0x153a   : > { %v2979_v60 = vrot.slane %v2975_v11, %v7028_v5 }
0x153c   : > { %2981 = vrot.lane.b32.xlu1 %v2979_v60, %s6764_s24 }
0x15ae   : > { %v2982_v49 = vpop.permute.xlu1 %2981 }
0x15af   : > { %v2984_v50 = vmul.f32 %v2982_v49, %v2973_v36  ;;  %v2985_v17 = vmul.f32 %v2982_v49, %v2974_v61 }
0x15b1   : > { %v2986_v57 = vadd.f32 %v2984_v50, %v7036_v15  ;;  %v2987_v62 = vadd.f32 %v2985_v17, %v7036_v15 }
0x15b3   : > { %v2988_v16 = vmax.f32 %v2986_v57, 0.0  ;;  %v2989_v39 = vmax.f32 %v2987_v62, 0.0  ;;  %v8279_v57 = vld [vmem:[%s9067_s3 + $0x20] sm:$0xff] }
0x15b5   : > { %v2990_v46 = vpack.c.bf16 %v2989_v39, %v2988_v16 }
0x15b7   : > { %5483 = vmatmul.mubr.msk.bf16.vlgmr.msra.gmra.mxu0 %vm380_vm2, %v2990_v46  ;;  %5484 = vmatmul.mubr.msk.bf16.vlgmr.msra.gmra.mxu1 %vm380_vm2, %v2990_v46 }
0x15b8   : > { %6097 = vmatpush3.bf16.msra.mxu0 %v6500_v42  ;;  %6104 = vmatprep.mubr.msk.bf16.mxu0 %vm6763_vm4, %v6762_v8 }
0x15b9   : > { %6098 = vmatprep.subr.bf16.mxu0 %v6762_v8  ;;  %6109 = vmatpush3.msra.mxu1 %v7870_v29  ;;  %v6503_v29 = vld [vmem:[%s9065_s1 + $0x10] ss:$20 sps:$4 sm:$0xff]  }
0x15ba   : > { %6110 = vmatprep.subr.mxu1 %v6762_v8  ;;  %6140 = vmatprep.mubr.msk.f32.mxu1 %vm6763_vm4, %v6762_v8 }
0x15bb   : > { %6111 = vmatpush3.msra.mxu1 %v7879_v32 }
0x15bc   : > { %6099 = vmatpush3.bf16.msra.mxu0 %v6501_v59  ;;  %6112 = vmatprep.subr.mxu1 %v6762_v8 }
0x15bd   : > { %6100 = vmatprep.subr.bf16.mxu0 %v6762_v8  ;;  %6113 = vmatpush3.msra.mxu1 %v7892_v41 }
0x15be   : > { %6114 = vmatprep.subr.mxu1 %v6762_v8 }
0x15bf   : > { %6115 = vmatpush3.msra.mxu1 %v7899_v6  ;;  %v8227_v6 = vld [vmem:[%s9067_s3] sm:$0xff] }
0x15c0   : > { %6101 = vmatpush3.bf16.msra.mxu0 %v6502_v37  ;;  %6116 = vmatprep.subr.mxu1 %v6762_v8 }
0x15c1   : > { %6102 = vmatprep.subr.bf16.mxu0 %v6762_v8  ;;  %6117 = vmatpush3.msra.mxu1 %v7909_v12 }
0x15c2   : > { %6118 = vmatprep.subr.mxu1 %v6762_v8 }
0x15c3   : > { %6119 = vmatpush3.msra.mxu1 %v7916_v19  ;;  %v8233_v19 = vld [vmem:[%s9067_s3 + $0x10] sm:$0xff] }
0x15c4   : > { %6103 = vmatpush3.bf16.msra.mxu0 %v6503_v29  ;;  %6120 = vmatprep.subr.mxu1 %v6762_v8 }
0x15c5   : > { %6121 = vmatpush3.msra.mxu1 %v7924_v21 }
0x15c6   : > { %6122 = vmatprep.subr.mxu1 %v6762_v8 }
0x15c7   : > { %6105 = vmatmul.mubr.msk.bf16.vlgmr.msra.gmra.mxu0 %vm380_vm2, %v2990_v46  ;;  %6123 = vmatpush3.msra.mxu1 %v7932_v23 }
0x15c8   : > { %6124 = vmatprep.subr.mxu1 %v6762_v8  ;;  %3694 = vmatprep.mubr.bf16.mxu0 %v6765_v0 }
0x15c9   : > { %6125 = vmatpush3.msra.mxu1 %v7944_v25 }
0x15ca   : > { %6126 = vmatprep.subr.mxu1 %v6762_v8 }
0x15cb   : > { %6127 = vmatpush3.msra.mxu1 %v7953_v13 }
0x15cc   : > { %6128 = vmatprep.subr.mxu1 %v6762_v8 }
0x15cd   : > { %6129 = vmatpush3.msra.mxu1 %v7962_v34 }
0x15ce   : > { %6130 = vmatprep.subr.mxu1 %v6762_v8 }
0x15cf   : > { %6131 = vmatpush3.msra.mxu1 %v7971_v52  ;;  %v8239_v52 = vld [vmem:[%s9067_s3 + $0x8] sm:$0xff] }
0x15d0   : > { %6132 = vmatprep.subr.mxu1 %v6762_v8 }
0x15d1   : > { %6133 = vmatpush3.msra.mxu1 %v7980_v26 }
0x15d2   : > { %6134 = vmatprep.subr.mxu1 %v6762_v8 }
0x15d3   : > { %6135 = vmatpush3.msra.mxu1 %v7989_v3  ;;  %v8245_v3 = vld [vmem:[%s9067_s3 + $0x18] sm:$0xff] }
0x15d4   : > { %6136 = vmatprep.subr.mxu1 %v6762_v8 }
0x15d5   : > { %6137 = vmatpush3.msra.mxu1 %v7998_v4 }
0x15d6   : > { %6138 = vmatprep.subr.mxu1 %v6762_v8 }
0x15d7   : > { %6139 = vmatpush3.msra.mxu1 %v8007_v31 }
0x15d8   : > { %6143 = vmatprep.subr.bf16.mxu1 %v6762_v8 }
0x1677   : > { %v3156_v32 = vpop.f32.mrf.mxu0  ;;  %v3199_v41 = vpop.f32.mrf.mxu1 }
0x1678   : > { %v3249_v12 = vmul.f32 %v8227_v6, %v3156_v32  ;;  %v3251_v21 = vmul.f32 %v8233_v19, %v3199_v41 }
0x1679   : > { %v3158_v23 = vpop.f32.mrf.mxu0  ;;  %v3201_v25 = vpop.f32.mrf.mxu1 }
0x167a   : > { %v3269_v13 = vrot.slane %v3249_v12, 4  ;;  %v3271_v34 = vrot.slane %v3251_v21, 4  ;;  %v3250_v26 = vmul.f32 %v8239_v52, %v3158_v23  ;;  %v3252_v4 = vmul.f32 %v8245_v3, %v3201_v25  ;;  %v8287_v21 = vld [vmem:[%s9067_s3 + $0x48] sm:$0x1] }
0x167b   : > { %v3160_v31 = vpop.f32.mrf.mxu0  ;;  %v3203_v10 = vpop.f32.mrf.mxu1 }
0x167c   : > { %3294 = vst [vmem:[#allocation2] sm:$0xf0] %v3269_v13  ;;  %3296 = vst [vmem:[#allocation2 + $0x10] sm:$0xf0] %v3271_v34  ;;  %v3270_v47 = vrot.slane %v3250_v26, 4  ;;  %v3272_v45 = vrot.slane %v3252_v4, 4  ;;  %v3254_v14 = vmul.f32 %v8251_v9, %v3160_v31  ;;  %v3256_v22 = vmul.f32 %v8257_v24, %v3203_v10 }
0x167d   : > { %v3162_v27 = vpop.f32.mrf.mxu0  ;;  %v3205_v18 = vpop.f32.mrf.mxu1 }
0x167e   : > { %3295 = vst [vmem:[#allocation2 + $0x8] sm:$0xf0] %v3270_v47  ;;  %3297 = vst [vmem:[#allocation2 + $0x18] sm:$0xf0] %v3272_v45  ;;  %v3274_v40 = vrot.slane %v3254_v14, 4  ;;  %v3278_v35 = vrot.slane %v3256_v22, 4  ;;  %v3255_v33 = vmul.f32 %v8263_v44, %v3162_v27  ;;  %v3257_v20 = vmul.f32 %v8269_v28, %v3205_v18 }
0x1680   : > { %v3275_v11 = vsel %vm795_vm5, %v3269_v13, %v3274_v40  ;;  %v3279_v60 = vsel %vm795_vm5, %v3271_v34, %v3278_v35  ;;  %v3276_v63 = vrot.slane %v3255_v33, 4  ;;  %v3280_v36 = vrot.slane %v3257_v20, 4 }
0x1681   : > { %3299 = vst [vmem:[#allocation2 + $0x28] sm:$0x1f] %v3275_v11  ;;  %3301 = vst [vmem:[#allocation2 + $0x38] sm:$0x1f] %v3279_v60 }
0x1682   : > { %v3277_v61 = vsel %vm795_vm5, %v3270_v47, %v3276_v63  ;;  %v3281_v49 = vsel %vm795_vm5, %v3272_v45, %v3280_v36 }
0x1683   : > { %3300 = vst [vmem:[#allocation2 + $0x30] sm:$0x1f] %v3277_v61  ;;  %3302 = vst [vmem:[#allocation2 + $0x40] sm:$0x1f] %v3281_v49  ;;  %v3308_v50 = vld [vmem:[#allocation2] sm:$0xfe] }
0x1684   : > { %v3312_v46 = vrot.slane %v3308_v50, 1  ;;  %v3360_v4 = vld [vmem:[#allocation2 + $0x10] sm:$0xe0]  ;;  %v3304_v11 = vld [vmem:[#allocation2] sm:$0xff] }
0x1685   : > { %v3334_v29 = vld [vmem:[#allocation2 + $0x8] sm:$0xf8]  ;;  %v3364_v14 = vrot.slane %v3360_v4, 5  ;;  %v3386_v22 = vld [vmem:[#allocation2 + $0x18] sm:$0x80]  ;;  %v3306_v49 = vadd.f32 %v3304_v11, %v7775_v38 }
0x1686   : > { %v3338_v34 = vrot.slane %v3334_v29, 3  ;;  %v3390_v40 = vrot.slane %v3386_v22, 7  ;;  %v3323_v60 = vld [vmem:[#allocation2 + $0x8] sm:$0xfc] }
0x1687   : > { %v3242_v17 = vpop.f32.mrf.mxu0 }
0x1688   : > { %v3253_v62 = vmul.f32 %v8279_v57, %v3242_v17  ;;  %v3309_v16 = vld [vmem:[#allocation2 + $0x28] sm:$0x3]  ;;  %v3361_v25 = vld [vmem:[#allocation2 + $0x38] sm:$0x3f] }
0x1689   : > { %v6106_v39 = vpop.f32.mrf.mxu0  ;;  %v3313_v42 = vrot.slane %v3309_v16, 1  ;;  %v3365_v10 = vrot.slane %v3361_v25, 5  ;;  %v3305_v33 = vld [vmem:[#allocation2 + $0x28] sm:$0x1]  ;;  %v3350_v50 = vld [vmem:[#allocation2 + $0x38] sm:$0x1f] }
0x168a   : > { %v3273_v59 = vrot.slane %v3253_v62, 4  ;;  %v3335_v37 = vld [vmem:[#allocation2 + $0x30] sm:$0xf]  ;;  %v3387_v45 = vld [vmem:[#allocation2 + $0x40] sm:$0xff]  ;;  %v3307_v63 = vadd.f32 %v3305_v33, %v7772_v7  ;;  %v3327_v16 = vrot.slane %v3323_v60, 2 }
0x168b   : > { %v3245_v32 = vpop.f32.mrf.mxu0  ;;  %3317 = vrot.lane.b32.xlu1 %v3313_v42, %s6764_s24  ;;  %v3314_v41 = vsel %vm850_vm6, %v3312_v46, %v3313_v42  ;;  %v3339_v12 = vrot.slane %v3335_v37, 3  ;;  %v3366_v27 = vsel %vm905_vm8, %v3364_v14, %v3365_v10  ;;  %v3391_v18 = vrot.slane %v3387_v45, 7  ;;  %v3324_v20 = vld [vmem:[#allocation2 + $0x30] sm:$0x7]  ;;  %v3349_v42 = vld [vmem:[#allocation2 + $0x10] sm:$0xf0] }
0x168c   : > { %v3258_v23 = vmul.f32 %v8287_v21, %v3245_v32  ;;  %3315 = vrot.lane.b32.xlu0 %v3314_v41, %s6764_s24  ;;  %v3328_v36 = vrot.slane %v3324_v20, 2  ;;  %v3354_v37 = vrot.slane %v3350_v50, 4  ;;  %v3376_v41 = vld [vmem:[#allocation2 + $0x40] sm:$0x7f]  ;;  %v3353_v7 = vrot.slane %v3349_v42, 4 }
0x168d   : > { %v6107_v13 = vpop.f32.mrf.mxu0  ;;  %v3340_v31 = vsel %vm878_vm7, %v3338_v34, %v3339_v12  ;;  %v3392_v35 = vsel %vm933_vm9, %v3390_v40, %v3391_v18 }
0x168e   : > { %v3282_v26 = vrot.slane %v3258_v23, 4  ;;  %v3375_v13 = vld [vmem:[#allocation2 + $0x18] sm:$0xc0]  ;;  %v3355_v38 = vsel %vm795_vm5, %v3353_v7, %v3354_v37 }
0x168f   : > { %3343 = vrot.lane.b32.xlu1 %v3339_v12, %s6764_s24  ;;  %v3379_v45 = vrot.slane %v3375_v13, 6 }
0x1690   : > { %v3283_v47 = vsel %vm795_vm5, %v3273_v59, %v3282_v26  ;;  %3341 = vrot.lane.b32.xlu0 %v3340_v31, %s6764_s24  ;;  %v3329_v59 = vsel %vm866_vm11, %v3327_v16, %v3328_v36  ;;  %v3380_v26 = vrot.slane %v3376_v41, 6 }
0x1691   : > { %3303 = vst.msk [vmem:[#allocation2 + $0x48] sm:$0x1f] %vm831_vm10, %v3283_v47 }
0x1693   : > { %3369 = vrot.lane.b32.xlu1 %v3365_v10, %s6764_s24 }
0x1694   : > { %3367 = vrot.lane.b32.xlu0 %v3366_v27, %s6764_s24  ;;  %v3381_v27 = vsel %vm921_vm12, %v3379_v45, %v3380_v26  ;;  %v6506_v45 = vld [vmem:[%s9066_s2 + $0x7c] ss:$20 sps:$4 sm:$0xff]  }
0x1695   : > { %3670 = vmatprep.subr.bf16.mxu0 %v6506_v45  ;;  %v8424_v45 = vld [vmem:[%s9071_s7 + $0x60] sm:$0xff] }
0x1697   : > { %3395 = vrot.lane.b32.xlu1 %v3391_v18, %s6764_s24  ;;  %v3402_v18 = vld [vmem:[#allocation2 + $0x70] sm:$0x1] }
0x1698   : > { %3393 = vrot.lane.b32.xlu0 %v3392_v35, %s6764_s24 }
0x16fd   : > { %v3318_v61 = vpop.permute.xlu1 %3317 }
0x16fe   : > { %v3322_v17 = vadd.f32 %v3318_v61, %v3307_v63  ;;  %v3316_v62 = vpop.permute.xlu0 %3315  ;;  %v3401_v63 = vld [vmem:[#allocation2 + $0x48] sm:$0xff] }
0x16ff   : > { %v3321_v39 = vadd.f32 %v3316_v62, %v3306_v49 }
0x1700   : > { %v3333_v46 = vadd.f32 %v3328_v36, %v3322_v17 }
0x1701   : > { %v3344_v29 = vpop.permute.xlu1 %3343  ;;  %v3332_v32 = vadd.f32 %v3329_v59, %v3321_v39 }
0x1702   : > { %v3348_v12 = vadd.f32 %v3344_v29, %v3333_v46  ;;  %v3342_v23 = vpop.permute.xlu0 %3341 }
0x1703   : > { %v3347_v25 = vadd.f32 %v3342_v23, %v3332_v32 }
0x1704   : > { %v3359_v34 = vadd.f32 %v3354_v37, %v3348_v12 }
0x1705   : > { %v3370_v4 = vpop.permute.xlu1 %3369  ;;  %v3358_v31 = vadd.f32 %v3355_v38, %v3347_v25 }
0x1706   : > { %v3374_v10 = vadd.f32 %v3370_v4, %v3359_v34  ;;  %v3368_v47 = vpop.permute.xlu0 %3367 }
0x1707   : > { %v3373_v14 = vadd.f32 %v3368_v47, %v3358_v31  ;;  %v6504_v47 = vld [vmem:[%s9066_s2 + $0x78] ss:$20 sps:$4 sm:$0xff]  }
0x1708   : > { %v3385_v22 = vadd.f32 %v3380_v26, %v3374_v10  ;;  %3671 = vmatpush1.bf16.msra.mxu0 %v6504_v47  ;;  %v8417_v47 = vld [vmem:[%s9071_s7 + $0x68] sm:$0xff] }
0x1709   : > { %v3396_v40 = vpop.permute.xlu1 %3395  ;;  %v3384_v35 = vadd.f32 %v3381_v27, %v3373_v14  ;;  %v6507_v14 = vld [vmem:[%s9066_s2 + $0x88] ss:$20 sps:$4 sm:$0xff]   ;;  %v6511_v27 = vld [vmem:[%s9066_s2 + $0x60] ss:$20 sps:$4 sm:$0xff]  }
0x170a   : > { %v3400_v33 = vadd.f32 %v3396_v40, %v3385_v22  ;;  %v3394_v20 = vpop.permute.xlu0 %3393  ;;  %v6510_v22 = vld [vmem:[%s9066_s2 + $0x54] ss:$20 sps:$4 sm:$0xff]   ;;  %v6514_v40 = vld [vmem:[%s9066_s2 + $0x2c] ss:$20 sps:$4 sm:$0xff]  }
0x170b   : > { %v3399_v11 = vadd.f32 %v3394_v20, %v3384_v35  ;;  %3672 = vmatprep.subr.bf16.mxu0 %v6510_v22  ;;  %v6512_v35 = vld [vmem:[%s9066_s2 + $0x28] ss:$20 sps:$4 sm:$0xff]  }
0x170c   : > { %v8307_v60 = vadd.f32 %v3402_v18, %v3400_v33  ;;  %v6508_v18 = vld [vmem:[%s9066_s2 + $0x50] ss:$20 sps:$4 sm:$0xff]   ;;  %v8434_v22 = vld [vmem:[%s9071_s7 + $0x58] sm:$0xff] }
0x170d   : > { %v8309_v36 = vadd.f32 %v3401_v63, %v3399_v11  ;;  %3673 = vmatpush1.bf16.msra.mxu0 %v6508_v18  ;;  %v8449_v18 = vld [vmem:[%s9071_s7 + $0x48] sm:$0xff] }
0x170e   : > { %v3415_v61 = vmul.f32 %v8307_v60, %v8307_v60  ;;  %v3406_v29 = vsel %vm382_vm3, %v8307_v60, 0.0  ;;  %3674 = vmatprep.subr.bf16.mxu0 %v6514_v40  ;;  %v8457_v40 = vld [vmem:[%s9071_s7 + $0x40] sm:$0xff] }
0x170f   : > { %v3414_v49 = vmul.f32 %v8309_v36, %v8309_v36  ;;  %v3405_v32 = vsel %vm380_vm2, %v8309_v36, 0.0 }
0x1710   : > { %v3417_v50 = vsel %vm382_vm3, %v3415_v61, 0.0  ;;  %v3407_v41 = vadd.f32 %v3406_v29, %v3405_v32  ;;  %v6515_v61 = vld [vmem:[%s9066_s2 + $0x38] ss:$20 sps:$4 sm:$0xff]  }
0x1711   : > { %v3416_v17 = vsel %vm380_vm2, %v3414_v49, 0.0  ;;  %3675 = vmatpush1.bf16.msra.mxu0 %v6512_v35  ;;  %v6518_v49 = vld [vmem:[%s9066_s2 + $0x4] ss:$20 sps:$4 sm:$0xff]  }
0x1712   : > { %v3418_v62 = vadd.f32 %v3417_v50, %v3416_v17  ;;  %v3408_v12 = vrot.slane %v3407_v41, 4  ;;  %v6516_v50 = vld [vmem:[%s9066_s2] ss:$20 sps:$4 sm:$0xff]   ;;  %3676 = vmatprep.subr.bf16.mxu0 %v6518_v49  ;;  %v6519_v17 = vld [vmem:[%s9066_s2 + $0x10] ss:$20 sps:$4 sm:$0xff]   ;;  %v8469_v35 = vld [vmem:[%s9071_s7 + $0x38] sm:$0xff] }
0x1713   : > { %v8523_v49 = vld [vmem:[%s9071_s7 + $0x8] sm:$0xff] }
0x1714   : > { %v3419_v16 = vrot.slane %v3418_v62, 4  ;;  %v3409_v23 = vadd.f32 %v3408_v12, %v3407_v41 }
0x1715   : > { %3677 = vmatpush1.bf16.msra.mxu0 %v6516_v50  ;;  %v8532_v50 = vld [vmem:[%s9071_s7] sm:$0xff] }
0x1716   : > { %v3420_v39 = vadd.f32 %v3419_v16, %v3418_v62  ;;  %v3410_v7 = vrot.slane %v3409_v23, 2  ;;  %v6522_v62 = vld [vmem:[%s9066_s2 + $0x84] ss:$20 sps:$4 sm:$0xff]  }
0x1717   : > { %3713 = vmatprep.subr.bf16.mxu0 %v6522_v62 }
0x1718   : > { %v3421_v42 = vrot.slane %v3420_v39, 2  ;;  %v3411_v25 = vadd.f32 %v3410_v7, %v3409_v23 }
0x171a   : > { %v3422_v46 = vadd.f32 %v3421_v42, %v3420_v39  ;;  %v3412_v13 = vrot.slane %v3411_v25, 1 }
0x171c   : > { %v3423_v59 = vrot.slane %v3422_v46, 1  ;;  %v3413_v34 = vadd.f32 %v3412_v13, %v3411_v25  ;;  %v6520_v13 = vld [vmem:[%s9066_s2 + $0x80] ss:$20 sps:$4 sm:$0xff]  }
0x171e   : > { %v3424_v37 = vadd.f32 %v3423_v59, %v3422_v46 }
0x1720   : > { %3426 = vrot.lane.b32.xlu0 %v3424_v37, %s6764_s24 }
0x1792   : > { %v3427_v38 = vpop.permute.xlu0 %3426 }
0x1793   : > { %v3429_v26 = vsel %vm380_vm2, %v3413_v34, %v3427_v38  ;;  %v6528_v38 = vld [vmem:[%s9066_s2 + $0x34] ss:$20 sps:$4 sm:$0xff]  }
0x1794   : > { %6141 = vmatmul.mubr.f32.vlgmr.msra.gmra.mxu1 %v3429_v26  ;;  %v8395_v26 = vld [vmem:[%s9071_s7 + $0x78] sm:$0xff] }
0x1795   : > { %6151 = vmatprep.mubr.msk.bf16.mxu1 %vm6763_vm4, %v6762_v8  ;;  %6144 = vmatpush3.bf16.msra.mxu1 %v6507_v14  ;;  %v6529_v14 = vld [vmem:[%s9066_s2 + $0x8] ss:$20 sps:$4 sm:$0xff]  }
0x1796   : > { %6145 = vmatprep.subr.bf16.mxu1 %v6762_v8 }
0x1799   : > { %6146 = vmatpush3.bf16.msra.mxu1 %v6511_v27  ;;  %v8441_v27 = vld [vmem:[%s9071_s7 + $0x50] sm:$0xff] }
0x179a   : > { %6147 = vmatprep.subr.bf16.mxu1 %v6762_v8 }
0x179d   : > { %6148 = vmatpush3.bf16.msra.mxu1 %v6515_v61  ;;  %v8514_v61 = vld [vmem:[%s9071_s7 + $0x10] sm:$0xff] }
0x179e   : > { %6149 = vmatprep.subr.bf16.mxu1 %v6762_v8 }
0x17a1   : > { %6150 = vmatpush3.bf16.msra.mxu1 %v6519_v17 }
0x17a2   : > { %6190 = vmatprep.subr.mxu1 %v6762_v8 }
0x1854   : > { %v3496_v4 = vpop.f32.mrf.mxu1 }
0x1855   : > { %v3500_v31 = vmul.f32 %v3496_v4, %v3496_v4  ;;  %v3512_v46 = vrot.slane %v3496_v4, %v7028_v5 }
0x1856   : > { %v6142_v10 = vpop.f32.mrf.mxu1 }
0x1857   : > { %3502 = vrot.lane.b32.xlu1 %v3500_v31, %s6764_s24  ;;  %v3513_v59 = vsub.f32 %v8309_v36, %v3512_v46  ;;  %v3514_v37 = vsub.f32 %v8307_v60, %v3512_v46  ;;  %v6525_v36 = vld [vmem:[%s9066_s2 + $0x5c] ss:$20 sps:$4 sm:$0xff]   ;;  %v6523_v60 = vld [vmem:[%s9066_s2 + $0x58] ss:$20 sps:$4 sm:$0xff]  }
0x1858   : > { %v6526_v31 = vld [vmem:[%s9066_s2 + $0x30] ss:$20 sps:$4 sm:$0xff]   ;;  %v6531_v10 = vld [vmem:[%s9066_s2 + $0xc] ss:$20 sps:$4 sm:$0xff]  }
0x18c9   : > { %v3503_v33 = vpop.permute.xlu1 %3502 }
0x18ca   : > { %v3505_v20 = vsub.f32 %v3496_v4, %v3503_v33  ;;  %v8404_v4 = vld [vmem:[%s9071_s7 + $0x70] sm:$0xff] }
0x18cb   : > { %v8478_v33 = vld [vmem:[%s9071_s7 + $0x30] sm:$0xff] }
0x18cc   : > { %v3506_v11 = vmax.f32 %v3505_v20, 0.0  ;;  %v8487_v20 = vld [vmem:[%s9071_s7 + $0x28] sm:$0xff] }
0x18ce   : > { %v3507_v63 = vadd.f32 1e-05, %v3506_v11  ;;  %v8496_v11 = vld [vmem:[%s9071_s7 + $0x20] sm:$0xff] }
0x18d0   : > { %6602 = vrsqrt.f32 %v3507_v63  ;;  %v8505_v63 = vld [vmem:[%s9071_s7 + $0x18] sm:$0xff] }
0x18dd   : > { %v6603_v16 = vpop.eup %6602 }
0x18de   : > { %v3515_v39 = vmul.f32 %v6603_v16, %v7284_v56 }
0x18e0   : > { %v3519_v42 = vrot.slane %v3515_v39, %v7028_v5 }
0x18e2   : > { %3521 = vrot.lane.b32.xlu0 %v3519_v42, %s6764_s24 }
0x1954   : > { %v3522_v29 = vpop.permute.xlu0 %3521 }
0x1955   : > { %v3524_v32 = vmul.f32 %v3522_v29, %v3513_v59  ;;  %v3525_v41 = vmul.f32 %v3522_v29, %v3514_v37 }
0x1957   : > { %v3526_v12 = vadd.f32 %v3524_v32, %v7293_v2  ;;  %v3527_v23 = vadd.f32 %v3525_v41, %v7293_v2 }
0x1959   : > { %v3528_v7 = vmax.f32 %v3526_v12, 0.0  ;;  %v3529_v25 = vmax.f32 %v3527_v23, 0.0 }
0x195b   : > { %v3530_v34 = vpack.c.bf16 %v3529_v25, %v3528_v7 }
0x195d   : > { %5506 = vmatmul.mubr.msk.bf16.vlgmr.msra.gmra.mxu0 %vm380_vm2, %v3530_v34  ;;  %6152 = vmatmul.mubr.msk.bf16.vlgmr.msra.gmra.mxu1 %vm380_vm2, %v3530_v34 }
0x195e   : > { %3714 = vmatpush1.bf16.msra.mxu0 %v6520_v13  ;;  %3737 = vmatprep.mubr.bf16.mxu0 %v6765_v0 }
0x195f   : > { %3715 = vmatprep.subr.bf16.mxu0 %v6525_v36  ;;  %6191 = vmatpush3.msra.mxu1 %v8395_v26 }
0x1960   : > { %6192 = vmatprep.subr.mxu1 %v6762_v8  ;;  %6222 = vmatprep.mubr.msk.f32.mxu1 %vm6763_vm4, %v6762_v8 }
0x1961   : > { %6193 = vmatpush3.msra.mxu1 %v8404_v4 }
0x1962   : > { %3716 = vmatpush1.bf16.msra.mxu0 %v6523_v60  ;;  %6194 = vmatprep.subr.mxu1 %v6762_v8 }
0x1963   : > { %3717 = vmatprep.subr.bf16.mxu0 %v6528_v38  ;;  %6195 = vmatpush3.msra.mxu1 %v8417_v47 }
0x1964   : > { %6196 = vmatprep.subr.mxu1 %v6762_v8 }
0x1965   : > { %6197 = vmatpush3.msra.mxu1 %v8424_v45 }
0x1966   : > { %3718 = vmatpush1.bf16.msra.mxu0 %v6526_v31  ;;  %6198 = vmatprep.subr.mxu1 %v6762_v8 }
0x1967   : > { %3719 = vmatprep.subr.bf16.mxu0 %v6531_v10  ;;  %6199 = vmatpush3.msra.mxu1 %v8434_v22 }
0x1968   : > { %6200 = vmatprep.subr.mxu1 %v6762_v8 }
0x1969   : > { %6201 = vmatpush3.msra.mxu1 %v8441_v27 }
0x196a   : > { %3720 = vmatpush1.bf16.msra.mxu0 %v6529_v14  ;;  %6202 = vmatprep.subr.mxu1 %v6762_v8 }
0x196b   : > { %6155 = vmatprep.subr.mxu0 %v6762_v8  ;;  %6203 = vmatpush3.msra.mxu1 %v8449_v18 }
0x196c   : > { %6204 = vmatprep.subr.mxu1 %v6762_v8 }
0x196d   : > { %5507 = vmatmul.mubr.msk.bf16.vlgmr.msra.gmra.mxu0 %vm380_vm2, %v3530_v34  ;;  %6205 = vmatpush3.msra.mxu1 %v8457_v40 }
0x196e   : > { %6156 = vmatpush3.msra.mxu0 %v8395_v26  ;;  %6187 = vmatprep.mubr.msk.f32.mxu0 %vm6763_vm4, %v6762_v8 }
0x196f   : > { %6157 = vmatprep.subr.mxu0 %v6762_v8  ;;  %6206 = vmatprep.subr.mxu1 %v6762_v8 }
0x1970   : > { %6158 = vmatpush3.msra.mxu0 %v8404_v4  ;;  %6207 = vmatpush3.msra.mxu1 %v8469_v35 }
0x1971   : > { %6159 = vmatprep.subr.mxu0 %v6762_v8  ;;  %6208 = vmatprep.subr.mxu1 %v6762_v8 }
0x1972   : > { %6160 = vmatpush3.msra.mxu0 %v8417_v47  ;;  %6209 = vmatpush3.msra.mxu1 %v8478_v33 }
0x1973   : > { %6161 = vmatprep.subr.mxu0 %v6762_v8  ;;  %6210 = vmatprep.subr.mxu1 %v6762_v8 }
0x1974   : > { %6162 = vmatpush3.msra.mxu0 %v8424_v45  ;;  %6211 = vmatpush3.msra.mxu1 %v8487_v20 }
0x1975   : > { %6163 = vmatprep.subr.mxu0 %v6762_v8  ;;  %6212 = vmatprep.subr.mxu1 %v6762_v8 }
0x1976   : > { %6164 = vmatpush3.msra.mxu0 %v8434_v22  ;;  %6213 = vmatpush3.msra.mxu1 %v8496_v11 }
0x1977   : > { %6165 = vmatprep.subr.mxu0 %v6762_v8  ;;  %6214 = vmatprep.subr.mxu1 %v6762_v8 }
0x1978   : > { %6166 = vmatpush3.msra.mxu0 %v8441_v27  ;;  %6215 = vmatpush3.msra.mxu1 %v8505_v63 }
0x1979   : > { %6167 = vmatprep.subr.mxu0 %v6762_v8  ;;  %6216 = vmatprep.subr.mxu1 %v6762_v8 }
0x197a   : > { %6168 = vmatpush3.msra.mxu0 %v8449_v18  ;;  %6217 = vmatpush3.msra.mxu1 %v8514_v61 }
0x197b   : > { %6169 = vmatprep.subr.mxu0 %v6762_v8  ;;  %6218 = vmatprep.subr.mxu1 %v6762_v8 }
0x197c   : > { %6170 = vmatpush3.msra.mxu0 %v8457_v40  ;;  %6219 = vmatpush3.msra.mxu1 %v8523_v49 }
0x197d   : > { %6171 = vmatprep.subr.mxu0 %v6762_v8  ;;  %6220 = vmatprep.subr.mxu1 %v6762_v8 }
0x197e   : > { %6172 = vmatpush3.msra.mxu0 %v8469_v35  ;;  %6221 = vmatpush3.msra.mxu1 %v8532_v50 }
0x197f   : > { %6173 = vmatprep.subr.mxu0 %v6762_v8 }
0x1980   : > { %6174 = vmatpush3.msra.mxu0 %v8478_v33 }
0x1981   : > { %6175 = vmatprep.subr.mxu0 %v6762_v8 }
0x1982   : > { %6176 = vmatpush3.msra.mxu0 %v8487_v20 }
0x1983   : > { %6177 = vmatprep.subr.mxu0 %v6762_v8 }
0x1984   : > { %6178 = vmatpush3.msra.mxu0 %v8496_v11 }
0x1985   : > { %6179 = vmatprep.subr.mxu0 %v6762_v8 }
0x1986   : > { %6180 = vmatpush3.msra.mxu0 %v8505_v63 }
0x1987   : > { %6181 = vmatprep.subr.mxu0 %v6762_v8 }
0x1988   : > { %6182 = vmatpush3.msra.mxu0 %v8514_v61 }
0x1989   : > { %6183 = vmatprep.subr.mxu0 %v6762_v8 }
0x198a   : > { %6184 = vmatpush3.msra.mxu0 %v8523_v49 }
0x198b   : > { %6185 = vmatprep.subr.mxu0 %v6762_v8 }
0x198c   : > { %6186 = vmatpush3.msra.mxu0 %v8532_v50 }
0x1a1d   : > { %v3696_v17 = vpop.f32.mrf.mxu0  ;;  %v3782_v62 = vpop.f32.mrf.mxu1 }
0x1a1e   : > { %v3789_v16 = vmul.f32 %v8227_v6, %v3696_v17  ;;  %v3793_v39 = vmul.f32 %v8279_v57, %v3782_v62 }
0x1a1f   : > { %v3698_v42 = vpop.f32.mrf.mxu0  ;;  %v6153_v46 = vpop.f32.mrf.mxu1 }
0x1a20   : > { %v3809_v59 = vrot.slane %v3789_v16, 4  ;;  %v3813_v37 = vrot.slane %v3793_v39, 4  ;;  %v3790_v29 = vmul.f32 %v8239_v52, %v3698_v42 }
0x1a21   : > { %v3700_v32 = vpop.f32.mrf.mxu0  ;;  %v3785_v41 = vpop.f32.mrf.mxu1 }
0x1a22   : > { %3834 = vst [vmem:[#allocation2] sm:$0xf0] %v3809_v59  ;;  %v3810_v12 = vrot.slane %v3790_v29, 4  ;;  %v3794_v23 = vmul.f32 %v8251_v9, %v3700_v32  ;;  %v3798_v7 = vmul.f32 %v8287_v21, %v3785_v41 }
0x1a23   : > { %v3702_v25 = vpop.f32.mrf.mxu0  ;;  %v6154_v13 = vpop.f32.mrf.mxu1 }
0x1a24   : > { %3835 = vst [vmem:[#allocation2 + $0x8] sm:$0xf0] %v3810_v12  ;;  %v3814_v6 = vrot.slane %v3794_v23, 4  ;;  %v3822_v34 = vrot.slane %v3798_v7, 4  ;;  %v3795_v57 = vmul.f32 %v8263_v44, %v3702_v25 }
0x1a26   : > { %v3815_v36 = vsel %vm795_vm5, %v3809_v59, %v3814_v6  ;;  %v3823_v60 = vsel %vm795_vm5, %v3813_v37, %v3822_v34  ;;  %v3816_v52 = vrot.slane %v3795_v57, 4 }
0x1a27   : > { %3839 = vst [vmem:[#allocation2 + $0x28] sm:$0x1f] %v3815_v36  ;;  %3843 = vst.msk [vmem:[#allocation2 + $0x48] sm:$0x1f] %vm831_vm10, %v3823_v60 }
0x1a28   : > { %v3817_v38 = vsel %vm795_vm5, %v3810_v12, %v3816_v52 }
0x1a29   : > { %3840 = vst [vmem:[#allocation2 + $0x30] sm:$0x1f] %v3817_v38  ;;  %v3848_v9 = vld [vmem:[#allocation2] sm:$0xfe] }
0x1a2a   : > { %v3852_v62 = vrot.slane %v3848_v9, 1 }
0x1a2b   : > { %v3874_v42 = vld [vmem:[#allocation2 + $0x8] sm:$0xf8] }
0x1a2c   : > { %v3878_v41 = vrot.slane %v3874_v42, 3 }
0x1a2d   : > { %v3739_v21 = vpop.f32.mrf.mxu0 }
0x1a2e   : > { %v3791_v31 = vmul.f32 %v8233_v19, %v3739_v21  ;;  %v3849_v10 = vld [vmem:[#allocation2 + $0x28] sm:$0x3] }
0x1a2f   : > { %v3741_v14 = vpop.f32.mrf.mxu0  ;;  %v3853_v17 = vrot.slane %v3849_v10, 1  ;;  %v3845_v21 = vld [vmem:[#allocation2 + $0x28] sm:$0x1] }
0x1a30   : > { %v3811_v44 = vrot.slane %v3791_v31, 4  ;;  %v3792_v16 = vmul.f32 %v8245_v3, %v3741_v14  ;;  %v3875_v39 = vld [vmem:[#allocation2 + $0x30] sm:$0xf]  ;;  %v3844_v31 = vld [vmem:[#allocation2] sm:$0xff] }
0x1a31   : > { %v3743_v46 = vpop.f32.mrf.mxu0  ;;  %3857 = vrot.lane.b32.xlu0 %v3853_v17, %s6764_s24  ;;  %v3854_v59 = vsel %vm850_vm6, %v3852_v62, %v3853_v17  ;;  %v3879_v37 = vrot.slane %v3875_v39, 3  ;;  %v3864_v14 = vld [vmem:[#allocation2 + $0x30] sm:$0x7]  ;;  %v3847_v17 = vadd.f32 %v3845_v21, %v8061_v54 }
0x1a32   : > { %3836 = vst [vmem:[#allocation2 + $0x10] sm:$0xf0] %v3811_v44  ;;  %v3812_v29 = vrot.slane %v3792_v16, 4  ;;  %v3796_v32 = vmul.f32 %v8257_v24, %v3743_v46  ;;  %3855 = vrot.lane.b32.xlu1 %v3854_v59, %s6764_s24  ;;  %v3863_v16 = vld [vmem:[#allocation2 + $0x8] sm:$0xfc]  ;;  %v3868_v42 = vrot.slane %v3864_v14, 2 }
0x1a33   : > { %v3745_v19 = vpop.f32.mrf.mxu0  ;;  %v3880_v23 = vsel %vm878_vm7, %v3878_v41, %v3879_v37  ;;  %v3867_v59 = vrot.slane %v3863_v16, 2 }
0x1a34   : > { %3837 = vst [vmem:[#allocation2 + $0x18] sm:$0xf0] %v3812_v29  ;;  %v3818_v12 = vrot.slane %v3796_v32, 4  ;;  %v3797_v3 = vmul.f32 %v8269_v28, %v3745_v19 }
0x1a35   : > { %3883 = vrot.lane.b32.xlu0 %v3879_v37, %s6764_s24 }
0x1a36   : > { %v3819_v7 = vsel %vm795_vm5, %v3811_v44, %v3818_v12  ;;  %v3820_v25 = vrot.slane %v3797_v3, 4  ;;  %3881 = vrot.lane.b32.xlu1 %v3880_v23, %s6764_s24  ;;  %v3846_v44 = vadd.f32 %v3844_v31, %v8064_v58  ;;  %v3942_v31 = vld [vmem:[#allocation2 + $0x70] sm:$0x1] }
0x1a37   : > { %3841 = vst [vmem:[#allocation2 + $0x38] sm:$0x1f] %v3819_v7 }
0x1a38   : > { %v3821_v24 = vsel %vm795_vm5, %v3812_v29, %v3820_v25  ;;  %v3869_v29 = vsel %vm866_vm11, %v3867_v59, %v3868_v42 }
0x1a39   : > { %3842 = vst [vmem:[#allocation2 + $0x40] sm:$0x1f] %v3821_v24  ;;  %v3900_v13 = vld [vmem:[#allocation2 + $0x10] sm:$0xe0] }
0x1a3a   : > { %v3904_v57 = vrot.slane %v3900_v13, 5  ;;  %v3889_v3 = vld [vmem:[#allocation2 + $0x10] sm:$0xf0] }
0x1a3b   : > { %v3926_v60 = vld [vmem:[#allocation2 + $0x18] sm:$0x80]  ;;  %v3893_v24 = vrot.slane %v3889_v3, 4 }
0x1a3c   : > { %v3930_v38 = vrot.slane %v3926_v60, 7  ;;  %v3915_v13 = vld [vmem:[#allocation2 + $0x18] sm:$0xc0] }
0x1a3e   : > { %v3901_v6 = vld [vmem:[#allocation2 + $0x38] sm:$0x3f] }
0x1a3f   : > { %v3905_v34 = vrot.slane %v3901_v6, 5  ;;  %v3890_v41 = vld [vmem:[#allocation2 + $0x38] sm:$0x1f] }
0x1a40   : > { %v3927_v36 = vld [vmem:[#allocation2 + $0x40] sm:$0xff]  ;;  %v3894_v7 = vrot.slane %v3890_v41, 4 }
0x1a41   : > { %3909 = vrot.lane.b32.xlu0 %v3905_v34, %s6764_s24  ;;  %v3906_v28 = vsel %vm905_vm8, %v3904_v57, %v3905_v34  ;;  %v3931_v52 = vrot.slane %v3927_v36, 7  ;;  %v3916_v54 = vld [vmem:[#allocation2 + $0x40] sm:$0x7f] }
0x1a42   : > { %3907 = vrot.lane.b32.xlu1 %v3906_v28, %s6764_s24  ;;  %v3895_v6 = vsel %vm795_vm5, %v3893_v24, %v3894_v7  ;;  %v3920_v34 = vrot.slane %v3916_v54, 6 }
0x1a43   : > { %v3932_v9 = vsel %vm933_vm9, %v3930_v38, %v3931_v52 }
0x1a45   : > { %3935 = vrot.lane.b32.xlu0 %v3931_v52, %s6764_s24  ;;  %v3919_v52 = vrot.slane %v3915_v13, 6 }
0x1a46   : > { %3933 = vrot.lane.b32.xlu1 %v3932_v9, %s6764_s24 }
0x1a47   : > { %v3921_v21 = vsel %vm921_vm12, %v3919_v52, %v3920_v34 }
0x1aa3   : > { %v3858_v10 = vpop.permute.xlu0 %3857 }
0x1aa4   : > { %v3856_v62 = vpop.permute.xlu1 %3855  ;;  %v3862_v39 = vadd.f32 %v3858_v10, %v3847_v17 }
0x1aa5   : > { %v3861_v46 = vadd.f32 %v3856_v62, %v3846_v44 }
0x1aa6   : > { %v3873_v37 = vadd.f32 %v3868_v42, %v3862_v39  ;;  %v3941_v39 = vld [vmem:[#allocation2 + $0x48] sm:$0xff] }
0x1aa7   : > { %v3884_v32 = vpop.permute.xlu0 %3883  ;;  %v3872_v19 = vadd.f32 %v3869_v29, %v3861_v46 }
0x1aa8   : > { %v3882_v12 = vpop.permute.xlu1 %3881  ;;  %v3888_v23 = vadd.f32 %v3884_v32, %v3873_v37 }
0x1aa9   : > { %v3887_v25 = vadd.f32 %v3882_v12, %v3872_v19 }
0x1aaa   : > { %v3899_v58 = vadd.f32 %v3894_v7, %v3888_v23 }
0x1aab   : > { %v3898_v36 = vadd.f32 %v3895_v6, %v3887_v25 }
0x1ab3   : > { %v3910_v57 = vpop.permute.xlu0 %3909 }
0x1ab4   : > { %v3914_v60 = vadd.f32 %v3910_v57, %v3899_v58  ;;  %v3908_v28 = vpop.permute.xlu1 %3907 }
0x1ab5   : > { %v3913_v38 = vadd.f32 %v3908_v28, %v3898_v36 }
0x1ab6   : > { %v3925_v9 = vadd.f32 %v3920_v34, %v3914_v60 }
0x1ab7   : > { %v3936_v10 = vpop.permute.xlu0 %3935  ;;  %v3924_v14 = vadd.f32 %v3921_v21, %v3913_v38 }
0x1ab8   : > { %v3940_v17 = vadd.f32 %v3936_v10, %v3925_v9  ;;  %v3934_v62 = vpop.permute.xlu1 %3933 }
0x1ab9   : > { %v3939_v44 = vadd.f32 %v3934_v62, %v3924_v14 }
0x1aba   : > { %v3944_v16 = vadd.f32 %v3942_v31, %v3940_v17 }
0x1abb   : > { %v3943_v42 = vadd.f32 %v3941_v39, %v3939_v44 }
0x1abc   : > { %v3955_v46 = vmul.f32 %v3944_v16, %v3944_v16  ;;  %v3946_v25 = vsel %vm382_vm3, %v3944_v16, 0.0 }
0x1abd   : > { %v3954_v59 = vmul.f32 %v3943_v42, %v3943_v42  ;;  %v3945_v54 = vsel %vm380_vm2, %v3943_v42, 0.0 }
0x1abe   : > { %v3957_v37 = vsel %vm382_vm3, %v3955_v46, 0.0  ;;  %v3947_v24 = vadd.f32 %v3946_v25, %v3945_v54  ;;  %v6689_v25 = vld [vmem:[%s6849_s18] sm:$0xff] }
0x1abf   : > { %v3956_v29 = vsel %vm380_vm2, %v3954_v59, 0.0 }
0x1ac0   : > { %v3958_v32 = vadd.f32 %v3957_v37, %v3956_v29  ;;  %v3948_v13 = vrot.slane %v3947_v24, 4 }
0x1ac2   : > { %v3959_v19 = vrot.slane %v3958_v32, 4  ;;  %v3949_v58 = vadd.f32 %v3948_v13, %v3947_v24  ;;  %v6690_v24 = vld [vmem:[%s6849_s18 + $0x8] sm:$0x1] }
0x1ac4   : > { %v3960_v41 = vadd.f32 %v3959_v19, %v3958_v32  ;;  %v3950_v6 = vrot.slane %v3949_v58, 2 }
0x1ac6   : > { %v3961_v12 = vrot.slane %v3960_v41, 2  ;;  %v3951_v34 = vadd.f32 %v3950_v6, %v3949_v58 }
0x1ac8   : > { %v3962_v3 = vadd.f32 %v3961_v12, %v3960_v41  ;;  %v3952_v57 = vrot.slane %v3951_v34, 1 }
0x1aca   : > { %v3963_v23 = vrot.slane %v3962_v3, 1  ;;  %v3953_v36 = vadd.f32 %v3952_v57, %v3951_v34 }
0x1acc   : > { %v3964_v7 = vadd.f32 %v3963_v23, %v3962_v3 }
0x1ace   : > { %3966 = vrot.lane.b32.xlu1 %v3964_v7, %s6764_s24 }
0x1b40   : > { %v3967_v60 = vpop.permute.xlu1 %3966 }
0x1b41   : > { %v3969_v28 = vsel %vm380_vm2, %v3953_v36, %v3967_v60 }
0x1b42   : > { %6188 = vmatmul.mubr.f32.vlgmr.msra.gmra.mxu0 %v3969_v28 }
0x1b43   : > { %4366 = vmatprep.mubr.bf16.mxu0 %v6765_v0 }
0x1c02   : > { %v4036_v52 = vpop.f32.mrf.mxu0 }
0x1c03   : > { %v4040_v38 = vmul.f32 %v4036_v52, %v4036_v52  ;;  %v4052_v39 = vrot.slane %v4036_v52, %v7028_v5 }
0x1c04   : > { %v6189_v9 = vpop.f32.mrf.mxu0 }
0x1c05   : > { %4042 = vrot.lane.b32.xlu0 %v4040_v38, %s6764_s24  ;;  %v4053_v46 = vsub.f32 %v3943_v42, %v4052_v39  ;;  %v4054_v59 = vsub.f32 %v3944_v16, %v4052_v39 }
0x1c77   : > { %v4043_v21 = vpop.permute.xlu0 %4042 }
0x1c78   : > { %v4045_v31 = vsub.f32 %v4036_v52, %v4043_v21 }
0x1c7a   : > { %v4046_v10 = vmax.f32 %v4045_v31, 0.0 }
0x1c7c   : > { %v4047_v14 = vadd.f32 1e-05, %v4046_v10 }
0x1c7e   : > { %6604 = vrsqrt.f32 %v4047_v14 }
0x1c8b   : > { %v6605_v17 = vpop.eup %6604 }
0x1c8c   : > { %v4055_v62 = vmul.f32 %v6605_v17, %v7531_v55 }
0x1c8e   : > { %v4059_v44 = vrot.slane %v4055_v62, %v7028_v5 }
0x1c90   : > { %4061 = vrot.lane.b32.xlu1 %v4059_v44, %s6764_s24 }
0x1d02   : > { %v4062_v37 = vpop.permute.xlu1 %4061 }
0x1d03   : > { %v4064_v29 = vmul.f32 %v4062_v37, %v4053_v46  ;;  %v4065_v32 = vmul.f32 %v4062_v37, %v4054_v59 }
0x1d05   : > { %v4066_v19 = vadd.f32 %v4064_v29, %v7539_v48  ;;  %v4067_v41 = vadd.f32 %v4065_v32, %v7539_v48 }
0x1d07   : > { %v4068_v12 = vmul.f32 0.041666668, %v4066_v19  ;;  %v4069_v3 = vmul.f32 0.041666668, %v4067_v41  ;;  %v4073_v23 = vmul.f32 0.125, %v4066_v19  ;;  %v4074_v7 = vmul.f32 0.125, %v4067_v41 }
0x1d08   : > { %v6532_v19 = vld [vmem:[%s9065_s1 + $0x78] ss:$20 sps:$4 sm:$0xff]   ;;  %v6534_v41 = vld [vmem:[%s9065_s1 + $0x7c] ss:$20 sps:$4 sm:$0xff]  }
0x1d09   : > { %v8597_v54 = vadd.f32 %v6689_v25, %v4073_v23  ;;  %v8600_v13 = vadd.f32 %v6690_v24, %v4074_v7  ;;  %v8603_v42 = vadd.f32 %v4068_v12, %v8089_v30  ;;  %v8606_v16 = vadd.f32 %v4069_v3, %v8091_v53  ;;  %v6535_v12 = vld [vmem:[%s9065_s1 + $0x80] ss:$20 sps:$4 sm:$0xff]   ;;  %v6537_v3 = vld [vmem:[%s9065_s1 + $0x84] ss:$20 sps:$4 sm:$0xff]   ;;  %4342 = vmatprep.subr.bf16.mxu0 %v6534_v41  ;;  %v6543_v7 = vld [vmem:[%s9065_s1 + $0x5c] ss:$20 sps:$4 sm:$0xff]  }
0x1d0a   : > { %v6540_v23 = vld [vmem:[%s9065_s1 + $0x54] ss:$20 sps:$4 sm:$0xff]   ;;  %4343 = vmatpush1.bf16.msra.mxu0 %v6532_v19  ;;  %4385 = vmatprep.subr.bf16.mxu1 %v6537_v3  ;;  %v6538_v25 = vld [vmem:[%s9065_s1 + $0x50] ss:$20 sps:$4 sm:$0xff]   ;;  %v6541_v24 = vld [vmem:[%s9065_s1 + $0x58] ss:$20 sps:$4 sm:$0xff]  }
0x1d0b   : > { %v4086_v58 = vmul.f32 %v8597_v54, %v8597_v54  ;;  %v4087_v6 = vmul.f32 %v8600_v13, %v8600_v13  ;;  %v4077_v53 = vsel %vm380_vm2, %v8597_v54, 0.0  ;;  %v4078_v21 = vsel %vm382_vm3, %v8600_v13, 0.0  ;;  %4344 = vmatprep.subr.bf16.mxu0 %v6540_v23  ;;  %v8762_v3 = vld [vmem:[%s9067_s3 + $0x28] sm:$0x1] }
0x1d0c   : > { %v4079_v31 = vadd.f32 %v4078_v21, %v4077_v53  ;;  %v6553_v53 = vld [vmem:[%s9065_s1 + $0x8] ss:$20 sps:$4 sm:$0xff]  }
0x1d0d   : > { %v4088_v34 = vsel %vm380_vm2, %v4086_v58, 0.0  ;;  %v4089_v57 = vsel %vm382_vm3, %v4087_v6, 0.0  ;;  %v6546_v58 = vld [vmem:[%s9065_s1 + $0x2c] ss:$20 sps:$4 sm:$0xff]   ;;  %v6544_v6 = vld [vmem:[%s9065_s1 + $0x28] ss:$20 sps:$4 sm:$0xff]  }
0x1d0e   : > { %v4090_v36 = vadd.f32 %v4089_v57, %v4088_v34  ;;  %v4080_v10 = vrot.slane %v4079_v31, 4  ;;  %4345 = vmatpush1.bf16.msra.mxu0 %v6538_v25 }
0x1d0f   : > { %4346 = vmatprep.subr.bf16.mxu0 %v6546_v58 }
0x1d10   : > { %v4091_v60 = vrot.slane %v4090_v36, 4  ;;  %v4081_v14 = vadd.f32 %v4080_v10, %v4079_v31 }
0x1d12   : > { %v4092_v28 = vadd.f32 %v4091_v60, %v4090_v36  ;;  %v4082_v17 = vrot.slane %v4081_v14, 2  ;;  %4347 = vmatpush1.bf16.msra.mxu0 %v6544_v6 }
0x1d14   : > { %v4093_v52 = vrot.slane %v4092_v28, 2  ;;  %v4083_v62 = vadd.f32 %v4082_v17, %v4081_v14 }
0x1d16   : > { %v4094_v38 = vadd.f32 %v4093_v52, %v4092_v28  ;;  %v4084_v44 = vrot.slane %v4083_v62, 1  ;;  %v6549_v28 = vld [vmem:[%s9065_s1 + $0x34] ss:$20 sps:$4 sm:$0xff]   ;;  %v6547_v52 = vld [vmem:[%s9065_s1 + $0x30] ss:$20 sps:$4 sm:$0xff]  }
0x1d18   : > { %v4095_v30 = vrot.slane %v4094_v38, 1  ;;  %v4085_v39 = vadd.f32 %v4084_v44, %v4083_v62 }
0x1d1a   : > { %v4096_v9 = vadd.f32 %v4095_v30, %v4094_v38  ;;  %v6552_v38 = vld [vmem:[%s9065_s1 + $0x4] ss:$20 sps:$4 sm:$0xff]   ;;  %v6550_v30 = vld [vmem:[%s9065_s1] ss:$20 sps:$4 sm:$0xff]  }
0x1d1b   : > { %4348 = vmatprep.subr.bf16.mxu0 %v6552_v38 }
0x1d1c   : > { %4098 = vrot.lane.b32.xlu0 %v4096_v9, %s6764_s24  ;;  %v6555_v9 = vld [vmem:[%s9065_s1 + $0xc] ss:$20 sps:$4 sm:$0xff]   ;;  %4349 = vmatpush1.bf16.msra.mxu0 %v6550_v30 }
0x1d1d   : > { %6225 = vmatprep.subr.bf16.mxu0 %v6762_v8 }
0x1d8e   : > { %v4099_v46 = vpop.permute.xlu0 %4098 }
0x1d8f   : > { %v4101_v59 = vsel %vm380_vm2, %v4085_v39, %v4099_v46 }
0x1d90   : > { %6223 = vmatmul.mubr.f32.vlgmr.msra.gmra.mxu1 %v4101_v59 }
0x1d91   : > { %4409 = vmatprep.mubr.bf16.mxu1 %v6765_v0  ;;  %4386 = vmatpush1.bf16.msra.mxu1 %v6535_v12 }
0x1d92   : > { %4387 = vmatprep.subr.bf16.mxu1 %v6543_v7  ;;  %v8768_v7 = vld [vmem:[%s9067_s3 + $0x38] sm:$0x1] }
0x1d95   : > { %4388 = vmatpush1.bf16.msra.mxu1 %v6541_v24 }
0x1d96   : > { %4389 = vmatprep.subr.bf16.mxu1 %v6549_v28 }
0x1d99   : > { %4390 = vmatpush1.bf16.msra.mxu1 %v6547_v52 }
0x1d9a   : > { %4391 = vmatprep.subr.bf16.mxu1 %v6555_v9 }
0x1d9d   : > { %4392 = vmatpush1.bf16.msra.mxu1 %v6553_v53 }
0x1d9e   : > { %6237 = vmatprep.subr.mxu1 %v6762_v8 }
0x1e50   : > { %v4168_v37 = vpop.f32.mrf.mxu1 }
0x1e51   : > { %v4172_v29 = vmul.f32 %v4168_v37, %v4168_v37  ;;  %v4184_v14 = vrot.slane %v4168_v37, %v7028_v5 }
0x1e52   : > { %v6224_v32 = vpop.f32.mrf.mxu1 }
0x1e53   : > { %4174 = vrot.lane.b32.xlu1 %v4172_v29, %s6764_s24  ;;  %v4185_v17 = vsub.f32 %v8597_v54, %v4184_v14  ;;  %v4186_v62 = vsub.f32 %v8600_v13, %v4184_v14  ;;  %v6557_v54 = vld [vmem:[%s9065_s1 + $0x60] ss:$20 sps:$4 sm:$0xff]  }
0x1e54   : > { %v8790_v14 = vld [vmem:[%s9067_s3 + $0x20] sm:$0xff] }
0x1ec5   : > { %v4175_v34 = vpop.permute.xlu1 %4174 }
0x1ec6   : > { %v4177_v57 = vsub.f32 %v4168_v37, %v4175_v34 }
0x1ec8   : > { %v4178_v36 = vmax.f32 %v4177_v57, 0.0  ;;  %v8774_v57 = vld [vmem:[%s9067_s3 + $0x30] sm:$0x1] }
0x1eca   : > { %v4179_v60 = vadd.f32 1e-05, %v4178_v36 }
0x1ecc   : > { %6606 = vrsqrt.f32 %v4179_v60  ;;  %v8780_v60 = vld [vmem:[%s9067_s3 + $0x40] sm:$0x1] }
0x1ed9   : > { %v6607_v21 = vpop.eup %6606 }
0x1eda   : > { %v4187_v31 = vmul.f32 %v6607_v21, %v7025_v1  ;;  %v6556_v1 = vld [vmem:[%s9065_s1 + $0x88] ss:$20 sps:$4 sm:$0xff]  }
0x1edc   : > { %v4191_v10 = vrot.slane %v4187_v31, %v7028_v5 }
0x1ede   : > { %4193 = vrot.lane.b32.xlu0 %v4191_v10, %s6764_s24 }
0x1f50   : > { %v4194_v44 = vpop.permute.xlu0 %4193 }
0x1f51   : > { %v4196_v39 = vmul.f32 %v4194_v44, %v4185_v17  ;;  %v4197_v46 = vmul.f32 %v4194_v44, %v4186_v62 }
0x1f53   : > { %v4198_v59 = vadd.f32 %v4196_v39, %v7036_v15  ;;  %v4199_v29 = vadd.f32 %v4197_v46, %v7036_v15  ;;  %v6558_v15 = vld [vmem:[%s9065_s1 + $0x38] ss:$20 sps:$4 sm:$0xff]  }
0x1f55   : > { %v4200_v32 = vmax.f32 %v4198_v59, 0.0  ;;  %v4201_v19 = vmax.f32 %v4199_v29, 0.0 }
0x1f57   : > { %v4202_v41 = vpack.c.bf16 %v4201_v19, %v4200_v32 }
0x1f59   : > { %5529 = vmatmul.mubr.msk.bf16.vlgmr.msra.gmra.mxu0 %vm380_vm2, %v4202_v41  ;;  %5530 = vmatmul.mubr.msk.bf16.vlgmr.msra.gmra.mxu1 %vm380_vm2, %v4202_v41 }
0x1f5a   : > { %6226 = vmatpush3.bf16.msra.mxu0 %v6556_v1  ;;  %6233 = vmatprep.mubr.msk.bf16.mxu0 %vm6763_vm4, %v6762_v8 }
0x1f5b   : > { %6227 = vmatprep.subr.bf16.mxu0 %v6762_v8  ;;  %6238 = vmatpush3.msra.mxu1 %v8395_v26  ;;  %v6559_v26 = vld [vmem:[%s9065_s1 + $0x10] ss:$20 sps:$4 sm:$0xff]  }
0x1f5c   : > { %6239 = vmatprep.subr.mxu1 %v6762_v8  ;;  %6269 = vmatprep.mubr.msk.f32.mxu1 %vm6763_vm4, %v6762_v8 }
0x1f5d   : > { %6240 = vmatpush3.msra.mxu1 %v8404_v4 }
0x1f5e   : > { %6228 = vmatpush3.bf16.msra.mxu0 %v6557_v54  ;;  %6241 = vmatprep.subr.mxu1 %v6762_v8  ;;  %v8798_v54 = vld [vmem:[%s9067_s3 + $0x48] sm:$0x1] }
0x1f5f   : > { %6229 = vmatprep.subr.bf16.mxu0 %v6762_v8  ;;  %6242 = vmatpush3.msra.mxu1 %v8417_v47 }
0x1f60   : > { %6243 = vmatprep.subr.mxu1 %v6762_v8 }
0x1f61   : > { %6244 = vmatpush3.msra.mxu1 %v8424_v45  ;;  %v8738_v45 = vld [vmem:[%s9067_s3] sm:$0xff] }
0x1f62   : > { %6230 = vmatpush3.bf16.msra.mxu0 %v6558_v15  ;;  %6245 = vmatprep.subr.mxu1 %v6762_v8 }
0x1f63   : > { %6231 = vmatprep.subr.bf16.mxu0 %v6762_v8  ;;  %6246 = vmatpush3.msra.mxu1 %v8434_v22 }
0x1f64   : > { %6247 = vmatprep.subr.mxu1 %v6762_v8 }
0x1f65   : > { %6248 = vmatpush3.msra.mxu1 %v8441_v27  ;;  %v8744_v27 = vld [vmem:[%s9067_s3 + $0x10] sm:$0xff] }
0x1f66   : > { %6232 = vmatpush3.bf16.msra.mxu0 %v6559_v26  ;;  %6249 = vmatprep.subr.mxu1 %v6762_v8 }
0x1f67   : > { %6250 = vmatpush3.msra.mxu1 %v8449_v18 }
0x1f68   : > { %6251 = vmatprep.subr.mxu1 %v6762_v8 }
0x1f69   : > { %6234 = vmatmul.mubr.msk.bf16.vlgmr.msra.gmra.mxu0 %vm380_vm2, %v4202_v41  ;;  %6252 = vmatpush3.msra.mxu1 %v8457_v40 }
0x1f6a   : > { %6253 = vmatprep.subr.mxu1 %v6762_v8  ;;  %4911 = vmatprep.mubr.bf16.mxu0 %v6765_v0 }
0x1f6b   : > { %6254 = vmatpush3.msra.mxu1 %v8469_v35 }
0x1f6c   : > { %6255 = vmatprep.subr.mxu1 %v6762_v8 }
0x1f6d   : > { %6256 = vmatpush3.msra.mxu1 %v8478_v33 }
0x1f6e   : > { %6257 = vmatprep.subr.mxu1 %v6762_v8 }
0x1f6f   : > { %6258 = vmatpush3.msra.mxu1 %v8487_v20 }
0x1f70   : > { %6259 = vmatprep.subr.mxu1 %v6762_v8 }
0x1f71   : > { %6260 = vmatpush3.msra.mxu1 %v8496_v11  ;;  %v8750_v11 = vld [vmem:[%s9067_s3 + $0x8] sm:$0xff] }
0x1f72   : > { %6261 = vmatprep.subr.mxu1 %v6762_v8 }
0x1f73   : > { %6262 = vmatpush3.msra.mxu1 %v8505_v63 }
0x1f74   : > { %6263 = vmatprep.subr.mxu1 %v6762_v8 }
0x1f75   : > { %6264 = vmatpush3.msra.mxu1 %v8514_v61  ;;  %v8756_v61 = vld [vmem:[%s9067_s3 + $0x18] sm:$0xff] }
0x1f76   : > { %6265 = vmatprep.subr.mxu1 %v6762_v8 }
0x1f77   : > { %6266 = vmatpush3.msra.mxu1 %v8523_v49 }
0x1f78   : > { %6267 = vmatprep.subr.mxu1 %v6762_v8 }
0x1f79   : > { %6268 = vmatpush3.msra.mxu1 %v8532_v50 }
0x1f7a   : > { %6272 = vmatprep.subr.bf16.mxu1 %v6762_v8 }
0x2019   : > { %v4368_v4 = vpop.f32.mrf.mxu0  ;;  %v4411_v47 = vpop.f32.mrf.mxu1 }
0x201a   : > { %v4461_v22 = vmul.f32 %v8738_v45, %v4368_v4  ;;  %v4463_v18 = vmul.f32 %v8744_v27, %v4411_v47 }
0x201b   : > { %v4370_v40 = vpop.f32.mrf.mxu0  ;;  %v4413_v35 = vpop.f32.mrf.mxu1 }
0x201c   : > { %v4481_v33 = vrot.slane %v4461_v22, 4  ;;  %v4483_v20 = vrot.slane %v4463_v18, 4  ;;  %v4462_v63 = vmul.f32 %v8750_v11, %v4370_v40  ;;  %v4464_v49 = vmul.f32 %v8756_v61, %v4413_v35 }
0x201d   : > { %v4372_v50 = vpop.f32.mrf.mxu0  ;;  %v4415_v13 = vpop.f32.mrf.mxu1 }
0x201e   : > { %4506 = vst [vmem:[#allocation2] sm:$0xf0] %v4481_v33  ;;  %4508 = vst [vmem:[#allocation2 + $0x10] sm:$0xf0] %v4483_v20  ;;  %v4482_v37 = vrot.slane %v4462_v63, 4  ;;  %v4484_v12 = vrot.slane %v4464_v49, 4  ;;  %v4466_v23 = vmul.f32 %v8762_v3, %v4372_v50  ;;  %v4468_v25 = vmul.f32 %v8768_v7, %v4415_v13 }
0x201f   : > { %v4374_v24 = vpop.f32.mrf.mxu0  ;;  %v4417_v58 = vpop.f32.mrf.mxu1 }
0x2020   : > { %4507 = vst [vmem:[#allocation2 + $0x8] sm:$0xf0] %v4482_v37  ;;  %4509 = vst [vmem:[#allocation2 + $0x18] sm:$0xf0] %v4484_v12  ;;  %v4486_v6 = vrot.slane %v4466_v23, 4  ;;  %v4490_v34 = vrot.slane %v4468_v25, 4  ;;  %v4467_v36 = vmul.f32 %v8774_v57, %v4374_v24  ;;  %v4469_v28 = vmul.f32 %v8780_v60, %v4417_v58 }
0x2021   : > { %v8814_v23 = vstv %s4072_s25  ;;  %v6701_v25 = vld [vmem:[%s9068_s4 + $0x8] sm:$0x1]  ;;  %v6702_v58 = vld [vmem:[%s9068_s4] sm:$0xff] }
0x2022   : > { %v4487_v52 = vsel %vm795_vm5, %v4481_v33, %v4486_v6  ;;  %v4491_v38 = vsel %vm795_vm5, %v4483_v20, %v4490_v34  ;;  %v4488_v30 = vrot.slane %v4467_v36, 4  ;;  %v4492_v9 = vrot.slane %v4469_v28, 4 }
0x2023   : > { %4511 = vst [vmem:[#allocation2 + $0x28] sm:$0x1f] %v4487_v52  ;;  %4513 = vst [vmem:[#allocation2 + $0x38] sm:$0x1f] %v4491_v38  ;;  %v4518_v24 = vmul.f32 %v6701_v25, %v8814_v23  ;;  %v4517_v6 = vmul.f32 %v6702_v58, %v8814_v23 }
0x2024   : > { %v4489_v53 = vsel %vm795_vm5, %v4482_v37, %v4488_v30  ;;  %v4493_v21 = vsel %vm795_vm5, %v4484_v12, %v4492_v9 }
0x2025   : > { %4512 = vst [vmem:[#allocation2 + $0x30] sm:$0x1f] %v4489_v53  ;;  %4514 = vst [vmem:[#allocation2 + $0x40] sm:$0x1f] %v4493_v21  ;;  %v4525_v31 = vld [vmem:[#allocation2] sm:$0xfe]  ;;  %v4520_v34 = vadd.f32 %v4518_v24, %v7213_v51  ;;  %v4519_v28 = vadd.f32 %v4517_v6, %v7213_v51 }
0x2026   : > { %v4529_v46 = vrot.slane %v4525_v31, 1  ;;  %v4577_v18 = vld [vmem:[#allocation2 + $0x10] sm:$0xe0]  ;;  %v4521_v38 = vld [vmem:[#allocation2] sm:$0xff] }
0x2027   : > { %v4551_v32 = vld [vmem:[#allocation2 + $0x8] sm:$0xf8]  ;;  %v4581_v63 = vrot.slane %v4577_v18, 5  ;;  %v4603_v49 = vld [vmem:[#allocation2 + $0x18] sm:$0x80]  ;;  %v4523_v31 = vadd.f32 %v4521_v38, %v4519_v28 }
0x2028   : > { %v4555_v47 = vrot.slane %v4551_v32, 3  ;;  %v4607_v37 = vrot.slane %v4603_v49, 7  ;;  %v4540_v30 = vld [vmem:[#allocation2 + $0x8] sm:$0xfc] }
0x2029   : > { %v4454_v10 = vpop.f32.mrf.mxu0 }
0x202a   : > { %v4465_v17 = vmul.f32 %v8790_v14, %v4454_v10  ;;  %v4526_v62 = vld [vmem:[#allocation2 + $0x28] sm:$0x3]  ;;  %v4578_v26 = vld [vmem:[#allocation2 + $0x38] sm:$0x3f] }
0x202b   : > { %v6235_v44 = vpop.f32.mrf.mxu0  ;;  %v4530_v39 = vrot.slane %v4526_v62, 1  ;;  %v4582_v35 = vrot.slane %v4578_v26, 5  ;;  %v4522_v36 = vld [vmem:[#allocation2 + $0x28] sm:$0x1]  ;;  %v4567_v10 = vld [vmem:[#allocation2 + $0x38] sm:$0x1f] }
0x202c   : > { %v4485_v59 = vrot.slane %v4465_v17, 4  ;;  %v4552_v29 = vld [vmem:[#allocation2 + $0x30] sm:$0xf]  ;;  %v4604_v20 = vld [vmem:[#allocation2 + $0x40] sm:$0xff]  ;;  %v4524_v9 = vadd.f32 %v4522_v36, %v4520_v34  ;;  %v4544_v44 = vrot.slane %v4540_v30, 2  ;;  %v4571_v32 = vrot.slane %v4567_v10, 4 }
0x202d   : > { %v4457_v19 = vpop.f32.mrf.mxu0  ;;  %4534 = vrot.lane.b32.xlu0 %v4530_v39, %s6764_s24  ;;  %v4531_v1 = vsel %vm850_vm6, %v4529_v46, %v4530_v39  ;;  %v4556_v41 = vrot.slane %v4552_v29, 3  ;;  %v4583_v50 = vsel %vm905_vm8, %v4581_v63, %v4582_v35  ;;  %v4608_v13 = vrot.slane %v4604_v20, 7  ;;  %v4541_v52 = vld [vmem:[#allocation2 + $0x30] sm:$0x7]  ;;  %v4566_v46 = vld [vmem:[#allocation2 + $0x10] sm:$0xf0] }
0x202e   : > { %v4470_v15 = vmul.f32 %v8798_v54, %v4457_v19  ;;  %4532 = vrot.lane.b32.xlu1 %v4531_v1, %s6764_s24  ;;  %v4545_v53 = vrot.slane %v4541_v52, 2  ;;  %v4593_v51 = vld [vmem:[#allocation2 + $0x40] sm:$0x7f]  ;;  %v4570_v26 = vrot.slane %v4566_v46, 4 }
0x202f   : > { %v6236_v4 = vpop.f32.mrf.mxu0  ;;  %v4557_v40 = vsel %vm878_vm7, %v4555_v47, %v4556_v41  ;;  %v4609_v12 = vsel %vm933_vm9, %v4607_v37, %v4608_v13  ;;  %v4592_v47 = vld [vmem:[#allocation2 + $0x18] sm:$0xc0] }
0x2030   : > { %v4494_v22 = vrot.slane %v4470_v15, 4  ;;  %v4546_v29 = vsel %vm866_vm11, %v4544_v44, %v4545_v53  ;;  %v4572_v18 = vsel %vm795_vm5, %v4570_v26, %v4571_v32  ;;  %v4596_v49 = vrot.slane %v4592_v47, 6 }
0x2031   : > { %4560 = vrot.lane.b32.xlu0 %v4556_v41, %s6764_s24 }
0x2032   : > { %v4495_v33 = vsel %vm795_vm5, %v4485_v59, %v4494_v22  ;;  %4558 = vrot.lane.b32.xlu1 %v4557_v40, %s6764_s24  ;;  %v4597_v40 = vrot.slane %v4593_v51, 6 }
0x2033   : > { %4515 = vst.msk [vmem:[#allocation2 + $0x48] sm:$0x1f] %vm831_vm10, %v4495_v33 }
0x2034   : > { %v4598_v37 = vsel %vm921_vm12, %v4596_v49, %v4597_v40  ;;  %v6564_v49 = vld [vmem:[%s9066_s2 + $0x50] ss:$20 sps:$4 sm:$0xff]  }
0x2035   : > { %4586 = vrot.lane.b32.xlu0 %v4582_v35, %s6764_s24 }
0x2036   : > { %4584 = vrot.lane.b32.xlu1 %v4583_v50, %s6764_s24 }
0x2039   : > { %4612 = vrot.lane.b32.xlu0 %v4608_v13, %s6764_s24 }
0x203a   : > { %4610 = vrot.lane.b32.xlu1 %v4609_v12, %s6764_s24  ;;  %v4619_v12 = vld [vmem:[#allocation2 + $0x70] sm:$0x1]  ;;  %v4618_v28 = vld [vmem:[#allocation2 + $0x48] sm:$0xff] }
0x209f   : > { %v4535_v21 = vpop.permute.xlu0 %4534 }
0x20a0   : > { %v4539_v17 = vadd.f32 %v4535_v21, %v4524_v9  ;;  %v4533_v62 = vpop.permute.xlu1 %4532 }
0x20a1   : > { %v4538_v39 = vadd.f32 %v4533_v62, %v4523_v31 }
0x20a2   : > { %v4550_v59 = vadd.f32 %v4545_v53, %v4539_v17 }
0x20a3   : > { %v4561_v19 = vpop.permute.xlu0 %4560  ;;  %v4549_v1 = vadd.f32 %v4546_v29, %v4538_v39 }
0x20a4   : > { %v4565_v41 = vadd.f32 %v4561_v19, %v4550_v59  ;;  %v4559_v15 = vpop.permute.xlu1 %4558 }
0x20a5   : > { %v4564_v4 = vadd.f32 %v4559_v15, %v4549_v1 }
0x20a6   : > { %v4576_v22 = vadd.f32 %v4571_v32, %v4565_v41 }
0x20a7   : > { %v4587_v35 = vpop.permute.xlu0 %4586  ;;  %v4575_v33 = vadd.f32 %v4572_v18, %v4564_v4 }
0x20a8   : > { %v4591_v20 = vadd.f32 %v4587_v35, %v4576_v22  ;;  %v4585_v63 = vpop.permute.xlu1 %4584  ;;  %v6562_v35 = vld [vmem:[%s9066_s2 + $0x7c] ss:$20 sps:$4 sm:$0xff]  }
0x20a9   : > { %v4590_v50 = vadd.f32 %v4585_v63, %v4575_v33  ;;  %v6563_v33 = vld [vmem:[%s9066_s2 + $0x88] ss:$20 sps:$4 sm:$0xff]   ;;  %4887 = vmatprep.subr.bf16.mxu0 %v6562_v35  ;;  %v6567_v63 = vld [vmem:[%s9066_s2 + $0x60] ss:$20 sps:$4 sm:$0xff]  }
0x20aa   : > { %v4602_v13 = vadd.f32 %v4597_v40, %v4591_v20  ;;  %v6560_v40 = vld [vmem:[%s9066_s2 + $0x78] ss:$20 sps:$4 sm:$0xff]   ;;  %v6566_v20 = vld [vmem:[%s9066_s2 + $0x54] ss:$20 sps:$4 sm:$0xff]  }
0x20ab   : > { %v4613_v25 = vpop.permute.xlu0 %4612  ;;  %v4601_v24 = vadd.f32 %v4598_v37, %v4590_v50  ;;  %4888 = vmatpush1.bf16.msra.mxu0 %v6560_v40  ;;  %v6570_v50 = vld [vmem:[%s9066_s2 + $0x2c] ss:$20 sps:$4 sm:$0xff]   ;;  %v6711_v40 = vld [vmem:[%s9071_s7 + $0x38] sm:$0xff]  ;;  %v6712_v35 = vld [vmem:[%s9071_s7 + $0x30] sm:$0xff] }
0x20ac   : > { %v4617_v58 = vadd.f32 %v4613_v25, %v4602_v13  ;;  %v4611_v6 = vpop.permute.xlu1 %4610  ;;  %4889 = vmatprep.subr.bf16.mxu0 %v6566_v20  ;;  %v6568_v13 = vld [vmem:[%s9066_s2 + $0x28] ss:$20 sps:$4 sm:$0xff]   ;;  %v6714_v20 = vld [vmem:[%s9071_s7 + $0x20] sm:$0xff] }
0x20ad   : > { %v4616_v34 = vadd.f32 %v4611_v6, %v4601_v24  ;;  %v6574_v6 = vld [vmem:[%s9066_s2 + $0x4] ss:$20 sps:$4 sm:$0xff]  }
0x20ae   : > { %v8829_v36 = vadd.f32 %v4619_v12, %v4617_v58  ;;  %v6571_v58 = vld [vmem:[%s9066_s2 + $0x38] ss:$20 sps:$4 sm:$0xff]  }
0x20af   : > { %v8831_v52 = vadd.f32 %v4618_v28, %v4616_v34  ;;  %4890 = vmatpush1.bf16.msra.mxu0 %v6564_v49  ;;  %v6572_v34 = vld [vmem:[%s9066_s2] ss:$20 sps:$4 sm:$0xff]   ;;  %v6575_v28 = vld [vmem:[%s9066_s2 + $0x10] ss:$20 sps:$4 sm:$0xff]  }
0x20b0   : > { %v4632_v38 = vmul.f32 %v8829_v36, %v8829_v36  ;;  %v4623_v46 = vsel %vm382_vm3, %v8829_v36, 0.0  ;;  %4891 = vmatprep.subr.bf16.mxu0 %v6570_v50  ;;  %v6716_v49 = vld [vmem:[%s9071_s7 + $0x10] sm:$0xff]  ;;  %v6717_v50 = vld [vmem:[%s9071_s7 + $0x8] sm:$0xff] }
0x20b1   : > { %v4631_v30 = vmul.f32 %v8831_v52, %v8831_v52  ;;  %v4622_v59 = vsel %vm380_vm2, %v8831_v52, 0.0 }
0x20b2   : > { %v4634_v9 = vsel %vm382_vm3, %v4632_v38, 0.0  ;;  %v4624_v29 = vadd.f32 %v4623_v46, %v4622_v59  ;;  %v6578_v38 = vld [vmem:[%s9066_s2 + $0x84] ss:$20 sps:$4 sm:$0xff]  }
0x20b3   : > { %v4633_v53 = vsel %vm380_vm2, %v4631_v30, 0.0  ;;  %4892 = vmatpush1.bf16.msra.mxu0 %v6568_v13  ;;  %v6718_v13 = vld [vmem:[%s9071_s7] sm:$0xff] }
0x20b4   : > { %v4635_v21 = vadd.f32 %v4634_v9, %v4633_v53  ;;  %v4625_v32 = vrot.slane %v4624_v29, 4  ;;  %4893 = vmatprep.subr.bf16.mxu0 %v6574_v6 }
0x20b6   : > { %v4636_v31 = vrot.slane %v4635_v21, 4  ;;  %v4626_v19 = vadd.f32 %v4625_v32, %v4624_v29 }
0x20b7   : > { %4894 = vmatpush1.bf16.msra.mxu0 %v6572_v34 }
0x20b8   : > { %v4637_v10 = vadd.f32 %v4636_v31, %v4635_v21  ;;  %v4627_v1 = vrot.slane %v4626_v19, 2  ;;  %4930 = vmatprep.subr.bf16.mxu0 %v6578_v38 }
0x20ba   : > { %v4638_v17 = vrot.slane %v4637_v10, 2  ;;  %v4628_v51 = vadd.f32 %v4627_v1, %v4626_v19  ;;  %v6582_v19 = vld [vmem:[%s9066_s2 + $0x30] ss:$20 sps:$4 sm:$0xff]   ;;  %v6587_v1 = vld [vmem:[%s9066_s2 + $0xc] ss:$20 sps:$4 sm:$0xff]  }
0x20bc   : > { %v4639_v62 = vadd.f32 %v4638_v17, %v4637_v10  ;;  %v4629_v41 = vrot.slane %v4628_v51, 1 }
0x20be   : > { %v4640_v44 = vrot.slane %v4639_v62, 1  ;;  %v4630_v15 = vadd.f32 %v4629_v41, %v4628_v51  ;;  %v6703_v51 = vld [vmem:[%s9071_s7 + $0x78] sm:$0xff]  ;;  %v6704_v41 = vld [vmem:[%s9071_s7 + $0x70] sm:$0xff] }
0x20c0   : > { %v4641_v39 = vadd.f32 %v4640_v44, %v4639_v62 }
0x20c2   : > { %4643 = vrot.lane.b32.xlu1 %v4641_v39, %s6764_s24 }
0x2134   : > { %v4644_v26 = vpop.permute.xlu1 %4643 }
0x2135   : > { %v4646_v4 = vsel %vm380_vm2, %v4630_v15, %v4644_v26  ;;  %v6705_v15 = vld [vmem:[%s9071_s7 + $0x68] sm:$0xff]  ;;  %v6706_v26 = vld [vmem:[%s9071_s7 + $0x60] sm:$0xff] }
0x2136   : > { %6270 = vmatmul.mubr.f32.vlgmr.msra.gmra.mxu1 %v4646_v4  ;;  %v6707_v4 = vld [vmem:[%s9071_s7 + $0x58] sm:$0xff] }
0x2137   : > { %6280 = vmatprep.mubr.msk.bf16.mxu1 %vm6763_vm4, %v6762_v8  ;;  %6273 = vmatpush3.bf16.msra.mxu1 %v6563_v33  ;;  %v6713_v33 = vld [vmem:[%s9071_s7 + $0x28] sm:$0xff] }
0x2138   : > { %6274 = vmatprep.subr.bf16.mxu1 %v6762_v8 }
0x213b   : > { %6275 = vmatpush3.bf16.msra.mxu1 %v6567_v63  ;;  %v6715_v63 = vld [vmem:[%s9071_s7 + $0x18] sm:$0xff] }
0x213c   : > { %6276 = vmatprep.subr.bf16.mxu1 %v6762_v8 }
0x213f   : > { %6277 = vmatpush3.bf16.msra.mxu1 %v6571_v58 }
0x2140   : > { %6278 = vmatprep.subr.bf16.mxu1 %v6762_v8 }
0x2143   : > { %6279 = vmatpush3.bf16.msra.mxu1 %v6575_v28 }
0x21f6   : > { %v4713_v47 = vpop.f32.mrf.mxu1 }
0x21f7   : > { %v4717_v22 = vmul.f32 %v4713_v47, %v4713_v47  ;;  %v4729_v21 = vrot.slane %v4713_v47, %v7028_v5 }
0x21f8   : > { %v6271_v18 = vpop.f32.mrf.mxu1 }
0x21f9   : > { %4719 = vrot.lane.b32.xlu0 %v4717_v22, %s6764_s24  ;;  %v4730_v31 = vsub.f32 %v8831_v52, %v4729_v21  ;;  %v4731_v10 = vsub.f32 %v8829_v36, %v4729_v21  ;;  %v6581_v52 = vld [vmem:[%s9066_s2 + $0x5c] ss:$20 sps:$4 sm:$0xff]   ;;  %v6584_v36 = vld [vmem:[%s9066_s2 + $0x34] ss:$20 sps:$4 sm:$0xff]   ;;  %v6710_v18 = vld [vmem:[%s9071_s7 + $0x40] sm:$0xff] }
0x21fa   : > { %v6709_v22 = vld [vmem:[%s9071_s7 + $0x48] sm:$0xff] }
0x226b   : > { %v4720_v37 = vpop.permute.xlu0 %4719 }
0x226c   : > { %v4722_v12 = vsub.f32 %v4713_v47, %v4720_v37  ;;  %v6708_v47 = vld [vmem:[%s9071_s7 + $0x50] sm:$0xff] }
0x226e   : > { %v4723_v25 = vmax.f32 %v4722_v12, 0.0 }
0x2270   : > { %v4724_v24 = vadd.f32 1e-05, %v4723_v25 }
0x2272   : > { %6608 = vrsqrt.f32 %v4724_v24 }
0x227f   : > { %v6609_v30 = vpop.eup %6608 }
0x2280   : > { %v4732_v9 = vmul.f32 %v6609_v30, %v7284_v56  ;;  %v6576_v56 = vld [vmem:[%s9066_s2 + $0x80] ss:$20 sps:$4 sm:$0xff]  }
0x2282   : > { %v4736_v53 = vrot.slane %v4732_v9, %v7028_v5 }
0x2284   : > { %4738 = vrot.lane.b32.xlu1 %v4736_v53, %s6764_s24 }
0x22f6   : > { %v4739_v17 = vpop.permute.xlu1 %4738 }
0x22f7   : > { %v4741_v62 = vmul.f32 %v4739_v17, %v4730_v31  ;;  %v4742_v44 = vmul.f32 %v4739_v17, %v4731_v10 }
0x22f9   : > { %v4743_v39 = vadd.f32 %v4741_v62, %v7293_v2  ;;  %v4744_v46 = vadd.f32 %v4742_v44, %v7293_v2  ;;  %v6579_v2 = vld [vmem:[%s9066_s2 + $0x58] ss:$20 sps:$4 sm:$0xff]  }
0x22fb   : > { %v4745_v59 = vmax.f32 %v4743_v39, 0.0  ;;  %v4746_v29 = vmax.f32 %v4744_v46, 0.0 }
0x22fd   : > { %v4747_v32 = vpack.c.bf16 %v4746_v29, %v4745_v59 }
0x22ff   : > { %5552 = vmatmul.mubr.msk.bf16.vlgmr.msra.gmra.mxu0 %vm380_vm2, %v4747_v32  ;;  %6281 = vmatmul.mubr.msk.bf16.vlgmr.msra.gmra.mxu1 %vm380_vm2, %v4747_v32 }
0x2300   : > { %4931 = vmatpush1.bf16.msra.mxu0 %v6576_v56  ;;  %4954 = vmatprep.mubr.bf16.mxu0 %v6765_v0  ;;  %v6585_v0 = vld [vmem:[%s9066_s2 + $0x8] ss:$20 sps:$4 sm:$0xff]  }
0x2301   : > { %4932 = vmatprep.subr.bf16.mxu0 %v6581_v52 }
0x2304   : > { %4933 = vmatpush1.bf16.msra.mxu0 %v6579_v2 }
0x2305   : > { %4934 = vmatprep.subr.bf16.mxu0 %v6584_v36 }
0x2308   : > { %4935 = vmatpush1.bf16.msra.mxu0 %v6582_v19 }
0x2309   : > { %4936 = vmatprep.subr.bf16.mxu0 %v6587_v1 }
0x230c   : > { %4937 = vmatpush1.bf16.msra.mxu0 %v6585_v0 }
0x230d   : > { %6284 = vmatprep.subr.mxu0 %v6762_v8 }
0x230f   : > { %5553 = vmatmul.mubr.msk.bf16.vlgmr.msra.gmra.mxu0 %vm380_vm2, %v4747_v32 }
0x2310   : > { %6285 = vmatpush3.msra.mxu0 %v6703_v51  ;;  %6316 = vmatprep.mubr.msk.f32.mxu0 %vm6763_vm4, %v6762_v8 }
0x2311   : > { %6286 = vmatprep.subr.mxu0 %v6762_v8 }
0x2312   : > { %6287 = vmatpush3.msra.mxu0 %v6704_v41 }
0x2313   : > { %6288 = vmatprep.subr.mxu0 %v6762_v8 }
0x2314   : > { %6289 = vmatpush3.msra.mxu0 %v6705_v15 }
0x2315   : > { %6290 = vmatprep.subr.mxu0 %v6762_v8 }
0x2316   : > { %6291 = vmatpush3.msra.mxu0 %v6706_v26 }
0x2317   : > { %6292 = vmatprep.subr.mxu0 %v6762_v8 }
0x2318   : > { %6293 = vmatpush3.msra.mxu0 %v6707_v4 }
0x2319   : > { %6294 = vmatprep.subr.mxu0 %v6762_v8 }
0x231a   : > { %6295 = vmatpush3.msra.mxu0 %v6708_v47 }
0x231b   : > { %6296 = vmatprep.subr.mxu0 %v6762_v8 }
0x231c   : > { %6297 = vmatpush3.msra.mxu0 %v6709_v22 }
0x231d   : > { %6298 = vmatprep.subr.mxu0 %v6762_v8 }
0x231e   : > { %6299 = vmatpush3.msra.mxu0 %v6710_v18 }
0x231f   : > { %6300 = vmatprep.subr.mxu0 %v6762_v8 }
0x2320   : > { %6301 = vmatpush3.msra.mxu0 %v6711_v40 }
0x2321   : > { %6302 = vmatprep.subr.mxu0 %v6762_v8 }
0x2322   : > { %6303 = vmatpush3.msra.mxu0 %v6712_v35 }
0x2323   : > { %6304 = vmatprep.subr.mxu0 %v6762_v8 }
0x2324   : > { %6305 = vmatpush3.msra.mxu0 %v6713_v33 }
0x2325   : > { %6306 = vmatprep.subr.mxu0 %v6762_v8 }
0x2326   : > { %6307 = vmatpush3.msra.mxu0 %v6714_v20 }
0x2327   : > { %6308 = vmatprep.subr.mxu0 %v6762_v8 }
0x2328   : > { %6309 = vmatpush3.msra.mxu0 %v6715_v63 }
0x2329   : > { %6310 = vmatprep.subr.mxu0 %v6762_v8 }
0x232a   : > { %6311 = vmatpush3.msra.mxu0 %v6716_v49 }
0x232b   : > { %6312 = vmatprep.subr.mxu0 %v6762_v8 }
0x232c   : > { %6313 = vmatpush3.msra.mxu0 %v6717_v50 }
0x232d   : > { %6314 = vmatprep.subr.mxu0 %v6762_v8 }
0x232e   : > { %6315 = vmatpush3.msra.mxu0 %v6718_v13 }
0x23bf   : > { %v4913_v37 = vpop.f32.mrf.mxu0  ;;  %v4999_v12 = vpop.f32.mrf.mxu1 }
0x23c0   : > { %v5006_v25 = vmul.f32 %v8738_v45, %v4913_v37  ;;  %v5010_v24 = vmul.f32 %v8790_v14, %v4999_v12  ;;  %v6719_v37 = vld [vmem:[%s9069_s5 + $0x8] sm:$0x1] }
0x23c1   : > { %v4915_v58 = vpop.f32.mrf.mxu0  ;;  %v6282_v6 = vpop.f32.mrf.mxu1  ;;  %v5062_v12 = vmul.f32 %v6719_v37, %v8814_v23 }
0x23c2   : > { %v5026_v34 = vrot.slane %v5006_v25, 4  ;;  %v5030_v28 = vrot.slane %v5010_v24, 4  ;;  %v5007_v38 = vmul.f32 %v8750_v11, %v4915_v58  ;;  %v6720_v25 = vld [vmem:[%s9069_s5] sm:$0xff] }
0x23c3   : > { %v4917_v30 = vpop.f32.mrf.mxu0  ;;  %v5002_v9 = vpop.f32.mrf.mxu1  ;;  %v5061_v24 = vmul.f32 %v6720_v25, %v8814_v23  ;;  %v5064_v58 = vadd.f32 %v5062_v12, %v7513_v43 }
0x23c4   : > { %5051 = vst [vmem:[#allocation2] sm:$0xf0] %v5026_v34  ;;  %v5027_v8 = vrot.slane %v5007_v38, 4  ;;  %v5011_v53 = vmul.f32 %v8762_v3, %v4917_v30  ;;  %v5015_v21 = vmul.f32 %v8798_v54, %v5002_v9 }
0x23c5   : > { %v4919_v31 = vpop.f32.mrf.mxu0  ;;  %v6283_v10 = vpop.f32.mrf.mxu1 }
0x23c6   : > { %5052 = vst [vmem:[#allocation2 + $0x8] sm:$0xf0] %v5027_v8  ;;  %v5031_v45 = vrot.slane %v5011_v53, 4  ;;  %v5039_v17 = vrot.slane %v5015_v21, 4  ;;  %v5012_v14 = vmul.f32 %v8774_v57, %v4919_v31 }
0x23c8   : > { %v5032_v62 = vsel %vm795_vm5, %v5026_v34, %v5031_v45  ;;  %v5040_v44 = vsel %vm795_vm5, %v5030_v28, %v5039_v17  ;;  %v5033_v11 = vrot.slane %v5012_v14, 4  ;;  %v5063_v34 = vadd.f32 %v5061_v24, %v7513_v43 }
0x23c9   : > { %5056 = vst [vmem:[#allocation2 + $0x28] sm:$0x1f] %v5032_v62  ;;  %5060 = vst.msk [vmem:[#allocation2 + $0x48] sm:$0x1f] %vm831_vm10, %v5040_v44 }
0x23ca   : > { %v5034_v39 = vsel %vm795_vm5, %v5027_v8, %v5033_v11 }
0x23cb   : > { %5057 = vst [vmem:[#allocation2 + $0x30] sm:$0x1f] %v5034_v39  ;;  %v5069_v3 = vld [vmem:[#allocation2] sm:$0xfe] }
0x23cc   : > { %v5073_v32 = vrot.slane %v5069_v3, 1  ;;  %v5065_v28 = vld [vmem:[#allocation2] sm:$0xff] }
0x23cd   : > { %v5095_v36 = vld [vmem:[#allocation2 + $0x8] sm:$0xf8]  ;;  %v5067_v53 = vadd.f32 %v5065_v28, %v5063_v34 }
0x23ce   : > { %v5099_v15 = vrot.slane %v5095_v36, 3  ;;  %v5084_v21 = vld [vmem:[#allocation2 + $0x8] sm:$0xfc] }
0x23cf   : > { %v4956_v54 = vpop.f32.mrf.mxu0  ;;  %v5088_v17 = vrot.slane %v5084_v21, 2 }
0x23d0   : > { %v5008_v46 = vmul.f32 %v8744_v27, %v4956_v54  ;;  %v5070_v59 = vld [vmem:[#allocation2 + $0x28] sm:$0x3] }
0x23d1   : > { %v4958_v29 = vpop.f32.mrf.mxu0  ;;  %v5074_v56 = vrot.slane %v5070_v59, 1  ;;  %v5066_v6 = vld [vmem:[#allocation2 + $0x28] sm:$0x1] }
0x23d2   : > { %v5028_v57 = vrot.slane %v5008_v46, 4  ;;  %v5009_v52 = vmul.f32 %v8756_v61, %v4958_v29  ;;  %v5096_v2 = vld [vmem:[#allocation2 + $0x30] sm:$0xf]  ;;  %v5068_v9 = vadd.f32 %v5066_v6, %v5064_v58 }
0x23d3   : > { %v4960_v19 = vpop.f32.mrf.mxu0  ;;  %5078 = vrot.lane.b32.xlu1 %v5074_v56, %s6764_s24  ;;  %v5075_v1 = vsel %vm850_vm6, %v5073_v32, %v5074_v56  ;;  %v5100_v0 = vrot.slane %v5096_v2, 3  ;;  %v5085_v30 = vld [vmem:[#allocation2 + $0x30] sm:$0x7] }
0x23d4   : > { %5053 = vst [vmem:[#allocation2 + $0x10] sm:$0xf0] %v5028_v57  ;;  %v5029_v51 = vrot.slane %v5009_v52, 4  ;;  %v5013_v41 = vmul.f32 %v8768_v7, %v4960_v19  ;;  %5076 = vrot.lane.b32.xlu0 %v5075_v1, %s6764_s24  ;;  %v5089_v10 = vrot.slane %v5085_v30, 2 }
0x23d5   : > { %v4962_v27 = vpop.f32.mrf.mxu0  ;;  %v5101_v4 = vsel %vm878_vm7, %v5099_v15, %v5100_v0  ;;  %v5163_v15 = vld [vmem:[#allocation2 + $0x70] sm:$0x1] }
0x23d6   : > { %5054 = vst [vmem:[#allocation2 + $0x18] sm:$0xf0] %v5029_v51  ;;  %v5035_v26 = vrot.slane %v5013_v41, 4  ;;  %v5014_v61 = vmul.f32 %v8780_v60, %v4962_v27  ;;  %v5090_v62 = vsel %vm866_vm11, %v5088_v17, %v5089_v10 }
0x23d7   : > { %5104 = vrot.lane.b32.xlu1 %v5100_v0, %s6764_s24 }
0x23d8   : > { %v5036_v47 = vsel %vm795_vm5, %v5028_v57, %v5035_v26  ;;  %v5037_v22 = vrot.slane %v5014_v61, 4  ;;  %5102 = vrot.lane.b32.xlu0 %v5101_v4, %s6764_s24 }
0x23d9   : > { %5058 = vst [vmem:[#allocation2 + $0x38] sm:$0x1f] %v5036_v47 }
0x23da   : > { %v5038_v7 = vsel %vm795_vm5, %v5029_v51, %v5037_v22 }
0x23db   : > { %5059 = vst [vmem:[#allocation2 + $0x40] sm:$0x1f] %v5038_v7  ;;  %v5121_v18 = vld [vmem:[#allocation2 + $0x10] sm:$0xe0] }
0x23dc   : > { %v5125_v33 = vrot.slane %v5121_v18, 5  ;;  %v5110_v3 = vld [vmem:[#allocation2 + $0x10] sm:$0xf0]  ;;  %v5162_v18 = vld [vmem:[#allocation2 + $0x48] sm:$0xff] }
0x23dd   : > { %v5147_v63 = vld [vmem:[#allocation2 + $0x18] sm:$0x80]  ;;  %v5114_v29 = vrot.slane %v5110_v3, 4 }
0x23de   : > { %v5151_v50 = vrot.slane %v5147_v63, 7  ;;  %v5136_v56 = vld [vmem:[#allocation2 + $0x18] sm:$0xc0] }
0x23df   : > { %v5140_v0 = vrot.slane %v5136_v56, 6 }
0x23e0   : > { %v5122_v40 = vld [vmem:[#allocation2 + $0x38] sm:$0x3f] }
0x23e1   : > { %v5126_v35 = vrot.slane %v5122_v40, 5  ;;  %v5111_v11 = vld [vmem:[#allocation2 + $0x38] sm:$0x1f] }
0x23e2   : > { %v5148_v20 = vld [vmem:[#allocation2 + $0x40] sm:$0xff]  ;;  %v5115_v54 = vrot.slane %v5111_v11, 4 }
0x23e3   : > { %5130 = vrot.lane.b32.xlu1 %v5126_v35, %s6764_s24  ;;  %v5127_v60 = vsel %vm905_vm8, %v5125_v33, %v5126_v35  ;;  %v5152_v49 = vrot.slane %v5148_v20, 7  ;;  %v5137_v59 = vld [vmem:[#allocation2 + $0x40] sm:$0x7f] }
0x23e4   : > { %5128 = vrot.lane.b32.xlu0 %v5127_v60, %s6764_s24  ;;  %v5116_v57 = vsel %vm795_vm5, %v5114_v29, %v5115_v54  ;;  %v5141_v52 = vrot.slane %v5137_v59, 6 }
0x23e5   : > { %v5153_v13 = vsel %vm933_vm9, %v5151_v50, %v5152_v49 }
0x23e6   : > { %v5142_v27 = vsel %vm921_vm12, %v5140_v0, %v5141_v52 }
0x23e7   : > { %5156 = vrot.lane.b32.xlu1 %v5152_v49, %s6764_s24 }
0x23e8   : > { %5154 = vrot.lane.b32.xlu0 %v5153_v13, %s6764_s24 }
0x2445   : > { %v5079_v38 = vpop.permute.xlu1 %5078 }
0x2446   : > { %v5077_v8 = vpop.permute.xlu0 %5076  ;;  %v5083_v31 = vadd.f32 %v5079_v38, %v5068_v9 }
0x2447   : > { %v5082_v45 = vadd.f32 %v5077_v8, %v5067_v53 }
0x2448   : > { %v5094_v14 = vadd.f32 %v5089_v10, %v5083_v31 }
0x2449   : > { %v5105_v23 = vpop.permute.xlu1 %5104  ;;  %v5093_v44 = vadd.f32 %v5090_v62, %v5082_v45 }
0x244a   : > { %v5103_v39 = vpop.permute.xlu0 %5102  ;;  %v5109_v43 = vadd.f32 %v5105_v23, %v5094_v14 }
0x244b   : > { %v5108_v46 = vadd.f32 %v5103_v39, %v5093_v44 }
0x244c   : > { %v5120_v32 = vadd.f32 %v5115_v54, %v5109_v43 }
0x244d   : > { %v5119_v36 = vadd.f32 %v5116_v57, %v5108_v46 }
0x2455   : > { %v5131_v2 = vpop.permute.xlu1 %5130 }
0x2456   : > { %v5135_v19 = vadd.f32 %v5131_v2, %v5120_v32  ;;  %v5129_v1 = vpop.permute.xlu0 %5128 }
0x2457   : > { %v5134_v51 = vadd.f32 %v5129_v1, %v5119_v36 }
0x2458   : > { %v5146_v41 = vadd.f32 %v5141_v52, %v5135_v19 }
0x2459   : > { %v5157_v26 = vpop.permute.xlu1 %5156  ;;  %v5145_v61 = vadd.f32 %v5142_v27, %v5134_v51 }
0x245a   : > { %v5161_v4 = vadd.f32 %v5157_v26, %v5146_v41  ;;  %v5155_v47 = vpop.permute.xlu0 %5154 }
0x245b   : > { %v5160_v22 = vadd.f32 %v5155_v47, %v5145_v61 }
0x245c   : > { %v5165_v7 = vadd.f32 %v5163_v15, %v5161_v4 }
0x245d   : > { %v5164_v40 = vadd.f32 %v5162_v18, %v5160_v22 }
0x245e   : > { %v5176_v35 = vmul.f32 %v5165_v7, %v5165_v7  ;;  %v5167_v24 = vsel %vm382_vm3, %v5165_v7, 0.0 }
0x245f   : > { %v5175_v33 = vmul.f32 %v5164_v40, %v5164_v40  ;;  %v5166_v58 = vsel %vm380_vm2, %v5164_v40, 0.0 }
0x2460   : > { %v5178_v20 = vsel %vm382_vm3, %v5176_v35, 0.0  ;;  %v5168_v6 = vadd.f32 %v5167_v24, %v5166_v58 }
0x2461   : > { %v5177_v63 = vsel %vm380_vm2, %v5175_v33, 0.0 }
0x2462   : > { %v5179_v60 = vadd.f32 %v5178_v20, %v5177_v63  ;;  %v5169_v34 = vrot.slane %v5168_v6, 4 }
0x2464   : > { %v5180_v49 = vrot.slane %v5179_v60, 4  ;;  %v5170_v28 = vadd.f32 %v5169_v34, %v5168_v6 }
0x2466   : > { %v5181_v50 = vadd.f32 %v5180_v49, %v5179_v60  ;;  %v5171_v38 = vrot.slane %v5170_v28, 2 }
0x2468   : > { %v5182_v13 = vrot.slane %v5181_v50, 2  ;;  %v5172_v30 = vadd.f32 %v5171_v38, %v5170_v28 }
0x246a   : > { %v5183_v37 = vadd.f32 %v5182_v13, %v5181_v50  ;;  %v5173_v9 = vrot.slane %v5172_v30, 1 }
0x246c   : > { %v5184_v12 = vrot.slane %v5183_v37, 1  ;;  %v5174_v8 = vadd.f32 %v5173_v9, %v5172_v30 }
0x246e   : > { %v5185_v25 = vadd.f32 %v5184_v12, %v5183_v37 }
0x2470   : > { %5187 = vrot.lane.b32.xlu0 %v5185_v25, %s6764_s24 }
0x24e2   : > { %v5188_v53 = vpop.permute.xlu0 %5187 }
0x24e3   : > { %v5190_v21 = vsel %vm380_vm2, %v5174_v8, %v5188_v53 }
0x24e4   : > { %6317 = vmatmul.mubr.f32.vlgmr.msra.gmra.mxu0 %v5190_v21 }
0x25a4   : > { %v5257_v31 = vpop.f32.mrf.mxu0 }
0x25a5   : > { %v5261_v10 = vmul.f32 %v5257_v31, %v5257_v31  ;;  %v5273_v3 = vrot.slane %v5257_v31, %v7028_v5 }
0x25a6   : > { %v6318_v45 = vpop.f32.mrf.mxu0 }
0x25a7   : > { %5263 = vrot.lane.b32.xlu1 %v5261_v10, %s6764_s24  ;;  %v5274_v43 = vsub.f32 %v5164_v40, %v5273_v3  ;;  %v5275_v54 = vsub.f32 %v5165_v7, %v5273_v3 }
0x2619   : > { %v5264_v17 = vpop.permute.xlu1 %5263 }
0x261a   : > { %v5266_v14 = vsub.f32 %v5257_v31, %v5264_v17 }
0x261c   : > { %v5267_v62 = vmax.f32 %v5266_v14, 0.0 }
0x261e   : > { %v5268_v23 = vadd.f32 1e-05, %v5267_v62 }
0x2620   : > { %6610 = vrsqrt.f32 %v5268_v23 }
0x262d   : > { %v6611_v44 = vpop.eup %6610 }
0x262e   : > { %v5276_v11 = vmul.f32 %v6611_v44, %v7531_v55 }
0x2630   : > { %v5280_v39 = vrot.slane %v5276_v11, %v7028_v5 }
0x2632   : > { %5282 = vrot.lane.b32.xlu0 %v5280_v39, %s6764_s24 }
0x26a4   : > { %v5283_v46 = vpop.permute.xlu0 %5282 }
0x26a5   : > { %v5285_v59 = vmul.f32 %v5283_v46, %v5274_v43  ;;  %v5286_v29 = vmul.f32 %v5283_v46, %v5275_v54 }
0x26a7   : > { %v5287_v56 = vadd.f32 %v5285_v59, %v7539_v48  ;;  %v5288_v32 = vadd.f32 %v5286_v29, %v7539_v48 }
0x26a9   : > { %v5289_v57 = vmul.f32 0.020833334, %v5287_v56  ;;  %v5290_v52 = vmul.f32 0.020833334, %v5288_v32 }
0x26ab   : > { %v5291_v55 = vadd.f32 %v5289_v57, %v8603_v42  ;;  %v5292_v2 = vadd.f32 %v5290_v52, %v8606_v16 }
0x26ad   : > { %5293 = vst.msk [vmem:[%s6849_s18] sm:$0xff] %vm380_vm2, %v5291_v55 }
0x26ae   : > { %5294 = vst.msk [vmem:[%s6849_s18 + $0x8] sm:$0x1] %vm382_vm3, %v5292_v2 }
0x26af PF: > { %s18_s9 = sadd.s32 1, %s6759_s9   ;;  %s9073_s27 = smov %s6751_s29 }
0x26b0   : > { %p15_p7 = scmp.ge.s32.totalorder %s18_s9, 18   ;;  %s9074_s28 = smov %s6755_s30 }
0x26b1   : > { %s9075_s29 = smov %s9078_s10  ;;  %s9076_s30 = smov %s9082_s11 }
0x26b2   :  { %17 = sbr.rel (!%p15_p7) target bundleno = 3 (0x3), region = 86 }

</bundles_post_ra>
